<compile_context>
chip_gen: v6e
topology: v6e:2x2x1
jax: 0.10.0
libtpu: 0.0.40
codegen_flags: <defaults>
</compile_context>

<pallas_src>
import functools
import math

import numpy as np
import jax
import jax.numpy as jnp
from jax.experimental import pallas as pl
from jax.experimental.pallas import tpu as pltpu

_EPS = 1e-5                       # torch InstanceNorm2d default eps
_SLOPE = 0.2                      # LeakyReLU negative slope
_INV_SQRT2 = 1.0 / math.sqrt(2.0)
_LANE = 128                       # pad channel dims to the lane width
_ACT_DTYPE = jnp.bfloat16         # inter-stage activation storage dtype
_HIGH = jax.lax.Precision.HIGHEST  # only for the tiny style-fc matmuls (wrapper)


def _round_up(n, m):
    return ((n + m - 1) // m) * m


def _geom(hs, ws):
    """Layout constants for the flattened zero-padded conv grid.

    Row m of an activation array maps to padded-grid cell
    (i, j) = ((m - E) // P, (m - E) % P); E zero rows at each end let the
    in-kernel 3x3 conv read every tap as a plain row-shifted slice.
    """
    p = ws + 2                      # padded row stride
    npad = (hs + 2) * p             # padded grid size
    e2 = _round_up(p + 1, 8)        # halo rows of conv2's input (stage-2 output)
    e1 = _round_up(e2 + p + 1, 8)   # halo rows of conv1's input (stage-1 output)
    return p, npad, e1, e2


# --------------------------------------------------------------------------- #
# In-kernel helpers
# --------------------------------------------------------------------------- #
def _norm_mod_lrelu(v, mod, mask, count):
    """Masked InstanceNorm + AdaIN modulation + LeakyReLU(0.2) on (L, C) f32."""
    inv_n = 1.0 / count
    vm = v * mask                                              # zero non-interior rows
    mean = jnp.sum(vm, axis=0, keepdims=True) * inv_n
    ex2 = jnp.sum(vm * v, axis=0, keepdims=True) * inv_n       # mask * v^2
    var = jnp.maximum(ex2 - mean * mean, 0.0)                  # single pass, f32 accum
    scale = mod[0:1, :]                                        # (1 + gamma)
    beta = mod[1:2, :]
    y = scale * ((v - mean) * jax.lax.rsqrt(var + _EPS)) + beta
    y = jnp.maximum(y, _SLOPE * y)                             # LeakyReLU via one vmax
    return y * mask                                            # re-zero halo/pad rows


def _conv3x3_taps(zf_ref, w_ref, row_off, p, l_out):
    """3x3 conv as 9 row-shifted (L, Cin) @ (Cin, Cout) bf16 MXU matmuls."""
    acc = None
    for dh in range(3):
        for dw in range(3):
            start = row_off + dh * p + dw
            tap = zf_ref[pl.ds(start, l_out), :].astype(jnp.bfloat16)
            part = jnp.dot(tap, w_ref[dh * 3 + dw],
                           preferred_element_type=jnp.float32)
            acc = part if acc is None else acc + part
    return acc


# ----------------- kernel 1: AdaIN(norm1) + LeakyReLU ----------------------- #
def _stage1_kernel(x_ref, mod_ref, mask_ref, o_ref, *, count):
    x = x_ref[0].astype(jnp.float32)            # (L, Cin_p)
    mod = mod_ref[0].astype(jnp.float32)        # (2, Cin_p): [1+gamma ; beta]
    mask = mask_ref[...]                        # (L, 1)
    o_ref[0] = _norm_mod_lrelu(x, mod, mask, count).astype(o_ref.dtype)


# --------- kernel 2: conv1 (in-kernel taps) + AdaIN(norm2) + LeakyReLU ------ #
def _stage2_kernel(z_ref, w_ref, b_ref, mod_ref, mask_ref, o_ref, zf_ref,
                   *, p, row_off, count):
    # Stage the bf16 HBM tile once into an f32 VMEM scratch so the nine shifted
    # tap reads are plain f32 sublane-offset loads.
    zf_ref[...] = z_ref[0].astype(jnp.float32)
    l_out = o_ref.shape[1]
    c = _conv3x3_taps(zf_ref, w_ref, row_off, p, l_out)
    c = c + b_ref[...].astype(jnp.float32)      # (L_out, Cout_p)
    mod = mod_ref[0].astype(jnp.float32)
    mask = mask_ref[...]
    o_ref[0] = _norm_mod_lrelu(c, mod, mask, count).astype(o_ref.dtype)


# ------------ kernel 3: conv2 + 1x1 shortcut + residual merge --------------- #
def _stage3_kernel(*refs, p, row_off, merge, learned_sc):
    if merge and learned_sc:
        z_ref, w_ref, b_ref, xsc_ref, scw_ref, o_ref, zf_ref = refs
    elif merge:
        z_ref, w_ref, b_ref, xsc_ref, o_ref, zf_ref = refs
        scw_ref = None
    else:
        z_ref, w_ref, b_ref, o_ref, zf_ref = refs
        xsc_ref = scw_ref = None
    zf_ref[...] = z_ref[0].astype(jnp.float32)
    l_out = o_ref.shape[1]
    r = _conv3x3_taps(zf_ref, w_ref, row_off, p, l_out)
    r = r + b_ref[...].astype(jnp.float32)
    if merge:
        if learned_sc:
            sc = jnp.dot(xsc_ref[0], scw_ref[...],
                         preferred_element_type=jnp.float32)
        else:
            sc = xsc_ref[0].astype(jnp.float32)
        r = (r + sc) * _INV_SQRT2
    o_ref[0] = r.astype(o_ref.dtype)


# --------------------------------------------------------------------------- #
# pallas_call wrappers
# --------------------------------------------------------------------------- #
def _block_spec(shape_wo_batch):
    n = len(shape_wo_batch)
    return pl.BlockSpec((1,) + tuple(shape_wo_batch), lambda b: (b,) + (0,) * n)


def _full_spec(shape):
    n = len(shape)
    return pl.BlockSpec(tuple(shape), lambda b: (0,) * n)


def _mosaic_params(vmem_need_bytes):
    limit = int(min(max(2 * vmem_need_bytes, 16 * 1024 * 1024), 96 * 1024 * 1024))
    return pltpu.CompilerParams(dimension_semantics=("parallel",),
                                vmem_limit_bytes=limit)


def _stage1_call(x_ext, mod, mask, *, count):
    b_sz, l, c = x_ext.shape
    need = 2 * (l * c * 2 + 2 * c * 4 + l * 4) + 2 * (l * c * 2)
    cost = pl.CostEstimate(
        flops=int(b_sz * l * c * 10),
        transcendentals=int(b_sz * c),
        bytes_accessed=int(b_sz * (2 * l * c * 2 + l * 4 + 2 * c * 4)))
    kernel = functools.partial(_stage1_kernel, count=count)
    return pl.pallas_call(
        kernel,
        out_shape=jax.ShapeDtypeStruct((b_sz, l, c), _ACT_DTYPE),
        grid_spec=pltpu.PrefetchScalarGridSpec(
            num_scalar_prefetch=0,
            grid=(b_sz,),
            in_specs=[_block_spec((l, c)),      # x in halo layout
                      _block_spec((2, c)),      # [1+gamma ; beta]
                      _full_spec((l, 1))],      # interior mask
            out_specs=_block_spec((l, c)),
        ),
        compiler_params=_mosaic_params(need),
        cost_estimate=cost,
    )(x_ext, mod, mask)


def _stage2_call(z, w, b, mod, mask, *, p, row_off, count, l_out):
    b_sz, l_in, cin = z.shape
    cout = w.shape[-1]
    need = (2 * (l_in * cin * 2 + 9 * cin * cout * 2 + cout * 4 + 2 * cout * 4
                 + l_out * 4)
            + 2 * (l_out * cout * 2) + l_in * cin * 4)
    cost = pl.CostEstimate(
        flops=int(b_sz * (18 * l_out * cin * cout + 14 * l_out * cout)),
        transcendentals=int(b_sz * cout),
        bytes_accessed=int(b_sz * (l_in * cin * 2 + l_out * cout * 2)
                           + 9 * cin * cout * 2))
    kernel = functools.partial(_stage2_kernel, p=p, row_off=row_off, count=count)
    return pl.pallas_call(
        kernel,
        out_shape=jax.ShapeDtypeStruct((b_sz, l_out, cout), _ACT_DTYPE),
        grid_spec=pltpu.PrefetchScalarGridSpec(
            num_scalar_prefetch=0,
            grid=(b_sz,),
            in_specs=[_block_spec((l_in, cin)),     # conv1 input (halo layout)
                      _full_spec((9, cin, cout)),   # conv1 weights (9 taps)
                      _full_spec((1, cout)),        # conv1 bias
                      _block_spec((2, cout)),       # [1+gamma ; beta]
                      _full_spec((l_out, 1))],      # interior mask
            out_specs=_block_spec((l_out, cout)),
            scratch_shapes=[pltpu.VMEM((l_in, cin), jnp.float32)],
        ),
        compiler_params=_mosaic_params(need),
        cost_estimate=cost,
    )(z, w, b, mod, mask)


def _stage3_call(z, w, b, xsc, scw, *, p, row_off, l_out, merge, learned_sc,
                 out_dtype):
    b_sz, l_in, cmid = z.shape
    cout = w.shape[-1]
    kernel = functools.partial(_stage3_kernel, p=p, row_off=row_off,
                               merge=merge, learned_sc=learned_sc)
    in_specs = [_block_spec((l_in, cmid)),
                _full_spec((9, cmid, cout)),
                _full_spec((1, cout))]
    args = [z, w, b]
    need = (2 * (l_in * cmid * 2 + 9 * cmid * cout * 2 + cout * 4)
            + 2 * l_out * cout * 4 + l_in * cmid * 4)
    sc_flops = 0
    if merge:
        cin = xsc.shape[-1]
        in_specs.append(_block_spec((l_out, cin)))
        args.append(xsc)
        need += 2 * l_out * cin * 2
        if learned_sc:
            in_specs.append(_full_spec((cin, cout)))
            args.append(scw)
            need += 2 * cin * cout * 2
            sc_flops = 2 * l_out * cin * cout
    cost = pl.CostEstimate(
        flops=int(b_sz * (18 * l_out * cmid * cout + sc_flops + 2 * l_out * cout)),
        transcendentals=0,
        bytes_accessed=int(b_sz * (l_in * cmid * 2 + l_out * cout * 4)))
    return pl.pallas_call(
        kernel,
        out_shape=jax.ShapeDtypeStruct((b_sz, l_out, cout), out_dtype),
        grid_spec=pltpu.PrefetchScalarGridSpec(
            num_scalar_prefetch=0,
            grid=(b_sz,),
            in_specs=in_specs,
            out_specs=_block_spec((l_out, cout)),
            scratch_shapes=[pltpu.VMEM((l_in, cmid), jnp.float32)],
        ),
        compiler_params=_mosaic_params(need),
        cost_estimate=cost,
    )(*args)


# --------------------------------------------------------------------------- #
# XLA-side layout plumbing (pure data movement, fused by XLA)
# --------------------------------------------------------------------------- #
def _interior_mask(l, e, p, hs, ws):
    k = np.arange(l) - e
    i = k // p
    j = k - i * p
    valid = ((k >= 0) & (k < (hs + 2) * p)
             & (i >= 1) & (i <= hs) & (j >= 1) & (j <= ws))
    return jnp.asarray(valid.astype(np.float32).reshape(l, 1))


def _to_ext(img, e, cp, dtype):
    """(B, Hs, Ws, C) -> flattened halo layout (B, (Hs+2)*(Ws+2) + 2E, Cp)."""
    bsz, hs, ws, c = img.shape
    img = jnp.pad(img, ((0, 0), (1, 1), (1, 1), (0, cp - c)))
    flat = img.reshape(bsz, (hs + 2) * (ws + 2), cp)
    flat = jnp.pad(flat, ((0, 0), (e, e), (0, 0)))
    return flat.astype(dtype)


def _ext_to_img(flat, e, hs, ws):
    bsz = flat.shape[0]
    inner = flat[:, e:e + (hs + 2) * (ws + 2), :]
    img = inner.reshape(bsz, hs + 2, ws + 2, -1)
    return img[:, 1:hs + 1, 1:ws + 1, :]


def _up2(img):
    return jnp.repeat(jnp.repeat(img, 2, axis=1), 2, axis=2)


# --------------------------------------------------------------------------- #
# Full AdainResBlk forward (Pallas path)
# --------------------------------------------------------------------------- #
def adain_resblk_pallas(x_nchw, s, params, *, upsample=False, w_hpf=0):
    b_sz, c_in, h, w = x_nchw.shape
    c_out = params["conv1_w"].shape[-1]
    learned_sc = params.get("sc_w", None) is not None
    merge = (w_hpf == 0)
    cin_p = _round_up(c_in, _LANE)
    cout_p = _round_up(c_out, _LANE)
    hc, wc = (2 * h, 2 * w) if upsample else (h, w)

    x_nhwc = jnp.transpose(x_nchw, (0, 2, 3, 1))               # (B, H, W, Cin)

    # ---- AdaIN style fc (tiny) hoisted out of the kernels ----
    def style_mod(fw, fb, c, cp):
        hh = jnp.dot(s, fw, precision=_HIGH) + fb               # (B, 2C)
        gamma, beta = jnp.split(hh, 2, axis=1)                  # == torch.chunk(dim=1)
        pad = ((0, 0), (0, cp - c))
        return jnp.stack([jnp.pad(1.0 + gamma, pad), jnp.pad(beta, pad)],
                         axis=1).astype(jnp.float32)            # (B, 2, Cp)

    mod1 = style_mod(params["fc1_w"], params["fc1_b"], c_in, cin_p)
    mod2 = style_mod(params["fc2_w"], params["fc2_b"], c_out, cout_p)

    # ---- conv weights -> (9, Cin_p, Cout_p) bf16, biases -> (1, Cout_p) f32 ----
    def conv_w(wt, ci, cip, cop):
        wt = wt.reshape(9, ci, -1)
        wt = jnp.pad(wt, ((0, 0), (0, cip - ci), (0, cop - wt.shape[-1])))
        return wt.astype(jnp.bfloat16)

    w1 = conv_w(params["conv1_w"], c_in, cin_p, cout_p)
    w2 = conv_w(params["conv2_w"], c_out, cout_p, cout_p)
    b1 = jnp.pad(params["conv1_b"], (0, cout_p - c_out)).reshape(1, cout_p)
    b2 = jnp.pad(params["conv2_b"], (0, cout_p - c_out)).reshape(1, cout_p)
    b1, b2 = b1.astype(jnp.float32), b2.astype(jnp.float32)

    # ---- stage 1: AdaIN(norm1) + LeakyReLU on the (low-res) input grid ----
    p_lo, npad_lo, e1_lo, _ = _geom(h, w)
    l1_lo = npad_lo + 2 * e1_lo
    x_ext = _to_ext(x_nhwc, e1_lo, cin_p, _ACT_DTYPE)
    mask1 = _interior_mask(l1_lo, e1_lo, p_lo, h, w)
    y1 = _stage1_call(x_ext, mod1, mask1, count=h * w)           # (B, L1, Cin_p) bf16

    # ---- hi-res conv grid constants ----
    p, npad, e1, e2 = _geom(hc, wc)
    l_a = npad + 2 * e1                                          # conv1-input rows
    l_b = npad + 2 * e2                                          # conv2-input rows

    if upsample:
        # TODO(synk): the nearest-neighbour x2 upsample + halo re-pad is still one
        # XLA repeat/pad fusion instead of being fused into the Pallas pipeline.
        y1_img = _ext_to_img(y1, e1_lo, h, w)                    # (B, H, W, Cin_p)
        conv1_in = _to_ext(_up2(y1_img), e1, cin_p, _ACT_DTYPE)
    else:
        conv1_in = y1                                            # already correct layout

    # ---- stage 2: conv1 (9 shifted MXU taps) + AdaIN(norm2) + LeakyReLU ----
    mask2 = _interior_mask(l_b, e2, p, hc, wc)
    y2 = _stage2_call(conv1_in, w1, b1, mod2, mask2,
                      p=p, row_off=(e1 - e2) - (p + 1), count=hc * wc, l_out=l_b)

    # ---- stage 3: conv2 + 1x1 shortcut + (r + sc) / sqrt(2) ----
    xsc = scw = None
    if merge:
        xsc_img = _up2(x_nhwc) if upsample else x_nhwc
        xsc_img = jnp.pad(xsc_img, ((0, 0), (1, 1), (1, 1), (0, cin_p - c_in)))
        xsc = xsc_img.reshape(b_sz, npad, cin_p).astype(_ACT_DTYPE)
        if learned_sc:
            scw = jnp.pad(params["sc_w"],
                          ((0, cin_p - c_in), (0, cout_p - c_out))).astype(jnp.bfloat16)
    out_pad = _stage3_call(y2, w2, b2, xsc, scw,
                           p=p, row_off=e2 - (p + 1), l_out=npad,
                           merge=merge, learned_sc=learned_sc,
                           out_dtype=x_nchw.dtype)               # (B, Npad, Cout_p)

    out = out_pad.reshape(b_sz, hc + 2, p, cout_p)[:, 1:hc + 1, 1:wc + 1, :c_out]
    return jnp.transpose(out, (0, 3, 1, 2))                      # back to NCHW


# --------------------------------------------------------------------------- #
# Pure-JAX f32 reference (mirrors the PyTorch module, NCHW)
# --------------------------------------------------------------------------- #
def adain_resblk_reference(x, s, params, *, upsample=False, w_hpf=0):
    def lrelu(v):
        return jnp.where(v >= 0.0, v, _SLOPE * v)

    def inorm(v):
        mean = jnp.mean(v, axis=(2, 3), keepdims=True)
        var = jnp.mean(jnp.square(v - mean), axis=(2, 3), keepdims=True)
        return (v - mean) * jax.lax.rsqrt(var + _EPS)

    def adain(v, style, w, b):
        hh = jnp.dot(style, w, precision=_HIGH) + b
        c = v.shape[1]
        gamma = hh[:, :c].reshape(-1, c, 1, 1)
        beta = hh[:, c:].reshape(-1, c, 1, 1)
        return (1.0 + gamma) * inorm(v) + beta

    def conv3x3(v, w_hwio, b):
        y = jax.lax.conv_general_dilated(
            v, w_hwio, (1, 1), ((1, 1), (1, 1)),
            dimension_numbers=("NCHW", "HWIO", "NCHW"), precision=_HIGH)
        return y + b.reshape(1, -1, 1, 1)

    def conv1x1(v, w_io):
        w = w_io.reshape(1, 1, *w_io.shape)
        return jax.lax.conv_general_dilated(
            v, w, (1, 1), ((0, 0), (0, 0)),
            dimension_numbers=("NCHW", "HWIO", "NCHW"), precision=_HIGH)

    def up(v):
        return jnp.repeat(jnp.repeat(v, 2, axis=2), 2, axis=3)

    hh = adain(x, s, params["fc1_w"], params["fc1_b"])
    hh = lrelu(hh)
    if upsample:
        hh = up(hh)
    hh = conv3x3(hh, params["conv1_w"], params["conv1_b"])
    hh = adain(hh, s, params["fc2_w"], params["fc2_b"])
    hh = lrelu(hh)
    hh = conv3x3(hh, params["conv2_w"], params["conv2_b"])

    xs = up(x) if upsample else x
    if params["sc_w"] is not None:
        xs = conv1x1(xs, params["sc_w"])
    if w_hpf == 0:
        hh = (hh + xs) * _INV_SQRT2
    return hh


# --------------------------------------------------------------------------- #
if __name__ == "__main__":
    B, C_in, C_out, S, H, W = 2, 4, 8, 16, 16, 16
    key = jax.random.PRNGKey(0)
    ks = jax.random.split(key, 11)

    x = jax.random.normal(ks[0], (B, C_in, H, W), jnp.float32)
    s = jax.random.normal(ks[1], (B, S), jnp.float32)
    params = {
        "fc1_w": jax.random.normal(ks[2], (S, 2 * C_in), jnp.float32) / math.sqrt(S),
        "fc1_b": jax.random.normal(ks[3], (2 * C_in,), jnp.float32) * 0.1,
        "fc2_w": jax.random.normal(ks[4], (S, 2 * C_out), jnp.float32) / math.sqrt(S),
        "fc2_b": jax.random.normal(ks[5], (2 * C_out,), jnp.float32) * 0.1,
        "conv1_w": jax.random.normal(ks[6], (3, 3, C_in, C_out), jnp.float32)
                   / math.sqrt(9 * C_in),
        "conv1_b": jax.random.normal(ks[7], (C_out,), jnp.float32) * 0.1,
        "conv2_w": jax.random.normal(ks[8], (3, 3, C_out, C_out), jnp.float32)
                   / math.sqrt(9 * C_out),
        "conv2_b": jax.random.normal(ks[9], (C_out,), jnp.float32) * 0.1,
        "sc_w": jax.random.normal(ks[10], (C_in, C_out), jnp.float32)
                / math.sqrt(C_in),                               # learned_sc (4 != 8)
    }

    for upsample in (False, True):
        fwd = jax.jit(functools.partial(adain_resblk_pallas,
                                        upsample=upsample, w_hpf=0))
        out = jax.block_until_ready(fwd(x, s, params))
        ref = adain_resblk_reference(x, s, params, upsample=upsample, w_hpf=0)
        assert out.shape == ref.shape, (out.shape, ref.shape)
        err = float(jnp.max(jnp.abs(out - ref)))
        ref_max = float(jnp.max(jnp.abs(ref)))
        # bf16 MXU path + bf16 inter-stage storage -> relaxed, scale-aware bound.
        tol = 0.05 + 0.04 * ref_max
        assert err <= tol, f"mismatch (upsample={upsample}): err={err}, tol={tol}"

    print("KERNEL_OK")
</pallas_src>

<mosaic_0001>
module attributes {stable_mosaic.version = 11 : i64} {
  func.func @_stage2_kernel(%arg0: i32, %arg1: memref<1x420x128xbf16, #tpu.memory_space<vmem>>, %arg2: memref<9x128x128xbf16, #tpu.memory_space<vmem>>, %arg3: memref<1x128xf32, #tpu.memory_space<vmem>>, %arg4: memref<1x2x128xf32, #tpu.memory_space<vmem>>, %arg5: memref<372x1xf32, #tpu.memory_space<vmem>>, %arg6: memref<1x372x128xbf16, #tpu.memory_space<vmem>>, %arg7: memref<420x128xf32, #tpu.memory_space<vmem>>) attributes {dimension_semantics = [#tpu.dimension_semantics<parallel>], iteration_bounds = array<i64: 2>, scalar_prefetch = 0 : i64, scratch_operands = 1 : i64, tpu.core_type = #tpu.core_type<tc>, window_params = [{transform_indices = @transform_0, window_bounds = array<i64: 1, 420, 128>}, {pipeline_mode = #tpu.pipeline_mode<synchronous>, transform_indices = @transform_1, window_bounds = array<i64: 9, 128, 128>}, {pipeline_mode = #tpu.pipeline_mode<synchronous>, transform_indices = @transform_2, window_bounds = array<i64: 1, 128>}, {transform_indices = @transform_3, window_bounds = array<i64: 1, 2, 128>}, {pipeline_mode = #tpu.pipeline_mode<synchronous>, transform_indices = @transform_4, window_bounds = array<i64: 372, 1>}, {transform_indices = @transform_5, window_bounds = array<i64: 1, 372, 128>}]} {
    %c0 = arith.constant 0 : index
    %c0_0 = arith.constant 0 : index
    %c0_1 = arith.constant 0 : index
    %0 = vector.load %arg1[%c0, %c0_0, %c0_1] : memref<1x420x128xbf16, #tpu.memory_space<vmem>>, vector<1x420x128xbf16>
    %1 = vector.shape_cast %0 : vector<1x420x128xbf16> to vector<420x128xbf16>
    %2 = arith.extf %1 : vector<420x128xbf16> to vector<420x128xf32>
    %c0_2 = arith.constant 0 : index
    %c0_3 = arith.constant 0 : index
    %3 = vector.load %arg7[%c0_2, %c0_3] : memref<420x128xf32, #tpu.memory_space<vmem>>, vector<420x128xf32>
    tpu.vector_store %arg7[%c0_2, %c0_3], %2 {strides = array<i32>} : memref<420x128xf32, #tpu.memory_space<vmem>>, vector<420x128xf32>,
    %c5 = arith.constant 5 : index
    %c0_4 = arith.constant 0 : index
    %4 = vector.load %arg7[%c5, %c0_4] : memref<420x128xf32, #tpu.memory_space<vmem>>, vector<372x128xf32>
    %5 = arith.truncf %4 : vector<372x128xf32> to vector<372x128xbf16>
    %c0_5 = arith.constant 0 : index
    %c0_6 = arith.constant 0 : index
    %c0_7 = arith.constant 0 : index
    %6 = vector.load %arg2[%c0_5, %c0_6, %c0_7] : memref<9x128x128xbf16, #tpu.memory_space<vmem>>, vector<1x128x128xbf16>
    %7 = vector.shape_cast %6 : vector<1x128x128xbf16> to vector<128x128xbf16>
    %cst = arith.constant dense<0.000000e+00> : vector<372x128xf32>
    %8 = tpu.matmul %5, %7, %cst {dimension_numbers = #tpu.dot_dimension_numbers<[1], [0], [0], [1], [0, 0, 1, 1], [], []>} : vector<372x128xbf16>, vector<128x128xbf16>, vector<372x128xf32> -> vector<372x128xf32>
    %c6 = arith.constant 6 : index
    %c0_8 = arith.constant 0 : index
    %9 = vector.load %arg7[%c6, %c0_8] : memref<420x128xf32, #tpu.memory_space<vmem>>, vector<372x128xf32>
    %10 = arith.truncf %9 : vector<372x128xf32> to vector<372x128xbf16>
    %c1 = arith.constant 1 : index
    %c0_9 = arith.constant 0 : index
    %c0_10 = arith.constant 0 : index
    %11 = vector.load %arg2[%c1, %c0_9, %c0_10] : memref<9x128x128xbf16, #tpu.memory_space<vmem>>, vector<1x128x128xbf16>
    %12 = vector.shape_cast %11 : vector<1x128x128xbf16> to vector<128x128xbf16>
    %cst_11 = arith.constant dense<0.000000e+00> : vector<372x128xf32>
    %13 = tpu.matmul %10, %12, %cst_11 {dimension_numbers = #tpu.dot_dimension_numbers<[1], [0], [0], [1], [0, 0, 1, 1], [], []>} : vector<372x128xbf16>, vector<128x128xbf16>, vector<372x128xf32> -> vector<372x128xf32>
    %14 = arith.addf %8, %13 : vector<372x128xf32>
    %c7 = arith.constant 7 : index
    %c0_12 = arith.constant 0 : index
    %15 = vector.load %arg7[%c7, %c0_12] : memref<420x128xf32, #tpu.memory_space<vmem>>, vector<372x128xf32>
    %16 = arith.truncf %15 : vector<372x128xf32> to vector<372x128xbf16>
    %c2 = arith.constant 2 : index
    %c0_13 = arith.constant 0 : index
    %c0_14 = arith.constant 0 : index
    %17 = vector.load %arg2[%c2, %c0_13, %c0_14] : memref<9x128x128xbf16, #tpu.memory_space<vmem>>, vector<1x128x128xbf16>
    %18 = vector.shape_cast %17 : vector<1x128x128xbf16> to vector<128x128xbf16>
    %cst_15 = arith.constant dense<0.000000e+00> : vector<372x128xf32>
    %19 = tpu.matmul %16, %18, %cst_15 {dimension_numbers = #tpu.dot_dimension_numbers<[1], [0], [0], [1], [0, 0, 1, 1], [], []>} : vector<372x128xbf16>, vector<128x128xbf16>, vector<372x128xf32> -> vector<372x128xf32>
    %20 = arith.addf %14, %19 : vector<372x128xf32>
    %c23 = arith.constant 23 : index
    %c0_16 = arith.constant 0 : index
    %21 = vector.load %arg7[%c23, %c0_16] : memref<420x128xf32, #tpu.memory_space<vmem>>, vector<372x128xf32>
    %22 = arith.truncf %21 : vector<372x128xf32> to vector<372x128xbf16>
    %c3 = arith.constant 3 : index
    %c0_17 = arith.constant 0 : index
    %c0_18 = arith.constant 0 : index
    %23 = vector.load %arg2[%c3, %c0_17, %c0_18] : memref<9x128x128xbf16, #tpu.memory_space<vmem>>, vector<1x128x128xbf16>
    %24 = vector.shape_cast %23 : vector<1x128x128xbf16> to vector<128x128xbf16>
    %cst_19 = arith.constant dense<0.000000e+00> : vector<372x128xf32>
    %25 = tpu.matmul %22, %24, %cst_19 {dimension_numbers = #tpu.dot_dimension_numbers<[1], [0], [0], [1], [0, 0, 1, 1], [], []>} : vector<372x128xbf16>, vector<128x128xbf16>, vector<372x128xf32> -> vector<372x128xf32>
    %26 = arith.addf %20, %25 : vector<372x128xf32>
    %c24 = arith.constant 24 : index
    %c0_20 = arith.constant 0 : index
    %27 = vector.load %arg7[%c24, %c0_20] : memref<420x128xf32, #tpu.memory_space<vmem>>, vector<372x128xf32>
    %28 = arith.truncf %27 : vector<372x128xf32> to vector<372x128xbf16>
    %c4 = arith.constant 4 : index
    %c0_21 = arith.constant 0 : index
    %c0_22 = arith.constant 0 : index
    %29 = vector.load %arg2[%c4, %c0_21, %c0_22] : memref<9x128x128xbf16, #tpu.memory_space<vmem>>, vector<1x128x128xbf16>
    %30 = vector.shape_cast %29 : vector<1x128x128xbf16> to vector<128x128xbf16>
    %cst_23 = arith.constant dense<0.000000e+00> : vector<372x128xf32>
    %31 = tpu.matmul %28, %30, %cst_23 {dimension_numbers = #tpu.dot_dimension_numbers<[1], [0], [0], [1], [0, 0, 1, 1], [], []>} : vector<372x128xbf16>, vector<128x128xbf16>, vector<372x128xf32> -> vector<372x128xf32>
    %32 = arith.addf %26, %31 : vector<372x128xf32>
    %c25 = arith.constant 25 : index
    %c0_24 = arith.constant 0 : index
    %33 = vector.load %arg7[%c25, %c0_24] : memref<420x128xf32, #tpu.memory_space<vmem>>, vector<372x128xf32>
    %34 = arith.truncf %33 : vector<372x128xf32> to vector<372x128xbf16>
    %c5_25 = arith.constant 5 : index
    %c0_26 = arith.constant 0 : index
    %c0_27 = arith.constant 0 : index
    %35 = vector.load %arg2[%c5_25, %c0_26, %c0_27] : memref<9x128x128xbf16, #tpu.memory_space<vmem>>, vector<1x128x128xbf16>
    %36 = vector.shape_cast %35 : vector<1x128x128xbf16> to vector<128x128xbf16>
    %cst_28 = arith.constant dense<0.000000e+00> : vector<372x128xf32>
    %37 = tpu.matmul %34, %36, %cst_28 {dimension_numbers = #tpu.dot_dimension_numbers<[1], [0], [0], [1], [0, 0, 1, 1], [], []>} : vector<372x128xbf16>, vector<128x128xbf16>, vector<372x128xf32> -> vector<372x128xf32>
    %38 = arith.addf %32, %37 : vector<372x128xf32>
    %c41 = arith.constant 41 : index
    %c0_29 = arith.constant 0 : index
    %39 = vector.load %arg7[%c41, %c0_29] : memref<420x128xf32, #tpu.memory_space<vmem>>, vector<372x128xf32>
    %40 = arith.truncf %39 : vector<372x128xf32> to vector<372x128xbf16>
    %c6_30 = arith.constant 6 : index
    %c0_31 = arith.constant 0 : index
    %c0_32 = arith.constant 0 : index
    %41 = vector.load %arg2[%c6_30, %c0_31, %c0_32] : memref<9x128x128xbf16, #tpu.memory_space<vmem>>, vector<1x128x128xbf16>
    %42 = vector.shape_cast %41 : vector<1x128x128xbf16> to vector<128x128xbf16>
    %cst_33 = arith.constant dense<0.000000e+00> : vector<372x128xf32>
    %43 = tpu.matmul %40, %42, %cst_33 {dimension_numbers = #tpu.dot_dimension_numbers<[1], [0], [0], [1], [0, 0, 1, 1], [], []>} : vector<372x128xbf16>, vector<128x128xbf16>, vector<372x128xf32> -> vector<372x128xf32>
    %44 = arith.addf %38, %43 : vector<372x128xf32>
    %c42 = arith.constant 42 : index
    %c0_34 = arith.constant 0 : index
    %45 = vector.load %arg7[%c42, %c0_34] : memref<420x128xf32, #tpu.memory_space<vmem>>, vector<372x128xf32>
    %46 = arith.truncf %45 : vector<372x128xf32> to vector<372x128xbf16>
    %c7_35 = arith.constant 7 : index
    %c0_36 = arith.constant 0 : index
    %c0_37 = arith.constant 0 : index
    %47 = vector.load %arg2[%c7_35, %c0_36, %c0_37] : memref<9x128x128xbf16, #tpu.memory_space<vmem>>, vector<1x128x128xbf16>
    %48 = vector.shape_cast %47 : vector<1x128x128xbf16> to vector<128x128xbf16>
    %cst_38 = arith.constant dense<0.000000e+00> : vector<372x128xf32>
    %49 = tpu.matmul %46, %48, %cst_38 {dimension_numbers = #tpu.dot_dimension_numbers<[1], [0], [0], [1], [0, 0, 1, 1], [], []>} : vector<372x128xbf16>, vector<128x128xbf16>, vector<372x128xf32> -> vector<372x128xf32>
    %50 = arith.addf %44, %49 : vector<372x128xf32>
    %c43 = arith.constant 43 : index
    %c0_39 = arith.constant 0 : index
    %51 = vector.load %arg7[%c43, %c0_39] : memref<420x128xf32, #tpu.memory_space<vmem>>, vector<372x128xf32>
    %52 = arith.truncf %51 : vector<372x128xf32> to vector<372x128xbf16>
    %c8 = arith.constant 8 : index
    %c0_40 = arith.constant 0 : index
    %c0_41 = arith.constant 0 : index
    %53 = vector.load %arg2[%c8, %c0_40, %c0_41] : memref<9x128x128xbf16, #tpu.memory_space<vmem>>, vector<1x128x128xbf16>
    %54 = vector.shape_cast %53 : vector<1x128x128xbf16> to vector<128x128xbf16>
    %cst_42 = arith.constant dense<0.000000e+00> : vector<372x128xf32>
    %55 = tpu.matmul %52, %54, %cst_42 {dimension_numbers = #tpu.dot_dimension_numbers<[1], [0], [0], [1], [0, 0, 1, 1], [], []>} : vector<372x128xbf16>, vector<128x128xbf16>, vector<372x128xf32> -> vector<372x128xf32>
    %56 = arith.addf %50, %55 : vector<372x128xf32>
    %c0_43 = arith.constant 0 : index
    %c0_44 = arith.constant 0 : index
    %57 = vector.load %arg3[%c0_43, %c0_44] : memref<1x128xf32, #tpu.memory_space<vmem>>, vector<1x128xf32>
    %58 = vector.broadcast %57 : vector<1x128xf32> to vector<372x128xf32>
    %59 = arith.addf %56, %58 : vector<372x128xf32>
    %c0_45 = arith.constant 0 : index
    %c0_46 = arith.constant 0 : index
    %c0_47 = arith.constant 0 : index
    %60 = vector.load %arg4[%c0_45, %c0_46, %c0_47] : memref<1x2x128xf32, #tpu.memory_space<vmem>>, vector<1x2x128xf32>
    %61 = vector.shape_cast %60 : vector<1x2x128xf32> to vector<2x128xf32>
    %c0_48 = arith.constant 0 : index
    %c0_49 = arith.constant 0 : index
    %62 = vector.load %arg5[%c0_48, %c0_49] : memref<372x1xf32, #tpu.memory_space<vmem>>, vector<372x1xf32>
    %63 = vector.broadcast %62 : vector<372x1xf32> to vector<372x128xf32>
    %64 = arith.mulf %59, %63 : vector<372x128xf32>
    %cst_50 = arith.constant dense<0.000000e+00> : vector<128xf32>
    %65 = vector.multi_reduction <add>, %64, %cst_50 [0] : vector<372x128xf32> to vector<128xf32>
    %66 = vector.shape_cast %65 : vector<128xf32> to vector<1x128xf32>
    %cst_51 = arith.constant 3.906250e-03 : f32
    %67 = vector.broadcast %cst_51 : f32 to vector<1x128xf32>
    %68 = arith.mulf %66, %67 : vector<1x128xf32>
    %69 = arith.mulf %64, %59 : vector<372x128xf32>
    %cst_52 = arith.constant dense<0.000000e+00> : vector<128xf32>
    %70 = vector.multi_reduction <add>, %69, %cst_52 [0] : vector<372x128xf32> to vector<128xf32>
    %71 = vector.shape_cast %70 : vector<128xf32> to vector<1x128xf32>
    %cst_53 = arith.constant 3.906250e-03 : f32
    %72 = vector.broadcast %cst_53 : f32 to vector<1x128xf32>
    %73 = arith.mulf %71, %72 : vector<1x128xf32>
    %74 = arith.mulf %68, %68 : vector<1x128xf32>
    %75 = arith.subf %73, %74 : vector<1x128xf32>
    %cst_54 = arith.constant 0.000000e+00 : f32
    %76 = vector.broadcast %cst_54 : f32 to vector<1x128xf32>
    %77 = arith.maximumf %75, %76 : vector<1x128xf32>
    %78 = vector.extract_strided_slice %61 {offsets = [0, 0], sizes = [1, 128], strides = [1, 1]} : vector<2x128xf32> to vector<1x128xf32>
    %79 = vector.extract_strided_slice %61 {offsets = [1, 0], sizes = [1, 128], strides = [1, 1]} : vector<2x128xf32> to vector<1x128xf32>
    %80 = vector.broadcast %68 : vector<1x128xf32> to vector<372x128xf32>
    %81 = arith.subf %59, %80 : vector<372x128xf32>
    %cst_55 = arith.constant 9.99999974E-6 : f32
    %82 = vector.broadcast %cst_55 : f32 to vector<1x128xf32>
    %83 = arith.addf %77, %82 : vector<1x128xf32>
    %84 = math.rsqrt %83 : vector<1x128xf32>
    %85 = vector.broadcast %84 : vector<1x128xf32> to vector<372x128xf32>
    %86 = arith.mulf %81, %85 : vector<372x128xf32>
    %87 = vector.broadcast %78 : vector<1x128xf32> to vector<372x128xf32>
    %88 = arith.mulf %87, %86 : vector<372x128xf32>
    %89 = vector.broadcast %79 : vector<1x128xf32> to vector<372x128xf32>
    %90 = arith.addf %88, %89 : vector<372x128xf32>
    %cst_56 = arith.constant 2.000000e-01 : f32
    %91 = vector.broadcast %cst_56 : f32 to vector<372x128xf32>
    %92 = arith.mulf %91, %90 : vector<372x128xf32>
    %93 = arith.maximumf %90, %92 : vector<372x128xf32>
    %94 = vector.broadcast %62 : vector<372x1xf32> to vector<372x128xf32>
    %95 = arith.mulf %93, %94 : vector<372x128xf32>
    %96 = arith.truncf %95 : vector<372x128xf32> to vector<372x128xbf16>
    %c0_57 = arith.constant 0 : index
    %c0_58 = arith.constant 0 : index
    %c0_59 = arith.constant 0 : index
    %97 = vector.load %arg6[%c0_57, %c0_58, %c0_59] : memref<1x372x128xbf16, #tpu.memory_space<vmem>>, vector<1x372x128xbf16>
    %98 = vector.shape_cast %97 : vector<1x372x128xbf16> to vector<372x128xbf16>
    %99 = vector.shape_cast %96 : vector<372x128xbf16> to vector<1x372x128xbf16>
    tpu.vector_store %arg6[%c0_57, %c0_58, %c0_59], %99 {strides = array<i32>} : memref<1x372x128xbf16, #tpu.memory_space<vmem>>, vector<1x372x128xbf16>,
    return
  }
  func.func @transform_0(%arg0: i32) -> (i32, i32, i32) {
    %c0_i32 = arith.constant 0 : i32
    %c0_i32_0 = arith.constant 0 : i32
    %c0_i32_1 = arith.constant 0 : i32
    return %arg0, %c0_i32, %c0_i32_0 : i32, i32, i32
  }
  func.func @transform_1(%arg0: i32) -> (i32, i32, i32) {
    %c0_i32 = arith.constant 0 : i32
    %c0_i32_0 = arith.constant 0 : i32
    %c0_i32_1 = arith.constant 0 : i32
    %c0_i32_2 = arith.constant 0 : i32
    return %c0_i32, %c0_i32_0, %c0_i32_1 : i32, i32, i32
  }
  func.func @transform_2(%arg0: i32) -> (i32, i32) {
    %c0_i32 = arith.constant 0 : i32
    %c0_i32_0 = arith.constant 0 : i32
    %c0_i32_1 = arith.constant 0 : i32
    return %c0_i32, %c0_i32_0 : i32, i32
  }
  func.func @transform_3(%arg0: i32) -> (i32, i32, i32) {
    %c0_i32 = arith.constant 0 : i32
    %c0_i32_0 = arith.constant 0 : i32
    %c0_i32_1 = arith.constant 0 : i32
    return %arg0, %c0_i32, %c0_i32_0 : i32, i32, i32
  }
  func.func @transform_4(%arg0: i32) -> (i32, i32) {
    %c0_i32 = arith.constant 0 : i32
    %c0_i32_0 = arith.constant 0 : i32
    %c0_i32_1 = arith.constant 0 : i32
    return %c0_i32, %c0_i32_0 : i32, i32
  }
  func.func @transform_5(%arg0: i32) -> (i32, i32, i32) {
    %c0_i32 = arith.constant 0 : i32
    %c0_i32_0 = arith.constant 0 : i32
    %c0_i32_1 = arith.constant 0 : i32
    return %arg0, %c0_i32, %c0_i32_0 : i32, i32, i32
  }
}

module attributes {stable_mosaic.version = 11 : i64} {
  func.func @_stage1_kernel(%arg0: i32, %arg1: memref<1x420x128xbf16, #tpu.memory_space<vmem>>, %arg2: memref<1x2x128xf32, #tpu.memory_space<vmem>>, %arg3: memref<420x1xf32, #tpu.memory_space<vmem>>, %arg4: memref<1x420x128xbf16, #tpu.memory_space<vmem>>) attributes {dimension_semantics = [#tpu.dimension_semantics<parallel>], iteration_bounds = array<i64: 2>, scalar_prefetch = 0 : i64, scratch_operands = 0 : i64, tpu.core_type = #tpu.core_type<tc>, window_params = [{transform_indices = @transform_0, window_bounds = array<i64: 1, 420, 128>}, {transform_indices = @transform_1, window_bounds = array<i64: 1, 2, 128>}, {pipeline_mode = #tpu.pipeline_mode<synchronous>, transform_indices = @transform_2, window_bounds = array<i64: 420, 1>}, {transform_indices = @transform_3, window_bounds = array<i64: 1, 420, 128>}]} {
    %c0 = arith.constant 0 : index
    %c0_0 = arith.constant 0 : index
    %c0_1 = arith.constant 0 : index
    %0 = vector.load %arg1[%c0, %c0_0, %c0_1] : memref<1x420x128xbf16, #tpu.memory_space<vmem>>, vector<1x420x128xbf16>
    %1 = vector.shape_cast %0 : vector<1x420x128xbf16> to vector<420x128xbf16>
    %2 = arith.extf %1 : vector<420x128xbf16> to vector<420x128xf32>
    %c0_2 = arith.constant 0 : index
    %c0_3 = arith.constant 0 : index
    %c0_4 = arith.constant 0 : index
    %3 = vector.load %arg2[%c0_2, %c0_3, %c0_4] : memref<1x2x128xf32, #tpu.memory_space<vmem>>, vector<1x2x128xf32>
    %4 = vector.shape_cast %3 : vector<1x2x128xf32> to vector<2x128xf32>
    %c0_5 = arith.constant 0 : index
    %c0_6 = arith.constant 0 : index
    %5 = vector.load %arg3[%c0_5, %c0_6] : memref<420x1xf32, #tpu.memory_space<vmem>>, vector<420x1xf32>
    %6 = vector.broadcast %5 : vector<420x1xf32> to vector<420x128xf32>
    %7 = arith.mulf %2, %6 : vector<420x128xf32>
    %cst = arith.constant dense<0.000000e+00> : vector<128xf32>
    %8 = vector.multi_reduction <add>, %7, %cst [0] : vector<420x128xf32> to vector<128xf32>
    %9 = vector.shape_cast %8 : vector<128xf32> to vector<1x128xf32>
    %cst_7 = arith.constant 3.906250e-03 : f32
    %10 = vector.broadcast %cst_7 : f32 to vector<1x128xf32>
    %11 = arith.mulf %9, %10 : vector<1x128xf32>
    %12 = arith.mulf %7, %2 : vector<420x128xf32>
    %cst_8 = arith.constant dense<0.000000e+00> : vector<128xf32>
    %13 = vector.multi_reduction <add>, %12, %cst_8 [0] : vector<420x128xf32> to vector<128xf32>
    %14 = vector.shape_cast %13 : vector<128xf32> to vector<1x128xf32>
    %cst_9 = arith.constant 3.906250e-03 : f32
    %15 = vector.broadcast %cst_9 : f32 to vector<1x128xf32>
    %16 = arith.mulf %14, %15 : vector<1x128xf32>
    %17 = arith.mulf %11, %11 : vector<1x128xf32>
    %18 = arith.subf %16, %17 : vector<1x128xf32>
    %cst_10 = arith.constant 0.000000e+00 : f32
    %19 = vector.broadcast %cst_10 : f32 to vector<1x128xf32>
    %20 = arith.maximumf %18, %19 : vector<1x128xf32>
    %21 = vector.extract_strided_slice %4 {offsets = [0, 0], sizes = [1, 128], strides = [1, 1]} : vector<2x128xf32> to vector<1x128xf32>
    %22 = vector.extract_strided_slice %4 {offsets = [1, 0], sizes = [1, 128], strides = [1, 1]} : vector<2x128xf32> to vector<1x128xf32>
    %23 = vector.broadcast %11 : vector<1x128xf32> to vector<420x128xf32>
    %24 = arith.subf %2, %23 : vector<420x128xf32>
    %cst_11 = arith.constant 9.99999974E-6 : f32
    %25 = vector.broadcast %cst_11 : f32 to vector<1x128xf32>
    %26 = arith.addf %20, %25 : vector<1x128xf32>
    %27 = math.rsqrt %26 : vector<1x128xf32>
    %28 = vector.broadcast %27 : vector<1x128xf32> to vector<420x128xf32>
    %29 = arith.mulf %24, %28 : vector<420x128xf32>
    %30 = vector.broadcast %21 : vector<1x128xf32> to vector<420x128xf32>
    %31 = arith.mulf %30, %29 : vector<420x128xf32>
    %32 = vector.broadcast %22 : vector<1x128xf32> to vector<420x128xf32>
    %33 = arith.addf %31, %32 : vector<420x128xf32>
    %cst_12 = arith.constant 2.000000e-01 : f32
    %34 = vector.broadcast %cst_12 : f32 to vector<420x128xf32>
    %35 = arith.mulf %34, %33 : vector<420x128xf32>
    %36 = arith.maximumf %33, %35 : vector<420x128xf32>
    %37 = vector.broadcast %5 : vector<420x1xf32> to vector<420x128xf32>
    %38 = arith.mulf %36, %37 : vector<420x128xf32>
    %39 = arith.truncf %38 : vector<420x128xf32> to vector<420x128xbf16>
    %c0_13 = arith.constant 0 : index
    %c0_14 = arith.constant 0 : index
    %c0_15 = arith.constant 0 : index
    %40 = vector.load %arg4[%c0_13, %c0_14, %c0_15] : memref<1x420x128xbf16, #tpu.memory_space<vmem>>, vector<1x420x128xbf16>
    %41 = vector.shape_cast %40 : vector<1x420x128xbf16> to vector<420x128xbf16>
    %42 = vector.shape_cast %39 : vector<420x128xbf16> to vector<1x420x128xbf16>
    tpu.vector_store %arg4[%c0_13, %c0_14, %c0_15], %42 {strides = array<i32>} : memref<1x420x128xbf16, #tpu.memory_space<vmem>>, vector<1x420x128xbf16>,
    return
  }
  func.func @transform_0(%arg0: i32) -> (i32, i32, i32) {
    %c0_i32 = arith.constant 0 : i32
    %c0_i32_0 = arith.constant 0 : i32
    %c0_i32_1 = arith.constant 0 : i32
    return %arg0, %c0_i32, %c0_i32_0 : i32, i32, i32
  }
  func.func @transform_1(%arg0: i32) -> (i32, i32, i32) {
    %c0_i32 = arith.constant 0 : i32
    %c0_i32_0 = arith.constant 0 : i32
    %c0_i32_1 = arith.constant 0 : i32
    return %arg0, %c0_i32, %c0_i32_0 : i32, i32, i32
  }
  func.func @transform_2(%arg0: i32) -> (i32, i32) {
    %c0_i32 = arith.constant 0 : i32
    %c0_i32_0 = arith.constant 0 : i32
    %c0_i32_1 = arith.constant 0 : i32
    return %c0_i32, %c0_i32_0 : i32, i32
  }
  func.func @transform_3(%arg0: i32) -> (i32, i32, i32) {
    %c0_i32 = arith.constant 0 : i32
    %c0_i32_0 = arith.constant 0 : i32
    %c0_i32_1 = arith.constant 0 : i32
    return %arg0, %c0_i32, %c0_i32_0 : i32, i32, i32
  }
}

module attributes {stable_mosaic.version = 11 : i64} {
  func.func @_stage3_kernel(%arg0: i32, %arg1: memref<1x372x128xbf16, #tpu.memory_space<vmem>>, %arg2: memref<9x128x128xbf16, #tpu.memory_space<vmem>>, %arg3: memref<1x128xf32, #tpu.memory_space<vmem>>, %arg4: memref<1x324x128xbf16, #tpu.memory_space<vmem>>, %arg5: memref<128x128xbf16, #tpu.memory_space<vmem>>, %arg6: memref<1x324x128xf32, #tpu.memory_space<vmem>>, %arg7: memref<372x128xf32, #tpu.memory_space<vmem>>) attributes {dimension_semantics = [#tpu.dimension_semantics<parallel>], iteration_bounds = array<i64: 2>, scalar_prefetch = 0 : i64, scratch_operands = 1 : i64, tpu.core_type = #tpu.core_type<tc>, window_params = [{transform_indices = @transform_0, window_bounds = array<i64: 1, 372, 128>}, {pipeline_mode = #tpu.pipeline_mode<synchronous>, transform_indices = @transform_1, window_bounds = array<i64: 9, 128, 128>}, {pipeline_mode = #tpu.pipeline_mode<synchronous>, transform_indices = @transform_2, window_bounds = array<i64: 1, 128>}, {transform_indices = @transform_3, window_bounds = array<i64: 1, 324, 128>}, {pipeline_mode = #tpu.pipeline_mode<synchronous>, transform_indices = @transform_4, window_bounds = array<i64: 128, 128>}, {transform_indices = @transform_5, window_bounds = array<i64: 1, 324, 128>}]} {
    %c0 = arith.constant 0 : index
    %c0_0 = arith.constant 0 : index
    %c0_1 = arith.constant 0 : index
    %0 = vector.load %arg1[%c0, %c0_0, %c0_1] : memref<1x372x128xbf16, #tpu.memory_space<vmem>>, vector<1x372x128xbf16>
    %1 = vector.shape_cast %0 : vector<1x372x128xbf16> to vector<372x128xbf16>
    %2 = arith.extf %1 : vector<372x128xbf16> to vector<372x128xf32>
    %c0_2 = arith.constant 0 : index
    %c0_3 = arith.constant 0 : index
    %3 = vector.load %arg7[%c0_2, %c0_3] : memref<372x128xf32, #tpu.memory_space<vmem>>, vector<372x128xf32>
    tpu.vector_store %arg7[%c0_2, %c0_3], %2 {strides = array<i32>} : memref<372x128xf32, #tpu.memory_space<vmem>>, vector<372x128xf32>,
    %c5 = arith.constant 5 : index
    %c0_4 = arith.constant 0 : index
    %4 = vector.load %arg7[%c5, %c0_4] : memref<372x128xf32, #tpu.memory_space<vmem>>, vector<324x128xf32>
    %5 = arith.truncf %4 : vector<324x128xf32> to vector<324x128xbf16>
    %c0_5 = arith.constant 0 : index
    %c0_6 = arith.constant 0 : index
    %c0_7 = arith.constant 0 : index
    %6 = vector.load %arg2[%c0_5, %c0_6, %c0_7] : memref<9x128x128xbf16, #tpu.memory_space<vmem>>, vector<1x128x128xbf16>
    %7 = vector.shape_cast %6 : vector<1x128x128xbf16> to vector<128x128xbf16>
    %cst = arith.constant dense<0.000000e+00> : vector<324x128xf32>
    %8 = tpu.matmul %5, %7, %cst {dimension_numbers = #tpu.dot_dimension_numbers<[1], [0], [0], [1], [0, 0, 1, 1], [], []>} : vector<324x128xbf16>, vector<128x128xbf16>, vector<324x128xf32> -> vector<324x128xf32>
    %c6 = arith.constant 6 : index
    %c0_8 = arith.constant 0 : index
    %9 = vector.load %arg7[%c6, %c0_8] : memref<372x128xf32, #tpu.memory_space<vmem>>, vector<324x128xf32>
    %10 = arith.truncf %9 : vector<324x128xf32> to vector<324x128xbf16>
    %c1 = arith.constant 1 : index
    %c0_9 = arith.constant 0 : index
    %c0_10 = arith.constant 0 : index
    %11 = vector.load %arg2[%c1, %c0_9, %c0_10] : memref<9x128x128xbf16, #tpu.memory_space<vmem>>, vector<1x128x128xbf16>
    %12 = vector.shape_cast %11 : vector<1x128x128xbf16> to vector<128x128xbf16>
    %cst_11 = arith.constant dense<0.000000e+00> : vector<324x128xf32>
    %13 = tpu.matmul %10, %12, %cst_11 {dimension_numbers = #tpu.dot_dimension_numbers<[1], [0], [0], [1], [0, 0, 1, 1], [], []>} : vector<324x128xbf16>, vector<128x128xbf16>, vector<324x128xf32> -> vector<324x128xf32>
    %14 = arith.addf %8, %13 : vector<324x128xf32>
    %c7 = arith.constant 7 : index
    %c0_12 = arith.constant 0 : index
    %15 = vector.load %arg7[%c7, %c0_12] : memref<372x128xf32, #tpu.memory_space<vmem>>, vector<324x128xf32>
    %16 = arith.truncf %15 : vector<324x128xf32> to vector<324x128xbf16>
    %c2 = arith.constant 2 : index
    %c0_13 = arith.constant 0 : index
    %c0_14 = arith.constant 0 : index
    %17 = vector.load %arg2[%c2, %c0_13, %c0_14] : memref<9x128x128xbf16, #tpu.memory_space<vmem>>, vector<1x128x128xbf16>
    %18 = vector.shape_cast %17 : vector<1x128x128xbf16> to vector<128x128xbf16>
    %cst_15 = arith.constant dense<0.000000e+00> : vector<324x128xf32>
    %19 = tpu.matmul %16, %18, %cst_15 {dimension_numbers = #tpu.dot_dimension_numbers<[1], [0], [0], [1], [0, 0, 1, 1], [], []>} : vector<324x128xbf16>, vector<128x128xbf16>, vector<324x128xf32> -> vector<324x128xf32>
    %20 = arith.addf %14, %19 : vector<324x128xf32>
    %c23 = arith.constant 23 : index
    %c0_16 = arith.constant 0 : index
    %21 = vector.load %arg7[%c23, %c0_16] : memref<372x128xf32, #tpu.memory_space<vmem>>, vector<324x128xf32>
    %22 = arith.truncf %21 : vector<324x128xf32> to vector<324x128xbf16>
    %c3 = arith.constant 3 : index
    %c0_17 = arith.constant 0 : index
    %c0_18 = arith.constant 0 : index
    %23 = vector.load %arg2[%c3, %c0_17, %c0_18] : memref<9x128x128xbf16, #tpu.memory_space<vmem>>, vector<1x128x128xbf16>
    %24 = vector.shape_cast %23 : vector<1x128x128xbf16> to vector<128x128xbf16>
    %cst_19 = arith.constant dense<0.000000e+00> : vector<324x128xf32>
    %25 = tpu.matmul %22, %24, %cst_19 {dimension_numbers = #tpu.dot_dimension_numbers<[1], [0], [0], [1], [0, 0, 1, 1], [], []>} : vector<324x128xbf16>, vector<128x128xbf16>, vector<324x128xf32> -> vector<324x128xf32>
    %26 = arith.addf %20, %25 : vector<324x128xf32>
    %c24 = arith.constant 24 : index
    %c0_20 = arith.constant 0 : index
    %27 = vector.load %arg7[%c24, %c0_20] : memref<372x128xf32, #tpu.memory_space<vmem>>, vector<324x128xf32>
    %28 = arith.truncf %27 : vector<324x128xf32> to vector<324x128xbf16>
    %c4 = arith.constant 4 : index
    %c0_21 = arith.constant 0 : index
    %c0_22 = arith.constant 0 : index
    %29 = vector.load %arg2[%c4, %c0_21, %c0_22] : memref<9x128x128xbf16, #tpu.memory_space<vmem>>, vector<1x128x128xbf16>
    %30 = vector.shape_cast %29 : vector<1x128x128xbf16> to vector<128x128xbf16>
    %cst_23 = arith.constant dense<0.000000e+00> : vector<324x128xf32>
    %31 = tpu.matmul %28, %30, %cst_23 {dimension_numbers = #tpu.dot_dimension_numbers<[1], [0], [0], [1], [0, 0, 1, 1], [], []>} : vector<324x128xbf16>, vector<128x128xbf16>, vector<324x128xf32> -> vector<324x128xf32>
    %32 = arith.addf %26, %31 : vector<324x128xf32>
    %c25 = arith.constant 25 : index
    %c0_24 = arith.constant 0 : index
    %33 = vector.load %arg7[%c25, %c0_24] : memref<372x128xf32, #tpu.memory_space<vmem>>, vector<324x128xf32>
    %34 = arith.truncf %33 : vector<324x128xf32> to vector<324x128xbf16>
    %c5_25 = arith.constant 5 : index
    %c0_26 = arith.constant 0 : index
    %c0_27 = arith.constant 0 : index
    %35 = vector.load %arg2[%c5_25, %c0_26, %c0_27] : memref<9x128x128xbf16, #tpu.memory_space<vmem>>, vector<1x128x128xbf16>
    %36 = vector.shape_cast %35 : vector<1x128x128xbf16> to vector<128x128xbf16>
    %cst_28 = arith.constant dense<0.000000e+00> : vector<324x128xf32>
    %37 = tpu.matmul %34, %36, %cst_28 {dimension_numbers = #tpu.dot_dimension_numbers<[1], [0], [0], [1], [0, 0, 1, 1], [], []>} : vector<324x128xbf16>, vector<128x128xbf16>, vector<324x128xf32> -> vector<324x128xf32>
    %38 = arith.addf %32, %37 : vector<324x128xf32>
    %c41 = arith.constant 41 : index
    %c0_29 = arith.constant 0 : index
    %39 = vector.load %arg7[%c41, %c0_29] : memref<372x128xf32, #tpu.memory_space<vmem>>, vector<324x128xf32>
    %40 = arith.truncf %39 : vector<324x128xf32> to vector<324x128xbf16>
    %c6_30 = arith.constant 6 : index
    %c0_31 = arith.constant 0 : index
    %c0_32 = arith.constant 0 : index
    %41 = vector.load %arg2[%c6_30, %c0_31, %c0_32] : memref<9x128x128xbf16, #tpu.memory_space<vmem>>, vector<1x128x128xbf16>
    %42 = vector.shape_cast %41 : vector<1x128x128xbf16> to vector<128x128xbf16>
    %cst_33 = arith.constant dense<0.000000e+00> : vector<324x128xf32>
    %43 = tpu.matmul %40, %42, %cst_33 {dimension_numbers = #tpu.dot_dimension_numbers<[1], [0], [0], [1], [0, 0, 1, 1], [], []>} : vector<324x128xbf16>, vector<128x128xbf16>, vector<324x128xf32> -> vector<324x128xf32>
    %44 = arith.addf %38, %43 : vector<324x128xf32>
    %c42 = arith.constant 42 : index
    %c0_34 = arith.constant 0 : index
    %45 = vector.load %arg7[%c42, %c0_34] : memref<372x128xf32, #tpu.memory_space<vmem>>, vector<324x128xf32>
    %46 = arith.truncf %45 : vector<324x128xf32> to vector<324x128xbf16>
    %c7_35 = arith.constant 7 : index
    %c0_36 = arith.constant 0 : index
    %c0_37 = arith.constant 0 : index
    %47 = vector.load %arg2[%c7_35, %c0_36, %c0_37] : memref<9x128x128xbf16, #tpu.memory_space<vmem>>, vector<1x128x128xbf16>
    %48 = vector.shape_cast %47 : vector<1x128x128xbf16> to vector<128x128xbf16>
    %cst_38 = arith.constant dense<0.000000e+00> : vector<324x128xf32>
    %49 = tpu.matmul %46, %48, %cst_38 {dimension_numbers = #tpu.dot_dimension_numbers<[1], [0], [0], [1], [0, 0, 1, 1], [], []>} : vector<324x128xbf16>, vector<128x128xbf16>, vector<324x128xf32> -> vector<324x128xf32>
    %50 = arith.addf %44, %49 : vector<324x128xf32>
    %c43 = arith.constant 43 : index
    %c0_39 = arith.constant 0 : index
    %51 = vector.load %arg7[%c43, %c0_39] : memref<372x128xf32, #tpu.memory_space<vmem>>, vector<324x128xf32>
    %52 = arith.truncf %51 : vector<324x128xf32> to vector<324x128xbf16>
    %c8 = arith.constant 8 : index
    %c0_40 = arith.constant 0 : index
    %c0_41 = arith.constant 0 : index
    %53 = vector.load %arg2[%c8, %c0_40, %c0_41] : memref<9x128x128xbf16, #tpu.memory_space<vmem>>, vector<1x128x128xbf16>
    %54 = vector.shape_cast %53 : vector<1x128x128xbf16> to vector<128x128xbf16>
    %cst_42 = arith.constant dense<0.000000e+00> : vector<324x128xf32>
    %55 = tpu.matmul %52, %54, %cst_42 {dimension_numbers = #tpu.dot_dimension_numbers<[1], [0], [0], [1], [0, 0, 1, 1], [], []>} : vector<324x128xbf16>, vector<128x128xbf16>, vector<324x128xf32> -> vector<324x128xf32>
    %56 = arith.addf %50, %55 : vector<324x128xf32>
    %c0_43 = arith.constant 0 : index
    %c0_44 = arith.constant 0 : index
    %57 = vector.load %arg3[%c0_43, %c0_44] : memref<1x128xf32, #tpu.memory_space<vmem>>, vector<1x128xf32>
    %58 = vector.broadcast %57 : vector<1x128xf32> to vector<324x128xf32>
    %59 = arith.addf %56, %58 : vector<324x128xf32>
    %c0_45 = arith.constant 0 : index
    %c0_46 = arith.constant 0 : index
    %c0_47 = arith.constant 0 : index
    %60 = vector.load %arg4[%c0_45, %c0_46, %c0_47] : memref<1x324x128xbf16, #tpu.memory_space<vmem>>, vector<1x324x128xbf16>
    %61 = vector.shape_cast %60 : vector<1x324x128xbf16> to vector<324x128xbf16>
    %c0_48 = arith.constant 0 : index
    %c0_49 = arith.constant 0 : index
    %62 = vector.load %arg5[%c0_48, %c0_49] : memref<128x128xbf16, #tpu.memory_space<vmem>>, vector<128x128xbf16>
    %cst_50 = arith.constant dense<0.000000e+00> : vector<324x128xf32>
    %63 = tpu.matmul %61, %62, %cst_50 {dimension_numbers = #tpu.dot_dimension_numbers<[1], [0], [0], [1], [0, 0, 1, 1], [], []>} : vector<324x128xbf16>, vector<128x128xbf16>, vector<324x128xf32> -> vector<324x128xf32>
    %64 = arith.addf %59, %63 : vector<324x128xf32>
    %cst_51 = arith.constant 0.707106769 : f32
    %65 = vector.broadcast %cst_51 : f32 to vector<324x128xf32>
    %66 = arith.mulf %64, %65 : vector<324x128xf32>
    %c0_52 = arith.constant 0 : index
    %c0_53 = arith.constant 0 : index
    %c0_54 = arith.constant 0 : index
    %67 = vector.load %arg6[%c0_52, %c0_53, %c0_54] : memref<1x324x128xf32, #tpu.memory_space<vmem>>, vector<1x324x128xf32>
    %68 = vector.shape_cast %67 : vector<1x324x128xf32> to vector<324x128xf32>
    %69 = vector.shape_cast %66 : vector<324x128xf32> to vector<1x324x128xf32>
    tpu.vector_store %arg6[%c0_52, %c0_53, %c0_54], %69 {strides = array<i32>} : memref<1x324x128xf32, #tpu.memory_space<vmem>>, vector<1x324x128xf32>,
    return
  }
  func.func @transform_0(%arg0: i32) -> (i32, i32, i32) {
    %c0_i32 = arith.constant 0 : i32
    %c0_i32_0 = arith.constant 0 : i32
    %c0_i32_1 = arith.constant 0 : i32
    return %arg0, %c0_i32, %c0_i32_0 : i32, i32, i32
  }
  func.func @transform_1(%arg0: i32) -> (i32, i32, i32) {
    %c0_i32 = arith.constant 0 : i32
    %c0_i32_0 = arith.constant 0 : i32
    %c0_i32_1 = arith.constant 0 : i32
    %c0_i32_2 = arith.constant 0 : i32
    return %c0_i32, %c0_i32_0, %c0_i32_1 : i32, i32, i32
  }
  func.func @transform_2(%arg0: i32) -> (i32, i32) {
    %c0_i32 = arith.constant 0 : i32
    %c0_i32_0 = arith.constant 0 : i32
    %c0_i32_1 = arith.constant 0 : i32
    return %c0_i32, %c0_i32_0 : i32, i32
  }
  func.func @transform_3(%arg0: i32) -> (i32, i32, i32) {
    %c0_i32 = arith.constant 0 : i32
    %c0_i32_0 = arith.constant 0 : i32
    %c0_i32_1 = arith.constant 0 : i32
    return %arg0, %c0_i32, %c0_i32_0 : i32, i32, i32
  }
  func.func @transform_4(%arg0: i32) -> (i32, i32) {
    %c0_i32 = arith.constant 0 : i32
    %c0_i32_0 = arith.constant 0 : i32
    %c0_i32_1 = arith.constant 0 : i32
    return %c0_i32, %c0_i32_0 : i32, i32
  }
  func.func @transform_5(%arg0: i32) -> (i32, i32, i32) {
    %c0_i32 = arith.constant 0 : i32
    %c0_i32_0 = arith.constant 0 : i32
    %c0_i32_1 = arith.constant 0 : i32
    return %arg0, %c0_i32, %c0_i32_0 : i32, i32, i32
  }
}

</mosaic_0001>

<bundles_post_ra>
// kernel: adain_resblk_pallas.3
= control target key start
LH: loop header
LB: loop body
LE: loop exit
PB: predicated region body
PF: predicated region fallthrough
CT: control target
= control target key end

     0   :  { %s2000_s12 = smov 0   ;;  %s3330_s0 = inlined_call_operand.vmem [shape: bf16[2,420,128], index: 0, kind: input, shape index: {}]   ;;  %s3331_s1 = inlined_call_operand.vmem [shape: f32[2,2,128], index: 1, kind: input, shape index: {}]   ;;  %s3332_s2 = inlined_call_operand.vmem [shape: f32[420,1], index: 2, kind: input, shape index: {}]   ;;  %s3333_s3 = inlined_call_operand.vmem [shape: bf16[2,420,128], index: 3, kind: output, shape index: {}]  }
   0x1 LB: > { %s1557_s13 = sadd.s32 4294967295, %s1977_s12   ;;  %p1561_p0 = scmp.ge.s32.totalorder %s1977_s12, 1  ;;  %s1977_s12 = sphi %s2000_s12, %s13_s12  }
   0x2   : > { %p146_p1 = scmp.lt.s32.totalorder %s1977_s12, 3 }
   0x4   : > { %p147_p2 = pnand %p1561_p0, %p146_p1 }
   0x6   : > { %150 = sbr.rel (%p147_p2) target bundleno = 396 (0x18c), region = 32 }
   0xb   : > { %v297_v0 = vld [vmem:[%s3332_s2 + $0x10] sm:$0xff]  ;;  %v295_v1 = vld [vmem:[%s3332_s2] sm:$0xff]  ;;  %v1979_v2 = vmov 0   ;;  %v298_v3 = vld [vmem:[%s3332_s2 + $0x18] sm:$0xff]  ;;  %p174_p3 = scmp.lt.s32.totalorder %s1557_s13, 1  ;;  %vm717_vm0 = vcmask 1043456  }
   0xc   : > { %1968 = vset.pattern.permute.xlu1 %v1979_v2  ;;  %1967 = vset.pattern.permute.xlu0 %v1979_v2  ;;  %v296_v4 = vld [vmem:[%s3332_s2 + $0x8] sm:$0xff]  ;;  %v299_v6 = vld [vmem:[%s3332_s2 + $0x20] sm:$0xff]  ;;  %v302_v7 = vld [vmem:[%s3332_s2 + $0x38] sm:$0xff] }
   0xd   : > { %360 = vperm.xlu1 %1968, %v297_v0   ;;  %350 = vperm.xlu0 %1967, %v295_v1   ;;  %v300_v5 = vld [vmem:[%s3332_s2 + $0x28] sm:$0xff]  ;;  %v301_v8 = vld [vmem:[%s3332_s2 + $0x30] sm:$0xff]  ;;  %v303_v10 = vld [vmem:[%s3332_s2 + $0x40] sm:$0xff]  ;;  %s3718_s13 = smov (!%p174_p3, %s1557_s13), 1 }
   0xe   : > { %v304_v9 = vld [vmem:[%s3332_s2 + $0x48] sm:$0xff]  ;;  %v306_v11 = vld [vmem:[%s3332_s2 + $0x58] sm:$0xff]  ;;  %v305_v12 = vld [vmem:[%s3332_s2 + $0x50] sm:$0xff]  ;;  %s1957_s20 = smul.u32 212, %s3718_s13  ;;  %s1563_s24 = sshll.u32 %s3718_s13, 1 }
   0xf   : > { %v308_v13 = vld [vmem:[%s3332_s2 + $0x68] sm:$0xff]  ;;  %v307_v14 = vld [vmem:[%s3332_s2 + $0x60] sm:$0xff]  ;;  %v310_v15 = vld [vmem:[%s3332_s2 + $0x78] sm:$0xff]  ;;  %s182_s27 = scalar_lea.vmem %s3331_s1, %s1563_s24 }
  0x10   : > { %v309_v16 = vld [vmem:[%s3332_s2 + $0x70] sm:$0xff]  ;;  %v312_v17 = vld [vmem:[%s3332_s2 + $0x88] sm:$0xff]  ;;  %v311_v18 = vld [vmem:[%s3332_s2 + $0x80] sm:$0xff]  ;;  %s2179_s23 = scalar_lea.vmem %s3330_s0, %s1957_s20  ;;  %s3282_s30 = scalar_lea.vmem %s3333_s3, %s1957_s20 }
  0x11   : > { %365 = vperm.xlu1 %1968, %v298_v3   ;;  %355 = vperm.xlu0 %1967, %v296_v4   ;;  %v314_v19 = vld [vmem:[%s3332_s2 + $0x98] sm:$0xff]  ;;  %v313_v20 = vld [vmem:[%s3332_s2 + $0x90] sm:$0xff]  ;;  %v316_v21 = vld [vmem:[%s3332_s2 + $0xa8] sm:$0xff] }
  0x12   : > { %v315_v22 = vld [vmem:[%s3332_s2 + $0xa0] sm:$0xff]  ;;  %v318_v23 = vld [vmem:[%s3332_s2 + $0xb8] sm:$0xff]  ;;  %v317_v24 = vld [vmem:[%s3332_s2 + $0xb0] sm:$0xff] }
  0x13   : > { %v320_v25 = vld [vmem:[%s3332_s2 + $0xc8] sm:$0xff]  ;;  %v319_v26 = vld [vmem:[%s3332_s2 + $0xc0] sm:$0xff]  ;;  %v322_v27 = vld [vmem:[%s3332_s2 + $0xd8] sm:$0xff] }
  0x14   : > { %v321_v28 = vld [vmem:[%s3332_s2 + $0xd0] sm:$0xff]  ;;  %v324_v29 = vld [vmem:[%s3332_s2 + $0xe8] sm:$0xff]  ;;  %v323_v30 = vld [vmem:[%s3332_s2 + $0xe0] sm:$0xff] }
  0x15   : > { %375 = vperm.xlu1 %1968, %v300_v5   ;;  %370 = vperm.xlu0 %1967, %v299_v6   ;;  %v326_v31 = vld [vmem:[%s3332_s2 + $0xf8] sm:$0xff]  ;;  %v325_v32 = vld [vmem:[%s3332_s2 + $0xf0] sm:$0xff]  ;;  %v328_v33 = vld [vmem:[%s3332_s2 + $0x108] sm:$0xff] }
  0x16   : > { %v327_v34 = vld [vmem:[%s3332_s2 + $0x100] sm:$0xff]  ;;  %v330_v35 = vld [vmem:[%s3332_s2 + $0x118] sm:$0xff]  ;;  %v329_v36 = vld [vmem:[%s3332_s2 + $0x110] sm:$0xff] }
  0x17   : > { %v332_v37 = vld [vmem:[%s3332_s2 + $0x128] sm:$0xff]  ;;  %v331_v38 = vld [vmem:[%s3332_s2 + $0x120] sm:$0xff]  ;;  %v334_v39 = vld [vmem:[%s3332_s2 + $0x138] sm:$0xff] }
  0x18   : > { %v333_v40 = vld [vmem:[%s3332_s2 + $0x130] sm:$0xff]  ;;  %v336_v41 = vld [vmem:[%s3332_s2 + $0x148] sm:$0xff]  ;;  %v335_v42 = vld [vmem:[%s3332_s2 + $0x140] sm:$0xff] }
  0x19   : > { %385 = vperm.xlu1 %1968, %v302_v7   ;;  %380 = vperm.xlu0 %1967, %v301_v8   ;;  %v338_v43 = vld [vmem:[%s3332_s2 + $0x158] sm:$0xff]  ;;  %v337_v44 = vld [vmem:[%s3332_s2 + $0x150] sm:$0xff]  ;;  %v340_v45 = vld [vmem:[%s3332_s2 + $0x168] sm:$0xff] }
  0x1a   : > { %v339_v46 = vld [vmem:[%s3332_s2 + $0x160] sm:$0xff]  ;;  %v342_v47 = vld [vmem:[%s3332_s2 + $0x178] sm:$0xff]  ;;  %v341_v48 = vld [vmem:[%s3332_s2 + $0x170] sm:$0xff] }
  0x1b   : > { %v344_v49 = vld [vmem:[%s3332_s2 + $0x188] sm:$0xff]  ;;  %v343_v50 = vld [vmem:[%s3332_s2 + $0x180] sm:$0xff]  ;;  %v346_v51 = vld [vmem:[%s3332_s2 + $0x198] sm:$0xff] }
  0x1c   : > { %v345_v52 = vld [vmem:[%s3332_s2 + $0x190] sm:$0xff]  ;;  %v347_v53 = vld [vmem:[%s3332_s2 + $0x1a0] sm:$0xf]  ;;  %v1907_v55 = vld [vmem:[%s2179_s23 + $0x8] sm:$0xff]  }
  0x1d   : > { %395 = vperm.xlu1 %1968, %v304_v9   ;;  %390 = vperm.xlu0 %1967, %v303_v10   ;;  %v1674_v54 = vld [vmem:[%s2179_s23] sm:$0xff]   ;;  %v2189_v59 = vunpack.c.l.bf16 %v1907_v55  ;;  %v1908_v61 = vld [vmem:[%s2179_s23 + $0x10] sm:$0xff]   ;;  %v2196_v63 = vunpack.c.h.bf16 %v1907_v55  ;;  %v1909_v5 = vld [vmem:[%s2179_s23 + $0x18] sm:$0xff]  }
  0x1e   : > { %v2183_v56 = vunpack.c.l.bf16 %v1674_v54  ;;  %v2191_v60 = vunpack.c.h.bf16 %v1674_v54  ;;  %v2206_v4 = vunpack.c.l.bf16 %v1908_v61  ;;  %v2209_v6 = vunpack.c.h.bf16 %v1908_v61 }
  0x21   : > { %405 = vperm.xlu1 %1968, %v306_v11   ;;  %400 = vperm.xlu0 %1967, %v305_v12  }
  0x25   : > { %415 = vperm.xlu1 %1968, %v308_v13   ;;  %410 = vperm.xlu0 %1967, %v307_v14   ;;  %v2219_v13 = vunpack.c.l.bf16 %v1909_v5 }
  0x29   : > { %425 = vperm.xlu1 %1968, %v310_v15   ;;  %420 = vperm.xlu0 %1967, %v309_v16  }
  0x2d   : > { %435 = vperm.xlu1 %1968, %v312_v17   ;;  %430 = vperm.xlu0 %1967, %v311_v18   ;;  %v1910_v18 = vld [vmem:[%s2179_s23 + $0x20] sm:$0xff]  }
  0x31   : > { %445 = vperm.xlu1 %1968, %v314_v19   ;;  %440 = vperm.xlu0 %1967, %v313_v20   ;;  %v2225_v19 = vunpack.c.h.bf16 %v1909_v5 }
  0x35   : > { %455 = vperm.xlu1 %1968, %v316_v21   ;;  %450 = vperm.xlu0 %1967, %v315_v22  }
  0x39   : > { %465 = vperm.xlu1 %1968, %v318_v23   ;;  %460 = vperm.xlu0 %1967, %v317_v24  }
  0x3d   : > { %475 = vperm.xlu1 %1968, %v320_v25   ;;  %470 = vperm.xlu0 %1967, %v319_v26   ;;  %v2234_v26 = vunpack.c.l.bf16 %v1910_v18 }
  0x41   : > { %485 = vperm.xlu1 %1968, %v322_v27   ;;  %480 = vperm.xlu0 %1967, %v321_v28  }
  0x45   : > { %495 = vperm.xlu1 %1968, %v324_v29   ;;  %490 = vperm.xlu0 %1967, %v323_v30  }
  0x49   : > { %505 = vperm.xlu1 %1968, %v326_v31   ;;  %500 = vperm.xlu0 %1967, %v325_v32   ;;  %v1911_v31 = vld [vmem:[%s2179_s23 + $0x28] sm:$0xff]   ;;  %v2240_v32 = vunpack.c.h.bf16 %v1910_v18 }
  0x4d   : > { %515 = vperm.xlu1 %1968, %v328_v33   ;;  %510 = vperm.xlu0 %1967, %v327_v34  }
  0x51   : > { %525 = vperm.xlu1 %1968, %v330_v35   ;;  %520 = vperm.xlu0 %1967, %v329_v36  }
  0x55   : > { %535 = vperm.xlu1 %1968, %v332_v37   ;;  %530 = vperm.xlu0 %1967, %v331_v38  }
  0x59   : > { %545 = vperm.xlu1 %1968, %v334_v39   ;;  %540 = vperm.xlu0 %1967, %v333_v40   ;;  %v2249_v39 = vunpack.c.l.bf16 %v1911_v31 }
  0x5d   : > { %555 = vperm.xlu1 %1968, %v336_v41   ;;  %550 = vperm.xlu0 %1967, %v335_v42  }
  0x61   : > { %565 = vperm.xlu1 %1968, %v338_v43   ;;  %560 = vperm.xlu0 %1967, %v337_v44   ;;  %v1912_v44 = vld [vmem:[%s2179_s23 + $0x30] sm:$0xff]  }
  0x65   : > { %575 = vperm.xlu1 %1968, %v340_v45   ;;  %570 = vperm.xlu0 %1967, %v339_v46   ;;  %v2255_v45 = vunpack.c.h.bf16 %v1911_v31 }
  0x69   : > { %585 = vperm.xlu1 %1968, %v342_v47   ;;  %580 = vperm.xlu0 %1967, %v341_v48  }
  0x6d   : > { %595 = vperm.xlu1 %1968, %v344_v49   ;;  %590 = vperm.xlu0 %1967, %v343_v50  }
  0x71   : > { %605 = vperm.xlu1 %1968, %v346_v51   ;;  %600 = vperm.xlu0 %1967, %v345_v52   ;;  %v2264_v52 = vunpack.c.l.bf16 %v1912_v44 }
  0x75   : > { %610 = vperm.xlu0 %1967, %v347_v53  }
  0x88   : > { %v2185_v57 = vpop.permute.xlu1 %360  ;;  %v2187_v58 = vpop.permute.xlu0 %350 }
  0x89   : > { %3447 = vst [vmem:[#allocation2_spill] sm:$0xff] %v2185_v57  ;;  %3448 = vst [vmem:[#allocation3_spill] sm:$0xff] %v2187_v58  ;;  %v613_v62 = vmul.f32 %v2183_v56, %v2187_v58  ;;  %v615_v2 = vmul.f32 %v2189_v59, %v2185_v57 }
  0x8b   : > { %v727_v7 = vmul.f32 %v2183_v56, %v613_v62  ;;  %v729_v14 = vmul.f32 %v2189_v59, %v615_v2 }
  0x8c   : > { %v2198_v0 = vpop.permute.xlu1 %365  ;;  %v2200_v1 = vpop.permute.xlu0 %355 }
  0x8d   : > { %3449 = vst [vmem:[#allocation4_spill] sm:$0xff] %v2198_v0  ;;  %3450 = vst [vmem:[#allocation5_spill] sm:$0xff] %v2200_v1  ;;  %v614_v3 = vmul.f32 %v2191_v60, %v2200_v1  ;;  %v616_v8 = vmul.f32 %v2196_v63, %v2198_v0  ;;  %v1928_v0 = vld [vmem:[%s2179_s23 + $0xb0] sm:$0xff]   ;;  %v1929_v1 = vld [vmem:[%s2179_s23 + $0xb8] sm:$0xff]  }
  0x8f   : > { %v666_v9 = vadd.f32 %v614_v3, %v613_v62  ;;  %v728_v10 = vmul.f32 %v2191_v60, %v614_v3  ;;  %v730_v20 = vmul.f32 %v2196_v63, %v616_v8  ;;  %v1913_v62 = vld [vmem:[%s2179_s23 + $0x38] sm:$0xff]  }
  0x90   : > { %v2215_v11 = vpop.permute.xlu1 %375  ;;  %v2217_v12 = vpop.permute.xlu0 %370 }
  0x91   : > { %3451 = vst [vmem:[#allocation6_spill] sm:$0xff] %v2215_v11  ;;  %3452 = vst [vmem:[#allocation7_spill] sm:$0xff] %v2217_v12  ;;  %v667_v15 = vadd.f32 %v666_v9, %v615_v2  ;;  %v780_v16 = vadd.f32 %v728_v10, %v727_v7  ;;  %v617_v17 = vmul.f32 %v2206_v4, %v2217_v12  ;;  %v2270_v2 = vunpack.c.h.bf16 %v1912_v44 }
  0x92   : > { %v618_v22 = vmul.f32 %v2209_v6, %v2215_v11  ;;  %v1927_v11 = vld [vmem:[%s2179_s23 + $0xa8] sm:$0xff]  }
  0x93   : > { %v781_v21 = vadd.f32 %v780_v16, %v729_v14  ;;  %v668_v23 = vadd.f32 %v667_v15, %v616_v8  ;;  %v731_v28 = vmul.f32 %v2206_v4, %v617_v17  ;;  %v2279_v14 = vunpack.c.l.bf16 %v1913_v62 }
  0x94   : > { %v2230_v24 = vpop.permute.xlu1 %385  ;;  %v2232_v25 = vpop.permute.xlu0 %380  ;;  %v732_v33 = vmul.f32 %v2209_v6, %v618_v22 }
  0x95   : > { %3453 = vst [vmem:[#allocation8_spill] sm:$0xff] %v2230_v24  ;;  %3454 = vst [vmem:[#allocation9_spill] sm:$0xff] %v2232_v25  ;;  %v669_v27 = vadd.f32 %v668_v23, %v617_v17  ;;  %v782_v29 = vadd.f32 %v781_v21, %v730_v20  ;;  %v619_v30 = vmul.f32 %v2219_v13, %v2232_v25  ;;  %v1914_v20 = vld [vmem:[%s2179_s23 + $0x40] sm:$0xff]   ;;  %v2285_v21 = vunpack.c.h.bf16 %v1913_v62  ;;  %v1916_v62 = vld [vmem:[%s2179_s23 + $0x50] sm:$0xff]  }
  0x96   : > { %v620_v35 = vmul.f32 %v2225_v19, %v2230_v24  ;;  %v2294_v31 = vunpack.c.l.bf16 %v1914_v20  ;;  %v1926_v24 = vld [vmem:[%s2179_s23 + $0xa0] sm:$0xff]  }
  0x97   : > { %v783_v34 = vadd.f32 %v782_v29, %v731_v28  ;;  %v670_v36 = vadd.f32 %v669_v27, %v618_v22  ;;  %v733_v41 = vmul.f32 %v2219_v13, %v619_v30 }
  0x98   : > { %v2245_v37 = vpop.permute.xlu1 %395  ;;  %v2247_v38 = vpop.permute.xlu0 %390  ;;  %v734_v46 = vmul.f32 %v2225_v19, %v620_v35 }
  0x99   : > { %3455 = vst [vmem:[#allocation10_spill] sm:$0xff] %v2245_v37  ;;  %3456 = vst [vmem:[#allocation11_spill] sm:$0xff] %v2247_v38  ;;  %v671_v40 = vadd.f32 %v670_v36, %v619_v30  ;;  %v784_v42 = vadd.f32 %v783_v34, %v732_v33  ;;  %v621_v43 = vmul.f32 %v2234_v26, %v2247_v38 }
  0x9a   : > { %v622_v48 = vmul.f32 %v2240_v32, %v2245_v37  ;;  %v1925_v37 = vld [vmem:[%s2179_s23 + $0x98] sm:$0xff]  }
  0x9b   : > { %v785_v47 = vadd.f32 %v784_v42, %v733_v41  ;;  %v672_v49 = vadd.f32 %v671_v40, %v620_v35  ;;  %v735_v54 = vmul.f32 %v2234_v26, %v621_v43  ;;  %v1915_v40 = vld [vmem:[%s2179_s23 + $0x48] sm:$0xff]   ;;  %v2300_v41 = vunpack.c.h.bf16 %v1914_v20 }
  0x9c   : > { %v2260_v50 = vpop.permute.xlu1 %405  ;;  %v2262_v51 = vpop.permute.xlu0 %400  ;;  %v736_v3 = vmul.f32 %v2240_v32, %v622_v48 }
  0x9d   : > { %3457 = vst [vmem:[#allocation12_spill] sm:$0xff] %v2260_v50  ;;  %3458 = vst [vmem:[#allocation13_spill] sm:$0xff] %v2262_v51  ;;  %v673_v53 = vadd.f32 %v672_v49, %v621_v43  ;;  %v786_v55 = vadd.f32 %v785_v47, %v734_v46  ;;  %v623_v61 = vmul.f32 %v2249_v39, %v2262_v51  ;;  %v2309_v49 = vunpack.c.l.bf16 %v1915_v40 }
  0x9e   : > { %v624_v7 = vmul.f32 %v2255_v45, %v2260_v50  ;;  %v1924_v50 = vld [vmem:[%s2179_s23 + $0x90] sm:$0xff]  }
  0x9f   : > { %v787_v5 = vadd.f32 %v786_v55, %v735_v54  ;;  %v674_v8 = vadd.f32 %v673_v53, %v622_v48  ;;  %v737_v16 = vmul.f32 %v2249_v39, %v623_v61 }
  0xa0   : > { %v2275_v9 = vpop.permute.xlu1 %415  ;;  %v2277_v10 = vpop.permute.xlu0 %410  ;;  %v738_v22 = vmul.f32 %v2255_v45, %v624_v7 }
  0xa1   : > { %3459 = vst [vmem:[#allocation14_spill] sm:$0xff] %v2275_v9  ;;  %3460 = vst [vmem:[#allocation15_spill] sm:$0xff] %v2277_v10  ;;  %v675_v15 = vadd.f32 %v674_v8, %v623_v61  ;;  %v788_v17 = vadd.f32 %v787_v5, %v736_v3  ;;  %v625_v18 = vmul.f32 %v2264_v52, %v2277_v10  ;;  %v2315_v3 = vunpack.c.h.bf16 %v1915_v40 }
  0xa2   : > { %v626_v27 = vmul.f32 %v2270_v2, %v2275_v9  ;;  %v1923_v9 = vld [vmem:[%s2179_s23 + $0x88] sm:$0xff]  }
  0xa3   : > { %v789_v23 = vadd.f32 %v788_v17, %v737_v16  ;;  %v676_v28 = vadd.f32 %v675_v15, %v624_v7  ;;  %v739_v34 = vmul.f32 %v2264_v52, %v625_v18 }
  0xa4   : > { %v2290_v29 = vpop.permute.xlu1 %425  ;;  %v2292_v30 = vpop.permute.xlu0 %420  ;;  %v740_v42 = vmul.f32 %v2270_v2, %v626_v27 }
  0xa5   : > { %3461 = vst [vmem:[#allocation16_spill] sm:$0xff] %v2290_v29  ;;  %3462 = vst [vmem:[#allocation17_spill] sm:$0xff] %v2292_v30  ;;  %v677_v33 = vadd.f32 %v676_v28, %v625_v18  ;;  %v790_v35 = vadd.f32 %v789_v23, %v738_v22  ;;  %v627_v36 = vmul.f32 %v2279_v14, %v2292_v30  ;;  %v2324_v18 = vunpack.c.l.bf16 %v1916_v62  ;;  %v1917_v28 = vld [vmem:[%s2179_s23 + $0x58] sm:$0xff]  }
  0xa6   : > { %v628_v44 = vmul.f32 %v2285_v21, %v2290_v29  ;;  %v1922_v29 = vld [vmem:[%s2179_s23 + $0x80] sm:$0xff]  }
  0xa7   : > { %v791_v43 = vadd.f32 %v790_v35, %v739_v34  ;;  %v678_v46 = vadd.f32 %v677_v33, %v626_v27  ;;  %v741_v54 = vmul.f32 %v2279_v14, %v627_v36  ;;  %v2330_v33 = vunpack.c.h.bf16 %v1916_v62 }
  0xa8   : > { %v2305_v47 = vpop.permute.xlu1 %435  ;;  %v2307_v48 = vpop.permute.xlu0 %430  ;;  %v742_v5 = vmul.f32 %v2285_v21, %v628_v44  ;;  %v2345_v62 = vunpack.c.h.bf16 %v1917_v28 }
  0xa9   : > { %3463 = vst [vmem:[#allocation18_spill] sm:$0xff] %v2305_v47  ;;  %3464 = vst [vmem:[#allocation19_spill] sm:$0xff] %v2307_v48  ;;  %v679_v53 = vadd.f32 %v678_v46, %v627_v36  ;;  %v792_v55 = vadd.f32 %v791_v43, %v740_v42  ;;  %v629_v61 = vmul.f32 %v2294_v31, %v2307_v48 }
  0xaa   : > { %v630_v8 = vmul.f32 %v2300_v41, %v2305_v47  ;;  %v1921_v47 = vld [vmem:[%s2179_s23 + $0x78] sm:$0xff]  }
  0xab   : > { %v793_v7 = vadd.f32 %v792_v55, %v741_v54  ;;  %v680_v15 = vadd.f32 %v679_v53, %v628_v44  ;;  %v743_v22 = vmul.f32 %v2294_v31, %v629_v61  ;;  %v2339_v44 = vunpack.c.l.bf16 %v1917_v28 }
  0xac   : > { %v2320_v16 = vpop.permute.xlu1 %445  ;;  %v2322_v17 = vpop.permute.xlu0 %440  ;;  %v744_v34 = vmul.f32 %v2300_v41, %v630_v8 }
  0xad   : > { %3465 = vst [vmem:[#allocation20_spill] sm:$0xff] %v2320_v16  ;;  %3466 = vst [vmem:[#allocation21_spill] sm:$0xff] %v2322_v17  ;;  %v681_v20 = vadd.f32 %v680_v15, %v629_v61  ;;  %v794_v23 = vadd.f32 %v793_v7, %v742_v5  ;;  %v631_v27 = vmul.f32 %v2309_v49, %v2322_v17  ;;  %v1918_v61 = vld [vmem:[%s2179_s23 + $0x60] sm:$0xff]  }
  0xae   : > { %v632_v36 = vmul.f32 %v2315_v3, %v2320_v16  ;;  %v1920_v16 = vld [vmem:[%s2179_s23 + $0x70] sm:$0xff]  }
  0xaf   : > { %v795_v35 = vadd.f32 %v794_v23, %v743_v22  ;;  %v682_v40 = vadd.f32 %v681_v20, %v630_v8  ;;  %v745_v53 = vmul.f32 %v2309_v49, %v631_v27  ;;  %v2354_v23 = vunpack.c.l.bf16 %v1918_v61 }
  0xb0   : > { %v2335_v42 = vpop.permute.xlu1 %455  ;;  %v2337_v43 = vpop.permute.xlu0 %450  ;;  %v746_v5 = vmul.f32 %v2315_v3, %v632_v36 }
  0xb1   : > { %3467 = vst [vmem:[#allocation22_spill] sm:$0xff] %v2335_v42  ;;  %3468 = vst [vmem:[#allocation23_spill] sm:$0xff] %v2337_v43  ;;  %v683_v46 = vadd.f32 %v682_v40, %v631_v27  ;;  %v796_v54 = vadd.f32 %v795_v35, %v744_v34  ;;  %v633_v55 = vmul.f32 %v2324_v18, %v2337_v43  ;;  %v1919_v40 = vld [vmem:[%s2179_s23 + $0x68] sm:$0xff]  }
  0xb2   : > { %v634_v8 = vmul.f32 %v2330_v33, %v2335_v42 }
  0xb3   : > { %v797_v7 = vadd.f32 %v796_v54, %v745_v53  ;;  %v684_v15 = vadd.f32 %v683_v46, %v632_v36  ;;  %v747_v34 = vmul.f32 %v2324_v18, %v633_v55  ;;  %v2360_v53 = vunpack.c.h.bf16 %v1918_v61 }
  0xb4   : > { %v2350_v20 = vpop.permute.xlu1 %465  ;;  %v2352_v22 = vpop.permute.xlu0 %460  ;;  %v748_v54 = vmul.f32 %v2330_v33, %v634_v8 }
  0xb5   : > { %3469 = vst [vmem:[#allocation24_spill] sm:$0xff] %v2350_v20  ;;  %3470 = vst [vmem:[#allocation25_spill] sm:$0xff] %v2352_v22  ;;  %v685_v27 = vadd.f32 %v684_v15, %v633_v55  ;;  %v798_v35 = vadd.f32 %v797_v7, %v746_v5  ;;  %v635_v28 = vmul.f32 %v2339_v44, %v2352_v22  ;;  %v2369_v55 = vunpack.c.l.bf16 %v1919_v40 }
  0xb6   : > { %v636_v46 = vmul.f32 %v2345_v62, %v2350_v20 }
  0xb7   : > { %v799_v36 = vadd.f32 %v798_v35, %v747_v34  ;;  %v686_v42 = vadd.f32 %v685_v27, %v634_v8  ;;  %v749_v7 = vmul.f32 %v2339_v44, %v635_v28  ;;  %v2375_v34 = vunpack.c.h.bf16 %v1919_v40 }
  0xb8   : > { %v2365_v43 = vpop.permute.xlu1 %475  ;;  %v2367_v15 = vpop.permute.xlu0 %470  ;;  %v750_v35 = vmul.f32 %v2345_v62, %v636_v46 }
  0xb9   : > { %3471 = vst [vmem:[#allocation26_spill] sm:$0xff] %v2365_v43  ;;  %3472 = vst [vmem:[#allocation27_spill] sm:$0xff] %v2367_v15  ;;  %v687_v5 = vadd.f32 %v686_v42, %v635_v28  ;;  %v800_v22 = vadd.f32 %v799_v36, %v748_v54  ;;  %v637_v61 = vmul.f32 %v2354_v23, %v2367_v15  ;;  %v2384_v28 = vunpack.c.l.bf16 %v1920_v16 }
  0xba   : > { %v638_v27 = vmul.f32 %v2360_v53, %v2365_v43 }
  0xbb   : > { %v801_v8 = vadd.f32 %v800_v22, %v749_v7  ;;  %v688_v20 = vadd.f32 %v687_v5, %v636_v46  ;;  %v751_v36 = vmul.f32 %v2354_v23, %v637_v61  ;;  %v2390_v22 = vunpack.c.h.bf16 %v1920_v16 }
  0xbc   : > { %v2380_v17 = vpop.permute.xlu1 %485  ;;  %v2382_v42 = vpop.permute.xlu0 %480  ;;  %v752_v7 = vmul.f32 %v2360_v53, %v638_v27 }
  0xbd   : > { %3473 = vst [vmem:[#allocation28_spill] sm:$0xff] %v2380_v17  ;;  %3474 = vst [vmem:[#allocation29_spill] sm:$0xff] %v2382_v42  ;;  %v689_v54 = vadd.f32 %v688_v20, %v637_v61  ;;  %v802_v15 = vadd.f32 %v801_v8, %v750_v35  ;;  %v639_v40 = vmul.f32 %v2369_v55, %v2382_v42  ;;  %v2399_v61 = vunpack.c.l.bf16 %v1921_v47 }
  0xbe   : > { %v640_v5 = vmul.f32 %v2375_v34, %v2380_v17 }
  0xbf   : > { %v803_v46 = vadd.f32 %v802_v15, %v751_v36  ;;  %v690_v43 = vadd.f32 %v689_v54, %v638_v27  ;;  %v753_v8 = vmul.f32 %v2369_v55, %v639_v40  ;;  %v2405_v15 = vunpack.c.h.bf16 %v1921_v47 }
  0xc0   : > { %v2395_v48 = vpop.permute.xlu1 %495  ;;  %v2397_v20 = vpop.permute.xlu0 %490  ;;  %v754_v36 = vmul.f32 %v2375_v34, %v640_v5 }
  0xc1   : > { %3475 = vst [vmem:[#allocation30_spill] sm:$0xff] %v2395_v48  ;;  %3476 = vst [vmem:[#allocation31_spill] sm:$0xff] %v2397_v20  ;;  %v691_v35 = vadd.f32 %v690_v43, %v639_v40  ;;  %v804_v42 = vadd.f32 %v803_v46, %v752_v7  ;;  %v641_v16 = vmul.f32 %v2384_v28, %v2397_v20  ;;  %v2414_v40 = vunpack.c.l.bf16 %v1922_v29 }
  0xc2   : > { %v642_v54 = vmul.f32 %v2390_v22, %v2395_v48 }
  0xc3   : > { %v805_v27 = vadd.f32 %v804_v42, %v753_v8  ;;  %v692_v17 = vadd.f32 %v691_v35, %v640_v5  ;;  %v755_v46 = vmul.f32 %v2384_v28, %v641_v16  ;;  %v2420_v42 = vunpack.c.h.bf16 %v1922_v29 }
  0xc4   : > { %v2410_v30 = vpop.permute.xlu1 %505  ;;  %v2412_v43 = vpop.permute.xlu0 %500  ;;  %v756_v8 = vmul.f32 %v2390_v22, %v642_v54 }
  0xc5   : > { %3477 = vst [vmem:[#allocation32_spill] sm:$0xff] %v2410_v30  ;;  %3478 = vst [vmem:[#allocation33_spill] sm:$0xff] %v2412_v43  ;;  %v693_v7 = vadd.f32 %v692_v17, %v641_v16  ;;  %v806_v20 = vadd.f32 %v805_v27, %v754_v36  ;;  %v643_v47 = vmul.f32 %v2399_v61, %v2412_v43  ;;  %v2429_v16 = vunpack.c.l.bf16 %v1923_v9 }
  0xc6   : > { %v644_v35 = vmul.f32 %v2405_v15, %v2410_v30 }
  0xc7   : > { %v807_v5 = vadd.f32 %v806_v20, %v755_v46  ;;  %v694_v48 = vadd.f32 %v693_v7, %v642_v54  ;;  %v757_v27 = vmul.f32 %v2399_v61, %v643_v47  ;;  %v2435_v20 = vunpack.c.h.bf16 %v1923_v9 }
  0xc8   : > { %v2425_v10 = vpop.permute.xlu1 %515  ;;  %v2427_v17 = vpop.permute.xlu0 %510  ;;  %v758_v46 = vmul.f32 %v2405_v15, %v644_v35 }
  0xc9   : > { %3479 = vst [vmem:[#allocation34_spill] sm:$0xff] %v2425_v10  ;;  %3480 = vst [vmem:[#allocation35_spill] sm:$0xff] %v2427_v17  ;;  %v695_v36 = vadd.f32 %v694_v48, %v643_v47  ;;  %v808_v43 = vadd.f32 %v807_v5, %v756_v8  ;;  %v645_v29 = vmul.f32 %v2414_v40, %v2427_v17  ;;  %v2444_v47 = vunpack.c.l.bf16 %v1924_v50 }
  0xca   : > { %v646_v7 = vmul.f32 %v2420_v42, %v2425_v10 }
  0xcb   : > { %v809_v54 = vadd.f32 %v808_v43, %v757_v27  ;;  %v696_v30 = vadd.f32 %v695_v36, %v644_v35  ;;  %v759_v5 = vmul.f32 %v2414_v40, %v645_v29  ;;  %v2450_v43 = vunpack.c.h.bf16 %v1924_v50 }
  0xcc   : > { %v2440_v51 = vpop.permute.xlu1 %525  ;;  %v2442_v48 = vpop.permute.xlu0 %520  ;;  %v760_v27 = vmul.f32 %v2420_v42, %v646_v7 }
  0xcd   : > { %3481 = vst [vmem:[#allocation36_spill] sm:$0xff] %v2440_v51  ;;  %3482 = vst [vmem:[#allocation37_spill] sm:$0xff] %v2442_v48  ;;  %v697_v8 = vadd.f32 %v696_v30, %v645_v29  ;;  %v810_v17 = vadd.f32 %v809_v54, %v758_v46  ;;  %v647_v9 = vmul.f32 %v2429_v16, %v2442_v48  ;;  %v2459_v29 = vunpack.c.l.bf16 %v1925_v37 }
  0xce   : > { %v648_v36 = vmul.f32 %v2435_v20, %v2440_v51 }
  0xcf   : > { %v811_v35 = vadd.f32 %v810_v17, %v759_v5  ;;  %v698_v10 = vadd.f32 %v697_v8, %v646_v7  ;;  %v761_v54 = vmul.f32 %v2429_v16, %v647_v9  ;;  %v2465_v17 = vunpack.c.h.bf16 %v1925_v37 }
  0xd0   : > { %v2455_v38 = vpop.permute.xlu1 %535  ;;  %v2457_v30 = vpop.permute.xlu0 %530  ;;  %v762_v5 = vmul.f32 %v2435_v20, %v648_v36 }
  0xd1   : > { %3483 = vst [vmem:[#allocation38_spill] sm:$0xff] %v2455_v38  ;;  %3484 = vst [vmem:[#allocation39_spill] sm:$0xff] %v2457_v30  ;;  %v699_v46 = vadd.f32 %v698_v10, %v647_v9  ;;  %v812_v48 = vadd.f32 %v811_v35, %v760_v27  ;;  %v649_v50 = vmul.f32 %v2444_v47, %v2457_v30  ;;  %v2474_v9 = vunpack.c.l.bf16 %v1926_v24 }
  0xd2   : > { %3485 = vst [vmem:[#allocation40_spill] sm:$0xff] %v2465_v17  ;;  %v650_v8 = vmul.f32 %v2450_v43, %v2455_v38 }
  0xd3   : > { %v813_v7 = vadd.f32 %v812_v48, %v761_v54  ;;  %v700_v51 = vadd.f32 %v699_v46, %v648_v36  ;;  %3488 = vst [vmem:[#allocation43_spill] sm:$0xff] %v2474_v9  ;;  %v763_v35 = vmul.f32 %v2444_v47, %v649_v50  ;;  %v2480_v48 = vunpack.c.h.bf16 %v1926_v24 }
  0xd4   : > { %v2470_v25 = vpop.permute.xlu1 %545  ;;  %v2472_v10 = vpop.permute.xlu0 %540  ;;  %v764_v54 = vmul.f32 %v2450_v43, %v650_v8 }
  0xd5   : > { %3486 = vst [vmem:[#allocation41_spill] sm:$0xff] %v2470_v25  ;;  %3487 = vst [vmem:[#allocation42_spill] sm:$0xff] %v2472_v10  ;;  %v701_v27 = vadd.f32 %v700_v51, %v649_v50  ;;  %v814_v30 = vadd.f32 %v813_v7, %v762_v5  ;;  %v651_v37 = vmul.f32 %v2459_v29, %v2472_v10  ;;  %v2489_v50 = vunpack.c.l.bf16 %v1927_v11 }
  0xd6   : > { %3489 = vst [vmem:[#allocation44_spill] sm:$0xff] %v2480_v48  ;;  %v652_v46 = vmul.f32 %v2465_v17, %v2470_v25 }
  0xd7   : > { %v815_v36 = vadd.f32 %v814_v30, %v763_v35  ;;  %v702_v38 = vadd.f32 %v701_v27, %v650_v8  ;;  %3492 = vst [vmem:[#allocation47_spill] sm:$0xff] %v2489_v50  ;;  %v765_v7 = vmul.f32 %v2459_v29, %v651_v37  ;;  %v2495_v30 = vunpack.c.h.bf16 %v1927_v11 }
  0xd8   : > { %v2485_v12 = vpop.permute.xlu1 %555  ;;  %v2487_v51 = vpop.permute.xlu0 %550  ;;  %v766_v35 = vmul.f32 %v2465_v17, %v652_v46 }
  0xd9   : > { %3490 = vst [vmem:[#allocation45_spill] sm:$0xff] %v2485_v12  ;;  %3491 = vst [vmem:[#allocation46_spill] sm:$0xff] %v2487_v51  ;;  %v703_v5 = vadd.f32 %v702_v38, %v651_v37  ;;  %v816_v10 = vadd.f32 %v815_v36, %v764_v54  ;;  %v653_v24 = vmul.f32 %v2474_v9, %v2487_v51  ;;  %v2504_v37 = vunpack.c.l.bf16 %v1928_v0 }
  0xda   : > { %3493 = vst [vmem:[#allocation48_spill] sm:$0xff] %v2495_v30  ;;  %v654_v27 = vmul.f32 %v2480_v48, %v2485_v12 }
  0xdb   : > { %v817_v8 = vadd.f32 %v816_v10, %v765_v7  ;;  %v704_v25 = vadd.f32 %v703_v5, %v652_v46  ;;  %3496 = vst [vmem:[#allocation51_spill] sm:$0xff] %v2504_v37  ;;  %v767_v36 = vmul.f32 %v2474_v9, %v653_v24  ;;  %v2510_v10 = vunpack.c.h.bf16 %v1928_v0 }
  0xdc   : > { %v2500_v57 = vpop.permute.xlu1 %565  ;;  %v2502_v38 = vpop.permute.xlu0 %560  ;;  %v768_v7 = vmul.f32 %v2480_v48, %v654_v27  ;;  %v1930_v48 = vld [vmem:[%s2179_s23 + $0xc0] sm:$0xff]  }
  0xdd   : > { %3494 = vst [vmem:[#allocation49_spill] sm:$0xff] %v2500_v57  ;;  %3495 = vst [vmem:[#allocation50_spill] sm:$0xff] %v2502_v38  ;;  %v705_v54 = vadd.f32 %v704_v25, %v653_v24  ;;  %v818_v51 = vadd.f32 %v817_v8, %v766_v35  ;;  %v655_v11 = vmul.f32 %v2489_v50, %v2502_v38  ;;  %v2519_v24 = vunpack.c.l.bf16 %v1929_v1 }
  0xde   : > { %3497 = vst [vmem:[#allocation52_spill] sm:$0xff] %v2510_v10  ;;  %v656_v5 = vmul.f32 %v2495_v30, %v2500_v57 }
  0xdf   : > { %v819_v46 = vadd.f32 %v818_v51, %v767_v36  ;;  %v706_v12 = vadd.f32 %v705_v54, %v654_v27  ;;  %3500 = vst [vmem:[#allocation55_spill] sm:$0xff] %v2519_v24  ;;  %v769_v8 = vmul.f32 %v2489_v50, %v655_v11  ;;  %v2525_v51 = vunpack.c.h.bf16 %v1929_v1 }
  0xe0   : > { %v2515_v58 = vpop.permute.xlu1 %575  ;;  %v2517_v25 = vpop.permute.xlu0 %570  ;;  %v770_v36 = vmul.f32 %v2495_v30, %v656_v5  ;;  %v1931_v30 = vld [vmem:[%s2179_s23 + $0xc8] sm:$0xff]  }
  0xe1   : > { %3498 = vst [vmem:[#allocation53_spill] sm:$0xff] %v2515_v58  ;;  %3499 = vst [vmem:[#allocation54_spill] sm:$0xff] %v2517_v25  ;;  %v707_v35 = vadd.f32 %v706_v12, %v655_v11  ;;  %v820_v38 = vadd.f32 %v819_v46, %v768_v7  ;;  %v657_v0 = vmul.f32 %v2504_v37, %v2517_v25  ;;  %v2534_v11 = vunpack.c.l.bf16 %v1930_v48 }
  0xe2   : > { %3501 = vst [vmem:[#allocation56_spill] sm:$0xff] %v2525_v51  ;;  %v658_v54 = vmul.f32 %v2510_v10, %v2515_v58 }
  0xe3   : > { %v821_v27 = vadd.f32 %v820_v38, %v769_v8  ;;  %v708_v57 = vadd.f32 %v707_v35, %v656_v5  ;;  %3504 = vst [vmem:[#allocation59_spill] sm:$0xff] %v2534_v11  ;;  %v771_v46 = vmul.f32 %v2504_v37, %v657_v0  ;;  %v2540_v38 = vunpack.c.h.bf16 %v1930_v48  ;;  %v240_v37 = vld [vmem:[%s2179_s23 + $0xd0] sm:$0x3] }
  0xe4   : > { %v2530_v9 = vpop.permute.xlu1 %585  ;;  %v2532_v12 = vpop.permute.xlu0 %580  ;;  %v772_v8 = vmul.f32 %v2510_v10, %v658_v54  ;;  %v2555_v10 = vunpack.c.h.bf16 %v1931_v30 }
  0xe5   : > { %3502 = vst [vmem:[#allocation57_spill] sm:$0xff] %v2530_v9  ;;  %3503 = vst [vmem:[#allocation58_spill] sm:$0xff] %v2532_v12  ;;  %v709_v7 = vadd.f32 %v708_v57, %v657_v0  ;;  %v822_v25 = vadd.f32 %v821_v27, %v770_v36  ;;  %v659_v1 = vmul.f32 %v2519_v24, %v2532_v12  ;;  %v2549_v0 = vunpack.c.l.bf16 %v1931_v30 }
  0xe6   : > { %3505 = vst [vmem:[#allocation60_spill] sm:$0xff] %v2540_v38  ;;  %v660_v35 = vmul.f32 %v2525_v51, %v2530_v9  ;;  %3509 = vst [vmem:[#allocation64_spill] sm:$0xff] %v2555_v10 }
  0xe7   : > { %v823_v5 = vadd.f32 %v822_v25, %v771_v46  ;;  %v710_v58 = vadd.f32 %v709_v7, %v658_v54  ;;  %3508 = vst [vmem:[#allocation63_spill] sm:$0xff] %v2549_v0  ;;  %v773_v27 = vmul.f32 %v2519_v24, %v659_v1 }
  0xe8   : > { %v2545_v50 = vpop.permute.xlu1 %595  ;;  %v2547_v57 = vpop.permute.xlu0 %590  ;;  %v774_v25 = vmul.f32 %v2525_v51, %v660_v35 }
  0xe9   : > { %3506 = vst [vmem:[#allocation61_spill] sm:$0xff] %v2545_v50  ;;  %3507 = vst [vmem:[#allocation62_spill] sm:$0xff] %v2547_v57  ;;  %v711_v36 = vadd.f32 %v710_v58, %v659_v1  ;;  %v824_v12 = vadd.f32 %v823_v5, %v772_v8  ;;  %v661_v48 = vmul.f32 %v2534_v11, %v2547_v57  ;;  %v2564_v58 = vunpack.c.l.bf16 %v240_v37 }
  0xea   : > { %v662_v54 = vmul.f32 %v2540_v38, %v2545_v50 }
  0xeb   : > { %v825_v46 = vadd.f32 %v824_v12, %v773_v27  ;;  %v712_v7 = vadd.f32 %v711_v36, %v660_v35  ;;  %v775_v8 = vmul.f32 %v2534_v11, %v661_v48 }
  0xec   : > { %v2560_v9 = vpop.permute.xlu1 %605  ;;  %v2562_v17 = vpop.permute.xlu0 %600  ;;  %v776_v27 = vmul.f32 %v2540_v38, %v662_v54 }
  0xed   : > { %3510 = vst [vmem:[#allocation65_spill] sm:$0xff] %v2560_v9  ;;  %3511 = vst [vmem:[#allocation66_spill] sm:$0xff] %v2562_v17  ;;  %v713_v1 = vadd.f32 %v712_v7, %v661_v48  ;;  %v826_v5 = vadd.f32 %v825_v46, %v774_v25  ;;  %v663_v30 = vmul.f32 %v2549_v0, %v2562_v17 }
  0xee   : > { %v664_v12 = vmul.f32 %v2555_v10, %v2560_v9 }
  0xef   : > { %v827_v50 = vadd.f32 %v826_v5, %v775_v8  ;;  %v714_v35 = vadd.f32 %v713_v1, %v662_v54  ;;  %v777_v37 = vmul.f32 %v2549_v0, %v663_v30 }
  0xf0   : > { %v2572_v36 = vpop.permute.xlu0 %610  ;;  %v778_v25 = vmul.f32 %v2555_v10, %v664_v12 }
  0xf1   : > { %3512 = vst [vmem:[#allocation67_spill] sm:$0xff] %v2572_v36  ;;  %v715_v57 = vadd.f32 %v714_v35, %v663_v30  ;;  %v828_v7 = vadd.f32 %v827_v50, %v776_v27  ;;  %v665_v48 = vmul.f32 %v2572_v36, %v2564_v58 }
  0xf3   : > { %v829_v46 = vadd.f32 %v828_v7, %v777_v37  ;;  %v716_v17 = vadd.f32 %v715_v57, %v664_v12  ;;  %v718_v11 = vsel %vm717_vm0, %v665_v48, 0.0  ;;  %v779_v9 = vmul.f32 %v665_v48, %v2564_v58 }
  0xf5   : > { %v719_v38 = vadd.f32 %v718_v11, %v716_v17  ;;  %v830_v8 = vadd.f32 %v829_v46, %v778_v25  ;;  %v831_v54 = vsel %vm717_vm0, %v779_v9, 0.0  ;;  %v951_v9 = vlaneseq }
  0xf7   : > { %v720_v1 = vrot.slane %v719_v38, 4  ;;  %v832_v5 = vadd.f32 %v831_v54, %v830_v8 }
  0xf9   : > { %v721_v51 = vadd.f32 %v720_v1, %v719_v38  ;;  %v833_v35 = vrot.slane %v832_v5, 4  ;;  %v952_v38 = vshrl.u32 %v951_v9, 7 }
  0xfb   : > { %v722_v30 = vrot.slane %v721_v51, 2  ;;  %v834_v50 = vadd.f32 %v833_v35, %v832_v5  ;;  %v953_v48 = vsub.s32 0, %v952_v38 }
  0xfd   : > { %v723_v27 = vadd.f32 %v722_v30, %v721_v51  ;;  %v835_v0 = vrot.slane %v834_v50, 2 }
  0xff   : > { %v724_v36 = vrot.slane %v723_v27, 1  ;;  %v836_v24 = vadd.f32 %v835_v0, %v834_v50  ;;  %v1010_v0 = vsub.s32 1, %v952_v38 }
 0x101   : > { %v725_v10 = vadd.f32 %v724_v36, %v723_v27  ;;  %v837_v37 = vrot.slane %v836_v24, 1  ;;  %v294_v36 = vld [vmem:[%s182_s27] sm:$0x3] }
 0x103   : > { %v2579_v57 = vmul.f32 0.00390625, %v725_v10  ;;  %v838_v12 = vadd.f32 %v837_v37, %v836_v24  ;;  %v2587_v10 = vrot.slane %v294_v36, %v953_v48  ;;  %v2589_v24 = vrot.slane %v294_v36, %v1010_v0  ;;  %v3524_v36 = vld [vmem:[#allocation59_spill] sm:$0xff] }
 0x105   : > { %v839_v7 = vmul.f32 0.00390625, %v838_v12  ;;  %v840_v17 = vmul.f32 %v2579_v57, %v2579_v57  ;;  %3513 = vst [vmem:[#allocation68_spill] sm:$0xff] %v2587_v10  ;;  %3514 = vst [vmem:[#allocation69_spill] sm:$0xff] %v2589_v24  ;;  %v843_v46 = vsub.f32 %v2183_v56, %v2579_v57  ;;  %v844_v8 = vsub.f32 %v2191_v60, %v2579_v57 }
 0x106   : > { %v845_v54 = vsub.f32 %v2189_v59, %v2579_v57  ;;  %v846_v1 = vsub.f32 %v2196_v63, %v2579_v57  ;;  %v847_v5 = vsub.f32 %v2206_v4, %v2579_v57  ;;  %v848_v35 = vsub.f32 %v2209_v6, %v2579_v57 }
 0x107   : > { %v841_v11 = vsub.f32 %v839_v7, %v840_v17  ;;  %v849_v30 = vsub.f32 %v2219_v13, %v2579_v57  ;;  %v850_v56 = vsub.f32 %v2225_v19, %v2579_v57  ;;  %v851_v60 = vsub.f32 %v2234_v26, %v2579_v57 }
 0x108   : > { %v852_v59 = vsub.f32 %v2240_v32, %v2579_v57  ;;  %v853_v63 = vsub.f32 %v2249_v39, %v2579_v57  ;;  %v854_v4 = vsub.f32 %v2255_v45, %v2579_v57  ;;  %v855_v6 = vsub.f32 %v2264_v52, %v2579_v57 }
 0x109   : > { %v842_v51 = vmax.f32 %v841_v11, 0.0  ;;  %v856_v13 = vsub.f32 %v2270_v2, %v2579_v57  ;;  %v857_v19 = vsub.f32 %v2279_v14, %v2579_v57  ;;  %v858_v26 = vsub.f32 %v2285_v21, %v2579_v57  ;;  %v3522_v11 = vld [vmem:[#allocation55_spill] sm:$0xff] }
 0x10a   : > { %v859_v32 = vsub.f32 %v2294_v31, %v2579_v57  ;;  %v860_v39 = vsub.f32 %v2300_v41, %v2579_v57  ;;  %v861_v45 = vsub.f32 %v2309_v49, %v2579_v57  ;;  %v862_v52 = vsub.f32 %v2315_v3, %v2579_v57 }
 0x10b   : > { %v896_v25 = vadd.f32 1e-05, %v842_v51  ;;  %v863_v2 = vsub.f32 %v2324_v18, %v2579_v57  ;;  %v864_v14 = vsub.f32 %v2330_v33, %v2579_v57  ;;  %v865_v21 = vsub.f32 %v2339_v44, %v2579_v57  ;;  %v3523_v51 = vld [vmem:[#allocation56_spill] sm:$0xff] }
 0x10c   : > { %v866_v31 = vsub.f32 %v2345_v62, %v2579_v57  ;;  %v867_v41 = vsub.f32 %v2354_v23, %v2579_v57  ;;  %v868_v49 = vsub.f32 %v2360_v53, %v2579_v57  ;;  %v869_v3 = vsub.f32 %v2369_v55, %v2579_v57 }
 0x10d   : > { %1969 = vrsqrt.f32 %v896_v25  ;;  %v870_v18 = vsub.f32 %v2375_v34, %v2579_v57  ;;  %v871_v33 = vsub.f32 %v2384_v28, %v2579_v57  ;;  %v872_v44 = vsub.f32 %v2390_v22, %v2579_v57 }
 0x10e   : > { %v873_v62 = vsub.f32 %v2399_v61, %v2579_v57  ;;  %v874_v23 = vsub.f32 %v2405_v15, %v2579_v57  ;;  %v875_v53 = vsub.f32 %v2414_v40, %v2579_v57  ;;  %v876_v55 = vsub.f32 %v2420_v42, %v2579_v57  ;;  %v3515_v40 = vld [vmem:[#allocation40_spill] sm:$0xff]  ;;  %v3516_v42 = vld [vmem:[#allocation43_spill] sm:$0xff] }
 0x10f   : > { %v877_v34 = vsub.f32 %v2429_v16, %v2579_v57  ;;  %v878_v28 = vsub.f32 %v2435_v20, %v2579_v57  ;;  %v879_v22 = vsub.f32 %v2444_v47, %v2579_v57  ;;  %v880_v61 = vsub.f32 %v2450_v43, %v2579_v57  ;;  %v3517_v16 = vld [vmem:[#allocation44_spill] sm:$0xff]  ;;  %v3518_v20 = vld [vmem:[#allocation47_spill] sm:$0xff] }
 0x110   : > { %v881_v15 = vsub.f32 %v2459_v29, %v2579_v57  ;;  %v882_v50 = vsub.f32 %v3515_v40, %v2579_v57  ;;  %v883_v27 = vsub.f32 %v3516_v42, %v2579_v57  ;;  %v884_v37 = vsub.f32 %v3517_v16, %v2579_v57  ;;  %v3519_v47 = vld [vmem:[#allocation48_spill] sm:$0xff]  ;;  %v3520_v43 = vld [vmem:[#allocation51_spill] sm:$0xff] }
 0x111   : > { %v885_v12 = vsub.f32 %v3518_v20, %v2579_v57  ;;  %v886_v7 = vsub.f32 %v3519_v47, %v2579_v57  ;;  %v887_v17 = vsub.f32 %v3520_v43, %v2579_v57  ;;  %v3521_v29 = vld [vmem:[#allocation52_spill] sm:$0xff]  ;;  %v889_v38 = vsub.f32 %v3522_v11, %v2579_v57  ;;  %v3526_v16 = vld [vmem:[#allocation63_spill] sm:$0xff] }
 0x112   : > { %v888_v9 = vsub.f32 %v3521_v29, %v2579_v57  ;;  %v890_v48 = vsub.f32 %v3523_v51, %v2579_v57  ;;  %v891_v25 = vsub.f32 %v3524_v36, %v2579_v57  ;;  %v3525_v40 = vld [vmem:[#allocation60_spill] sm:$0xff]  ;;  %v893_v20 = vsub.f32 %v3526_v16, %v2579_v57 }
 0x113   : > { %v892_v42 = vsub.f32 %v3525_v40, %v2579_v57  ;;  %v3527_v47 = vld [vmem:[#allocation64_spill] sm:$0xff]  ;;  %v895_v29 = vsub.f32 %v2564_v58, %v2579_v57 }
 0x114   : > { %v894_v43 = vsub.f32 %v3527_v47, %v2579_v57 }
 0x11a   : > { %v1970_v0 = vpop.eup %1969 }
 0x11b   : > { %v898_v11 = vmul.f32 %v1970_v0, %v843_v46  ;;  %v899_v24 = vmul.f32 %v1970_v0, %v844_v8  ;;  %v900_v10 = vmul.f32 %v1970_v0, %v845_v54  ;;  %v901_v51 = vmul.f32 %v1970_v0, %v846_v1 }
 0x11c   : > { %v902_v36 = vmul.f32 %v1970_v0, %v847_v5  ;;  %v903_v40 = vmul.f32 %v1970_v0, %v848_v35  ;;  %v904_v16 = vmul.f32 %v1970_v0, %v849_v30  ;;  %v905_v47 = vmul.f32 %v1970_v0, %v850_v56 }
 0x11d   : > { %v906_v57 = vmul.f32 %v1970_v0, %v851_v60  ;;  %v907_v58 = vmul.f32 %v1970_v0, %v852_v59  ;;  %v908_v46 = vmul.f32 %v1970_v0, %v853_v63  ;;  %v909_v8 = vmul.f32 %v1970_v0, %v854_v4 }
 0x11e   : > { %v910_v54 = vmul.f32 %v1970_v0, %v855_v6  ;;  %v911_v1 = vmul.f32 %v1970_v0, %v856_v13  ;;  %v912_v5 = vmul.f32 %v1970_v0, %v857_v19  ;;  %v913_v35 = vmul.f32 %v1970_v0, %v858_v26 }
 0x11f   : > { %v914_v30 = vmul.f32 %v1970_v0, %v859_v32  ;;  %v915_v56 = vmul.f32 %v1970_v0, %v860_v39  ;;  %v916_v60 = vmul.f32 %v1970_v0, %v861_v45  ;;  %v917_v59 = vmul.f32 %v1970_v0, %v862_v52 }
 0x120   : > { %v918_v63 = vmul.f32 %v1970_v0, %v863_v2  ;;  %v919_v4 = vmul.f32 %v1970_v0, %v864_v14  ;;  %v920_v6 = vmul.f32 %v1970_v0, %v865_v21  ;;  %v921_v13 = vmul.f32 %v1970_v0, %v866_v31 }
 0x121   : > { %v922_v19 = vmul.f32 %v1970_v0, %v867_v41  ;;  %v923_v26 = vmul.f32 %v1970_v0, %v868_v49  ;;  %v924_v32 = vmul.f32 %v1970_v0, %v869_v3  ;;  %v925_v39 = vmul.f32 %v1970_v0, %v870_v18 }
 0x122   : > { %v926_v45 = vmul.f32 %v1970_v0, %v871_v33  ;;  %v927_v52 = vmul.f32 %v1970_v0, %v872_v44  ;;  %v928_v2 = vmul.f32 %v1970_v0, %v873_v62  ;;  %v929_v14 = vmul.f32 %v1970_v0, %v874_v23 }
 0x123   : > { %v930_v21 = vmul.f32 %v1970_v0, %v875_v53  ;;  %v931_v31 = vmul.f32 %v1970_v0, %v876_v55  ;;  %v932_v41 = vmul.f32 %v1970_v0, %v877_v34  ;;  %v933_v49 = vmul.f32 %v1970_v0, %v878_v28 }
 0x124   : > { %v934_v3 = vmul.f32 %v1970_v0, %v879_v22  ;;  %v935_v18 = vmul.f32 %v1970_v0, %v880_v61  ;;  %v936_v33 = vmul.f32 %v1970_v0, %v881_v15  ;;  %v937_v44 = vmul.f32 %v1970_v0, %v882_v50 }
 0x125   : > { %v938_v62 = vmul.f32 %v1970_v0, %v883_v27  ;;  %v939_v23 = vmul.f32 %v1970_v0, %v884_v37  ;;  %v940_v53 = vmul.f32 %v1970_v0, %v885_v12  ;;  %v941_v55 = vmul.f32 %v1970_v0, %v886_v7  ;;  %v3528_v7 = vld [vmem:[#allocation68_spill] sm:$0xff] }
 0x126   : > { %v942_v34 = vmul.f32 %v1970_v0, %v887_v17  ;;  %v943_v28 = vmul.f32 %v1970_v0, %v888_v9  ;;  %v944_v22 = vmul.f32 %v1970_v0, %v889_v38  ;;  %v945_v61 = vmul.f32 %v1970_v0, %v890_v48 }
 0x127   : > { %v946_v15 = vmul.f32 %v1970_v0, %v891_v25  ;;  %v947_v50 = vmul.f32 %v1970_v0, %v892_v42  ;;  %v948_v27 = vmul.f32 %v1970_v0, %v893_v20  ;;  %v949_v37 = vmul.f32 %v1970_v0, %v894_v43 }
 0x128   : > { %v950_v12 = vmul.f32 %v1970_v0, %v895_v29  ;;  %v955_v17 = vmul.f32 %v3528_v7, %v898_v11  ;;  %v956_v9 = vmul.f32 %v3528_v7, %v899_v24  ;;  %v957_v38 = vmul.f32 %v3528_v7, %v900_v10 }
 0x129   : > { %v958_v48 = vmul.f32 %v3528_v7, %v901_v51  ;;  %v959_v25 = vmul.f32 %v3528_v7, %v902_v36  ;;  %v960_v42 = vmul.f32 %v3528_v7, %v903_v40  ;;  %v961_v20 = vmul.f32 %v3528_v7, %v904_v16 }
 0x12a   : > { %v962_v43 = vmul.f32 %v3528_v7, %v905_v47  ;;  %v963_v0 = vmul.f32 %v3528_v7, %v906_v57  ;;  %v964_v29 = vmul.f32 %v3528_v7, %v907_v58  ;;  %v965_v11 = vmul.f32 %v3528_v7, %v908_v46 }
 0x12b   : > { %v966_v24 = vmul.f32 %v3528_v7, %v909_v8  ;;  %v967_v10 = vmul.f32 %v3528_v7, %v910_v54  ;;  %v968_v51 = vmul.f32 %v3528_v7, %v911_v1  ;;  %v969_v36 = vmul.f32 %v3528_v7, %v912_v5 }
 0x12c   : > { %v970_v40 = vmul.f32 %v3528_v7, %v913_v35  ;;  %v971_v16 = vmul.f32 %v3528_v7, %v914_v30  ;;  %v972_v47 = vmul.f32 %v3528_v7, %v915_v56  ;;  %v973_v57 = vmul.f32 %v3528_v7, %v916_v60 }
 0x12d   : > { %v974_v58 = vmul.f32 %v3528_v7, %v917_v59  ;;  %v975_v46 = vmul.f32 %v3528_v7, %v918_v63  ;;  %v976_v8 = vmul.f32 %v3528_v7, %v919_v4  ;;  %v977_v54 = vmul.f32 %v3528_v7, %v920_v6 }
 0x12e   : > { %v978_v1 = vmul.f32 %v3528_v7, %v921_v13  ;;  %v979_v5 = vmul.f32 %v3528_v7, %v922_v19  ;;  %v980_v35 = vmul.f32 %v3528_v7, %v923_v26  ;;  %v981_v30 = vmul.f32 %v3528_v7, %v924_v32 }
 0x12f   : > { %v982_v56 = vmul.f32 %v3528_v7, %v925_v39  ;;  %v983_v60 = vmul.f32 %v3528_v7, %v926_v45  ;;  %v984_v59 = vmul.f32 %v3528_v7, %v927_v52  ;;  %v985_v63 = vmul.f32 %v3528_v7, %v928_v2 }
 0x130   : > { %v986_v4 = vmul.f32 %v3528_v7, %v929_v14  ;;  %v987_v6 = vmul.f32 %v3528_v7, %v930_v21  ;;  %v988_v13 = vmul.f32 %v3528_v7, %v931_v31  ;;  %v989_v19 = vmul.f32 %v3528_v7, %v932_v41 }
 0x131   : > { %v990_v26 = vmul.f32 %v3528_v7, %v933_v49  ;;  %v991_v32 = vmul.f32 %v3528_v7, %v934_v3  ;;  %v992_v39 = vmul.f32 %v3528_v7, %v935_v18  ;;  %v993_v45 = vmul.f32 %v3528_v7, %v936_v33 }
 0x132   : > { %v994_v52 = vmul.f32 %v3528_v7, %v937_v44  ;;  %v995_v2 = vmul.f32 %v3528_v7, %v938_v62  ;;  %v996_v14 = vmul.f32 %v3528_v7, %v939_v23  ;;  %v997_v21 = vmul.f32 %v3528_v7, %v940_v53 }
 0x133   : > { %v998_v31 = vmul.f32 %v3528_v7, %v941_v55  ;;  %v999_v41 = vmul.f32 %v3528_v7, %v942_v34  ;;  %v1000_v49 = vmul.f32 %v3528_v7, %v943_v28  ;;  %v1001_v3 = vmul.f32 %v3528_v7, %v944_v22  ;;  %v3529_v55 = vld [vmem:[#allocation69_spill] sm:$0xff] }
 0x134   : > { %v1002_v18 = vmul.f32 %v3528_v7, %v945_v61  ;;  %v1003_v33 = vmul.f32 %v3528_v7, %v946_v15  ;;  %v1004_v44 = vmul.f32 %v3528_v7, %v947_v50  ;;  %v1005_v62 = vmul.f32 %v3528_v7, %v948_v27 }
 0x135   : > { %v1006_v23 = vmul.f32 %v3528_v7, %v949_v37  ;;  %v1007_v53 = vmul.f32 %v3528_v7, %v950_v12  ;;  %v2751_v34 = vadd.f32 %v3529_v55, %v955_v17  ;;  %v2754_v28 = vadd.f32 %v3529_v55, %v956_v9 }
 0x136   : > { %v2757_v22 = vadd.f32 %v3529_v55, %v957_v38  ;;  %v2760_v61 = vadd.f32 %v3529_v55, %v958_v48  ;;  %v2763_v15 = vadd.f32 %v3529_v55, %v959_v25  ;;  %v2766_v50 = vadd.f32 %v3529_v55, %v960_v42 }
 0x137   : > { %3530 = vst [vmem:[#allocation40_spill] sm:$0xff] %v2751_v34  ;;  %3531 = vst [vmem:[#allocation43_spill] sm:$0xff] %v2754_v28  ;;  %v2769_v27 = vadd.f32 %v3529_v55, %v961_v20  ;;  %v2772_v37 = vadd.f32 %v3529_v55, %v962_v43  ;;  %v2775_v12 = vadd.f32 %v3529_v55, %v963_v0 }
 0x138   : > { %3532 = vst [vmem:[#allocation44_spill] sm:$0xff] %v2757_v22  ;;  %3533 = vst [vmem:[#allocation47_spill] sm:$0xff] %v2760_v61  ;;  %v2778_v7 = vadd.f32 %v3529_v55, %v964_v29  ;;  %v2781_v17 = vadd.f32 %v3529_v55, %v965_v11  ;;  %v2784_v9 = vadd.f32 %v3529_v55, %v966_v24 }
 0x139   : > { %3534 = vst [vmem:[#allocation48_spill] sm:$0xff] %v2763_v15  ;;  %3535 = vst [vmem:[#allocation51_spill] sm:$0xff] %v2766_v50  ;;  %v2787_v38 = vadd.f32 %v3529_v55, %v967_v10  ;;  %v2790_v48 = vadd.f32 %v3529_v55, %v968_v51  ;;  %v2793_v25 = vadd.f32 %v3529_v55, %v969_v36 }
 0x13a   : > { %3536 = vst [vmem:[#allocation52_spill] sm:$0xff] %v2769_v27  ;;  %3537 = vst [vmem:[#allocation55_spill] sm:$0xff] %v2772_v37  ;;  %v2796_v42 = vadd.f32 %v3529_v55, %v970_v40  ;;  %v2799_v20 = vadd.f32 %v3529_v55, %v971_v16  ;;  %v2802_v43 = vadd.f32 %v3529_v55, %v972_v47 }
 0x13b   : > { %3538 = vst [vmem:[#allocation56_spill] sm:$0xff] %v2775_v12  ;;  %3539 = vst [vmem:[#allocation59_spill] sm:$0xff] %v2778_v7  ;;  %v2805_v0 = vadd.f32 %v3529_v55, %v973_v57  ;;  %v2808_v29 = vadd.f32 %v3529_v55, %v974_v58  ;;  %v2811_v11 = vadd.f32 %v3529_v55, %v975_v46 }
 0x13c   : > { %3540 = vst [vmem:[#allocation60_spill] sm:$0xff] %v2781_v17  ;;  %3541 = vst [vmem:[#allocation63_spill] sm:$0xff] %v2784_v9  ;;  %v2814_v24 = vadd.f32 %v3529_v55, %v976_v8  ;;  %v2817_v10 = vadd.f32 %v3529_v55, %v977_v54  ;;  %v2820_v51 = vadd.f32 %v3529_v55, %v978_v1 }
 0x13d   : > { %3542 = vst [vmem:[#allocation64_spill] sm:$0xff] %v2787_v38  ;;  %3543 = vst [vmem:[#allocation68_spill] sm:$0xff] %v2796_v42  ;;  %v2823_v36 = vadd.f32 %v3529_v55, %v979_v5  ;;  %v2826_v40 = vadd.f32 %v3529_v55, %v980_v35  ;;  %v2829_v16 = vadd.f32 %v3529_v55, %v981_v30 }
 0x13e   : > { %3544 = vst [vmem:[#allocation69_spill] sm:$0xff] %v2805_v0  ;;  %3545 = vst [vmem:[#allocation70_spill] sm:$0xff] %v2814_v24  ;;  %v2832_v47 = vadd.f32 %v3529_v55, %v982_v56  ;;  %v2835_v57 = vadd.f32 %v3529_v55, %v983_v60  ;;  %v2838_v58 = vadd.f32 %v3529_v55, %v984_v59 }
 0x13f   : > { %3546 = vst [vmem:[#allocation71_spill] sm:$0xff] %v2823_v36  ;;  %v2841_v46 = vadd.f32 %v3529_v55, %v985_v63  ;;  %v2844_v8 = vadd.f32 %v3529_v55, %v986_v4  ;;  %v2847_v54 = vadd.f32 %v3529_v55, %v987_v6  ;;  %v2850_v1 = vadd.f32 %v3529_v55, %v988_v13 }
 0x140   : > { %3547 = vst [vmem:[#allocation72_spill] sm:$0xff] %v2832_v47  ;;  %v2853_v5 = vadd.f32 %v3529_v55, %v989_v19  ;;  %v2856_v35 = vadd.f32 %v3529_v55, %v990_v26  ;;  %v2859_v30 = vadd.f32 %v3529_v55, %v991_v32  ;;  %v2862_v56 = vadd.f32 %v3529_v55, %v992_v39 }
 0x141   : > { %3548 = vst [vmem:[#allocation73_spill] sm:$0xff] %v2841_v46  ;;  %3549 = vst [vmem:[#allocation74_spill] sm:$0xff] %v2850_v1  ;;  %v2865_v60 = vadd.f32 %v3529_v55, %v993_v45  ;;  %v2868_v59 = vadd.f32 %v3529_v55, %v994_v52  ;;  %v2871_v63 = vadd.f32 %v3529_v55, %v995_v2 }
 0x142   : > { %3550 = vst [vmem:[#allocation75_spill] sm:$0xff] %v2859_v30  ;;  %v2874_v4 = vadd.f32 %v3529_v55, %v996_v14  ;;  %v2877_v6 = vadd.f32 %v3529_v55, %v997_v21  ;;  %v2880_v13 = vadd.f32 %v3529_v55, %v998_v31  ;;  %v2883_v19 = vadd.f32 %v3529_v55, %v999_v41 }
 0x143   : > { %3551 = vst [vmem:[#allocation76_spill] sm:$0xff] %v2868_v59  ;;  %v2886_v26 = vadd.f32 %v3529_v55, %v1000_v49  ;;  %v2889_v32 = vadd.f32 %v3529_v55, %v1001_v3  ;;  %v2892_v39 = vadd.f32 %v3529_v55, %v1002_v18  ;;  %v2895_v45 = vadd.f32 %v3529_v55, %v1003_v33 }
 0x144   : > { %3552 = vst [vmem:[#allocation77_spill] sm:$0xff] %v2877_v6  ;;  %3553 = vst [vmem:[#allocation78_spill] sm:$0xff] %v2883_v19  ;;  %v2898_v52 = vadd.f32 %v3529_v55, %v1004_v44  ;;  %v2901_v2 = vadd.f32 %v3529_v55, %v1005_v62  ;;  %v2904_v14 = vadd.f32 %v3529_v55, %v1006_v23  ;;  %v2907_v21 = vmul.f32 0.2, %v2751_v34 }
 0x145   : > { %3554 = vst [vmem:[#allocation79_spill] sm:$0xff] %v2886_v26  ;;  %3555 = vst [vmem:[#allocation80_spill] sm:$0xff] %v2889_v32  ;;  %v2910_v31 = vadd.f32 %v3529_v55, %v1007_v53  ;;  %v2913_v41 = vmul.f32 0.2, %v2754_v28  ;;  %v2916_v49 = vmul.f32 0.2, %v2757_v22 }
 0x146   : > { %3556 = vst [vmem:[#allocation81_spill] sm:$0xff] %v2892_v39  ;;  %3557 = vst [vmem:[#allocation82_spill] sm:$0xff] %v2895_v45  ;;  %v2919_v3 = vmul.f32 0.2, %v2760_v61  ;;  %v2922_v18 = vmul.f32 0.2, %v2763_v15 }
 0x147   : > { %3558 = vst [vmem:[#allocation83_spill] sm:$0xff] %v2898_v52  ;;  %3559 = vst [vmem:[#allocation84_spill] sm:$0xff] %v2901_v2  ;;  %v2925_v33 = vmul.f32 0.2, %v2766_v50  ;;  %v2928_v44 = vmul.f32 0.2, %v2769_v27 }
 0x148   : > { %3560 = vst [vmem:[#allocation85_spill] sm:$0xff] %v2904_v14  ;;  %3561 = vst [vmem:[#allocation86_spill] sm:$0xff] %v2907_v21  ;;  %v2933_v23 = vmul.f32 0.2, %v2772_v37  ;;  %v2936_v53 = vmul.f32 0.2, %v2775_v12 }
 0x149   : > { %3562 = vst [vmem:[#allocation87_spill] sm:$0xff] %v2910_v31  ;;  %3563 = vst [vmem:[#allocation88_spill] sm:$0xff] %v2913_v41  ;;  %v2939_v55 = vmul.f32 0.2, %v2778_v7  ;;  %v2944_v14 = vmul.f32 0.2, %v2781_v17 }
 0x14a   : > { %3564 = vst [vmem:[#allocation89_spill] sm:$0xff] %v2916_v49  ;;  %3565 = vst [vmem:[#allocation90_spill] sm:$0xff] %v2919_v3  ;;  %v2947_v2 = vmul.f32 0.2, %v2784_v9  ;;  %v2950_v62 = vmul.f32 0.2, %v2787_v38 }
 0x14b   : > { %3566 = vst [vmem:[#allocation91_spill] sm:$0xff] %v2922_v18  ;;  %3567 = vst [vmem:[#allocation92_spill] sm:$0xff] %v2925_v33  ;;  %v2955_v34 = vmul.f32 0.2, %v2790_v48  ;;  %v2958_v52 = vmul.f32 0.2, %v2793_v25 }
 0x14c   : > { %3568 = vst [vmem:[#allocation93_spill] sm:$0xff] %v2928_v44  ;;  %3569 = vst [vmem:[#allocation94_spill] sm:$0xff] %v2933_v23  ;;  %v2961_v31 = vmul.f32 0.2, %v2796_v42  ;;  %v2966_v28 = vmul.f32 0.2, %v2799_v20 }
 0x14d   : > { %3570 = vst [vmem:[#allocation95_spill] sm:$0xff] %v2936_v53  ;;  %3571 = vst [vmem:[#allocation96_spill] sm:$0xff] %v2939_v55  ;;  %v2969_v45 = vmul.f32 0.2, %v2802_v43  ;;  %v2972_v21 = vmul.f32 0.2, %v2805_v0 }
 0x14e   : > { %3572 = vst [vmem:[#allocation97_spill] sm:$0xff] %v2944_v14  ;;  %3573 = vst [vmem:[#allocation98_spill] sm:$0xff] %v2947_v2  ;;  %v2977_v22 = vmul.f32 0.2, %v2808_v29  ;;  %v2980_v42 = vmul.f32 0.2, %v2811_v11  ;;  %v1131_v2 = vmax.f32 %v2790_v48, %v2955_v34 }
 0x14f   : > { %3574 = vst [vmem:[#allocation99_spill] sm:$0xff] %v2950_v62  ;;  %v2983_v41 = vmul.f32 0.2, %v2814_v24  ;;  %v2988_v61 = vmul.f32 0.2, %v2817_v10  ;;  %v1132_v62 = vmax.f32 %v2793_v25, %v2958_v52  ;;  %v3580_v38 = vld [vmem:[#allocation83_spill] sm:$0xff]  ;;  %v1135_v25 = vmax.f32 %v2802_v43, %v2969_v45 }
 0x150   : > { %v2991_v0 = vmul.f32 0.2, %v2820_v51  ;;  %v2994_v49 = vmul.f32 0.2, %v2823_v36  ;;  %v2999_v15 = vmul.f32 0.2, %v2826_v40 }
 0x151   : > { %v3002_v24 = vmul.f32 0.2, %v2829_v16  ;;  %v3005_v3 = vmul.f32 0.2, %v2832_v47  ;;  %v3010_v50 = vmul.f32 0.2, %v2835_v57 }
 0x152   : > { %v3013_v36 = vmul.f32 0.2, %v2838_v58  ;;  %v3016_v18 = vmul.f32 0.2, %v2841_v46  ;;  %v3021_v27 = vmul.f32 0.2, %v2844_v8  ;;  %v1143_v45 = vmax.f32 %v2826_v40, %v2999_v15 }
 0x153   : > { %v3024_v47 = vmul.f32 0.2, %v2847_v54  ;;  %v3027_v33 = vmul.f32 0.2, %v2850_v1  ;;  %v3032_v37 = vmul.f32 0.2, %v2853_v5 }
 0x154   : > { %v3035_v46 = vmul.f32 0.2, %v2856_v35  ;;  %v3038_v44 = vmul.f32 0.2, %v2859_v30  ;;  %v3043_v12 = vmul.f32 0.2, %v2862_v56 }
 0x155   : > { %v3046_v1 = vmul.f32 0.2, %v2865_v60  ;;  %v3049_v23 = vmul.f32 0.2, %v2868_v59  ;;  %v3054_v7 = vmul.f32 0.2, %v2871_v63  ;;  %v1150_v15 = vmax.f32 %v2847_v54, %v3024_v47 }
 0x156   : > { %v3057_v30 = vmul.f32 0.2, %v2874_v4  ;;  %v3060_v53 = vmul.f32 0.2, %v2877_v6  ;;  %v3065_v17 = vmul.f32 0.2, %v2880_v13 }
 0x157   : > { %v3068_v59 = vmul.f32 0.2, %v2883_v19  ;;  %v3071_v55 = vmul.f32 0.2, %v2886_v26  ;;  %v3076_v9 = vmul.f32 0.2, %v2889_v32  ;;  %v1158_v54 = vmax.f32 %v2871_v63, %v3054_v7 }
 0x158   : > { %3575 = vst [vmem:[#allocation100_spill] sm:$0xff] %v3060_v53  ;;  %v3079_v6 = vmul.f32 0.2, %v2892_v39  ;;  %v3579_v53 = vld [vmem:[#allocation82_spill] sm:$0xff]  ;;  %v3087_v19 = vmul.f32 0.2, %v3580_v38 }
 0x159   : > { %3576 = vst [vmem:[#allocation101_spill] sm:$0xff] %v3068_v59  ;;  %3577 = vst [vmem:[#allocation102_spill] sm:$0xff] %v3071_v55  ;;  %v3082_v14 = vmul.f32 0.2, %v3579_v53  ;;  %v3581_v26 = vld [vmem:[#allocation84_spill] sm:$0xff]  ;;  %v3582_v59 = vld [vmem:[#allocation85_spill] sm:$0xff]  ;;  %v1134_v53 = vmax.f32 %v2799_v20, %v2966_v28  ;;  %v1141_v28 = vmax.f32 %v2820_v51, %v2991_v0  ;;  %v1149_v51 = vmax.f32 %v2844_v8, %v3021_v27 }
 0x15a   : > { %3578 = vst [vmem:[#allocation103_spill] sm:$0xff] %v3079_v6  ;;  %v3090_v55 = vmul.f32 0.2, %v3581_v26  ;;  %v3093_v34 = vmul.f32 0.2, %v3582_v59  ;;  %v3583_v48 = vld [vmem:[#allocation68_spill] sm:$0xff]  ;;  %v1137_v26 = vmax.f32 %v2808_v29, %v2977_v22  ;;  %v1138_v59 = vmax.f32 %v2811_v11, %v2980_v42 }
 0x15b   : > { %v1133_v32 = vmax.f32 %v3583_v48, %v2961_v31  ;;  %v3584_v39 = vld [vmem:[#allocation87_spill] sm:$0xff]  ;;  %v3585_v52 = vld [vmem:[#allocation69_spill] sm:$0xff]  ;;  %v3586_v31 = vld [vmem:[#allocation70_spill] sm:$0xff]  ;;  %v1144_v22 = vmax.f32 %v2829_v16, %v3002_v24  ;;  %v1146_v11 = vmax.f32 %v2835_v57, %v3010_v50  ;;  %v1152_v16 = vmax.f32 %v2853_v5, %v3032_v37 }
 0x15c   : > { %v3098_v6 = vmul.f32 0.2, %v3584_v39  ;;  %v1136_v38 = vmax.f32 %v3585_v52, %v2972_v21  ;;  %v1139_v48 = vmax.f32 %v3586_v31, %v2983_v41  ;;  %v1140_v39 = vmax.f32 %v2817_v10, %v2988_v61  ;;  %v3587_v20 = vld [vmem:[#allocation71_spill] sm:$0xff]  ;;  %v3588_v42 = vld [vmem:[#allocation72_spill] sm:$0xff]  ;;  %v3589_v0 = vld [vmem:[#allocation73_spill] sm:$0xff] }
 0x15d   : > { %v1142_v43 = vmax.f32 %v3587_v20, %v2994_v49  ;;  %v1145_v29 = vmax.f32 %v3588_v42, %v3005_v3  ;;  %v1147_v61 = vmax.f32 %v2838_v58, %v3013_v36  ;;  %v1148_v10 = vmax.f32 %v3589_v0, %v3016_v18  ;;  %v3590_v24 = vld [vmem:[#allocation74_spill] sm:$0xff]  ;;  %v3591_v36 = vld [vmem:[#allocation75_spill] sm:$0xff]  ;;  %v3592_v47 = vld [vmem:[#allocation76_spill] sm:$0xff] }
 0x15e   : > { %v1151_v40 = vmax.f32 %v3590_v24, %v3027_v33  ;;  %v1153_v50 = vmax.f32 %v2856_v35, %v3035_v46  ;;  %v1154_v57 = vmax.f32 %v3591_v36, %v3038_v44  ;;  %v1155_v58 = vmax.f32 %v2862_v56, %v3043_v12  ;;  %v3594_v46 = vld [vmem:[#allocation77_spill] sm:$0xff]  ;;  %v3596_v12 = vld [vmem:[#allocation78_spill] sm:$0xff]  ;;  %v3599_v3 = vld [vmem:[#allocation80_spill] sm:$0xff] }
 0x15f   : > { %v1156_v27 = vmax.f32 %v2865_v60, %v3046_v1  ;;  %v1157_v8 = vmax.f32 %v3592_v47, %v3049_v23  ;;  %v1159_v37 = vmax.f32 %v2874_v4, %v3057_v30  ;;  %v3593_v5 = vld [vmem:[#allocation100_spill] sm:$0xff]  ;;  %v1161_v21 = vmax.f32 %v2880_v13, %v3065_v17  ;;  %v3598_v1 = vld [vmem:[#allocation79_spill] sm:$0xff]  ;;  %v3601_v7 = vld [vmem:[#allocation81_spill] sm:$0xff] }
 0x160   : > { %v1160_v35 = vmax.f32 %v3594_v46, %v3593_v5  ;;  %v3595_v41 = vld [vmem:[#allocation101_spill] sm:$0xff]  ;;  %v3597_v49 = vld [vmem:[#allocation102_spill] sm:$0xff]  ;;  %v1164_v18 = vmax.f32 %v3599_v3, %v3076_v9  ;;  %v3603_v44 = vld [vmem:[#allocation83_spill] sm:$0xff] }
 0x161   : > { %v1162_v56 = vmax.f32 %v3596_v12, %v3595_v41  ;;  %v1163_v60 = vmax.f32 %v3598_v1, %v3597_v49  ;;  %v3600_v33 = vld [vmem:[#allocation103_spill] sm:$0xff]  ;;  %v3602_v30 = vld [vmem:[#allocation82_spill] sm:$0xff]  ;;  %v1167_v23 = vmax.f32 %v3603_v44, %v3087_v19  ;;  %v3604_v17 = vld [vmem:[#allocation84_spill] sm:$0xff] }
 0x162   : > { %v1165_v63 = vmax.f32 %v3601_v7, %v3600_v33  ;;  %v1166_v4 = vmax.f32 %v3602_v30, %v3082_v14  ;;  %v1168_v13 = vmax.f32 %v3604_v17, %v3090_v55  ;;  %v3605_v52 = vld [vmem:[#allocation85_spill] sm:$0xff]  ;;  %v3606_v20 = vld [vmem:[#allocation87_spill] sm:$0xff]  ;;  %v3608_v9 = vld [vmem:[#allocation40_spill] sm:$0xff] }
 0x163   : > { %v1169_v31 = vmax.f32 %v3605_v52, %v3093_v34  ;;  %v1170_v42 = vmax.f32 %v3606_v20, %v3098_v6  ;;  %v3607_v0 = vld [vmem:[#allocation3_spill] sm:$0xff]  ;;  %v3609_v24 = vld [vmem:[#allocation86_spill] sm:$0xff]  ;;  %v3611_v5 = vld [vmem:[#allocation5_spill] sm:$0xff] }
 0x164   : > { %v3610_v36 = vmax.f32 %v3608_v9, %v3609_v24  ;;  %v3612_v46 = vld [vmem:[#allocation43_spill] sm:$0xff]  ;;  %v3613_v14 = vld [vmem:[#allocation88_spill] sm:$0xff]  ;;  %v3615_v19 = vld [vmem:[#allocation2_spill] sm:$0xff] }
 0x165   : > { %v3614_v41 = vmax.f32 %v3612_v46, %v3613_v14  ;;  %v3616_v49 = vld [vmem:[#allocation44_spill] sm:$0xff]  ;;  %v3617_v1 = vld [vmem:[#allocation89_spill] sm:$0xff]  ;;  %v3620_v34 = vld [vmem:[#allocation47_spill] sm:$0xff] }
 0x166   : > { %v1171_v47 = vmul.f32 %v3610_v36, %v3607_v0  ;;  %v3618_v55 = vmax.f32 %v3616_v49, %v3617_v1  ;;  %v3619_v33 = vld [vmem:[#allocation4_spill] sm:$0xff]  ;;  %v3621_v7 = vld [vmem:[#allocation90_spill] sm:$0xff]  ;;  %v3623_v44 = vld [vmem:[#allocation7_spill] sm:$0xff] }
 0x167   : > { %v1172_v12 = vmul.f32 %v3614_v41, %v3611_v5  ;;  %v3622_v30 = vmax.f32 %v3620_v34, %v3621_v7  ;;  %v3624_v17 = vld [vmem:[#allocation48_spill] sm:$0xff]  ;;  %v3625_v52 = vld [vmem:[#allocation91_spill] sm:$0xff]  ;;  %v3627_v9 = vld [vmem:[#allocation6_spill] sm:$0xff] }
 0x168   : > { %v1173_v3 = vmul.f32 %v3618_v55, %v3615_v19  ;;  %v3626_v20 = vmax.f32 %v3624_v17, %v3625_v52  ;;  %v3628_v24 = vld [vmem:[#allocation51_spill] sm:$0xff]  ;;  %v3629_v36 = vld [vmem:[#allocation92_spill] sm:$0xff]  ;;  %v3631_v14 = vld [vmem:[#allocation9_spill] sm:$0xff] }
 0x169   : > { %v1174_v6 = vmul.f32 %v3622_v30, %v3619_v33  ;;  %v3630_v46 = vmax.f32 %v3628_v24, %v3629_v36  ;;  %v3632_v41 = vld [vmem:[#allocation52_spill] sm:$0xff]  ;;  %v3633_v1 = vld [vmem:[#allocation93_spill] sm:$0xff]  ;;  %v3636_v7 = vld [vmem:[#allocation55_spill] sm:$0xff] }
 0x16a   : > { %v1175_v0 = vmul.f32 %v3626_v20, %v3623_v44  ;;  %v3634_v49 = vmax.f32 %v3632_v41, %v3633_v1  ;;  %v3635_v55 = vld [vmem:[#allocation8_spill] sm:$0xff]  ;;  %v3637_v34 = vld [vmem:[#allocation94_spill] sm:$0xff]  ;;  %v3639_v17 = vld [vmem:[#allocation11_spill] sm:$0xff] }
 0x16b   : > { %v1176_v5 = vmul.f32 %v3630_v46, %v3627_v9  ;;  %v3638_v30 = vmax.f32 %v3636_v7, %v3637_v34  ;;  %v3640_v52 = vld [vmem:[#allocation56_spill] sm:$0xff]  ;;  %v3641_v20 = vld [vmem:[#allocation95_spill] sm:$0xff]  ;;  %v3643_v36 = vld [vmem:[#allocation10_spill] sm:$0xff] }
 0x16c   : > { %v1177_v19 = vmul.f32 %v3634_v49, %v3631_v14  ;;  %v3642_v44 = vmax.f32 %v3640_v52, %v3641_v20  ;;  %v3644_v9 = vld [vmem:[#allocation59_spill] sm:$0xff]  ;;  %v3645_v46 = vld [vmem:[#allocation96_spill] sm:$0xff]  ;;  %v3647_v14 = vld [vmem:[#allocation13_spill] sm:$0xff] }
 0x16d   : > { %v1178_v33 = vmul.f32 %v3638_v30, %v3635_v55  ;;  %v3646_v1 = vmax.f32 %v3644_v9, %v3645_v46  ;;  %v3648_v49 = vld [vmem:[#allocation60_spill] sm:$0xff]  ;;  %v3649_v7 = vld [vmem:[#allocation97_spill] sm:$0xff]  ;;  %v3652_v20 = vld [vmem:[#allocation63_spill] sm:$0xff] }
 0x16e   : > { %v1179_v24 = vmul.f32 %v3642_v44, %v3639_v17  ;;  %v3650_v34 = vmax.f32 %v3648_v49, %v3649_v7  ;;  %v3651_v55 = vld [vmem:[#allocation12_spill] sm:$0xff]  ;;  %v3653_v52 = vld [vmem:[#allocation98_spill] sm:$0xff]  ;;  %v3655_v9 = vld [vmem:[#allocation15_spill] sm:$0xff] }
 0x16f   : > { %v1180_v41 = vmul.f32 %v3646_v1, %v3643_v36  ;;  %v3654_v17 = vmax.f32 %v3652_v20, %v3653_v52  ;;  %v3656_v46 = vld [vmem:[#allocation64_spill] sm:$0xff]  ;;  %v3657_v1 = vld [vmem:[#allocation99_spill] sm:$0xff]  ;;  %v3659_v49 = vld [vmem:[#allocation14_spill] sm:$0xff] }
 0x170   : > { %v1181_v30 = vmul.f32 %v3650_v34, %v3647_v14  ;;  %v3658_v36 = vmax.f32 %v3656_v46, %v3657_v1  ;;  %v1184_v14 = vmul.f32 %v1131_v2, %v3659_v49  ;;  %v3660_v34 = vld [vmem:[#allocation17_spill] sm:$0xff]  ;;  %v3661_v52 = vld [vmem:[#allocation16_spill] sm:$0xff]  ;;  %v3664_v46 = vld [vmem:[#allocation18_spill] sm:$0xff] }
 0x171   : > { %v1182_v44 = vmul.f32 %v3654_v17, %v3651_v55  ;;  %v1185_v20 = vmul.f32 %v1132_v62, %v3660_v34  ;;  %v1186_v17 = vmul.f32 %v1133_v32, %v3661_v52  ;;  %v3662_v55 = vld [vmem:[#allocation19_spill] sm:$0xff]  ;;  %v3668_v49 = vld [vmem:[#allocation20_spill] sm:$0xff]  ;;  %v3670_v52 = vld [vmem:[#allocation22_spill] sm:$0xff] }
 0x172   : > { %v1183_v7 = vmul.f32 %v3658_v36, %v3655_v9  ;;  %v3230_v1 = vmul.f32 %v1134_v53, %v3662_v55  ;;  %v3233_v9 = vmul.f32 %v1135_v25, %v3664_v46  ;;  %v3666_v36 = vld [vmem:[#allocation21_spill] sm:$0xff]  ;;  %v1190_v34 = vmul.f32 %v1137_v26, %v3668_v49  ;;  %v3669_v62 = vld [vmem:[#allocation23_spill] sm:$0xff]  ;;  %v3672_v25 = vld [vmem:[#allocation24_spill] sm:$0xff] }
 0x173   : > { %v3236_v2 = vmul.f32 %v1136_v38, %v3666_v36  ;;  %v1191_v32 = vmul.f32 %v1138_v59, %v3669_v62  ;;  %v1192_v53 = vmul.f32 %v1139_v48, %v3670_v52  ;;  %v3671_v55 = vld [vmem:[#allocation25_spill] sm:$0xff]  ;;  %v1194_v46 = vmul.f32 %v1141_v28, %v3672_v25  ;;  %v3675_v38 = vld [vmem:[#allocation26_spill] sm:$0xff]  ;;  %v3679_v59 = vld [vmem:[#allocation28_spill] sm:$0xff] }
 0x174   : > { %3663 = vst [vmem:[#allocation68_spill] sm:$0xff] %v3230_v1  ;;  %3665 = vst [vmem:[#allocation69_spill] sm:$0xff] %v3233_v9  ;;  %v1193_v1 = vmul.f32 %v1140_v39, %v3671_v55  ;;  %v3673_v9 = vld [vmem:[#allocation27_spill] sm:$0xff]  ;;  %v3677_v26 = vld [vmem:[#allocation29_spill] sm:$0xff]  ;;  %v1198_v62 = vmul.f32 %v1145_v29, %v3679_v59 }
 0x175   : > { %3667 = vst [vmem:[#allocation70_spill] sm:$0xff] %v3236_v2  ;;  %v3244_v36 = vmul.f32 %v1142_v43, %v3673_v9  ;;  %v3247_v2 = vmul.f32 %v1143_v45, %v3675_v38  ;;  %v3250_v49 = vmul.f32 %v1144_v22, %v3677_v26  ;;  %v3680_v48 = vld [vmem:[#allocation31_spill] sm:$0xff]  ;;  %v3681_v39 = vld [vmem:[#allocation30_spill] sm:$0xff]  ;;  %v3682_v25 = vld [vmem:[#allocation33_spill] sm:$0xff] }
 0x176   : > { %v1199_v52 = vmul.f32 %v1146_v11, %v3680_v48  ;;  %v1200_v55 = vmul.f32 %v1147_v61, %v3681_v39  ;;  %v1201_v28 = vmul.f32 %v1148_v10, %v3682_v25  ;;  %v3683_v9 = vld [vmem:[#allocation32_spill] sm:$0xff]  ;;  %v3686_v45 = vld [vmem:[#allocation34_spill] sm:$0xff]  ;;  %v3688_v22 = vld [vmem:[#allocation37_spill] sm:$0xff] }
 0x177   : > { %3674 = vst [vmem:[#allocation71_spill] sm:$0xff] %v3244_v36  ;;  %3676 = vst [vmem:[#allocation72_spill] sm:$0xff] %v3247_v2  ;;  %v1202_v43 = vmul.f32 %v1149_v51, %v3683_v9  ;;  %v3684_v36 = vld [vmem:[#allocation35_spill] sm:$0xff]  ;;  %v3261_v2 = vmul.f32 %v1151_v40, %v3686_v45  ;;  %v3264_v26 = vmul.f32 %v1152_v16, %v3688_v22  ;;  %v3692_v48 = vld [vmem:[#allocation38_spill] sm:$0xff] }
 0x178   : > { %3678 = vst [vmem:[#allocation73_spill] sm:$0xff] %v3250_v49  ;;  %v3258_v38 = vmul.f32 %v1150_v15, %v3684_v36  ;;  %v3690_v49 = vld [vmem:[#allocation36_spill] sm:$0xff]  ;;  %v3691_v59 = vld [vmem:[#allocation39_spill] sm:$0xff]  ;;  %v1208_v61 = vmul.f32 %v1155_v58, %v3692_v48  ;;  %v3693_v39 = vld [vmem:[#allocation42_spill] sm:$0xff] }
 0x179   : > { %3687 = vst [vmem:[#allocation75_spill] sm:$0xff] %v3261_v2  ;;  %3689 = vst [vmem:[#allocation76_spill] sm:$0xff] %v3264_v26  ;;  %v1206_v29 = vmul.f32 %v1153_v50, %v3690_v49  ;;  %v1207_v11 = vmul.f32 %v1154_v57, %v3691_v59  ;;  %v1209_v10 = vmul.f32 %v1156_v27, %v3693_v39  ;;  %v3694_v25 = vld [vmem:[#allocation41_spill] sm:$0xff]  ;;  %v3695_v51 = vld [vmem:[#allocation46_spill] sm:$0xff] }
 0x17a   : > { %3685 = vst [vmem:[#allocation74_spill] sm:$0xff] %v3258_v38  ;;  %v1210_v9 = vmul.f32 %v1157_v8, %v3694_v25  ;;  %v1211_v15 = vmul.f32 %v1158_v54, %v3695_v51  ;;  %v3696_v36 = vld [vmem:[#allocation45_spill] sm:$0xff]  ;;  %v3697_v40 = vld [vmem:[#allocation50_spill] sm:$0xff]  ;;  %v3707_v48 = vld [vmem:[#allocation67_spill] sm:$0xff]  ;;  %v1780_v25 = vpack.c.bf16 %v1172_v12, %v1171_v47  ;;  %v1785_v51 = vpack.c.bf16 %v1174_v6, %v1173_v3 }
 0x17b   : > { %v1212_v38 = vmul.f32 %v1159_v37, %v3696_v36  ;;  %v1213_v45 = vmul.f32 %v1160_v35, %v3697_v40  ;;  %v3698_v2 = vld [vmem:[#allocation49_spill] sm:$0xff]  ;;  %v3699_v22 = vld [vmem:[#allocation54_spill] sm:$0xff]  ;;  %v1223_v39 = vmul.f32 %v1170_v42, %v3707_v48  ;;  %v1790_v36 = vpack.c.bf16 %v1176_v5, %v1175_v0 }
 0x17c   : > { %v1214_v16 = vmul.f32 %v1161_v21, %v3698_v2  ;;  %v1215_v26 = vmul.f32 %v1162_v56, %v3699_v22  ;;  %v3700_v49 = vld [vmem:[#allocation53_spill] sm:$0xff]  ;;  %v3701_v57 = vld [vmem:[#allocation58_spill] sm:$0xff]  ;;  %1781 = vst [vmem:[%s3282_s30] sm:$0xff] %v1780_v25   ;;  %v1805_v40 = vpack.c.bf16 %v1182_v44, %v1181_v30  ;;  %v1815_v22 = vpack.c.bf16 %v1186_v17, %v1185_v20 }
 0x17d   : > { %v1216_v50 = vmul.f32 %v1163_v60, %v3700_v49  ;;  %v1217_v58 = vmul.f32 %v1164_v18, %v3701_v57  ;;  %v3702_v27 = vld [vmem:[#allocation57_spill] sm:$0xff]  ;;  %v3703_v54 = vld [vmem:[#allocation62_spill] sm:$0xff]  ;;  %v1795_v18 = vpack.c.bf16 %v1178_v33, %v1177_v19  ;;  %1932 = vst [vmem:[%s3282_s30 + $0x8] sm:$0xff] %v1785_v51   ;;  %1933 = vst [vmem:[%s3282_s30 + $0x10] sm:$0xff] %v1790_v36  }
 0x17e   : > { %v1218_v8 = vmul.f32 %v1165_v63, %v3702_v27  ;;  %v1219_v37 = vmul.f32 %v1166_v4, %v3703_v54  ;;  %v3704_v35 = vld [vmem:[#allocation61_spill] sm:$0xff]  ;;  %v3705_v56 = vld [vmem:[#allocation66_spill] sm:$0xff]  ;;  %v1800_v63 = vpack.c.bf16 %v1180_v41, %v1179_v24  ;;  %v1672_v4 = vpack.c.bf16 %v1223_v39, %v1223_v39  ;;  %1936 = vst [vmem:[%s3282_s30 + $0x28] sm:$0xff] %v1805_v40   ;;  %v3711_v0 = vld [vmem:[#allocation71_spill] sm:$0xff] }
 0x17f   : > { %v1220_v21 = vmul.f32 %v1167_v23, %v3704_v35  ;;  %v1221_v60 = vmul.f32 %v1168_v13, %v3705_v56  ;;  %v3706_v2 = vld [vmem:[#allocation65_spill] sm:$0xff]  ;;  %v1810_v23 = vpack.c.bf16 %v1184_v14, %v1183_v7  ;;  %1934 = vst [vmem:[%s3282_s30 + $0x18] sm:$0xff] %v1795_v18   ;;  %v3708_v13 = vld [vmem:[#allocation68_spill] sm:$0xff]  ;;  %v3710_v47 = vld [vmem:[#allocation70_spill] sm:$0xff]  ;;  %v1830_v3 = vpack.c.bf16 %v1192_v53, %v1191_v32 }
 0x180   : > { %v1222_v59 = vmul.f32 %v1169_v31, %v3706_v2  ;;  %1935 = vst [vmem:[%s3282_s30 + $0x20] sm:$0xff] %v1800_v63   ;;  %v3709_v31 = vld [vmem:[#allocation69_spill] sm:$0xff]  ;;  %v1825_v12 = vpack.c.bf16 %v1190_v34, %v3710_v47  ;;  %v1835_v6 = vpack.c.bf16 %v1194_v46, %v1193_v1  ;;  %1938 = vst [vmem:[%s3282_s30 + $0x38] sm:$0xff] %v1815_v22   ;;  %v3712_v5 = vld [vmem:[#allocation72_spill] sm:$0xff] }
 0x181   : > { %v1820_v42 = vpack.c.bf16 %v3709_v31, %v3708_v13  ;;  %1937 = vst [vmem:[%s3282_s30 + $0x30] sm:$0xff] %v1810_v23   ;;  %v1840_v19 = vpack.c.bf16 %v3712_v5, %v3711_v0  ;;  %v3713_v33 = vld [vmem:[#allocation73_spill] sm:$0xff]  ;;  %v1850_v41 = vpack.c.bf16 %v1200_v55, %v1199_v52  ;;  %v1855_v30 = vpack.c.bf16 %v1202_v43, %v1201_v28  ;;  %v3714_v44 = vld [vmem:[#allocation74_spill] sm:$0xff]  ;;  %v3715_v7 = vld [vmem:[#allocation75_spill] sm:$0xff] }
 0x182   : > { %v1845_v24 = vpack.c.bf16 %v1198_v62, %v3713_v33  ;;  %1489 = vst [vmem:[%s3282_s30 + $0xd0] sm:$0x3] %v1672_v4  ;;  %1940 = vst [vmem:[%s3282_s30 + $0x48] sm:$0xff] %v1825_v12   ;;  %v1860_v14 = vpack.c.bf16 %v3715_v7, %v3714_v44  ;;  %v3716_v20 = vld [vmem:[#allocation76_spill] sm:$0xff]  ;;  %v1870_v1 = vpack.c.bf16 %v1208_v61, %v1207_v11 }
 0x183   : > { %1939 = vst [vmem:[%s3282_s30 + $0x40] sm:$0xff] %v1820_v42   ;;  %1941 = vst [vmem:[%s3282_s30 + $0x50] sm:$0xff] %v1830_v3   ;;  %v1865_v17 = vpack.c.bf16 %v1206_v29, %v3716_v20  ;;  %v1875_v34 = vpack.c.bf16 %v1210_v9, %v1209_v10  ;;  %v1880_v32 = vpack.c.bf16 %v1212_v38, %v1211_v15 }
 0x184   : > { %1942 = vst [vmem:[%s3282_s30 + $0x58] sm:$0xff] %v1835_v6   ;;  %1943 = vst [vmem:[%s3282_s30 + $0x60] sm:$0xff] %v1840_v19   ;;  %v1885_v53 = vpack.c.bf16 %v1214_v16, %v1213_v45  ;;  %v1890_v46 = vpack.c.bf16 %v1216_v50, %v1215_v26  ;;  %v1895_v62 = vpack.c.bf16 %v1218_v8, %v1217_v58 }
 0x185   : > { %1944 = vst [vmem:[%s3282_s30 + $0x68] sm:$0xff] %v1845_v24   ;;  %1945 = vst [vmem:[%s3282_s30 + $0x70] sm:$0xff] %v1850_v41   ;;  %v1900_v52 = vpack.c.bf16 %v1220_v21, %v1219_v37  ;;  %v1905_v55 = vpack.c.bf16 %v1222_v59, %v1221_v60 }
 0x186   : > { %1946 = vst [vmem:[%s3282_s30 + $0x78] sm:$0xff] %v1855_v30   ;;  %1947 = vst [vmem:[%s3282_s30 + $0x80] sm:$0xff] %v1860_v14  }
 0x187   : > { %1948 = vst [vmem:[%s3282_s30 + $0x88] sm:$0xff] %v1865_v17   ;;  %1949 = vst [vmem:[%s3282_s30 + $0x90] sm:$0xff] %v1870_v1  }
 0x188   : > { %1950 = vst [vmem:[%s3282_s30 + $0x98] sm:$0xff] %v1875_v34   ;;  %1951 = vst [vmem:[%s3282_s30 + $0xa0] sm:$0xff] %v1880_v32  }
 0x189   : > { %1952 = vst [vmem:[%s3282_s30 + $0xa8] sm:$0xff] %v1885_v53   ;;  %1953 = vst [vmem:[%s3282_s30 + $0xb0] sm:$0xff] %v1890_v46  }
 0x18a   : > { %1954 = vst [vmem:[%s3282_s30 + $0xb8] sm:$0xff] %v1895_v62   ;;  %1955 = vst [vmem:[%s3282_s30 + $0xc0] sm:$0xff] %v1900_v52  }
 0x18b   : > { %1956 = vst [vmem:[%s3282_s30 + $0xc8] sm:$0xff] %v1905_v55  }
 0x18c PF: > { %s13_s12 = sadd.s32 1, %s1977_s12  }
 0x18d   : > { %p10_p4 = scmp.ge.s32.totalorder %s13_s12, 4  }
 0x18f   :  { %12 = sbr.rel (!%p10_p4) target bundleno = 1 (0x1), region = 65 }

// kernel: adain_resblk_pallas.5
= control target key start
LH: loop header
LB: loop body
LE: loop exit
PB: predicated region body
PF: predicated region fallthrough
CT: control target
= control target key end

     0   :  { %s6081_s18 = smov 0   ;;  %s7551_s0 = inlined_call_operand.vmem [shape: bf16[2,372,128], index: 0, kind: input, shape index: {}]   ;;  %s7552_s1 = inlined_call_operand.vmem [shape: bf16[9,128,128], index: 1, kind: input, shape index: {}]   ;;  %s7553_s2 = inlined_call_operand.vmem [shape: f32[1,128], index: 2, kind: input, shape index: {}]   ;;  %s7554_s3 = inlined_call_operand.vmem [shape: bf16[2,324,128], index: 3, kind: input, shape index: {}]   ;;  %s7555_s4 = inlined_call_operand.vmem [shape: bf16[128,128], index: 4, kind: input, shape index: {}]   ;;  %s7556_s5 = inlined_call_operand.vmem [shape: f32[2,324,128], index: 5, kind: output, shape index: {}]  }
   0x1 LB: > { %s4283_s19 = sadd.s32 4294967295, %s6047_s18   ;;  %p4287_p0 = scmp.ge.s32.totalorder %s6047_s18, 1  ;;  %s6047_s18 = sphi %s6081_s18, %s15_s18  }
   0x2   : > { %p197_p1 = scmp.lt.s32.totalorder %s6047_s18, 3 }
   0x4   : > { %p198_p2 = pnand %p4287_p0, %p197_p1 }
   0x6   : > { %201 = sbr.rel (%p198_p2) target bundleno = 1078 (0x436), region = 40 }
   0xb   : > { %v5940_v0 = vld [vmem:[%s7552_s1 + $0x78] sm:$0xff]   ;;  %v7557_v1 = vmov 0.0   ;;  %v5942_v3 = vld [vmem:[%s7552_s1 + $0x70] sm:$0xff]   ;;  %vm6050_vm0 = vmmov 0   ;;  %p230_p3 = scmp.lt.s32.totalorder %s4283_s19, 1  ;;  %v5944_v5 = vld [vmem:[%s7552_s1 + $0x68] sm:$0xff]  }
   0xc   : > { %4927 = vmatprep.subr.bf16.mxu0 %v7557_v1  ;;  %5027 = vmatprep.subr.bf16.mxu1 %v7557_v1  ;;  %v5941_v2 = vld [vmem:[%s7552_s1 + $0x38] sm:$0xff]   ;;  %v5943_v4 = vld [vmem:[%s7552_s1 + $0x30] sm:$0xff]   ;;  %v5945_v6 = vld [vmem:[%s7552_s1 + $0x28] sm:$0xff]  }
   0xd   : > { %4928 = vmatpush3.bf16.msra.mxu0 %v5940_v0  ;;  %4943 = vmatprep.mubr.msk.bf16.mxu0 %vm6050_vm0, %v7557_v1  ;;  %s7589_s19 = smov (!%p230_p3, %s4283_s19), 1  ;;  %v5946_v7 = vld [vmem:[%s7552_s1 + $0x60] sm:$0xff]   ;;  %v5948_v9 = vld [vmem:[%s7552_s1 + $0x58] sm:$0xff]   ;;  %v5950_v13 = vld [vmem:[%s7552_s1 + $0x50] sm:$0xff]  }
   0xe   : > { %5028 = vmatpush3.bf16.msra.mxu1 %v5941_v2  ;;  %4929 = vmatprep.subr.bf16.mxu0 %v7557_v1  ;;  %s5927_s7 = smul.u32 188, %s7589_s19  ;;  %v5947_v8 = vld [vmem:[%s7552_s1 + $0x20] sm:$0xff]   ;;  %v5949_v10 = vld [vmem:[%s7552_s1 + $0x18] sm:$0xff]   ;;  %v5951_v17 = vld [vmem:[%s7552_s1 + $0x10] sm:$0xff]  }
   0xf   : > { %5029 = vmatprep.subr.bf16.mxu1 %v7557_v1  ;;  %5043 = vmatprep.mubr.msk.bf16.mxu1 %vm6050_vm0, %v7557_v1  ;;  %v5952_v26 = vld [vmem:[%s7552_s1 + $0x48] sm:$0xff]   ;;  %v5954_v41 = vld [vmem:[%s7552_s1 + $0x40] sm:$0xff]   ;;  %v5956_v53 = vld [vmem:[%s7552_s1 + $0xb8] sm:$0xff]   ;;  %s5928_s28 = smul.u32 164, %s7589_s19 }
  0x10   : > { %s6131_s14 = scalar_lea.vmem %s7551_s0, %s5927_s7  ;;  %v5953_v31 = vld [vmem:[%s7552_s1 + $0x8] sm:$0xff]   ;;  %v5955_v48 = vld [vmem:[%s7552_s1] sm:$0xff]   ;;  %v5957_v54 = vld [vmem:[%s7552_s1 + $0xf8] sm:$0xff]   ;;  %s5929_s9 = smul.u32 328, %s7589_s19 }
  0x11   : > { %4930 = vmatpush3.bf16.msra.mxu0 %v5942_v3  ;;  %v4524_v11 = vld [vmem:[%s6131_s14] sm:$0xff]   ;;  %v4615_v12 = vld [vmem:[%s6131_s14 + $0x8] sm:$0xff]   ;;  %v4616_v19 = vld [vmem:[%s6131_s14 + $0x10] sm:$0xff]   ;;  %s6997_s6 = scalar_lea.vmem %s7554_s3, %s5928_s28 }
  0x12   : > { %5030 = vmatpush3.bf16.msra.mxu1 %v5943_v4  ;;  %4931 = vmatprep.subr.bf16.mxu0 %v7557_v1  ;;  %v4525_v14 = vunpack.c.l.bf16 %v4524_v11  ;;  %v4526_v15 = vunpack.c.h.bf16 %v4524_v11  ;;  %v4529_v16 = vunpack.c.l.bf16 %v4615_v12  ;;  %v4530_v18 = vunpack.c.h.bf16 %v4615_v12  ;;  %v4617_v20 = vld [vmem:[%s6131_s14 + $0x18] sm:$0xff]   ;;  %v4618_v25 = vld [vmem:[%s6131_s14 + $0x20] sm:$0xff]   ;;  %v4619_v29 = vld [vmem:[%s6131_s14 + $0x28] sm:$0xff]   ;;  %s7426_s12 = scalar_lea.vmem %s7556_s5, %s5929_s9 }
  0x13   : > { %5031 = vmatprep.subr.bf16.mxu1 %v7557_v1  ;;  %v4533_v21 = vunpack.c.l.bf16 %v4616_v19  ;;  %v4534_v22 = vunpack.c.h.bf16 %v4616_v19  ;;  %v4537_v23 = vunpack.c.l.bf16 %v4617_v20  ;;  %v4538_v24 = vunpack.c.h.bf16 %v4617_v20  ;;  %v4620_v30 = vld [vmem:[%s6131_s14 + $0x30] sm:$0xff]   ;;  %v4621_v36 = vld [vmem:[%s6131_s14 + $0x38] sm:$0xff]   ;;  %v4622_v39 = vld [vmem:[%s6131_s14 + $0x40] sm:$0xff]  }
  0x14   : > { %340 = vst [vmem:[#allocation2] sm:$0xff] %v4525_v14  ;;  %341 = vst [vmem:[#allocation2 + $0x8] sm:$0xff] %v4526_v15  ;;  %v4541_v27 = vunpack.c.l.bf16 %v4618_v25  ;;  %v4542_v28 = vunpack.c.h.bf16 %v4618_v25  ;;  %v4545_v32 = vunpack.c.l.bf16 %v4619_v29  ;;  %v4546_v33 = vunpack.c.h.bf16 %v4619_v29  ;;  %v4623_v40 = vld [vmem:[%s6131_s14 + $0x48] sm:$0xff]   ;;  %v5958_v57 = vld [vmem:[%s7552_s1 + $0xb0] sm:$0xff]  }
  0x15   : > { %4932 = vmatpush3.bf16.msra.mxu0 %v5944_v5  ;;  %342 = vst [vmem:[#allocation2 + $0x10] sm:$0xff] %v4529_v16  ;;  %343 = vst [vmem:[#allocation2 + $0x18] sm:$0xff] %v4530_v18  ;;  %v4549_v34 = vunpack.c.l.bf16 %v4620_v30  ;;  %v4550_v35 = vunpack.c.h.bf16 %v4620_v30  ;;  %v4553_v37 = vunpack.c.l.bf16 %v4621_v36  ;;  %v4554_v38 = vunpack.c.h.bf16 %v4621_v36  ;;  %v5959_v60 = vld [vmem:[%s7552_s1 + $0xf0] sm:$0xff]   ;;  %v5960_v63 = vld [vmem:[%s7552_s1 + $0xa8] sm:$0xff]  }
  0x16   : > { %5032 = vmatpush3.bf16.msra.mxu1 %v5945_v6  ;;  %4933 = vmatprep.subr.bf16.mxu0 %v7557_v1  ;;  %344 = vst [vmem:[#allocation2 + $0x20] sm:$0xff] %v4533_v21  ;;  %345 = vst [vmem:[#allocation2 + $0x28] sm:$0xff] %v4534_v22  ;;  %v4557_v44 = vunpack.c.l.bf16 %v4622_v39  ;;  %v4558_v45 = vunpack.c.h.bf16 %v4622_v39  ;;  %v4561_v46 = vunpack.c.l.bf16 %v4623_v40  ;;  %v4562_v47 = vunpack.c.h.bf16 %v4623_v40  ;;  %v5961_v0 = vld [vmem:[%s7552_s1 + $0xe8] sm:$0xff]   ;;  %v4624_v2 = vld [vmem:[%s6131_s14 + $0x50] sm:$0xff]  }
  0x17   : > { %5033 = vmatprep.subr.bf16.mxu1 %v7557_v1  ;;  %346 = vst [vmem:[#allocation2 + $0x30] sm:$0xff] %v4537_v23  ;;  %347 = vst [vmem:[#allocation2 + $0x38] sm:$0xff] %v4538_v24  ;;  %v4565_v5 = vunpack.c.l.bf16 %v4624_v2  ;;  %v4566_v6 = vunpack.c.h.bf16 %v4624_v2  ;;  %v4626_v12 = vld [vmem:[%s6131_s14 + $0x60] sm:$0xff]   ;;  %v4627_v16 = vld [vmem:[%s6131_s14 + $0x68] sm:$0xff]  }
  0x18   : > { %348 = vst [vmem:[#allocation2 + $0x40] sm:$0xff] %v4541_v27  ;;  %349 = vst [vmem:[#allocation2 + $0x48] sm:$0xff] %v4542_v28  ;;  %v4573_v14 = vunpack.c.l.bf16 %v4626_v12  ;;  %v4574_v15 = vunpack.c.h.bf16 %v4626_v12  ;;  %v5963_v18 = vld [vmem:[%s7552_s1 + $0xe0] sm:$0xff]   ;;  %v4577_v19 = vunpack.c.l.bf16 %v4627_v16  ;;  %v4578_v20 = vunpack.c.h.bf16 %v4627_v16  ;;  %v4629_v25 = vld [vmem:[%s6131_s14 + $0x78] sm:$0xff]  }
  0x19   : > { %4934 = vmatpush3.bf16.msra.mxu0 %v5946_v7  ;;  %350 = vst [vmem:[#allocation2 + $0x50] sm:$0xff] %v4545_v32  ;;  %351 = vst [vmem:[#allocation2 + $0x58] sm:$0xff] %v4546_v33  ;;  %v4625_v7 = vld [vmem:[%s6131_s14 + $0x58] sm:$0xff]   ;;  %v4585_v28 = vunpack.c.l.bf16 %v4629_v25  ;;  %v4586_v29 = vunpack.c.h.bf16 %v4629_v25  ;;  %v4631_v32 = vld [vmem:[%s6131_s14 + $0x88] sm:$0xff]  }
  0x1a   : > { %5034 = vmatpush3.bf16.msra.mxu1 %v5947_v8  ;;  %4935 = vmatprep.subr.bf16.mxu0 %v7557_v1  ;;  %352 = vst [vmem:[#allocation2 + $0x60] sm:$0xff] %v4549_v34  ;;  %353 = vst [vmem:[#allocation2 + $0x68] sm:$0xff] %v4550_v35  ;;  %v4570_v11 = vunpack.c.h.bf16 %v4625_v7  ;;  %v5964_v27 = vld [vmem:[%s7552_s1 + $0x98] sm:$0xff]   ;;  %v4593_v34 = vunpack.c.l.bf16 %v4631_v32  ;;  %v4594_v35 = vunpack.c.h.bf16 %v4631_v32  ;;  %v5966_v40 = vld [vmem:[%s7552_s1 + $0x90] sm:$0xff]  }
  0x1b   : > { %5035 = vmatprep.subr.bf16.mxu1 %v7557_v1  ;;  %v465_v42 = vld [vmem:[#allocation2 + $0x6] sm:$0xff]  ;;  %354 = vst [vmem:[#allocation2 + $0x70] sm:$0xff] %v4553_v37  ;;  %355 = vst [vmem:[#allocation2 + $0x78] sm:$0xff] %v4554_v38  ;;  %v5965_v33 = vld [vmem:[%s7552_s1 + $0xd8] sm:$0xff]  }
  0x1c   : > { %v466_v43 = vld [vmem:[#allocation2 + $0xe] sm:$0xff]  ;;  %v387_v49 = vld [vmem:[#allocation2 + $0x5] sm:$0xff]  ;;  %356 = vst [vmem:[#allocation2 + $0x80] sm:$0xff] %v4557_v44  ;;  %357 = vst [vmem:[#allocation2 + $0x88] sm:$0xff] %v4558_v45 }
  0x1d   : > { %4936 = vmatpush3.bf16.msra.mxu0 %v5948_v9  ;;  %v388_v50 = vld [vmem:[#allocation2 + $0xd] sm:$0xff]  ;;  %358 = vst [vmem:[#allocation2 + $0x90] sm:$0xff] %v4561_v46  ;;  %359 = vst [vmem:[#allocation2 + $0x98] sm:$0xff] %v4562_v47  ;;  %v506_v51 = vpack.c.bf16 %v466_v43, %v465_v42  ;;  %v467_v55 = vld [vmem:[#allocation2 + $0x16] sm:$0xff] }
  0x1e   : > { %5036 = vmatpush3.bf16.msra.mxu1 %v5949_v10  ;;  %4937 = vmatprep.subr.bf16.mxu0 %v7557_v1  ;;  %v428_v52 = vpack.c.bf16 %v388_v50, %v387_v49  ;;  %v468_v56 = vld [vmem:[#allocation2 + $0x1e] sm:$0xff]  ;;  %v389_v58 = vld [vmem:[#allocation2 + $0x15] sm:$0xff]  ;;  %v469_v3 = vld [vmem:[#allocation2 + $0x26] sm:$0xff]  ;;  %v4569_v10 = vunpack.c.l.bf16 %v4625_v7  ;;  %360 = vst [vmem:[#allocation2 + $0xa0] sm:$0xff] %v4565_v5 }
  0x1f   : > { %5037 = vmatprep.subr.bf16.mxu1 %v7557_v1  ;;  %v390_v59 = vld [vmem:[#allocation2 + $0x1d] sm:$0xff]  ;;  %v507_v61 = vpack.c.bf16 %v468_v56, %v467_v55  ;;  %v470_v4 = vld [vmem:[#allocation2 + $0x2e] sm:$0xff]  ;;  %v391_v8 = vld [vmem:[#allocation2 + $0x25] sm:$0xff]  ;;  %361 = vst [vmem:[#allocation2 + $0xa8] sm:$0xff] %v4566_v6 }
  0x20   : > { %v429_v62 = vpack.c.bf16 %v390_v59, %v389_v58  ;;  %v5962_v9 = vld [vmem:[%s7552_s1 + $0xa0] sm:$0xff]   ;;  %362 = vst [vmem:[#allocation2 + $0xb0] sm:$0xff] %v4569_v10  ;;  %363 = vst [vmem:[#allocation2 + $0xb8] sm:$0xff] %v4570_v11  ;;  %v508_v23 = vpack.c.bf16 %v470_v4, %v469_v3  ;;  %v471_v36 = vld [vmem:[#allocation2 + $0x36] sm:$0xff] }
  0x21   : > { %4938 = vmatpush3.bf16.msra.mxu0 %v5950_v13  ;;  %v392_v13 = vld [vmem:[#allocation2 + $0x2d] sm:$0xff]  ;;  %364 = vst [vmem:[#allocation2 + $0xc0] sm:$0xff] %v4573_v14  ;;  %365 = vst [vmem:[#allocation2 + $0xc8] sm:$0xff] %v4574_v15  ;;  %v472_v37 = vld [vmem:[#allocation2 + $0x3e] sm:$0xff] }
  0x22   : > { %5038 = vmatpush3.bf16.msra.mxu1 %v5951_v17  ;;  %4939 = vmatprep.subr.bf16.mxu0 %v7557_v1  ;;  %v4628_v17 = vld [vmem:[%s6131_s14 + $0x70] sm:$0xff]   ;;  %v430_v24 = vpack.c.bf16 %v392_v13, %v391_v8  ;;  %366 = vst [vmem:[#allocation2 + $0xd0] sm:$0xff] %v4577_v19  ;;  %367 = vst [vmem:[#allocation2 + $0xd8] sm:$0xff] %v4578_v20  ;;  %v394_v39 = vld [vmem:[#allocation2 + $0x3d] sm:$0xff]  ;;  %v509_v45 = vpack.c.bf16 %v472_v37, %v471_v36 }
  0x23   : > { %5039 = vmatprep.subr.bf16.mxu1 %v7557_v1  ;;  %v4581_v21 = vunpack.c.l.bf16 %v4628_v17  ;;  %v4582_v22 = vunpack.c.h.bf16 %v4628_v17  ;;  %370 = vst [vmem:[#allocation2 + $0xf0] sm:$0xff] %v4585_v28  ;;  %371 = vst [vmem:[#allocation2 + $0xf8] sm:$0xff] %v4586_v29  ;;  %v393_v38 = vld [vmem:[#allocation2 + $0x35] sm:$0xff]  ;;  %v5968_v47 = vld [vmem:[%s7552_s1 + $0x88] sm:$0xff]  }
  0x24   : > { %374 = vst [vmem:[#allocation2 + $0x110] sm:$0xff] %v4593_v34  ;;  %375 = vst [vmem:[#allocation2 + $0x118] sm:$0xff] %v4594_v35  ;;  %v5967_v42 = vld [vmem:[%s7552_s1 + $0xd0] sm:$0xff]   ;;  %v431_v46 = vpack.c.bf16 %v394_v39, %v393_v38  ;;  %v473_v49 = vld [vmem:[#allocation2 + $0x46] sm:$0xff] }
  0x25   : > { %4940 = vmatpush3.bf16.msra.mxu0 %v5952_v26  ;;  %368 = vst [vmem:[#allocation2 + $0xe0] sm:$0xff] %v4581_v21  ;;  %369 = vst [vmem:[#allocation2 + $0xe8] sm:$0xff] %v4582_v22  ;;  %v4630_v26 = vld [vmem:[%s6131_s14 + $0x80] sm:$0xff]   ;;  %v474_v50 = vld [vmem:[#allocation2 + $0x4e] sm:$0xff] }
  0x26   : > { %5040 = vmatpush3.bf16.msra.mxu1 %v5953_v31  ;;  %4941 = vmatprep.subr.bf16.mxu0 %v7557_v1  ;;  %v4589_v30 = vunpack.c.l.bf16 %v4630_v26  ;;  %v4590_v31 = vunpack.c.h.bf16 %v4630_v26  ;;  %v5970_v58 = vld [vmem:[%s7552_s1 + $0x80] sm:$0xff]   ;;  %v397_v2 = vld [vmem:[#allocation2 + $0x55] sm:$0xff]  ;;  %v404_v21 = vld [vmem:[#allocation2 + $0x8d] sm:$0xff] }
  0x27   : > { %5041 = vmatprep.subr.bf16.mxu1 %v7557_v1  ;;  %v5971_v59 = vld [vmem:[%s7552_s1 + $0xc0] sm:$0xff]   ;;  %v478_v7 = vld [vmem:[#allocation2 + $0x6e] sm:$0xff]  ;;  %v479_v12 = vld [vmem:[#allocation2 + $0x76] sm:$0xff] }
  0x28   : > { %372 = vst [vmem:[#allocation2 + $0x100] sm:$0xff] %v4589_v30  ;;  %373 = vst [vmem:[#allocation2 + $0x108] sm:$0xff] %v4590_v31  ;;  %v398_v3 = vld [vmem:[#allocation2 + $0x5d] sm:$0xff]  ;;  %v477_v6 = vld [vmem:[#allocation2 + $0x66] sm:$0xff] }
  0x29   : > { %4942 = vmatpush3.bf16.msra.mxu0 %v5954_v41  ;;  %v4632_v41 = vld [vmem:[%s6131_s14 + $0x90] sm:$0xff]   ;;  %v433_v5 = vpack.c.bf16 %v398_v3, %v397_v2  ;;  %v399_v8 = vld [vmem:[#allocation2 + $0x65] sm:$0xff]  ;;  %v512_v10 = vpack.c.bf16 %v478_v7, %v477_v6  ;;  %v402_v15 = vld [vmem:[#allocation2 + $0x7d] sm:$0xff] }
  0x2a   : > { %5042 = vmatpush3.bf16.msra.mxu1 %v5955_v48  ;;  %5127 = vmatprep.subr.bf16.mxu0 %v7557_v1  ;;  %v4597_v43 = vunpack.c.l.bf16 %v4632_v41  ;;  %v4598_v44 = vunpack.c.h.bf16 %v4632_v41  ;;  %v5969_v48 = vld [vmem:[%s7552_s1 + $0xc8] sm:$0xff]   ;;  %v480_v13 = vld [vmem:[#allocation2 + $0x7e] sm:$0xff]  ;;  %v401_v14 = vld [vmem:[#allocation2 + $0x75] sm:$0xff] }
  0x2b   : > { %5227 = vmatprep.subr.bf16.mxu1 %v7557_v1  ;;  %v513_v16 = vpack.c.bf16 %v480_v13, %v479_v12  ;;  %v435_v17 = vpack.c.bf16 %v402_v15, %v401_v14  ;;  %v482_v19 = vld [vmem:[#allocation2 + $0x8e] sm:$0xff]  ;;  %v403_v20 = vld [vmem:[#allocation2 + $0x85] sm:$0xff]  ;;  %v487_v36 = vld [vmem:[#allocation2 + $0xb6] sm:$0xff] }
  0x2c   : > { %4944 = vmatmul.mubr.bf16.vlgmr.msra.gmra.mxu0 %v506_v51  ;;  %376 = vst [vmem:[#allocation2 + $0x120] sm:$0xff] %v4597_v43  ;;  %377 = vst [vmem:[#allocation2 + $0x128] sm:$0xff] %v4598_v44  ;;  %v395_v51 = vld [vmem:[#allocation2 + $0x45] sm:$0xff]  ;;  %v405_v26 = vld [vmem:[#allocation2 + $0x95] sm:$0xff] }
  0x2d   : > { %5044 = vmatmul.mubr.bf16.vlgmr.msra.gmra.mxu1 %v428_v52  ;;  %5128 = vmatpush3.bf16.msra.mxu0 %v5956_v53  ;;  %v396_v52 = vld [vmem:[#allocation2 + $0x4d] sm:$0xff]  ;;  %v4633_v53 = vld [vmem:[%s6131_s14 + $0x98] sm:$0xff]   ;;  %v407_v32 = vld [vmem:[#allocation2 + $0xa5] sm:$0xff] }
  0x2e   : > { %5228 = vmatpush3.bf16.msra.mxu1 %v5957_v54  ;;  %4947 = vmatprep.mubr.msk.bf16.mxu0 %vm6050_vm0, %v7557_v1  ;;  %v510_v54 = vpack.c.bf16 %v474_v50, %v473_v49  ;;  %v4601_v55 = vunpack.c.l.bf16 %v4633_v53  ;;  %v4602_v56 = vunpack.c.h.bf16 %v4633_v53  ;;  %v484_v25 = vld [vmem:[#allocation2 + $0x9e] sm:$0xff]  ;;  %v485_v30 = vld [vmem:[#allocation2 + $0xa6] sm:$0xff]  ;;  %v486_v31 = vld [vmem:[#allocation2 + $0xae] sm:$0xff] }
  0x2f   : > { %5047 = vmatprep.mubr.msk.bf16.mxu1 %vm6050_vm0, %v7557_v1  ;;  %5129 = vmatprep.subr.bf16.mxu0 %v7557_v1  ;;  %v516_v34 = vpack.c.bf16 %v486_v31, %v485_v30  ;;  %v488_v37 = vld [vmem:[#allocation2 + $0xbe] sm:$0xff]  ;;  %v409_v38 = vld [vmem:[#allocation2 + $0xb5] sm:$0xff]  ;;  %v497_v3 = vld [vmem:[#allocation2 + $0x106] sm:$0xff] }
  0x30   : > { %5229 = vmatprep.subr.bf16.mxu1 %v7557_v1  ;;  %378 = vst [vmem:[#allocation2 + $0x130] sm:$0xff] %v4601_v55  ;;  %379 = vst [vmem:[#allocation2 + $0x138] sm:$0xff] %v4602_v56  ;;  %v410_v39 = vld [vmem:[#allocation2 + $0xbd] sm:$0xff]  ;;  %v490_v43 = vld [vmem:[#allocation2 + $0xce] sm:$0xff] }
  0x31   : > { %5130 = vmatpush3.bf16.msra.mxu0 %v5958_v57  ;;  %v432_v57 = vpack.c.bf16 %v396_v52, %v395_v51  ;;  %v439_v41 = vpack.c.bf16 %v410_v39, %v409_v38  ;;  %v411_v44 = vld [vmem:[#allocation2 + $0xc5] sm:$0xff]  ;;  %v413_v50 = vld [vmem:[#allocation2 + $0xd5] sm:$0xff]  ;;  %v414_v51 = vld [vmem:[#allocation2 + $0xdd] sm:$0xff] }
  0x32   : > { %5230 = vmatpush3.bf16.msra.mxu1 %v5959_v60  ;;  %5131 = vmatprep.subr.bf16.mxu0 %v7557_v1  ;;  %v4634_v60 = vld [vmem:[%s6131_s14 + $0xa0] sm:$0xff]   ;;  %v441_v53 = vpack.c.bf16 %v414_v51, %v413_v50  ;;  %v494_v55 = vld [vmem:[#allocation2 + $0xee] sm:$0xff]  ;;  %v5973_v38 = vld [vmem:[%s7552_s1 + $0x178] sm:$0xff]  }
  0x33   : > { %5231 = vmatprep.subr.bf16.mxu1 %v7557_v1  ;;  %v492_v49 = vld [vmem:[#allocation2 + $0xde] sm:$0xff]  ;;  %v420_v6 = vld [vmem:[#allocation2 + $0x10d] sm:$0xff] }
  0x34   : > { %4948 = vmatmul.mubr.bf16.gmra.mxu0 %v507_v61  ;;  %v475_v61 = vld [vmem:[#allocation2 + $0x56] sm:$0xff]  ;;  %v415_v56 = vld [vmem:[#allocation2 + $0xe5] sm:$0xff] }
  0x35   : > { %5048 = vmatmul.mubr.bf16.gmra.mxu1 %v429_v62  ;;  %4951 = vmatprep.mubr.msk.bf16.mxu0 %vm6050_vm0, %v7557_v1  ;;  %v476_v62 = vld [vmem:[#allocation2 + $0x5e] sm:$0xff]  ;;  %v501_v15 = vld [vmem:[#allocation2 + $0x126] sm:$0xff]  ;;  %v5974_v39 = vld [vmem:[%s7552_s1 + $0x130] sm:$0xff]  }
  0x36   : > { %5051 = vmatprep.mubr.msk.bf16.mxu1 %vm6050_vm0, %v7557_v1  ;;  %5132 = vmatpush3.bf16.msra.mxu0 %v5960_v63  ;;  %v4605_v63 = vunpack.c.l.bf16 %v4634_v60  ;;  %v511_v4 = vpack.c.bf16 %v476_v62, %v475_v61  ;;  %v496_v61 = vld [vmem:[#allocation2 + $0xfe] sm:$0xff]  ;;  %v417_v62 = vld [vmem:[#allocation2 + $0xf5] sm:$0xff]  ;;  %v1040_v31 = vld [vmem:[#allocation2 + $0x7] sm:$0xff] }
  0x37   : > { %5232 = vmatpush3.bf16.msra.mxu1 %v5961_v0  ;;  %5133 = vmatprep.subr.bf16.mxu0 %v7557_v1  ;;  %v4606_v0 = vunpack.c.h.bf16 %v4634_v60  ;;  %v495_v60 = vld [vmem:[#allocation2 + $0xf6] sm:$0xff]  ;;  %v4635_v50 = vld [vmem:[%s6131_s14 + $0xa8] sm:$0xff]  }
  0x38   : > { %5233 = vmatprep.subr.bf16.mxu1 %v7557_v1  ;;  %380 = vst [vmem:[#allocation2 + $0x140] sm:$0xff] %v4605_v63  ;;  %v418_v63 = vld [vmem:[#allocation2 + $0xfd] sm:$0xff] }
  0x39   : > { %381 = vst [vmem:[#allocation2 + $0x148] sm:$0xff] %v4606_v0  ;;  %v521_v0 = vpack.c.bf16 %v496_v61, %v495_v60  ;;  %v443_v2 = vpack.c.bf16 %v418_v63, %v417_v62  ;;  %v422_v12 = vld [vmem:[#allocation2 + $0x11d] sm:$0xff]  ;;  %v4610_v60 = vunpack.c.h.bf16 %v4635_v50  ;;  %v5984_v61 = vld [vmem:[%s7552_s1 + $0x108] sm:$0xff]  }
  0x3a   : > { %5134 = vmatpush3.bf16.msra.mxu0 %v5962_v9  ;;  %v400_v9 = vld [vmem:[#allocation2 + $0x6d] sm:$0xff] }
  0x3b   : > { %5234 = vmatpush3.bf16.msra.mxu1 %v5963_v18  ;;  %5135 = vmatprep.subr.bf16.mxu0 %v7557_v1  ;;  %v434_v11 = vpack.c.bf16 %v400_v9, %v399_v8  ;;  %v481_v18 = vld [vmem:[#allocation2 + $0x86] sm:$0xff]  ;;  %v499_v9 = vld [vmem:[#allocation2 + $0x116] sm:$0xff]  ;;  %383 = vst [vmem:[#allocation2 + $0x158] sm:$0xff] %v4610_v60 }
  0x3c   : > { %4952 = vmatmul.mubr.bf16.gmra.mxu0 %v508_v23  ;;  %5235 = vmatprep.subr.bf16.mxu1 %v7557_v1  ;;  %v514_v22 = vpack.c.bf16 %v482_v19, %v481_v18  ;;  %v436_v23 = vpack.c.bf16 %v404_v21, %v403_v20  ;;  %v424_v18 = vld [vmem:[#allocation2 + $0x12d] sm:$0xff]  ;;  %v503_v21 = vld [vmem:[#allocation2 + $0x136] sm:$0xff] }
  0x3d   : > { %5052 = vmatmul.mubr.bf16.gmra.mxu1 %v430_v24  ;;  %4955 = vmatprep.mubr.msk.bf16.mxu0 %vm6050_vm0, %v7557_v1  ;;  %v483_v24 = vld [vmem:[#allocation2 + $0x96] sm:$0xff]  ;;  %v5985_v62 = vld [vmem:[%s7552_s1 + $0x148] sm:$0xff]  }
  0x3e   : > { %5055 = vmatprep.mubr.msk.bf16.mxu1 %vm6050_vm0, %v7557_v1  ;;  %5136 = vmatpush3.bf16.msra.mxu0 %v5964_v27  ;;  %v406_v27 = vld [vmem:[#allocation2 + $0x9d] sm:$0xff]  ;;  %v515_v28 = vpack.c.bf16 %v484_v25, %v483_v24 }
  0x3f   : > { %5236 = vmatpush3.bf16.msra.mxu1 %v5965_v33  ;;  %5137 = vmatprep.subr.bf16.mxu0 %v7557_v1  ;;  %v437_v29 = vpack.c.bf16 %v406_v27, %v405_v26  ;;  %v408_v33 = vld [vmem:[#allocation2 + $0xad] sm:$0xff]  ;;  %v426_v24 = vld [vmem:[#allocation2 + $0x13d] sm:$0xff] }
  0x40   : > { %5237 = vmatprep.subr.bf16.mxu1 %v7557_v1  ;;  %v438_v35 = vpack.c.bf16 %v408_v33, %v407_v32  ;;  %v505_v27 = vld [vmem:[#allocation2 + $0x146] sm:$0xf]  ;;  %v1041_v32 = vld [vmem:[#allocation2 + $0xf] sm:$0xff]  ;;  %v1408_v33 = vld [vmem:[#allocation2 + $0x17] sm:$0xff] }
  0x42   : > { %5138 = vmatpush3.bf16.msra.mxu0 %v5966_v40  ;;  %v517_v40 = vpack.c.bf16 %v488_v37, %v487_v36  ;;  %v5972_v37 = vld [vmem:[%s7552_s1 + $0x138] sm:$0xff]  }
  0x43   : > { %5238 = vmatpush3.bf16.msra.mxu1 %v5967_v42  ;;  %5139 = vmatprep.subr.bf16.mxu0 %v7557_v1  ;;  %v489_v42 = vld [vmem:[#allocation2 + $0xc6] sm:$0xff] }
  0x44   : > { %4956 = vmatmul.mubr.bf16.gmra.mxu0 %v509_v45  ;;  %5239 = vmatprep.subr.bf16.mxu1 %v7557_v1  ;;  %v412_v45 = vld [vmem:[#allocation2 + $0xcd] sm:$0xff] }
  0x45   : > { %5056 = vmatmul.mubr.bf16.gmra.mxu1 %v431_v46  ;;  %4959 = vmatprep.mubr.msk.bf16.mxu0 %vm6050_vm0, %v7557_v1  ;;  %v518_v46 = vpack.c.bf16 %v490_v43, %v489_v42  ;;  %v5975_v42 = vld [vmem:[%s7552_s1 + $0x170] sm:$0xff]  }
  0x46   : > { %5059 = vmatprep.mubr.msk.bf16.mxu1 %vm6050_vm0, %v7557_v1  ;;  %5140 = vmatpush3.bf16.msra.mxu0 %v5968_v47  ;;  %v440_v47 = vpack.c.bf16 %v412_v45, %v411_v44  ;;  %v5976_v44 = vld [vmem:[%s7552_s1 + $0x128] sm:$0xff]  }
  0x47   : > { %5240 = vmatpush3.bf16.msra.mxu1 %v5969_v48  ;;  %5141 = vmatprep.subr.bf16.mxu0 %v7557_v1  ;;  %v491_v48 = vld [vmem:[#allocation2 + $0xd6] sm:$0xff]  ;;  %v5977_v45 = vld [vmem:[%s7552_s1 + $0x168] sm:$0xff]  }
  0x48   : > { %5241 = vmatprep.subr.bf16.mxu1 %v7557_v1  ;;  %v519_v52 = vpack.c.bf16 %v492_v49, %v491_v48  ;;  %v5978_v48 = vld [vmem:[%s7552_s1 + $0x120] sm:$0xff]  }
  0x49   : > { %v5979_v49 = vld [vmem:[%s7552_s1 + $0x160] sm:$0xff]  }
  0x4a   : > { %5142 = vmatpush3.bf16.msra.mxu0 %v5970_v58 }
  0x4b   : > { %5242 = vmatpush3.bf16.msra.mxu1 %v5971_v59  ;;  %5327 = vmatprep.subr.bf16.mxu0 %v7557_v1 }
  0x4c   : > { %4960 = vmatmul.mubr.bf16.gmra.mxu0 %v510_v54  ;;  %5427 = vmatprep.subr.bf16.mxu1 %v7557_v1  ;;  %v493_v54 = vld [vmem:[#allocation2 + $0xe6] sm:$0xff] }
  0x4d   : > { %5060 = vmatmul.mubr.bf16.gmra.mxu1 %v432_v57  ;;  %4963 = vmatprep.mubr.msk.bf16.mxu0 %vm6050_vm0, %v7557_v1  ;;  %v416_v57 = vld [vmem:[#allocation2 + $0xed] sm:$0xff]  ;;  %v520_v58 = vpack.c.bf16 %v494_v55, %v493_v54  ;;  %v5981_v54 = vld [vmem:[%s7552_s1 + $0x158] sm:$0xff]  }
  0x4e   : > { %5063 = vmatprep.mubr.msk.bf16.mxu1 %vm6050_vm0, %v7557_v1  ;;  %v442_v59 = vpack.c.bf16 %v416_v57, %v415_v56  ;;  %v1414_v55 = vld [vmem:[#allocation2 + $0x47] sm:$0xff]  ;;  %v1415_v56 = vld [vmem:[#allocation2 + $0x4f] sm:$0xff] }
  0x4f   : > { %v5982_v57 = vld [vmem:[%s7552_s1 + $0x110] sm:$0xff]  }
  0x54   : > { %4964 = vmatmul.mubr.bf16.gmra.mxu0 %v511_v4  ;;  %v498_v4 = vld [vmem:[#allocation2 + $0x10e] sm:$0xff] }
  0x55   : > { %5064 = vmatmul.mubr.bf16.gmra.mxu1 %v433_v5  ;;  %4967 = vmatprep.mubr.msk.bf16.mxu0 %vm6050_vm0, %v7557_v1  ;;  %v419_v5 = vld [vmem:[#allocation2 + $0x105] sm:$0xff]  ;;  %v522_v7 = vpack.c.bf16 %v498_v4, %v497_v3  ;;  %v1416_v4 = vld [vmem:[#allocation2 + $0x57] sm:$0xff] }
  0x56   : > { %5067 = vmatprep.mubr.msk.bf16.mxu1 %vm6050_vm0, %v7557_v1  ;;  %v444_v8 = vpack.c.bf16 %v420_v6, %v419_v5  ;;  %v1417_v5 = vld [vmem:[#allocation2 + $0x5f] sm:$0xff] }
  0x57   : > { %v5986_v6 = vld [vmem:[%s7552_s1 + $0x100] sm:$0xff]  }
  0x5c   : > { %4968 = vmatmul.mubr.bf16.gmra.mxu0 %v512_v10  ;;  %v500_v10 = vld [vmem:[#allocation2 + $0x11e] sm:$0xff] }
  0x5d   : > { %5068 = vmatmul.mubr.bf16.gmra.mxu1 %v434_v11  ;;  %4971 = vmatprep.mubr.msk.bf16.mxu0 %vm6050_vm0, %v7557_v1  ;;  %v421_v11 = vld [vmem:[#allocation2 + $0x115] sm:$0xff]  ;;  %v523_v13 = vpack.c.bf16 %v500_v10, %v499_v9 }
  0x5e   : > { %5071 = vmatprep.mubr.msk.bf16.mxu1 %vm6050_vm0, %v7557_v1  ;;  %v445_v14 = vpack.c.bf16 %v422_v12, %v421_v11  ;;  %v1453_v11 = vpack.c.bf16 %v1417_v5, %v1416_v4 }
  0x64   : > { %4972 = vmatmul.mubr.bf16.gmra.mxu0 %v513_v16  ;;  %v502_v16 = vld [vmem:[#allocation2 + $0x12e] sm:$0xff] }
  0x65   : > { %5072 = vmatmul.mubr.bf16.gmra.mxu1 %v435_v17  ;;  %4975 = vmatprep.mubr.msk.bf16.mxu0 %vm6050_vm0, %v7557_v1  ;;  %v423_v17 = vld [vmem:[#allocation2 + $0x125] sm:$0xff]  ;;  %v524_v19 = vpack.c.bf16 %v502_v16, %v501_v15 }
  0x66   : > { %5075 = vmatprep.mubr.msk.bf16.mxu1 %vm6050_vm0, %v7557_v1  ;;  %v446_v20 = vpack.c.bf16 %v424_v18, %v423_v17 }
  0x6c   : > { %4976 = vmatmul.mubr.bf16.gmra.mxu0 %v514_v22  ;;  %v504_v22 = vld [vmem:[#allocation2 + $0x13e] sm:$0xff] }
  0x6d   : > { %5076 = vmatmul.mubr.bf16.gmra.mxu1 %v436_v23  ;;  %4979 = vmatprep.mubr.msk.bf16.mxu0 %vm6050_vm0, %v7557_v1  ;;  %v425_v23 = vld [vmem:[#allocation2 + $0x135] sm:$0xff]  ;;  %v525_v25 = vpack.c.bf16 %v504_v22, %v503_v21 }
  0x6e   : > { %5079 = vmatprep.mubr.msk.bf16.mxu1 %vm6050_vm0, %v7557_v1  ;;  %v447_v26 = vpack.c.bf16 %v426_v24, %v425_v23 }
  0x74   : > { %4980 = vmatmul.mubr.bf16.gmra.mxu0 %v515_v28  ;;  %v427_v28 = vld [vmem:[#allocation2 + $0x145] sm:$0xf] }
  0x75   : > { %5080 = vmatmul.mubr.bf16.gmra.mxu1 %v437_v29  ;;  %4983 = vmatprep.mubr.msk.bf16.mxu0 %vm6050_vm0, %v7557_v1  ;;  %v526_v29 = vpack.c.bf16 %v505_v27, %v505_v27  ;;  %v448_v30 = vpack.c.bf16 %v427_v28, %v427_v28 }
  0x76   : > { %5083 = vmatprep.mubr.msk.bf16.mxu1 %vm6050_vm0, %v7557_v1 }
  0x7c   : > { %4984 = vmatmul.mubr.bf16.gmra.mxu0 %v516_v34  ;;  %v1409_v34 = vld [vmem:[#allocation2 + $0x1f] sm:$0xff] }
  0x7d   : > { %5084 = vmatmul.mubr.bf16.gmra.mxu1 %v438_v35  ;;  %4987 = vmatprep.mubr.msk.bf16.mxu0 %vm6050_vm0, %v7557_v1  ;;  %v1081_v35 = vpack.c.bf16 %v1041_v32, %v1040_v31  ;;  %v1449_v36 = vpack.c.bf16 %v1409_v34, %v1408_v33  ;;  %v1420_v32 = vld [vmem:[#allocation2 + $0x77] sm:$0xff]  ;;  %v1421_v33 = vld [vmem:[#allocation2 + $0x7f] sm:$0xff] }
  0x7e   : > { %5087 = vmatprep.mubr.msk.bf16.mxu1 %vm6050_vm0, %v7557_v1 }
  0x84   : > { %4988 = vmatmul.mubr.bf16.gmra.mxu0 %v517_v40  ;;  %v1410_v40 = vld [vmem:[#allocation2 + $0x27] sm:$0xff] }
  0x85   : > { %5088 = vmatmul.mubr.bf16.gmra.mxu1 %v439_v41  ;;  %4991 = vmatprep.mubr.msk.bf16.mxu0 %vm6050_vm0, %v7557_v1  ;;  %v1411_v41 = vld [vmem:[#allocation2 + $0x2f] sm:$0xff] }
  0x86   : > { %5091 = vmatprep.mubr.msk.bf16.mxu1 %vm6050_vm0, %v7557_v1  ;;  %v1450_v43 = vpack.c.bf16 %v1411_v41, %v1410_v40 }
  0x8c   : > { %4992 = vmatmul.mubr.bf16.gmra.mxu0 %v518_v46  ;;  %v1412_v46 = vld [vmem:[#allocation2 + $0x37] sm:$0xff] }
  0x8d   : > { %5092 = vmatmul.mubr.bf16.gmra.mxu1 %v440_v47  ;;  %4995 = vmatprep.mubr.msk.bf16.mxu0 %vm6050_vm0, %v7557_v1  ;;  %v1413_v47 = vld [vmem:[#allocation2 + $0x3f] sm:$0xff] }
  0x8e   : > { %5095 = vmatprep.mubr.msk.bf16.mxu1 %vm6050_vm0, %v7557_v1  ;;  %v1451_v51 = vpack.c.bf16 %v1413_v47, %v1412_v46  ;;  %v1423_v46 = vld [vmem:[#allocation2 + $0x8f] sm:$0xff] }
  0x94   : > { %4996 = vmatmul.mubr.bf16.gmra.mxu0 %v519_v52  ;;  %v4609_v52 = vunpack.c.l.bf16 %v4635_v50 }
  0x95   : > { %5096 = vmatmul.mubr.bf16.gmra.mxu1 %v441_v53  ;;  %4999 = vmatprep.mubr.msk.bf16.mxu0 %vm6050_vm0, %v7557_v1  ;;  %v5980_v53 = vld [vmem:[%s7552_s1 + $0x118] sm:$0xff]  }
  0x96   : > { %5099 = vmatprep.mubr.msk.bf16.mxu1 %vm6050_vm0, %v7557_v1  ;;  %382 = vst [vmem:[#allocation2 + $0x150] sm:$0xff] %v4609_v52 }
  0x9c   : > { %5000 = vmatmul.mubr.bf16.gmra.mxu0 %v520_v58  ;;  %v5983_v58 = vld [vmem:[%s7552_s1 + $0x150] sm:$0xff]  }
  0x9d   : > { %5100 = vmatmul.mubr.bf16.gmra.mxu1 %v442_v59  ;;  %5003 = vmatprep.mubr.msk.bf16.mxu0 %vm6050_vm0, %v7557_v1  ;;  %v1452_v59 = vpack.c.bf16 %v1415_v56, %v1414_v55 }
  0x9e   : > { %5103 = vmatprep.mubr.msk.bf16.mxu1 %vm6050_vm0, %v7557_v1 }
  0xa4   : > { %5004 = vmatmul.mubr.bf16.gmra.mxu0 %v521_v0 }
  0xa5   : > { %5104 = vmatmul.mubr.bf16.gmra.mxu1 %v443_v2  ;;  %5007 = vmatprep.mubr.msk.bf16.mxu0 %vm6050_vm0, %v7557_v1 }
  0xa6   : > { %5107 = vmatprep.mubr.msk.bf16.mxu1 %vm6050_vm0, %v7557_v1 }
  0xac   : > { %5008 = vmatmul.mubr.bf16.gmra.mxu0 %v522_v7 }
  0xad   : > { %5108 = vmatmul.mubr.bf16.gmra.mxu1 %v444_v8  ;;  %5011 = vmatprep.mubr.msk.bf16.mxu0 %vm6050_vm0, %v7557_v1  ;;  %v5987_v8 = vld [vmem:[%s7552_s1 + $0x140] sm:$0xff]  }
  0xae   : > { %5111 = vmatprep.mubr.msk.bf16.mxu1 %vm6050_vm0, %v7557_v1 }
  0xb4   : > { %5012 = vmatmul.mubr.bf16.gmra.mxu0 %v523_v13 }
  0xb5   : > { %5112 = vmatmul.mubr.bf16.gmra.mxu1 %v445_v14  ;;  %5015 = vmatprep.mubr.msk.bf16.mxu0 %vm6050_vm0, %v7557_v1 }
  0xb6   : > { %5115 = vmatprep.mubr.msk.bf16.mxu1 %vm6050_vm0, %v7557_v1 }
  0xbc   : > { %5016 = vmatmul.mubr.bf16.gmra.mxu0 %v524_v19  ;;  %v1418_v19 = vld [vmem:[#allocation2 + $0x67] sm:$0xff] }
  0xbd   : > { %5116 = vmatmul.mubr.bf16.gmra.mxu1 %v446_v20  ;;  %5019 = vmatprep.mubr.msk.bf16.mxu0 %vm6050_vm0, %v7557_v1  ;;  %v1419_v20 = vld [vmem:[#allocation2 + $0x6f] sm:$0xff] }
  0xbe   : > { %5119 = vmatprep.mubr.msk.bf16.mxu1 %vm6050_vm0, %v7557_v1  ;;  %v1454_v24 = vpack.c.bf16 %v1419_v20, %v1418_v19 }
  0xc4   : > { %5020 = vmatmul.mubr.bf16.gmra.mxu0 %v525_v25 }
  0xc5   : > { %5120 = vmatmul.mubr.bf16.gmra.mxu1 %v447_v26  ;;  %5023 = vmatprep.mubr.msk.bf16.mxu0 %vm6050_vm0, %v7557_v1 }
  0xc6   : > { %5123 = vmatprep.mubr.msk.bf16.mxu1 %vm6050_vm0, %v7557_v1 }
  0xcc   : > { %5024 = vmatmul.mubr.bf16.gmra.mxu0 %v526_v29 }
  0xcd   : > { %5124 = vmatmul.mubr.bf16.gmra.mxu1 %v448_v30  ;;  %5143 = vmatprep.mubr.msk.bf16.mxu0 %vm6050_vm0, %v7557_v1 }
  0xce   : > { %5243 = vmatprep.mubr.msk.bf16.mxu1 %vm6050_vm0, %v7557_v1 }
  0xd4   : > { %5144 = vmatmul.mubr.bf16.vlgmr.msra.gmra.mxu0 %v1081_v35 }
  0xd5   : > { %5244 = vmatmul.mubr.bf16.vlgmr.msra.gmra.mxu1 %v1449_v36  ;;  %5328 = vmatpush3.bf16.msra.mxu0 %v5972_v37  ;;  %v1455_v37 = vpack.c.bf16 %v1421_v33, %v1420_v32 }
  0xd6   : > { %5428 = vmatpush3.bf16.msra.mxu1 %v5973_v38  ;;  %5147 = vmatprep.mubr.msk.bf16.mxu0 %vm6050_vm0, %v7557_v1 }
  0xd7   : > { %5247 = vmatprep.mubr.msk.bf16.mxu1 %vm6050_vm0, %v7557_v1  ;;  %5329 = vmatprep.subr.bf16.mxu0 %v7557_v1 }
  0xd8   : > { %5429 = vmatprep.subr.bf16.mxu1 %v7557_v1 }
  0xd9   : > { %5330 = vmatpush3.bf16.msra.mxu0 %v5974_v39 }
  0xda   : > { %5430 = vmatpush3.bf16.msra.mxu1 %v5975_v42  ;;  %5331 = vmatprep.subr.bf16.mxu0 %v7557_v1 }
  0xdb   : > { %5431 = vmatprep.subr.bf16.mxu1 %v7557_v1 }
  0xdc   : > { %5148 = vmatmul.mubr.bf16.gmra.mxu0 %v1449_v36 }
  0xdd   : > { %5248 = vmatmul.mubr.bf16.gmra.mxu1 %v1450_v43  ;;  %5151 = vmatprep.mubr.msk.bf16.mxu0 %vm6050_vm0, %v7557_v1 }
  0xde   : > { %5251 = vmatprep.mubr.msk.bf16.mxu1 %vm6050_vm0, %v7557_v1  ;;  %5332 = vmatpush3.bf16.msra.mxu0 %v5976_v44 }
  0xdf   : > { %5432 = vmatpush3.bf16.msra.mxu1 %v5977_v45  ;;  %5333 = vmatprep.subr.bf16.mxu0 %v7557_v1  ;;  %v1422_v45 = vld [vmem:[#allocation2 + $0x87] sm:$0xff] }
  0xe0   : > { %5433 = vmatprep.subr.bf16.mxu1 %v7557_v1  ;;  %v1456_v50 = vpack.c.bf16 %v1423_v46, %v1422_v45 }
  0xe2   : > { %5334 = vmatpush3.bf16.msra.mxu0 %v5978_v48 }
  0xe3   : > { %5434 = vmatpush3.bf16.msra.mxu1 %v5979_v49  ;;  %5335 = vmatprep.subr.bf16.mxu0 %v7557_v1 }
  0xe4   : > { %5152 = vmatmul.mubr.bf16.gmra.mxu0 %v1450_v43  ;;  %5435 = vmatprep.subr.bf16.mxu1 %v7557_v1 }
  0xe5   : > { %5252 = vmatmul.mubr.bf16.gmra.mxu1 %v1451_v51  ;;  %5155 = vmatprep.mubr.msk.bf16.mxu0 %vm6050_vm0, %v7557_v1 }
  0xe6   : > { %5255 = vmatprep.mubr.msk.bf16.mxu1 %vm6050_vm0, %v7557_v1  ;;  %5336 = vmatpush3.bf16.msra.mxu0 %v5980_v53 }
  0xe7   : > { %5436 = vmatpush3.bf16.msra.mxu1 %v5981_v54  ;;  %5337 = vmatprep.subr.bf16.mxu0 %v7557_v1 }
  0xe8   : > { %5437 = vmatprep.subr.bf16.mxu1 %v7557_v1 }
  0xea   : > { %5338 = vmatpush3.bf16.msra.mxu0 %v5982_v57 }
  0xeb   : > { %5438 = vmatpush3.bf16.msra.mxu1 %v5983_v58  ;;  %5339 = vmatprep.subr.bf16.mxu0 %v7557_v1  ;;  %v1424_v58 = vld [vmem:[#allocation2 + $0x97] sm:$0xff] }
  0xec   : > { %v626_v63 = vpop.f32.mrf.mxu0  ;;  %5156 = vmatmul.mubr.bf16.gmra.mxu0 %v1451_v51  ;;  %5439 = vmatprep.subr.bf16.mxu1 %v7557_v1 }
  0xed   : > { %v874_v0 = vpop.f32.mrf.mxu1  ;;  %5256 = vmatmul.mubr.bf16.gmra.mxu1 %v1452_v59  ;;  %5159 = vmatprep.mubr.msk.bf16.mxu0 %vm6050_vm0, %v7557_v1 }
  0xee   : > { %v6405_v2 = vadd.f32 %v874_v0, %v626_v63  ;;  %v4945_v3 = vpop.f32.mrf.mxu0  ;;  %5259 = vmatprep.mubr.msk.bf16.mxu1 %vm6050_vm0, %v7557_v1  ;;  %5340 = vmatpush3.bf16.msra.mxu0 %v5984_v61 }
  0xef   : > { %v5045_v7 = vpop.f32.mrf.mxu1  ;;  %5440 = vmatpush3.bf16.msra.mxu1 %v5985_v62  ;;  %5341 = vmatprep.subr.bf16.mxu0 %v7557_v1 }
  0xf0   : > { %v629_v9 = vpop.f32.mrf.mxu0  ;;  %5441 = vmatprep.subr.bf16.mxu1 %v7557_v1 }
  0xf1   : > { %v877_v10 = vpop.f32.mrf.mxu1 }
  0xf2   : > { %v6417_v12 = vadd.f32 %v877_v10, %v629_v9  ;;  %v4946_v13 = vpop.f32.mrf.mxu0  ;;  %5342 = vmatpush3.bf16.msra.mxu0 %v5986_v6  ;;  %v1426_v9 = vld [vmem:[#allocation2 + $0xa7] sm:$0xff]  ;;  %v1427_v10 = vld [vmem:[#allocation2 + $0xaf] sm:$0xff] }
  0xf3   : > { %v5046_v14 = vpop.f32.mrf.mxu1  ;;  %5442 = vmatpush3.bf16.msra.mxu1 %v5987_v8  ;;  %5527 = vmatprep.subr.bf16.mxu0 %v7557_v1 }
  0xf4   : > { %v634_v15 = vpop.f32.mrf.mxu0  ;;  %5160 = vmatmul.mubr.bf16.gmra.mxu0 %v1452_v59  ;;  %5627 = vmatprep.subr.bf16.mxu1 %v7557_v1  ;;  %v1425_v59 = vld [vmem:[#allocation2 + $0x9f] sm:$0xff] }
  0xf5   : > { %v882_v16 = vpop.f32.mrf.mxu1  ;;  %5260 = vmatmul.mubr.bf16.gmra.mxu1 %v1453_v11  ;;  %5163 = vmatprep.mubr.msk.bf16.mxu0 %vm6050_vm0, %v7557_v1  ;;  %v1457_v63 = vpack.c.bf16 %v1425_v59, %v1424_v58 }
  0xf6   : > { %v6423_v17 = vadd.f32 %v882_v16, %v634_v15  ;;  %v4949_v18 = vpop.f32.mrf.mxu0  ;;  %5263 = vmatprep.mubr.msk.bf16.mxu1 %vm6050_vm0, %v7557_v1  ;;  %v1458_v15 = vpack.c.bf16 %v1427_v10, %v1426_v9  ;;  %v1434_v9 = vld [vmem:[#allocation2 + $0xe7] sm:$0xff]  ;;  %v1435_v10 = vld [vmem:[#allocation2 + $0xef] sm:$0xff] }
  0xf7   : > { %v5049_v21 = vpop.f32.mrf.mxu1 }
  0xf8   : > { %v637_v22 = vpop.f32.mrf.mxu0 }
  0xf9   : > { %v885_v23 = vpop.f32.mrf.mxu1 }
  0xfa   : > { %v6427_v25 = vadd.f32 %v885_v23, %v637_v22  ;;  %v4950_v26 = vpop.f32.mrf.mxu0 }
  0xfb   : > { %v5050_v27 = vpop.f32.mrf.mxu1  ;;  %v1429_v26 = vld [vmem:[#allocation2 + $0xbf] sm:$0xff] }
  0xfc   : > { %v642_v28 = vpop.f32.mrf.mxu0  ;;  %5164 = vmatmul.mubr.bf16.gmra.mxu0 %v1453_v11 }
  0xfd   : > { %v890_v29 = vpop.f32.mrf.mxu1  ;;  %5264 = vmatmul.mubr.bf16.gmra.mxu1 %v1454_v24  ;;  %5167 = vmatprep.mubr.msk.bf16.mxu0 %vm6050_vm0, %v7557_v1 }
  0xfe   : > { %v6431_v30 = vadd.f32 %v890_v29, %v642_v28  ;;  %v4953_v31 = vpop.f32.mrf.mxu0  ;;  %5267 = vmatprep.mubr.msk.bf16.mxu1 %vm6050_vm0, %v7557_v1 }
  0xff   : > { %v5053_v34 = vpop.f32.mrf.mxu1 }
 0x100   : > { %v645_v35 = vpop.f32.mrf.mxu0 }
 0x101   : > { %v893_v36 = vpop.f32.mrf.mxu1 }
 0x102   : > { %v6435_v38 = vadd.f32 %v893_v36, %v645_v35  ;;  %v4954_v39 = vpop.f32.mrf.mxu0 }
 0x103   : > { %v5054_v40 = vpop.f32.mrf.mxu1 }
 0x104   : > { %v650_v41 = vpop.f32.mrf.mxu0  ;;  %5168 = vmatmul.mubr.bf16.gmra.mxu0 %v1454_v24  ;;  %v1428_v24 = vld [vmem:[#allocation2 + $0xb7] sm:$0xff]  ;;  %v1430_v40 = vld [vmem:[#allocation2 + $0xc7] sm:$0xff] }
 0x105   : > { %v898_v42 = vpop.f32.mrf.mxu1  ;;  %5268 = vmatmul.mubr.bf16.gmra.mxu1 %v1455_v37  ;;  %5171 = vmatprep.mubr.msk.bf16.mxu0 %vm6050_vm0, %v7557_v1  ;;  %v1459_v31 = vpack.c.bf16 %v1429_v26, %v1428_v24 }
 0x106   : > { %v6439_v43 = vadd.f32 %v898_v42, %v650_v41  ;;  %v4957_v44 = vpop.f32.mrf.mxu0  ;;  %5271 = vmatprep.mubr.msk.bf16.mxu1 %vm6050_vm0, %v7557_v1  ;;  %v1431_v41 = vld [vmem:[#allocation2 + $0xcf] sm:$0xff] }
 0x107   : > { %v5057_v47 = vpop.f32.mrf.mxu1  ;;  %v1460_v46 = vpack.c.bf16 %v1431_v41, %v1430_v40 }
 0x108   : > { %v653_v48 = vpop.f32.mrf.mxu0 }
 0x109   : > { %v901_v49 = vpop.f32.mrf.mxu1 }
 0x10a   : > { %v6443_v51 = vadd.f32 %v901_v49, %v653_v48  ;;  %v4958_v52 = vpop.f32.mrf.mxu0 }
 0x10b   : > { %v5058_v53 = vpop.f32.mrf.mxu1 }
 0x10c   : > { %v658_v54 = vpop.f32.mrf.mxu0  ;;  %5172 = vmatmul.mubr.bf16.gmra.mxu0 %v1455_v37 }
 0x10d   : > { %v906_v55 = vpop.f32.mrf.mxu1  ;;  %5272 = vmatmul.mubr.bf16.gmra.mxu1 %v1456_v50  ;;  %5175 = vmatprep.mubr.msk.bf16.mxu0 %vm6050_vm0, %v7557_v1 }
 0x10e   : > { %v6447_v56 = vadd.f32 %v906_v55, %v658_v54  ;;  %v4961_v57 = vpop.f32.mrf.mxu0  ;;  %5275 = vmatprep.mubr.msk.bf16.mxu1 %vm6050_vm0, %v7557_v1  ;;  %v1432_v55 = vld [vmem:[#allocation2 + $0xd7] sm:$0xff] }
 0x10f   : > { %v5061_v60 = vpop.f32.mrf.mxu1  ;;  %v1433_v57 = vld [vmem:[#allocation2 + $0xdf] sm:$0xff] }
 0x110   : > { %v661_v61 = vpop.f32.mrf.mxu0 }
 0x111   : > { %v909_v62 = vpop.f32.mrf.mxu1 }
 0x112   : > { %v6451_v0 = vadd.f32 %v909_v62, %v661_v61  ;;  %v4962_v3 = vpop.f32.mrf.mxu0  ;;  %v1461_v61 = vpack.c.bf16 %v1433_v57, %v1432_v55 }
 0x113   : > { %v5062_v4 = vpop.f32.mrf.mxu1 }
 0x114   : > { %v666_v5 = vpop.f32.mrf.mxu0  ;;  %5176 = vmatmul.mubr.bf16.gmra.mxu0 %v1456_v50 }
 0x115   : > { %v914_v6 = vpop.f32.mrf.mxu1  ;;  %5276 = vmatmul.mubr.bf16.gmra.mxu1 %v1457_v63  ;;  %5179 = vmatprep.mubr.msk.bf16.mxu0 %vm6050_vm0, %v7557_v1 }
 0x116   : > { %v6455_v7 = vadd.f32 %v914_v6, %v666_v5  ;;  %v4965_v8 = vpop.f32.mrf.mxu0  ;;  %5279 = vmatprep.mubr.msk.bf16.mxu1 %vm6050_vm0, %v7557_v1 }
 0x117   : > { %v5065_v11 = vpop.f32.mrf.mxu1 }
 0x118   : > { %v669_v13 = vpop.f32.mrf.mxu0 }
 0x119   : > { %v917_v14 = vpop.f32.mrf.mxu1 }
 0x11a   : > { %v6459_v16 = vadd.f32 %v917_v14, %v669_v13  ;;  %v4966_v18 = vpop.f32.mrf.mxu0 }
 0x11b   : > { %v5066_v19 = vpop.f32.mrf.mxu1 }
 0x11c   : > { %v674_v20 = vpop.f32.mrf.mxu0  ;;  %5180 = vmatmul.mubr.bf16.gmra.mxu0 %v1457_v63 }
 0x11d   : > { %v922_v21 = vpop.f32.mrf.mxu1  ;;  %5280 = vmatmul.mubr.bf16.gmra.mxu1 %v1458_v15  ;;  %5183 = vmatprep.mubr.msk.bf16.mxu0 %vm6050_vm0, %v7557_v1 }
 0x11e   : > { %v6463_v22 = vadd.f32 %v922_v21, %v674_v20  ;;  %v4969_v23 = vpop.f32.mrf.mxu0  ;;  %5283 = vmatprep.mubr.msk.bf16.mxu1 %vm6050_vm0, %v7557_v1 }
 0x11f   : > { %v5069_v27 = vpop.f32.mrf.mxu1 }
 0x120   : > { %v677_v28 = vpop.f32.mrf.mxu0  ;;  %v1436_v27 = vld [vmem:[#allocation2 + $0xf7] sm:$0xff] }
 0x121   : > { %v925_v29 = vpop.f32.mrf.mxu1 }
 0x122   : > { %v6467_v32 = vadd.f32 %v925_v29, %v677_v28  ;;  %v4970_v33 = vpop.f32.mrf.mxu0  ;;  %v1437_v28 = vld [vmem:[#allocation2 + $0xff] sm:$0xff] }
 0x123   : > { %v5070_v34 = vpop.f32.mrf.mxu1 }
 0x124   : > { %v682_v35 = vpop.f32.mrf.mxu0  ;;  %5184 = vmatmul.mubr.bf16.gmra.mxu0 %v1458_v15  ;;  %v1462_v15 = vpack.c.bf16 %v1435_v10, %v1434_v9  ;;  %v1463_v34 = vpack.c.bf16 %v1437_v28, %v1436_v27 }
 0x125   : > { %v930_v36 = vpop.f32.mrf.mxu1  ;;  %5284 = vmatmul.mubr.bf16.gmra.mxu1 %v1459_v31  ;;  %5187 = vmatprep.mubr.msk.bf16.mxu0 %vm6050_vm0, %v7557_v1 }
 0x126   : > { %v6471_v37 = vadd.f32 %v930_v36, %v682_v35  ;;  %v4973_v39 = vpop.f32.mrf.mxu0  ;;  %5287 = vmatprep.mubr.msk.bf16.mxu1 %vm6050_vm0, %v7557_v1 }
 0x127   : > { %v5073_v42 = vpop.f32.mrf.mxu1 }
 0x128   : > { %v685_v44 = vpop.f32.mrf.mxu0 }
 0x129   : > { %v933_v45 = vpop.f32.mrf.mxu1 }
 0x12a   : > { %v6475_v47 = vadd.f32 %v933_v45, %v685_v44  ;;  %v4974_v48 = vpop.f32.mrf.mxu0  ;;  %v1438_v45 = vld [vmem:[#allocation2 + $0x107] sm:$0xff] }
 0x12b   : > { %v5074_v49 = vpop.f32.mrf.mxu1 }
 0x12c   : > { %v690_v50 = vpop.f32.mrf.mxu0  ;;  %5188 = vmatmul.mubr.bf16.gmra.mxu0 %v1459_v31 }
 0x12d   : > { %v938_v52 = vpop.f32.mrf.mxu1  ;;  %5288 = vmatmul.mubr.bf16.gmra.mxu1 %v1460_v46  ;;  %5191 = vmatprep.mubr.msk.bf16.mxu0 %vm6050_vm0, %v7557_v1 }
 0x12e   : > { %v6479_v53 = vadd.f32 %v938_v52, %v690_v50  ;;  %v4977_v54 = vpop.f32.mrf.mxu0  ;;  %5291 = vmatprep.mubr.msk.bf16.mxu1 %vm6050_vm0, %v7557_v1 }
 0x12f   : > { %v5077_v58 = vpop.f32.mrf.mxu1 }
 0x130   : > { %v693_v59 = vpop.f32.mrf.mxu0 }
 0x131   : > { %v941_v60 = vpop.f32.mrf.mxu1 }
 0x132   : > { %v6483_v62 = vadd.f32 %v941_v60, %v693_v59  ;;  %v4978_v63 = vpop.f32.mrf.mxu0 }
 0x133   : > { %v5078_v3 = vpop.f32.mrf.mxu1  ;;  %v1440_v63 = vld [vmem:[#allocation2 + $0x117] sm:$0xff] }
 0x134   : > { %v698_v4 = vpop.f32.mrf.mxu0  ;;  %5192 = vmatmul.mubr.bf16.gmra.mxu0 %v1460_v46  ;;  %v1439_v46 = vld [vmem:[#allocation2 + $0x10f] sm:$0xff]  ;;  %v1441_v3 = vld [vmem:[#allocation2 + $0x11f] sm:$0xff] }
 0x135   : > { %v946_v5 = vpop.f32.mrf.mxu1  ;;  %5292 = vmatmul.mubr.bf16.gmra.mxu1 %v1461_v61  ;;  %5195 = vmatprep.mubr.msk.bf16.mxu0 %vm6050_vm0, %v7557_v1  ;;  %v1464_v52 = vpack.c.bf16 %v1439_v46, %v1438_v45  ;;  %v1465_v9 = vpack.c.bf16 %v1441_v3, %v1440_v63  ;;  %v1445_v45 = vld [vmem:[#allocation2 + $0x13f] sm:$0xff]  ;;  %v1446_v3 = vld [vmem:[#allocation2 + $0x147] sm:$0xff] }
 0x136   : > { %v6487_v6 = vadd.f32 %v946_v5, %v698_v4  ;;  %v4981_v8 = vpop.f32.mrf.mxu0  ;;  %5295 = vmatprep.mubr.msk.bf16.mxu1 %vm6050_vm0, %v7557_v1 }
 0x137   : > { %v5081_v11 = vpop.f32.mrf.mxu1 }
 0x138   : > { %v701_v13 = vpop.f32.mrf.mxu0 }
 0x139   : > { %v949_v14 = vpop.f32.mrf.mxu1 }
 0x13a   : > { %v6491_v18 = vadd.f32 %v949_v14, %v701_v13  ;;  %v4982_v19 = vpop.f32.mrf.mxu0 }
 0x13b   : > { %v5082_v20 = vpop.f32.mrf.mxu1 }
 0x13c   : > { %v706_v21 = vpop.f32.mrf.mxu0  ;;  %5196 = vmatmul.mubr.bf16.gmra.mxu0 %v1461_v61 }
 0x13d   : > { %v954_v23 = vpop.f32.mrf.mxu1  ;;  %5296 = vmatmul.mubr.bf16.gmra.mxu1 %v1462_v15  ;;  %5199 = vmatprep.mubr.msk.bf16.mxu0 %vm6050_vm0, %v7557_v1 }
 0x13e   : > { %v6495_v24 = vadd.f32 %v954_v23, %v706_v21  ;;  %v4985_v26 = vpop.f32.mrf.mxu0  ;;  %5299 = vmatprep.mubr.msk.bf16.mxu1 %vm6050_vm0, %v7557_v1  ;;  %v1442_v21 = vld [vmem:[#allocation2 + $0x127] sm:$0xff]  ;;  %v1443_v23 = vld [vmem:[#allocation2 + $0x12f] sm:$0xff] }
 0x13f   : > { %v5085_v29 = vpop.f32.mrf.mxu1 }
 0x140   : > { %v709_v31 = vpop.f32.mrf.mxu0  ;;  %v1466_v29 = vpack.c.bf16 %v1443_v23, %v1442_v21  ;;  %v1080_v23 = vld [vmem:[#allocation2 + $0x147] sm:$0xf] }
 0x141   : > { %v957_v33 = vpop.f32.mrf.mxu1 }
 0x142   : > { %v6499_v35 = vadd.f32 %v957_v33, %v709_v31  ;;  %v4986_v36 = vpop.f32.mrf.mxu0 }
 0x143   : > { %v5086_v39 = vpop.f32.mrf.mxu1 }
 0x144   : > { %v714_v40 = vpop.f32.mrf.mxu0  ;;  %5200 = vmatmul.mubr.bf16.gmra.mxu0 %v1462_v15 }
 0x145   : > { %v962_v41 = vpop.f32.mrf.mxu1  ;;  %5300 = vmatmul.mubr.bf16.gmra.mxu1 %v1463_v34  ;;  %5203 = vmatprep.mubr.msk.bf16.mxu0 %vm6050_vm0, %v7557_v1 }
 0x146   : > { %v6503_v42 = vadd.f32 %v962_v41, %v714_v40  ;;  %v4989_v44 = vpop.f32.mrf.mxu0  ;;  %5303 = vmatprep.mubr.msk.bf16.mxu1 %vm6050_vm0, %v7557_v1 }
 0x147   : > { %v5089_v48 = vpop.f32.mrf.mxu1  ;;  %v1444_v44 = vld [vmem:[#allocation2 + $0x137] sm:$0xff] }
 0x148   : > { %v717_v49 = vpop.f32.mrf.mxu0 }
 0x149   : > { %v965_v50 = vpop.f32.mrf.mxu1 }
 0x14a   : > { %v6507_v54 = vadd.f32 %v965_v50, %v717_v49  ;;  %v4990_v55 = vpop.f32.mrf.mxu0  ;;  %v1467_v50 = vpack.c.bf16 %v1445_v45, %v1444_v44 }
 0x14b   : > { %v5090_v57 = vpop.f32.mrf.mxu1 }
 0x14c   : > { %v722_v58 = vpop.f32.mrf.mxu0  ;;  %5204 = vmatmul.mubr.bf16.gmra.mxu0 %v1463_v34 }
 0x14d   : > { %v970_v59 = vpop.f32.mrf.mxu1  ;;  %5304 = vmatmul.mubr.bf16.gmra.mxu1 %v1464_v52  ;;  %5207 = vmatprep.mubr.msk.bf16.mxu0 %vm6050_vm0, %v7557_v1 }
 0x14e   : > { %v6511_v60 = vadd.f32 %v970_v59, %v722_v58  ;;  %v4993_v61 = vpop.f32.mrf.mxu0  ;;  %5307 = vmatprep.mubr.msk.bf16.mxu1 %vm6050_vm0, %v7557_v1 }
 0x14f   : > { %v5093_v4 = vpop.f32.mrf.mxu1 }
 0x150   : > { %v725_v5 = vpop.f32.mrf.mxu0  ;;  %v1447_v4 = vld [vmem:[#allocation2 + $0x14f] sm:$0xff] }
 0x151   : > { %v973_v8 = vpop.f32.mrf.mxu1 }
 0x152   : > { %v6515_v10 = vadd.f32 %v973_v8, %v725_v5  ;;  %v4994_v11 = vpop.f32.mrf.mxu0 }
 0x153   : > { %v5094_v13 = vpop.f32.mrf.mxu1  ;;  %v1468_v11 = vpack.c.bf16 %v1447_v4, %v1446_v3 }
 0x154   : > { %v730_v14 = vpop.f32.mrf.mxu0  ;;  %5208 = vmatmul.mubr.bf16.gmra.mxu0 %v1464_v52 }
 0x155   : > { %v978_v15 = vpop.f32.mrf.mxu1  ;;  %5308 = vmatmul.mubr.bf16.gmra.mxu1 %v1465_v9  ;;  %5211 = vmatprep.mubr.msk.bf16.mxu0 %vm6050_vm0, %v7557_v1 }
 0x156   : > { %v6519_v19 = vadd.f32 %v978_v15, %v730_v14  ;;  %v4997_v20 = vpop.f32.mrf.mxu0  ;;  %5311 = vmatprep.mubr.msk.bf16.mxu1 %vm6050_vm0, %v7557_v1 }
 0x157   : > { %v5097_v26 = vpop.f32.mrf.mxu1 }
 0x158   : > { %v733_v27 = vpop.f32.mrf.mxu0 }
 0x159   : > { %v981_v28 = vpop.f32.mrf.mxu1 }
 0x15a   : > { %v6523_v31 = vadd.f32 %v981_v28, %v733_v27  ;;  %v4998_v33 = vpop.f32.mrf.mxu0  ;;  %v1448_v28 = vld [vmem:[#allocation2 + $0x157] sm:$0xf] }
 0x15b   : > { %v5098_v34 = vpop.f32.mrf.mxu1 }
 0x15c   : > { %v738_v36 = vpop.f32.mrf.mxu0  ;;  %5212 = vmatmul.mubr.bf16.gmra.mxu0 %v1465_v9  ;;  %v1101_v34 = vpack.c.bf16 %v1080_v23, %v1080_v23 }
 0x15d   : > { %v986_v39 = vpop.f32.mrf.mxu1  ;;  %5312 = vmatmul.mubr.bf16.gmra.mxu1 %v1466_v29  ;;  %5215 = vmatprep.mubr.msk.bf16.mxu0 %vm6050_vm0, %v7557_v1 }
 0x15e   : > { %v6527_v40 = vadd.f32 %v986_v39, %v738_v36  ;;  %v5001_v41 = vpop.f32.mrf.mxu0  ;;  %5315 = vmatprep.mubr.msk.bf16.mxu1 %vm6050_vm0, %v7557_v1  ;;  %v1469_v39 = vpack.c.bf16 %v1448_v28, %v1448_v28  ;;  %v1779_v28 = vld [vmem:[#allocation2 + $0x30] sm:$0xff] }
 0x15f   : > { %v5101_v46 = vpop.f32.mrf.mxu1 }
 0x160   : > { %v741_v48 = vpop.f32.mrf.mxu0 }
 0x161   : > { %v989_v49 = vpop.f32.mrf.mxu1 }
 0x162   : > { %v6531_v52 = vadd.f32 %v989_v49, %v741_v48  ;;  %v5002_v55 = vpop.f32.mrf.mxu0  ;;  %v1776_v49 = vld [vmem:[#allocation2 + $0x18] sm:$0xff] }
 0x163   : > { %v5102_v57 = vpop.f32.mrf.mxu1 }
 0x164   : > { %v746_v58 = vpop.f32.mrf.mxu0  ;;  %5216 = vmatmul.mubr.bf16.gmra.mxu0 %v1466_v29 }
 0x165   : > { %v994_v59 = vpop.f32.mrf.mxu1  ;;  %5316 = vmatmul.mubr.bf16.gmra.mxu1 %v1467_v50  ;;  %5219 = vmatprep.mubr.msk.bf16.mxu0 %vm6050_vm0, %v7557_v1 }
 0x166   : > { %v6535_v61 = vadd.f32 %v994_v59, %v746_v58  ;;  %v5005_v63 = vpop.f32.mrf.mxu0  ;;  %5319 = vmatprep.mubr.msk.bf16.mxu1 %vm6050_vm0, %v7557_v1  ;;  %v2144_v58 = vld [vmem:[#allocation2 + $0x19] sm:$0xff]  ;;  %v2145_v59 = vld [vmem:[#allocation2 + $0x21] sm:$0xff] }
 0x167   : > { %v5105_v5 = vpop.f32.mrf.mxu1 }
 0x168   : > { %v749_v8 = vpop.f32.mrf.mxu0 }
 0x169   : > { %v997_v9 = vpop.f32.mrf.mxu1 }
 0x16a   : > { %v6539_v13 = vadd.f32 %v997_v9, %v749_v8  ;;  %v5006_v14 = vpop.f32.mrf.mxu0  ;;  %v2185_v8 = vpack.c.bf16 %v2145_v59, %v2144_v58  ;;  %v5988_v9 = vld [vmem:[%s7552_s1 + $0x1b8] sm:$0xff]   ;;  %v5992_v59 = vld [vmem:[%s7552_s1 + $0x1a8] sm:$0xff]  }
 0x16b   : > { %v5106_v15 = vpop.f32.mrf.mxu1 }
 0x16c   : > { %v754_v20 = vpop.f32.mrf.mxu0  ;;  %5220 = vmatmul.mubr.bf16.gmra.mxu0 %v1467_v50  ;;  %v1777_v50 = vld [vmem:[#allocation2 + $0x20] sm:$0xff]  ;;  %v5989_v15 = vld [vmem:[%s7552_s1 + $0x1f8] sm:$0xff]  }
 0x16d   : > { %v1002_v21 = vpop.f32.mrf.mxu1  ;;  %5320 = vmatmul.mubr.bf16.gmra.mxu1 %v1468_v11  ;;  %5223 = vmatprep.mubr.msk.bf16.mxu0 %vm6050_vm0, %v7557_v1  ;;  %v1817_v4 = vpack.c.bf16 %v1777_v50, %v1776_v49 }
 0x16e   : > { %v6543_v26 = vadd.f32 %v1002_v21, %v754_v20  ;;  %v5009_v27 = vpop.f32.mrf.mxu0  ;;  %5323 = vmatprep.mubr.msk.bf16.mxu1 %vm6050_vm0, %v7557_v1 }
 0x16f   : > { %v5109_v29 = vpop.f32.mrf.mxu1  ;;  %v1778_v27 = vld [vmem:[#allocation2 + $0x28] sm:$0xff] }
 0x170   : > { %v757_v33 = vpop.f32.mrf.mxu0  ;;  %v5990_v29 = vld [vmem:[%s7552_s1 + $0x1b0] sm:$0xff]  }
 0x171   : > { %v1005_v36 = vpop.f32.mrf.mxu1 }
 0x172   : > { %v6547_v41 = vadd.f32 %v1005_v36, %v757_v33  ;;  %v5010_v44 = vpop.f32.mrf.mxu0  ;;  %v2146_v36 = vld [vmem:[#allocation2 + $0x29] sm:$0xff] }
 0x173   : > { %v5110_v45 = vpop.f32.mrf.mxu1  ;;  %v5991_v44 = vld [vmem:[%s7552_s1 + $0x1f0] sm:$0xff]  }
 0x174   : > { %v762_v46 = vpop.f32.mrf.mxu0  ;;  %5224 = vmatmul.mubr.bf16.gmra.mxu0 %v1101_v34 }
 0x175   : > { %v1010_v48 = vpop.f32.mrf.mxu1  ;;  %5324 = vmatmul.mubr.bf16.gmra.mxu1 %v1469_v39  ;;  %5343 = vmatprep.mubr.msk.bf16.mxu0 %vm6050_vm0, %v7557_v1  ;;  %v2147_v39 = vld [vmem:[#allocation2 + $0x31] sm:$0xff] }
 0x176   : > { %v6551_v55 = vadd.f32 %v1010_v48, %v762_v46  ;;  %v5013_v57 = vpop.f32.mrf.mxu0  ;;  %5443 = vmatprep.mubr.msk.bf16.mxu1 %vm6050_vm0, %v7557_v1  ;;  %v1818_v48 = vpack.c.bf16 %v1779_v28, %v1778_v27  ;;  %v6577_v50 = vpack.c.bf16 %v2147_v39, %v2146_v36  ;;  %v5995_v28 = vld [vmem:[%s7552_s1 + $0x1e0] sm:$0xff]  }
 0x177   : > { %v5113_v63 = vpop.f32.mrf.mxu1 }
 0x178   : > { %v765_v3 = vpop.f32.mrf.mxu0 }
 0x179   : > { %v1013_v5 = vpop.f32.mrf.mxu1 }
 0x17a   : > { %v6558_v11 = vadd.f32 %v1013_v5, %v765_v3  ;;  %v5014_v14 = vpop.f32.mrf.mxu0  ;;  %v5993_v3 = vld [vmem:[%s7552_s1 + $0x1e8] sm:$0xff]  }
 0x17b   : > { %v5114_v20 = vpop.f32.mrf.mxu1 }
 0x17c   : > { %v770_v21 = vpop.f32.mrf.mxu0  ;;  %5344 = vmatmul.mubr.bf16.vlgmr.msra.gmra.mxu0 %v1817_v4  ;;  %v2148_v20 = vld [vmem:[#allocation2 + $0x39] sm:$0xff] }
 0x17d   : > { %v1018_v23 = vpop.f32.mrf.mxu1  ;;  %5444 = vmatmul.mubr.bf16.vlgmr.msra.gmra.mxu1 %v2185_v8  ;;  %5528 = vmatpush3.bf16.msra.mxu0 %v5988_v9  ;;  %v1780_v8 = vld [vmem:[#allocation2 + $0x38] sm:$0xff]  ;;  %v1781_v9 = vld [vmem:[#allocation2 + $0x40] sm:$0xff] }
 0x17e   : > { %v6566_v33 = vadd.f32 %v1018_v23, %v770_v21  ;;  %v5017_v34 = vpop.f32.mrf.mxu0  ;;  %5628 = vmatpush3.bf16.msra.mxu1 %v5989_v15  ;;  %5347 = vmatprep.mubr.msk.bf16.mxu0 %vm6050_vm0, %v7557_v1  ;;  %v2149_v21 = vld [vmem:[#allocation2 + $0x41] sm:$0xff] }
 0x17f   : > { %v5117_v45 = vpop.f32.mrf.mxu1  ;;  %5447 = vmatprep.mubr.msk.bf16.mxu1 %vm6050_vm0, %v7557_v1  ;;  %5529 = vmatprep.subr.bf16.mxu0 %v7557_v1  ;;  %v5994_v23 = vld [vmem:[%s7552_s1 + $0x1a0] sm:$0xff]   ;;  %v1819_v34 = vpack.c.bf16 %v1781_v9, %v1780_v8  ;;  %v6604_v39 = vpack.c.bf16 %v2149_v21, %v2148_v20  ;;  %v2150_v8 = vld [vmem:[#allocation2 + $0x49] sm:$0xff]  ;;  %v2151_v9 = vld [vmem:[#allocation2 + $0x51] sm:$0xff] }
 0x180   : > { %v773_v46 = vpop.f32.mrf.mxu0  ;;  %5629 = vmatprep.subr.bf16.mxu1 %v7557_v1  ;;  %v5999_v21 = vld [vmem:[%s7552_s1 + $0x1d0] sm:$0xff]  }
 0x181   : > { %v1021_v49 = vpop.f32.mrf.mxu1  ;;  %5530 = vmatpush3.bf16.msra.mxu0 %v5990_v29 }
 0x182   : > { %v6579_v57 = vadd.f32 %v1021_v49, %v773_v46  ;;  %v5018_v58 = vpop.f32.mrf.mxu0  ;;  %5630 = vmatpush3.bf16.msra.mxu1 %v5991_v44  ;;  %5531 = vmatprep.subr.bf16.mxu0 %v7557_v1  ;;  %v5996_v46 = vld [vmem:[%s7552_s1 + $0x198] sm:$0xff]  }
 0x183   : > { %v5118_v63 = vpop.f32.mrf.mxu1  ;;  %5631 = vmatprep.subr.bf16.mxu1 %v7557_v1  ;;  %v5997_v49 = vld [vmem:[%s7552_s1 + $0x1d8] sm:$0xff]  }
 0x184   : > { %v778_v4 = vpop.f32.mrf.mxu0  ;;  %5348 = vmatmul.mubr.bf16.gmra.mxu0 %v1818_v48  ;;  %v1782_v63 = vld [vmem:[#allocation2 + $0x48] sm:$0xff] }
 0x185   : > { %v1026_v5 = vpop.f32.mrf.mxu1  ;;  %5448 = vmatmul.mubr.bf16.gmra.mxu1 %v6577_v50  ;;  %5351 = vmatprep.mubr.msk.bf16.mxu0 %vm6050_vm0, %v7557_v1 }
 0x186   : > { %v6592_v14 = vadd.f32 %v1026_v5, %v778_v4  ;;  %v5021_v15 = vpop.f32.mrf.mxu0  ;;  %5451 = vmatprep.mubr.msk.bf16.mxu1 %vm6050_vm0, %v7557_v1  ;;  %5532 = vmatpush3.bf16.msra.mxu0 %v5992_v59 }
 0x187   : > { %v5121_v27 = vpop.f32.mrf.mxu1  ;;  %5632 = vmatpush3.bf16.msra.mxu1 %v5993_v3  ;;  %5533 = vmatprep.subr.bf16.mxu0 %v7557_v1  ;;  %v1783_v3 = vld [vmem:[#allocation2 + $0x50] sm:$0xff] }
 0x188   : > { %v781_v29 = vpop.f32.mrf.mxu0  ;;  %5633 = vmatprep.subr.bf16.mxu1 %v7557_v1  ;;  %v5998_v15 = vld [vmem:[%s7552_s1 + $0x190] sm:$0xff]   ;;  %v1820_v27 = vpack.c.bf16 %v1783_v3, %v1782_v63  ;;  %v1785_v63 = vld [vmem:[#allocation2 + $0x60] sm:$0xff] }
 0x189   : > { %v1029_v36 = vpop.f32.mrf.mxu1 }
 0x18a   : > { %v6606_v44 = vadd.f32 %v1029_v36, %v781_v29  ;;  %v5022_v45 = vpop.f32.mrf.mxu0  ;;  %5534 = vmatpush3.bf16.msra.mxu0 %v5994_v23  ;;  %v6631_v29 = vpack.c.bf16 %v2151_v9, %v2150_v8  ;;  %v6000_v36 = vld [vmem:[%s7552_s1 + $0x188] sm:$0xff]   ;;  %v6002_v9 = vld [vmem:[%s7552_s1 + $0x180] sm:$0xff]  }
 0x18b   : > { %v5122_v48 = vpop.f32.mrf.mxu1  ;;  %5634 = vmatpush3.bf16.msra.mxu1 %v5995_v28  ;;  %5535 = vmatprep.subr.bf16.mxu0 %v7557_v1  ;;  %v2153_v8 = vld [vmem:[#allocation2 + $0x61] sm:$0xff] }
 0x18c   : > { %v786_v58 = vpop.f32.mrf.mxu0  ;;  %5352 = vmatmul.mubr.bf16.gmra.mxu0 %v1819_v34  ;;  %5635 = vmatprep.subr.bf16.mxu1 %v7557_v1 }
 0x18d   : > { %v1034_v59 = vpop.f32.mrf.mxu1  ;;  %5452 = vmatmul.mubr.bf16.gmra.mxu1 %v6604_v39  ;;  %5355 = vmatprep.mubr.msk.bf16.mxu0 %vm6050_vm0, %v7557_v1 }
 0x18e   : > { %v6619_v4 = vadd.f32 %v1034_v59, %v786_v58  ;;  %v5025_v5 = vpop.f32.mrf.mxu0  ;;  %5455 = vmatprep.mubr.msk.bf16.mxu1 %vm6050_vm0, %v7557_v1  ;;  %5536 = vmatpush3.bf16.msra.mxu0 %v5996_v46  ;;  %v6001_v46 = vld [vmem:[%s7552_s1 + $0x1c8] sm:$0xff]   ;;  %v1784_v59 = vld [vmem:[#allocation2 + $0x58] sm:$0xff] }
 0x18f   : > { %v5125_v20 = vpop.f32.mrf.mxu1  ;;  %5636 = vmatpush3.bf16.msra.mxu1 %v5997_v49  ;;  %5537 = vmatprep.subr.bf16.mxu0 %v7557_v1  ;;  %v2152_v5 = vld [vmem:[#allocation2 + $0x59] sm:$0xff] }
 0x190   : > { %v789_v23 = vpop.f32.mrf.mxu0  ;;  %5637 = vmatprep.subr.bf16.mxu1 %v7557_v1  ;;  %v6003_v20 = vld [vmem:[%s7552_s1 + $0x1c0] sm:$0xff]  }
 0x191   : > { %v1037_v28 = vpop.f32.mrf.mxu1  ;;  %v1821_v23 = vpack.c.bf16 %v1785_v63, %v1784_v59  ;;  %v1787_v59 = vld [vmem:[#allocation2 + $0x70] sm:$0xff] }
 0x192   : > { %v5026_v34 = vpop.f32.mrf.mxu0  ;;  %5538 = vmatpush3.bf16.msra.mxu0 %v5998_v15 }
 0x193   : > { %v5126_v45 = vpop.f32.mrf.mxu1  ;;  %5638 = vmatpush3.bf16.msra.mxu1 %v5999_v21  ;;  %5539 = vmatprep.subr.bf16.mxu0 %v7557_v1  ;;  %v6658_v34 = vpack.c.bf16 %v2153_v8, %v2152_v5  ;;  %v2155_v5 = vld [vmem:[#allocation2 + $0x71] sm:$0xff] }
 0x194   : > { %v1201_v48 = vpop.f32.mrf.mxu0  ;;  %5356 = vmatmul.mubr.bf16.gmra.mxu0 %v1820_v27  ;;  %5639 = vmatprep.subr.bf16.mxu1 %v7557_v1 }
 0x195   : > { %v1367_v49 = vadd.f32 %v1201_v48, %v6405_v2  ;;  %v1569_v58 = vpop.f32.mrf.mxu1  ;;  %5456 = vmatmul.mubr.bf16.gmra.mxu1 %v6631_v29  ;;  %5359 = vmatprep.mubr.msk.bf16.mxu0 %vm6050_vm0, %v7557_v1 }
 0x196   : > { %v5145_v3 = vpop.f32.mrf.mxu0  ;;  %5459 = vmatprep.mubr.msk.bf16.mxu1 %vm6050_vm0, %v7557_v1  ;;  %5540 = vmatpush3.bf16.msra.mxu0 %v6000_v36 }
 0x197   : > { %v6650_v2 = vadd.f32 %v1569_v58, %v1367_v49  ;;  %v5245_v15 = vpop.f32.mrf.mxu1  ;;  %5640 = vmatpush3.bf16.msra.mxu1 %v6001_v46  ;;  %5541 = vmatprep.subr.bf16.mxu0 %v7557_v1  ;;  %v2154_v3 = vld [vmem:[#allocation2 + $0x69] sm:$0xff] }
 0x198   : > { %v1204_v21 = vpop.f32.mrf.mxu0  ;;  %5641 = vmatprep.subr.bf16.mxu1 %v7557_v1 }
 0x199   : > { %v1368_v27 = vadd.f32 %v1204_v21, %v6417_v12  ;;  %v1572_v28 = vpop.f32.mrf.mxu1  ;;  %v1786_v12 = vld [vmem:[#allocation2 + $0x68] sm:$0xff] }
 0x19a   : > { %v5146_v36 = vpop.f32.mrf.mxu0  ;;  %5542 = vmatpush3.bf16.msra.mxu0 %v6002_v9 }
 0x19b   : > { %v6660_v45 = vadd.f32 %v1572_v28, %v1368_v27  ;;  %v5246_v46 = vpop.f32.mrf.mxu1  ;;  %5642 = vmatpush3.bf16.msra.mxu1 %v6003_v20  ;;  %5727 = vmatprep.subr.bf16.mxu0 %v7557_v1  ;;  %v1822_v20 = vpack.c.bf16 %v1787_v59, %v1786_v12  ;;  %v2156_v12 = vld [vmem:[#allocation2 + $0x79] sm:$0xff]  ;;  %v2157_v59 = vld [vmem:[#allocation2 + $0x81] sm:$0xff] }
 0x19c   : > { %v1209_v48 = vpop.f32.mrf.mxu0  ;;  %5360 = vmatmul.mubr.bf16.gmra.mxu0 %v1821_v23  ;;  %5827 = vmatprep.subr.bf16.mxu1 %v7557_v1  ;;  %v6673_v23 = vpack.c.bf16 %v2155_v5, %v2154_v3 }
 0x19d   : > { %v1369_v49 = vadd.f32 %v1209_v48, %v6423_v17  ;;  %v1577_v58 = vpop.f32.mrf.mxu1  ;;  %5460 = vmatmul.mubr.bf16.gmra.mxu1 %v6658_v34  ;;  %5363 = vmatprep.mubr.msk.bf16.mxu0 %vm6050_vm0, %v7557_v1 }
 0x19e   : > { %v5149_v63 = vpop.f32.mrf.mxu0  ;;  %5463 = vmatprep.mubr.msk.bf16.mxu1 %vm6050_vm0, %v7557_v1 }
 0x19f   : > { %v6670_v8 = vadd.f32 %v1577_v58, %v1369_v49  ;;  %v5249_v9 = vpop.f32.mrf.mxu1  ;;  %v1788_v49 = vld [vmem:[#allocation2 + $0x78] sm:$0xff]  ;;  %v1789_v58 = vld [vmem:[#allocation2 + $0x80] sm:$0xff] }
 0x1a0   : > { %v1212_v15 = vpop.f32.mrf.mxu0 }
 0x1a1   : > { %v1370_v17 = vadd.f32 %v1212_v15, %v6427_v25  ;;  %v1580_v21 = vpop.f32.mrf.mxu1  ;;  %v1823_v15 = vpack.c.bf16 %v1789_v58, %v1788_v49  ;;  %v1791_v49 = vld [vmem:[#allocation2 + $0x90] sm:$0xff] }
 0x1a2   : > { %v5150_v27 = vpop.f32.mrf.mxu0  ;;  %v2158_v58 = vld [vmem:[#allocation2 + $0x89] sm:$0xff] }
 0x1a3   : > { %v6675_v28 = vadd.f32 %v1580_v21, %v1370_v17  ;;  %v5250_v36 = vpop.f32.mrf.mxu1  ;;  %v6686_v17 = vpack.c.bf16 %v2157_v59, %v2156_v12  ;;  %v2159_v12 = vld [vmem:[#allocation2 + $0x91] sm:$0xff] }
 0x1a4   : > { %v1217_v46 = vpop.f32.mrf.mxu0  ;;  %5364 = vmatmul.mubr.bf16.gmra.mxu0 %v1822_v20 }
 0x1a5   : > { %v1371_v48 = vadd.f32 %v1217_v46, %v6431_v30  ;;  %v1585_v63 = vpop.f32.mrf.mxu1  ;;  %5464 = vmatmul.mubr.bf16.gmra.mxu1 %v6673_v23  ;;  %5367 = vmatprep.mubr.msk.bf16.mxu0 %vm6050_vm0, %v7557_v1 }
 0x1a6   : > { %v5153_v25 = vpop.f32.mrf.mxu0  ;;  %5467 = vmatprep.mubr.msk.bf16.mxu1 %vm6050_vm0, %v7557_v1 }
 0x1a7   : > { %v6683_v3 = vadd.f32 %v1585_v63, %v1371_v48  ;;  %v5253_v5 = vpop.f32.mrf.mxu1  ;;  %v7561_v48 = vmov 0.0   ;;  %v1790_v63 = vld [vmem:[#allocation2 + $0x88] sm:$0xff] }
 0x1a8   : > { %v1220_v9 = vpop.f32.mrf.mxu0 }
 0x1a9   : > { %7559 = vst [vmem:[#allocation3_spill] sm:$0xff] %v6683_v3  ;;  %v1372_v30 = vadd.f32 %v1220_v9, %v6435_v38  ;;  %v1588_v20 = vpop.f32.mrf.mxu1 }
 0x1aa   : > { %v5154_v21 = vpop.f32.mrf.mxu0 }
 0x1ab   : > { %v6688_v27 = vadd.f32 %v1588_v20, %v1372_v30  ;;  %v5254_v36 = vpop.f32.mrf.mxu1  ;;  %v6699_v20 = vpack.c.bf16 %v2159_v12, %v2158_v58 }
 0x1ac   : > { %v1225_v46 = vpop.f32.mrf.mxu0  ;;  %5368 = vmatmul.mubr.bf16.gmra.mxu0 %v1823_v15  ;;  %v1824_v15 = vpack.c.bf16 %v1791_v49, %v1790_v63  ;;  %v2160_v63 = vld [vmem:[#allocation2 + $0x99] sm:$0xff]  ;;  %v2161_v49 = vld [vmem:[#allocation2 + $0xa1] sm:$0xff] }
 0x1ad   : > { %7560 = vst [vmem:[#allocation4_spill] sm:$0xff] %v6688_v27  ;;  %v1373_v25 = vadd.f32 %v1225_v46, %v6439_v43  ;;  %v1593_v1 = vpop.f32.mrf.mxu1  ;;  %5468 = vmatmul.mubr.bf16.gmra.mxu1 %v6686_v17  ;;  %5371 = vmatprep.mubr.msk.bf16.mxu0 %vm6050_vm0, %v7561_v48 }
 0x1ae   : > { %v5157_v38 = vpop.f32.mrf.mxu0  ;;  %5471 = vmatprep.mubr.msk.bf16.mxu1 %vm6050_vm0, %v7561_v48 }
 0x1af   : > { %v6696_v59 = vadd.f32 %v1593_v1, %v1373_v25  ;;  %v5257_v5 = vpop.f32.mrf.mxu1  ;;  %v1792_v1 = vld [vmem:[#allocation2 + $0x98] sm:$0xff]  ;;  %v1793_v25 = vld [vmem:[#allocation2 + $0xa0] sm:$0xff] }
 0x1b0   : > { %v1228_v9 = vpop.f32.mrf.mxu0 }
 0x1b1   : > { %v1374_v43 = vadd.f32 %v1228_v9, %v6443_v51  ;;  %v1596_v30 = vpop.f32.mrf.mxu1  ;;  %v1825_v9 = vpack.c.bf16 %v1793_v25, %v1792_v1  ;;  %v2162_v1 = vld [vmem:[#allocation2 + $0xa9] sm:$0xff]  ;;  %v2163_v25 = vld [vmem:[#allocation2 + $0xb1] sm:$0xff] }
 0x1b2   : > { %v5158_v21 = vpop.f32.mrf.mxu0 }
 0x1b3   : > { %v6701_v36 = vadd.f32 %v1596_v30, %v1374_v43  ;;  %v5258_v46 = vpop.f32.mrf.mxu1  ;;  %v6712_v43 = vpack.c.bf16 %v2161_v49, %v2160_v63 }
 0x1b4   : > { %v1233_v38 = vpop.f32.mrf.mxu0  ;;  %5372 = vmatmul.mubr.bf16.gmra.mxu0 %v1824_v15 }
 0x1b5   : > { %7562 = vst [vmem:[#allocation5_spill] sm:$0xff] %v6701_v36  ;;  %v1375_v27 = vadd.f32 %v1233_v38, %v6447_v56  ;;  %v1601_v3 = vpop.f32.mrf.mxu1  ;;  %5472 = vmatmul.mubr.bf16.gmra.mxu1 %v6699_v20  ;;  %5375 = vmatprep.mubr.msk.bf16.mxu0 %vm6050_vm0, %v7561_v48 }
 0x1b6   : > { %v5161_v51 = vpop.f32.mrf.mxu0  ;;  %5475 = vmatprep.mubr.msk.bf16.mxu1 %vm6050_vm0, %v7561_v48 }
 0x1b7   : > { %v6709_v58 = vadd.f32 %v1601_v3, %v1375_v27  ;;  %v5261_v12 = vpop.f32.mrf.mxu1  ;;  %v1794_v3 = vld [vmem:[#allocation2 + $0xa8] sm:$0xff]  ;;  %v1795_v27 = vld [vmem:[#allocation2 + $0xb0] sm:$0xff] }
 0x1b8   : > { %v1236_v5 = vpop.f32.mrf.mxu0 }
 0x1b9   : > { %v1376_v56 = vadd.f32 %v1236_v5, %v6451_v0  ;;  %v1604_v15 = vpop.f32.mrf.mxu1  ;;  %v1826_v5 = vpack.c.bf16 %v1795_v27, %v1794_v3  ;;  %v2164_v3 = vld [vmem:[#allocation2 + $0xb9] sm:$0xff]  ;;  %v2165_v27 = vld [vmem:[#allocation2 + $0xc1] sm:$0xff] }
 0x1ba   : > { %v5162_v30 = vpop.f32.mrf.mxu0 }
 0x1bb   : > { %v6714_v21 = vadd.f32 %v1604_v15, %v1376_v56  ;;  %v5262_v46 = vpop.f32.mrf.mxu1  ;;  %v6725_v56 = vpack.c.bf16 %v2163_v25, %v2162_v1 }
 0x1bc   : > { %v1241_v38 = vpop.f32.mrf.mxu0  ;;  %5376 = vmatmul.mubr.bf16.gmra.mxu0 %v1825_v9 }
 0x1bd   : > { %7563 = vst [vmem:[#allocation6_spill] sm:$0xff] %v6714_v21  ;;  %v1377_v51 = vadd.f32 %v1241_v38, %v6455_v7  ;;  %v1609_v36 = vpop.f32.mrf.mxu1  ;;  %5476 = vmatmul.mubr.bf16.gmra.mxu1 %v6712_v43  ;;  %5379 = vmatprep.mubr.msk.bf16.mxu0 %vm6050_vm0, %v7561_v48 }
 0x1be   : > { %v5165_v0 = vpop.f32.mrf.mxu0  ;;  %5479 = vmatprep.mubr.msk.bf16.mxu1 %vm6050_vm0, %v7561_v48 }
 0x1bf   : > { %v6722_v63 = vadd.f32 %v1609_v36, %v1377_v51  ;;  %v5265_v49 = vpop.f32.mrf.mxu1  ;;  %v1796_v36 = vld [vmem:[#allocation2 + $0xb8] sm:$0xff]  ;;  %v1797_v51 = vld [vmem:[#allocation2 + $0xc0] sm:$0xff] }
 0x1c0   : > { %v1244_v12 = vpop.f32.mrf.mxu0 }
 0x1c1   : > { %v1378_v7 = vadd.f32 %v1244_v12, %v6459_v16  ;;  %v1612_v9 = vpop.f32.mrf.mxu1  ;;  %v1827_v12 = vpack.c.bf16 %v1797_v51, %v1796_v36  ;;  %v2166_v36 = vld [vmem:[#allocation2 + $0xc9] sm:$0xff]  ;;  %v2167_v51 = vld [vmem:[#allocation2 + $0xd1] sm:$0xff] }
 0x1c2   : > { %v5166_v15 = vpop.f32.mrf.mxu0 }
 0x1c3   : > { %v6727_v30 = vadd.f32 %v1612_v9, %v1378_v7  ;;  %v5266_v46 = vpop.f32.mrf.mxu1  ;;  %v6738_v7 = vpack.c.bf16 %v2165_v27, %v2164_v3 }
 0x1c4   : > { %v1249_v38 = vpop.f32.mrf.mxu0  ;;  %5380 = vmatmul.mubr.bf16.gmra.mxu0 %v1826_v5 }
 0x1c5   : > { %7564 = vst [vmem:[#allocation7_spill] sm:$0xff] %v6727_v30  ;;  %v1379_v0 = vadd.f32 %v1249_v38, %v6463_v22  ;;  %v1617_v21 = vpop.f32.mrf.mxu1  ;;  %5480 = vmatmul.mubr.bf16.gmra.mxu1 %v6725_v56  ;;  %5383 = vmatprep.mubr.msk.bf16.mxu0 %vm6050_vm0, %v7561_v48 }
 0x1c6   : > { %v5169_v16 = vpop.f32.mrf.mxu0  ;;  %5483 = vmatprep.mubr.msk.bf16.mxu1 %vm6050_vm0, %v7561_v48 }
 0x1c7   : > { %v6735_v1 = vadd.f32 %v1617_v21, %v1379_v0  ;;  %v5269_v25 = vpop.f32.mrf.mxu1  ;;  %v1798_v21 = vld [vmem:[#allocation2 + $0xc8] sm:$0xff]  ;;  %v1799_v0 = vld [vmem:[#allocation2 + $0xd0] sm:$0xff] }
 0x1c8   : > { %v1252_v49 = vpop.f32.mrf.mxu0 }
 0x1c9   : > { %v1380_v22 = vadd.f32 %v1252_v49, %v6467_v32  ;;  %v1620_v5 = vpop.f32.mrf.mxu1  ;;  %v1828_v49 = vpack.c.bf16 %v1799_v0, %v1798_v21  ;;  %v2168_v21 = vld [vmem:[#allocation2 + $0xd9] sm:$0xff]  ;;  %v2169_v0 = vld [vmem:[#allocation2 + $0xe1] sm:$0xff] }
 0x1ca   : > { %v5170_v9 = vpop.f32.mrf.mxu0 }
 0x1cb   : > { %v6740_v15 = vadd.f32 %v1620_v5, %v1380_v22  ;;  %v5270_v46 = vpop.f32.mrf.mxu1  ;;  %v6751_v22 = vpack.c.bf16 %v2167_v51, %v2166_v36 }
 0x1cc   : > { %v1257_v38 = vpop.f32.mrf.mxu0  ;;  %5384 = vmatmul.mubr.bf16.gmra.mxu0 %v1827_v12 }
 0x1cd   : > { %7565 = vst [vmem:[#allocation8_spill] sm:$0xff] %v6740_v15  ;;  %v1381_v16 = vadd.f32 %v1257_v38, %v6471_v37  ;;  %v1625_v30 = vpop.f32.mrf.mxu1  ;;  %5484 = vmatmul.mubr.bf16.gmra.mxu1 %v6738_v7  ;;  %5387 = vmatprep.mubr.msk.bf16.mxu0 %vm6050_vm0, %v7561_v48 }
 0x1ce   : > { %v5173_v32 = vpop.f32.mrf.mxu0  ;;  %5487 = vmatprep.mubr.msk.bf16.mxu1 %vm6050_vm0, %v7561_v48 }
 0x1cf   : > { %v6748_v3 = vadd.f32 %v1625_v30, %v1381_v16  ;;  %v5273_v27 = vpop.f32.mrf.mxu1  ;;  %v1800_v30 = vld [vmem:[#allocation2 + $0xd8] sm:$0xff]  ;;  %v1801_v16 = vld [vmem:[#allocation2 + $0xe0] sm:$0xff] }
 0x1d0   : > { %v1260_v25 = vpop.f32.mrf.mxu0 }
 0x1d1   : > { %v1382_v37 = vadd.f32 %v1260_v25, %v6475_v47  ;;  %v1628_v12 = vpop.f32.mrf.mxu1  ;;  %v1829_v25 = vpack.c.bf16 %v1801_v16, %v1800_v30  ;;  %v2170_v30 = vld [vmem:[#allocation2 + $0xe9] sm:$0xff]  ;;  %v2171_v16 = vld [vmem:[#allocation2 + $0xf1] sm:$0xff] }
 0x1d2   : > { %v5174_v5 = vpop.f32.mrf.mxu0 }
 0x1d3   : > { %v6753_v9 = vadd.f32 %v1628_v12, %v1382_v37  ;;  %v5274_v46 = vpop.f32.mrf.mxu1  ;;  %v6764_v37 = vpack.c.bf16 %v2169_v0, %v2168_v21 }
 0x1d4   : > { %v1265_v38 = vpop.f32.mrf.mxu0  ;;  %5388 = vmatmul.mubr.bf16.gmra.mxu0 %v1828_v49 }
 0x1d5   : > { %7566 = vst [vmem:[#allocation9_spill] sm:$0xff] %v6753_v9  ;;  %v1383_v32 = vadd.f32 %v1265_v38, %v6479_v53  ;;  %v1633_v15 = vpop.f32.mrf.mxu1  ;;  %5488 = vmatmul.mubr.bf16.gmra.mxu1 %v6751_v22  ;;  %5391 = vmatprep.mubr.msk.bf16.mxu0 %vm6050_vm0, %v7561_v48 }
 0x1d6   : > { %v5177_v47 = vpop.f32.mrf.mxu0  ;;  %5491 = vmatprep.mubr.msk.bf16.mxu1 %vm6050_vm0, %v7561_v48 }
 0x1d7   : > { %v6761_v36 = vadd.f32 %v1633_v15, %v1383_v32  ;;  %v5277_v51 = vpop.f32.mrf.mxu1  ;;  %v1802_v15 = vld [vmem:[#allocation2 + $0xe8] sm:$0xff]  ;;  %v1803_v32 = vld [vmem:[#allocation2 + $0xf0] sm:$0xff] }
 0x1d8   : > { %v1268_v27 = vpop.f32.mrf.mxu0 }
 0x1d9   : > { %v1384_v53 = vadd.f32 %v1268_v27, %v6483_v62  ;;  %v1636_v49 = vpop.f32.mrf.mxu1  ;;  %v1830_v27 = vpack.c.bf16 %v1803_v32, %v1802_v15  ;;  %v2172_v15 = vld [vmem:[#allocation2 + $0xf9] sm:$0xff]  ;;  %v2173_v32 = vld [vmem:[#allocation2 + $0x101] sm:$0xff] }
 0x1da   : > { %v5178_v12 = vpop.f32.mrf.mxu0 }
 0x1db   : > { %v6766_v5 = vadd.f32 %v1636_v49, %v1384_v53  ;;  %v5278_v46 = vpop.f32.mrf.mxu1  ;;  %v6777_v53 = vpack.c.bf16 %v2171_v16, %v2170_v30 }
 0x1dc   : > { %v1273_v38 = vpop.f32.mrf.mxu0  ;;  %5392 = vmatmul.mubr.bf16.gmra.mxu0 %v1829_v25 }
 0x1dd   : > { %7567 = vst [vmem:[#allocation10_spill] sm:$0xff] %v6766_v5  ;;  %v1385_v47 = vadd.f32 %v1273_v38, %v6487_v6  ;;  %v1641_v9 = vpop.f32.mrf.mxu1  ;;  %5492 = vmatmul.mubr.bf16.gmra.mxu1 %v6764_v37  ;;  %5395 = vmatprep.mubr.msk.bf16.mxu0 %vm6050_vm0, %v7561_v48 }
 0x1de   : > { %v5181_v62 = vpop.f32.mrf.mxu0  ;;  %5495 = vmatprep.mubr.msk.bf16.mxu1 %vm6050_vm0, %v7561_v48 }
 0x1df   : > { %v6774_v21 = vadd.f32 %v1641_v9, %v1385_v47  ;;  %v5281_v0 = vpop.f32.mrf.mxu1  ;;  %v1804_v9 = vld [vmem:[#allocation2 + $0xf8] sm:$0xff]  ;;  %v1805_v47 = vld [vmem:[#allocation2 + $0x100] sm:$0xff] }
 0x1e0   : > { %v1276_v51 = vpop.f32.mrf.mxu0 }
 0x1e1   : > { %v1386_v6 = vadd.f32 %v1276_v51, %v6491_v18  ;;  %v1644_v25 = vpop.f32.mrf.mxu1  ;;  %v1831_v51 = vpack.c.bf16 %v1805_v47, %v1804_v9  ;;  %v2174_v9 = vld [vmem:[#allocation2 + $0x109] sm:$0xff]  ;;  %v2175_v47 = vld [vmem:[#allocation2 + $0x111] sm:$0xff] }
 0x1e2   : > { %v5182_v49 = vpop.f32.mrf.mxu0 }
 0x1e3   : > { %v6779_v12 = vadd.f32 %v1644_v25, %v1386_v6  ;;  %v5282_v46 = vpop.f32.mrf.mxu1  ;;  %v6790_v6 = vpack.c.bf16 %v2173_v32, %v2172_v15 }
 0x1e4   : > { %v1281_v38 = vpop.f32.mrf.mxu0  ;;  %5396 = vmatmul.mubr.bf16.gmra.mxu0 %v1830_v27 }
 0x1e5   : > { %7568 = vst [vmem:[#allocation11_spill] sm:$0xff] %v6779_v12  ;;  %v1387_v62 = vadd.f32 %v1281_v38, %v6495_v24  ;;  %v1649_v5 = vpop.f32.mrf.mxu1  ;;  %5496 = vmatmul.mubr.bf16.gmra.mxu1 %v6777_v53  ;;  %5399 = vmatprep.mubr.msk.bf16.mxu0 %vm6050_vm0, %v7561_v48 }
 0x1e6   : > { %v5185_v18 = vpop.f32.mrf.mxu0  ;;  %5499 = vmatprep.mubr.msk.bf16.mxu1 %vm6050_vm0, %v7561_v48 }
 0x1e7   : > { %v6787_v30 = vadd.f32 %v1649_v5, %v1387_v62  ;;  %v5285_v16 = vpop.f32.mrf.mxu1  ;;  %v1806_v5 = vld [vmem:[#allocation2 + $0x108] sm:$0xff]  ;;  %v1807_v62 = vld [vmem:[#allocation2 + $0x110] sm:$0xff] }
 0x1e8   : > { %v1284_v0 = vpop.f32.mrf.mxu0 }
 0x1e9   : > { %v1388_v24 = vadd.f32 %v1284_v0, %v6499_v35  ;;  %v1652_v27 = vpop.f32.mrf.mxu1  ;;  %v1832_v0 = vpack.c.bf16 %v1807_v62, %v1806_v5  ;;  %v2176_v5 = vld [vmem:[#allocation2 + $0x119] sm:$0xff]  ;;  %v2177_v62 = vld [vmem:[#allocation2 + $0x121] sm:$0xff] }
 0x1ea   : > { %v5186_v25 = vpop.f32.mrf.mxu0 }
 0x1eb   : > { %v6792_v49 = vadd.f32 %v1652_v27, %v1388_v24  ;;  %v5286_v46 = vpop.f32.mrf.mxu1  ;;  %v6803_v24 = vpack.c.bf16 %v2175_v47, %v2174_v9 }
 0x1ec   : > { %v1289_v38 = vpop.f32.mrf.mxu0  ;;  %5400 = vmatmul.mubr.bf16.gmra.mxu0 %v1831_v51 }
 0x1ed   : > { %7569 = vst [vmem:[#allocation12_spill] sm:$0xff] %v6792_v49  ;;  %v1389_v18 = vadd.f32 %v1289_v38, %v6503_v42  ;;  %v1657_v12 = vpop.f32.mrf.mxu1  ;;  %5500 = vmatmul.mubr.bf16.gmra.mxu1 %v6790_v6  ;;  %5403 = vmatprep.mubr.msk.bf16.mxu0 %vm6050_vm0, %v7561_v48 }
 0x1ee   : > { %v5189_v35 = vpop.f32.mrf.mxu0  ;;  %5503 = vmatprep.mubr.msk.bf16.mxu1 %vm6050_vm0, %v7561_v48 }
 0x1ef   : > { %v6800_v15 = vadd.f32 %v1657_v12, %v1389_v18  ;;  %v5289_v32 = vpop.f32.mrf.mxu1  ;;  %v1808_v12 = vld [vmem:[#allocation2 + $0x118] sm:$0xff]  ;;  %v1809_v18 = vld [vmem:[#allocation2 + $0x120] sm:$0xff] }
 0x1f0   : > { %v1292_v16 = vpop.f32.mrf.mxu0 }
 0x1f1   : > { %v1390_v42 = vadd.f32 %v1292_v16, %v6507_v54  ;;  %v1660_v51 = vpop.f32.mrf.mxu1  ;;  %v1833_v16 = vpack.c.bf16 %v1809_v18, %v1808_v12  ;;  %v2178_v12 = vld [vmem:[#allocation2 + $0x129] sm:$0xff]  ;;  %v2179_v18 = vld [vmem:[#allocation2 + $0x131] sm:$0xff] }
 0x1f2   : > { %v5190_v27 = vpop.f32.mrf.mxu0 }
 0x1f3   : > { %v6805_v25 = vadd.f32 %v1660_v51, %v1390_v42  ;;  %v5290_v46 = vpop.f32.mrf.mxu1  ;;  %v6816_v42 = vpack.c.bf16 %v2177_v62, %v2176_v5 }
 0x1f4   : > { %v1297_v38 = vpop.f32.mrf.mxu0  ;;  %5404 = vmatmul.mubr.bf16.gmra.mxu0 %v1832_v0 }
 0x1f5   : > { %7570 = vst [vmem:[#allocation13_spill] sm:$0xff] %v6805_v25  ;;  %v1391_v35 = vadd.f32 %v1297_v38, %v6511_v60  ;;  %v1665_v49 = vpop.f32.mrf.mxu1  ;;  %5504 = vmatmul.mubr.bf16.gmra.mxu1 %v6803_v24  ;;  %5407 = vmatprep.mubr.msk.bf16.mxu0 %vm6050_vm0, %v7561_v48 }
 0x1f6   : > { %v5193_v54 = vpop.f32.mrf.mxu0  ;;  %5507 = vmatprep.mubr.msk.bf16.mxu1 %vm6050_vm0, %v7561_v48 }
 0x1f7   : > { %v6813_v9 = vadd.f32 %v1665_v49, %v1391_v35  ;;  %v5293_v47 = vpop.f32.mrf.mxu1  ;;  %v1810_v49 = vld [vmem:[#allocation2 + $0x128] sm:$0xff]  ;;  %v1811_v35 = vld [vmem:[#allocation2 + $0x130] sm:$0xff] }
 0x1f8   : > { %v1300_v32 = vpop.f32.mrf.mxu0 }
 0x1f9   : > { %v1392_v60 = vadd.f32 %v1300_v32, %v6515_v10  ;;  %v1668_v0 = vpop.f32.mrf.mxu1  ;;  %v1834_v32 = vpack.c.bf16 %v1811_v35, %v1810_v49  ;;  %v2180_v49 = vld [vmem:[#allocation2 + $0x139] sm:$0xff]  ;;  %v2181_v35 = vld [vmem:[#allocation2 + $0x141] sm:$0xff] }
 0x1fa   : > { %v5194_v51 = vpop.f32.mrf.mxu0 }
 0x1fb   : > { %v6818_v27 = vadd.f32 %v1668_v0, %v1392_v60  ;;  %v5294_v46 = vpop.f32.mrf.mxu1  ;;  %v6829_v60 = vpack.c.bf16 %v2179_v18, %v2178_v12 }
 0x1fc   : > { %v1305_v38 = vpop.f32.mrf.mxu0  ;;  %5408 = vmatmul.mubr.bf16.gmra.mxu0 %v1833_v16 }
 0x1fd   : > { %7571 = vst [vmem:[#allocation14_spill] sm:$0xff] %v6818_v27  ;;  %v1393_v54 = vadd.f32 %v1305_v38, %v6519_v19  ;;  %v1673_v25 = vpop.f32.mrf.mxu1  ;;  %5508 = vmatmul.mubr.bf16.gmra.mxu1 %v6816_v42  ;;  %5411 = vmatprep.mubr.msk.bf16.mxu0 %vm6050_vm0, %v7561_v48 }
 0x1fe   : > { %v5197_v10 = vpop.f32.mrf.mxu0  ;;  %5511 = vmatprep.mubr.msk.bf16.mxu1 %vm6050_vm0, %v7561_v48 }
 0x1ff   : > { %v6826_v5 = vadd.f32 %v1673_v25, %v1393_v54  ;;  %v5297_v62 = vpop.f32.mrf.mxu1  ;;  %v1812_v25 = vld [vmem:[#allocation2 + $0x138] sm:$0xff]  ;;  %v1813_v54 = vld [vmem:[#allocation2 + $0x140] sm:$0xff] }
 0x200   : > { %v1308_v47 = vpop.f32.mrf.mxu0 }
 0x201   : > { %v1394_v19 = vadd.f32 %v1308_v47, %v6523_v31  ;;  %v1676_v16 = vpop.f32.mrf.mxu1  ;;  %v1835_v47 = vpack.c.bf16 %v1813_v54, %v1812_v25  ;;  %v2182_v25 = vld [vmem:[#allocation2 + $0x149] sm:$0xff]  ;;  %v2183_v54 = vld [vmem:[#allocation2 + $0x151] sm:$0xff] }
 0x202   : > { %v5198_v0 = vpop.f32.mrf.mxu0 }
 0x203   : > { %v6831_v51 = vadd.f32 %v1676_v16, %v1394_v19  ;;  %v5298_v46 = vpop.f32.mrf.mxu1  ;;  %v6842_v19 = vpack.c.bf16 %v2181_v35, %v2180_v49 }
 0x204   : > { %v1313_v38 = vpop.f32.mrf.mxu0  ;;  %5412 = vmatmul.mubr.bf16.gmra.mxu0 %v1834_v32 }
 0x205   : > { %7572 = vst [vmem:[#allocation15_spill] sm:$0xff] %v6831_v51  ;;  %v1395_v10 = vadd.f32 %v1313_v38, %v6527_v40  ;;  %v1681_v27 = vpop.f32.mrf.mxu1  ;;  %5512 = vmatmul.mubr.bf16.gmra.mxu1 %v6829_v60  ;;  %5415 = vmatprep.mubr.msk.bf16.mxu0 %vm6050_vm0, %v7561_v48 }
 0x206   : > { %v5201_v31 = vpop.f32.mrf.mxu0  ;;  %5515 = vmatprep.mubr.msk.bf16.mxu1 %vm6050_vm0, %v7561_v48 }
 0x207   : > { %v6839_v12 = vadd.f32 %v1681_v27, %v1395_v10  ;;  %v5301_v18 = vpop.f32.mrf.mxu1  ;;  %v1814_v27 = vld [vmem:[#allocation2 + $0x148] sm:$0xff]  ;;  %v1815_v10 = vld [vmem:[#allocation2 + $0x150] sm:$0xff] }
 0x208   : > { %v1316_v62 = vpop.f32.mrf.mxu0 }
 0x209   : > { %v1396_v40 = vadd.f32 %v1316_v62, %v6531_v52  ;;  %v1684_v32 = vpop.f32.mrf.mxu1  ;;  %v1836_v62 = vpack.c.bf16 %v1815_v10, %v1814_v27 }
 0x20a   : > { %v5202_v16 = vpop.f32.mrf.mxu0 }
 0x20b   : > { %v6844_v0 = vadd.f32 %v1684_v32, %v1396_v40  ;;  %v5302_v46 = vpop.f32.mrf.mxu1  ;;  %v6855_v40 = vpack.c.bf16 %v2183_v54, %v2182_v25 }
 0x20c   : > { %v1321_v38 = vpop.f32.mrf.mxu0  ;;  %5416 = vmatmul.mubr.bf16.gmra.mxu0 %v1835_v47 }
 0x20d   : > { %7573 = vst [vmem:[#allocation16_spill] sm:$0xff] %v6844_v0  ;;  %v1397_v31 = vadd.f32 %v1321_v38, %v6535_v61  ;;  %v1689_v51 = vpop.f32.mrf.mxu1  ;;  %5516 = vmatmul.mubr.bf16.gmra.mxu1 %v6842_v19  ;;  %5419 = vmatprep.mubr.msk.bf16.mxu0 %vm6050_vm0, %v7561_v48 }
 0x20e   : > { %v5205_v52 = vpop.f32.mrf.mxu0  ;;  %5519 = vmatprep.mubr.msk.bf16.mxu1 %vm6050_vm0, %v7561_v48 }
 0x20f   : > { %v6852_v49 = vadd.f32 %v1689_v51, %v1397_v31  ;;  %v5305_v35 = vpop.f32.mrf.mxu1  ;;  %v1816_v51 = vld [vmem:[#allocation2 + $0x158] sm:$0xf] }
 0x210   : > { %v1324_v18 = vpop.f32.mrf.mxu0  ;;  %v1837_v54 = vpack.c.bf16 %v1816_v51, %v1816_v51 }
 0x211   : > { %v1398_v61 = vadd.f32 %v1324_v18, %v6539_v13  ;;  %v1692_v47 = vpop.f32.mrf.mxu1  ;;  %v2184_v13 = vld [vmem:[#allocation2 + $0x159] sm:$0xf] }
 0x212   : > { %v5206_v32 = vpop.f32.mrf.mxu0  ;;  %v2205_v18 = vpack.c.bf16 %v2184_v13, %v2184_v13 }
 0x213   : > { %v6857_v16 = vadd.f32 %v1692_v47, %v1398_v61  ;;  %v5306_v46 = vpop.f32.mrf.mxu1 }
 0x214   : > { %v1329_v38 = vpop.f32.mrf.mxu0  ;;  %5420 = vmatmul.mubr.bf16.gmra.mxu0 %v1836_v62 }
 0x215   : > { %v1399_v52 = vadd.f32 %v1329_v38, %v6543_v26  ;;  %v1697_v0 = vpop.f32.mrf.mxu1  ;;  %5520 = vmatmul.mubr.bf16.gmra.mxu1 %v6855_v40  ;;  %5423 = vmatprep.mubr.msk.bf16.mxu0 %vm6050_vm0, %v7561_v48 }
 0x216   : > { %v5209_v31 = vpop.f32.mrf.mxu0  ;;  %5523 = vmatprep.mubr.msk.bf16.mxu1 %vm6050_vm0, %v7561_v48 }
 0x217   : > { %v6865_v27 = vadd.f32 %v1697_v0, %v1399_v52  ;;  %v5309_v10 = vpop.f32.mrf.mxu1  ;;  %v2881_v52 = vld [vmem:[#allocation2 + $0x32] sm:$0xff] }
 0x218   : > { %v1332_v25 = vpop.f32.mrf.mxu0 }
 0x219   : > { %v1400_v35 = vadd.f32 %v1332_v25, %v6547_v41  ;;  %v1700_v26 = vpop.f32.mrf.mxu1  ;;  %v2880_v41 = vld [vmem:[#allocation2 + $0x2a] sm:$0xff] }
 0x21a   : > { %v5210_v62 = vpop.f32.mrf.mxu0 }
 0x21b   : > { %v6868_v61 = vadd.f32 %v1700_v26, %v1400_v35  ;;  %v5310_v47 = vpop.f32.mrf.mxu1  ;;  %v6005_v26 = vld [vmem:[%s7555_s4 + $0x38] sm:$0xff]  }
 0x21c   : > { %v1337_v32 = vpop.f32.mrf.mxu0  ;;  %5424 = vmatmul.mubr.bf16.gmra.mxu0 %v1837_v54  ;;  %v2921_v54 = vpack.c.bf16 %v2881_v52, %v2880_v41  ;;  %v2883_v41 = vld [vmem:[#allocation2 + $0x42] sm:$0xff] }
 0x21d   : > { %v1401_v46 = vadd.f32 %v1337_v32, %v6551_v55  ;;  %v1705_v38 = vpop.f32.mrf.mxu1  ;;  %5524 = vmatmul.mubr.bf16.gmra.mxu1 %v2205_v18  ;;  %5543 = vmatprep.mubr.msk.bf16.mxu0 %vm6050_vm0, %v7561_v48  ;;  %v6004_v55 = vld [vmem:[%s7552_s1 + $0x238] sm:$0xff]  }
 0x21e   : > { %v5213_v0 = vpop.f32.mrf.mxu0  ;;  %5643 = vmatprep.mubr.msk.bf16.mxu1 %vm6050_vm0, %v7561_v48 }
 0x21f   : > { %v6875_v51 = vadd.f32 %v1705_v38, %v1401_v46  ;;  %v5313_v31 = vpop.f32.mrf.mxu1  ;;  %v6006_v46 = vld [vmem:[%s7552_s1 + $0x230] sm:$0xff]   ;;  %v2882_v0 = vld [vmem:[#allocation2 + $0x3a] sm:$0xff] }
 0x220   : > { %v1340_v13 = vpop.f32.mrf.mxu0 }
 0x221   : > { %v1402_v10 = vadd.f32 %v1340_v13, %v6558_v11  ;;  %v1708_v25 = vpop.f32.mrf.mxu1 }
 0x222   : > { %v5214_v35 = vpop.f32.mrf.mxu0 }
 0x223   : > { %v6884_v18 = vadd.f32 %v1708_v25, %v1402_v10  ;;  %v5314_v62 = vpop.f32.mrf.mxu1  ;;  %v2922_v25 = vpack.c.bf16 %v2883_v41, %v2882_v0  ;;  %v6010_v0 = vld [vmem:[%s7552_s1 + $0x220] sm:$0xff]  }
 0x224   : > { %v1345_v47 = vpop.f32.mrf.mxu0  ;;  %5544 = vmatmul.mubr.bf16.vlgmr.msra.gmra.mxu0 %v6577_v50  ;;  %v6007_v50 = vld [vmem:[%s7555_s4 + $0x30] sm:$0xff]   ;;  %v6011_v41 = vld [vmem:[%s7555_s4 + $0x20] sm:$0xff]  }
 0x225   : > { %v1403_v32 = vadd.f32 %v1345_v47, %v6566_v33  ;;  %v1713_v11 = vpop.f32.mrf.mxu1  ;;  %5644 = vmatmul.mubr.bf16.vlgmr.msra.gmra.mxu1 %v2921_v54  ;;  %5728 = vmatpush3.bf16.msra.mxu0 %v6004_v55  ;;  %v6008_v55 = vld [vmem:[%s7552_s1 + $0x228] sm:$0xff]  }
 0x226   : > { %v5217_v38 = vpop.f32.mrf.mxu0  ;;  %5828 = vmatpush3.bf16.msra.mxu1 %v6005_v26  ;;  %5547 = vmatprep.mubr.msk.bf16.mxu0 %vm6050_vm0, %v7561_v48 }
 0x227   : > { %v6896_v52 = vadd.f32 %v1713_v11, %v1403_v32  ;;  %v5317_v33 = vpop.f32.mrf.mxu1  ;;  %5647 = vmatprep.mubr.msk.bf16.mxu1 %vm6050_vm0, %v7561_v48  ;;  %5729 = vmatprep.subr.bf16.mxu0 %v7561_v48  ;;  %v2885_v38 = vld [vmem:[#allocation2 + $0x52] sm:$0xff] }
 0x228   : > { %v1348_v31 = vpop.f32.mrf.mxu0  ;;  %5829 = vmatprep.subr.bf16.mxu1 %v7561_v48  ;;  %v4636_v33 = vld [vmem:[%s6131_s14 + $0xb0] sm:$0xff]  }
 0x229   : > { %v1404_v13 = vadd.f32 %v1348_v31, %v6579_v57  ;;  %v1716_v10 = vpop.f32.mrf.mxu1  ;;  %5730 = vmatpush3.bf16.msra.mxu0 %v6006_v46  ;;  %v6009_v57 = vld [vmem:[%s7555_s4 + $0x28] sm:$0xff]  }
 0x22a   : > { %v5218_v54 = vpop.f32.mrf.mxu0  ;;  %5830 = vmatpush3.bf16.msra.mxu1 %v6007_v50  ;;  %5731 = vmatprep.subr.bf16.mxu0 %v7561_v48  ;;  %v2884_v46 = vld [vmem:[#allocation2 + $0x4a] sm:$0xff] }
 0x22b   : > { %v6907_v35 = vadd.f32 %v1716_v10, %v1404_v13  ;;  %v5318_v26 = vpop.f32.mrf.mxu1  ;;  %5831 = vmatprep.subr.bf16.mxu1 %v7561_v48  ;;  %v2923_v10 = vpack.c.bf16 %v2885_v38, %v2884_v46  ;;  %v4614_v54 = vunpack.c.h.bf16 %v4636_v33  ;;  %v2886_v38 = vld [vmem:[#allocation2 + $0x5a] sm:$0xff] }
 0x22c   : > { %v1353_v62 = vpop.f32.mrf.mxu0  ;;  %5548 = vmatmul.mubr.bf16.gmra.mxu0 %v6604_v39  ;;  %v6012_v26 = vld [vmem:[%s7552_s1 + $0x218] sm:$0xff]  }
 0x22d   : > { %v1405_v47 = vadd.f32 %v1353_v62, %v6592_v14  ;;  %v1721_v32 = vpop.f32.mrf.mxu1  ;;  %5648 = vmatmul.mubr.bf16.gmra.mxu1 %v2922_v25  ;;  %5551 = vmatprep.mubr.msk.bf16.mxu0 %vm6050_vm0, %v7561_v48  ;;  %v4613_v25 = vunpack.c.l.bf16 %v4636_v33  ;;  %385 = vst [vmem:[#allocation2 + $0x168] sm:$0xff] %v4614_v54  ;;  %v6017_v54 = vld [vmem:[%s7555_s4 + $0x8] sm:$0xff]  }
 0x22e   : > { %v5221_v11 = vpop.f32.mrf.mxu0  ;;  %5651 = vmatprep.mubr.msk.bf16.mxu1 %vm6050_vm0, %v7561_v48  ;;  %5732 = vmatpush3.bf16.msra.mxu0 %v6008_v55 }
 0x22f   : > { %v6922_v39 = vadd.f32 %v1721_v32, %v1405_v47  ;;  %v5321_v14 = vpop.f32.mrf.mxu1  ;;  %5832 = vmatpush3.bf16.msra.mxu1 %v6009_v57  ;;  %5733 = vmatprep.subr.bf16.mxu0 %v7561_v48  ;;  %384 = vst [vmem:[#allocation2 + $0x160] sm:$0xff] %v4613_v25 }
 0x230   : > { %v1356_v50 = vpop.f32.mrf.mxu0  ;;  %5833 = vmatprep.subr.bf16.mxu1 %v7561_v48 }
 0x231   : > { %v1406_v31 = vadd.f32 %v1356_v50, %v6606_v44  ;;  %v1724_v13 = vpop.f32.mrf.mxu1  ;;  %v6013_v44 = vld [vmem:[%s7555_s4 + $0x18] sm:$0xff]  }
 0x232   : > { %v5222_v55 = vpop.f32.mrf.mxu0  ;;  %5734 = vmatpush3.bf16.msra.mxu0 %v6010_v0  ;;  %v2887_v0 = vld [vmem:[#allocation2 + $0x62] sm:$0xff] }
 0x233   : > { %v6934_v57 = vadd.f32 %v1724_v13, %v1406_v31  ;;  %v5322_v62 = vpop.f32.mrf.mxu1  ;;  %5834 = vmatpush3.bf16.msra.mxu1 %v6011_v41  ;;  %5735 = vmatprep.subr.bf16.mxu0 %v7561_v48  ;;  %v2924_v31 = vpack.c.bf16 %v2887_v0, %v2886_v38 }
 0x234   : > { %v1361_v47 = vpop.f32.mrf.mxu0  ;;  %5552 = vmatmul.mubr.bf16.gmra.mxu0 %v6631_v29  ;;  %5835 = vmatprep.subr.bf16.mxu1 %v7561_v48  ;;  %v6014_v29 = vld [vmem:[%s7552_s1 + $0x210] sm:$0xff]  }
 0x235   : > { %v1407_v32 = vadd.f32 %v1361_v47, %v6619_v4  ;;  %v1729_v11 = vpop.f32.mrf.mxu1  ;;  %5652 = vmatmul.mubr.bf16.gmra.mxu1 %v2923_v10  ;;  %5555 = vmatprep.mubr.msk.bf16.mxu0 %vm6050_vm0, %v7561_v48  ;;  %v6015_v4 = vld [vmem:[%s7555_s4 + $0x10] sm:$0xff]   ;;  %v6016_v10 = vld [vmem:[%s7552_s1 + $0x208] sm:$0xff]  }
 0x236   : > { %v5225_v46 = vpop.f32.mrf.mxu0  ;;  %5655 = vmatprep.mubr.msk.bf16.mxu1 %vm6050_vm0, %v7561_v48  ;;  %5736 = vmatpush3.bf16.msra.mxu0 %v6012_v26  ;;  %v2888_v47 = vld [vmem:[#allocation2 + $0x6a] sm:$0xff] }
 0x237   : > { %v6950_v14 = vadd.f32 %v1729_v11, %v1407_v32  ;;  %v5325_v41 = vpop.f32.mrf.mxu1  ;;  %5836 = vmatpush3.bf16.msra.mxu1 %v6013_v44  ;;  %5737 = vmatprep.subr.bf16.mxu0 %v7561_v48  ;;  %v2889_v32 = vld [vmem:[#allocation2 + $0x72] sm:$0xff] }
 0x238   : > { %v1364_v50 = vpop.f32.mrf.mxu0  ;;  %5837 = vmatprep.subr.bf16.mxu1 %v7561_v48  ;;  %v2925_v41 = vpack.c.bf16 %v2889_v32, %v2888_v47 }
 0x239   : > { %v1732_v33 = vpop.f32.mrf.mxu1 }
 0x23a   : > { %v5226_v13 = vpop.f32.mrf.mxu0  ;;  %5738 = vmatpush3.bf16.msra.mxu0 %v6014_v29 }
 0x23b   : > { %v5326_v25 = vpop.f32.mrf.mxu1  ;;  %5838 = vmatpush3.bf16.msra.mxu1 %v6015_v4  ;;  %5739 = vmatprep.subr.bf16.mxu0 %v7561_v48 }
 0x23c   : > { %v1937_v55 = vpop.f32.mrf.mxu0  ;;  %5556 = vmatmul.mubr.bf16.gmra.mxu0 %v6658_v34  ;;  %5839 = vmatprep.subr.bf16.mxu1 %v7561_v48  ;;  %v6018_v34 = vld [vmem:[%s7552_s1 + $0x200] sm:$0xff]  }
 0x23d   : > { %v2103_v26 = vadd.f32 %v1937_v55, %v6650_v2  ;;  %v2305_v62 = vpop.f32.mrf.mxu1  ;;  %5656 = vmatmul.mubr.bf16.gmra.mxu1 %v2924_v31  ;;  %5559 = vmatprep.mubr.msk.bf16.mxu0 %vm6050_vm0, %v7561_v48  ;;  %v6019_v2 = vld [vmem:[%s7555_s4] sm:$0xff]  }
 0x23e   : > { %v5345_v44 = vpop.f32.mrf.mxu0  ;;  %5659 = vmatprep.mubr.msk.bf16.mxu1 %vm6050_vm0, %v7561_v48  ;;  %5740 = vmatpush3.bf16.msra.mxu0 %v6016_v10  ;;  %v2890_v25 = vld [vmem:[#allocation2 + $0x7a] sm:$0xff] }
 0x23f   : > { %v6974_v11 = vadd.f32 %v2305_v62, %v2103_v26  ;;  %v5445_v46 = vpop.f32.mrf.mxu1  ;;  %5840 = vmatpush3.bf16.msra.mxu1 %v6017_v54  ;;  %5741 = vmatprep.subr.bf16.mxu0 %v7561_v48  ;;  %v2891_v54 = vld [vmem:[#allocation2 + $0x82] sm:$0xff] }
 0x240   : > { %v1940_v38 = vpop.f32.mrf.mxu0  ;;  %5841 = vmatprep.subr.bf16.mxu1 %v7561_v48 }
 0x241   : > { %v2104_v0 = vadd.f32 %v1940_v38, %v6660_v45  ;;  %v2308_v29 = vpop.f32.mrf.mxu1  ;;  %v2893_v38 = vld [vmem:[#allocation2 + $0x92] sm:$0xff] }
 0x242   : > { %v5346_v4 = vpop.f32.mrf.mxu0  ;;  %5742 = vmatpush3.bf16.msra.mxu0 %v6018_v34 }
 0x243   : > { %v6982_v50 = vadd.f32 %v2308_v29, %v2104_v0  ;;  %v5446_v33 = vpop.f32.mrf.mxu1  ;;  %5842 = vmatpush3.bf16.msra.mxu1 %v6019_v2  ;;  %v2892_v2 = vld [vmem:[#allocation2 + $0x8a] sm:$0xff]  ;;  %v7574_v0 = vld [vmem:[#allocation3_spill] sm:$0xff] }
 0x244   : > { %v1945_v31 = vpop.f32.mrf.mxu0  ;;  %5560 = vmatmul.mubr.bf16.gmra.mxu0 %v6673_v23 }
 0x245   : > { %v2105_v13 = vadd.f32 %v1945_v31, %v6670_v8  ;;  %v2313_v10 = vpop.f32.mrf.mxu1  ;;  %5660 = vmatmul.mubr.bf16.gmra.mxu1 %v2925_v41  ;;  %5563 = vmatprep.mubr.msk.bf16.mxu0 %vm6050_vm0, %v7561_v48  ;;  %v2926_v8 = vpack.c.bf16 %v2891_v54, %v2890_v25 }
 0x246   : > { %v5349_v45 = vpop.f32.mrf.mxu0  ;;  %5663 = vmatprep.mubr.msk.bf16.mxu1 %vm6050_vm0, %v7561_v48 }
 0x247   : > { %v6990_v55 = vadd.f32 %v2313_v10, %v2105_v13  ;;  %v5449_v26 = vpop.f32.mrf.mxu1  ;;  %v7575_v13 = vld [vmem:[#allocation4_spill] sm:$0xff]  ;;  %v2927_v45 = vpack.c.bf16 %v2893_v38, %v2892_v2 }
 0x248   : > { %v1948_v62 = vpop.f32.mrf.mxu0 }
 0x249   : > { %v2106_v23 = vadd.f32 %v1948_v62, %v6675_v28  ;;  %v2316_v44 = vpop.f32.mrf.mxu1 }
 0x24a   : > { %v5350_v47 = vpop.f32.mrf.mxu0 }
 0x24b   : > { %v6999_v32 = vadd.f32 %v2316_v44, %v2106_v23  ;;  %v5450_v34 = vpop.f32.mrf.mxu1  ;;  %v2894_v23 = vld [vmem:[#allocation2 + $0x9a] sm:$0xff]  ;;  %v2895_v44 = vld [vmem:[#allocation2 + $0xa2] sm:$0xff] }
 0x24c   : > { %v1953_v46 = vpop.f32.mrf.mxu0  ;;  %5564 = vmatmul.mubr.bf16.gmra.mxu0 %v6686_v17 }
 0x24d   : > { %v2107_v29 = vadd.f32 %v1953_v46, %v7574_v0  ;;  %v2321_v41 = vpop.f32.mrf.mxu1  ;;  %5664 = vmatmul.mubr.bf16.gmra.mxu1 %v2926_v8  ;;  %5567 = vmatprep.mubr.msk.bf16.mxu0 %vm6050_vm0, %v7561_v48  ;;  %v7576_v0 = vld [vmem:[#allocation5_spill] sm:$0xff] }
 0x24e   : > { %v5353_v28 = vpop.f32.mrf.mxu0  ;;  %5667 = vmatprep.mubr.msk.bf16.mxu1 %vm6050_vm0, %v7561_v48 }
 0x24f   : > { %v7007_v4 = vadd.f32 %v2321_v41, %v2107_v29  ;;  %v5453_v33 = vpop.f32.mrf.mxu1  ;;  %v2928_v41 = vpack.c.bf16 %v2895_v44, %v2894_v23  ;;  %v7577_v44 = vld [vmem:[#allocation6_spill] sm:$0xff] }
 0x250   : > { %v1956_v31 = vpop.f32.mrf.mxu0 }
 0x251   : > { %v2108_v10 = vadd.f32 %v1956_v31, %v7575_v13  ;;  %v2324_v17 = vpop.f32.mrf.mxu1 }
 0x252   : > { %v5354_v25 = vpop.f32.mrf.mxu0 }
 0x253   : > { %v7010_v54 = vadd.f32 %v2324_v17, %v2108_v10  ;;  %v5454_v26 = vpop.f32.mrf.mxu1  ;;  %v2897_v25 = vld [vmem:[#allocation2 + $0xb2] sm:$0xff] }
 0x254   : > { %v1961_v62 = vpop.f32.mrf.mxu0  ;;  %5568 = vmatmul.mubr.bf16.gmra.mxu0 %v6699_v20 }
 0x255   : > { %v2109_v8 = vadd.f32 %v1961_v62, %v6696_v59  ;;  %v2329_v47 = vpop.f32.mrf.mxu1  ;;  %5668 = vmatmul.mubr.bf16.gmra.mxu1 %v2927_v45  ;;  %5571 = vmatprep.mubr.msk.bf16.mxu0 %vm6050_vm0, %v7561_v48  ;;  %v2896_v45 = vld [vmem:[#allocation2 + $0xaa] sm:$0xff] }
 0x256   : > { %v5357_v34 = vpop.f32.mrf.mxu0  ;;  %5671 = vmatprep.mubr.msk.bf16.mxu1 %vm6050_vm0, %v7561_v48 }
 0x257   : > { %v7018_v46 = vadd.f32 %v2329_v47, %v2109_v8  ;;  %v5457_v2 = vpop.f32.mrf.mxu1  ;;  %v2929_v47 = vpack.c.bf16 %v2897_v25, %v2896_v45 }
 0x258   : > { %v1964_v38 = vpop.f32.mrf.mxu0 }
 0x259   : > { %v2110_v29 = vadd.f32 %v1964_v38, %v7576_v0  ;;  %v2332_v20 = vpop.f32.mrf.mxu1 }
 0x25a   : > { %v5358_v28 = vpop.f32.mrf.mxu0 }
 0x25b   : > { %v7021_v33 = vadd.f32 %v2332_v20, %v2110_v29  ;;  %v5458_v59 = vpop.f32.mrf.mxu1  ;;  %v2899_v28 = vld [vmem:[#allocation2 + $0xc2] sm:$0xff] }
 0x25c   : > { %v1969_v31 = vpop.f32.mrf.mxu0  ;;  %5572 = vmatmul.mubr.bf16.gmra.mxu0 %v6712_v43 }
 0x25d   : > { %v2111_v13 = vadd.f32 %v1969_v31, %v6709_v58  ;;  %v2337_v10 = vpop.f32.mrf.mxu1  ;;  %5672 = vmatmul.mubr.bf16.gmra.mxu1 %v2928_v41  ;;  %5575 = vmatprep.mubr.msk.bf16.mxu0 %vm6050_vm0, %v7561_v48  ;;  %v2898_v41 = vld [vmem:[#allocation2 + $0xba] sm:$0xff] }
 0x25e   : > { %v5361_v17 = vpop.f32.mrf.mxu0  ;;  %5675 = vmatprep.mubr.msk.bf16.mxu1 %vm6050_vm0, %v7561_v48  ;;  %v2930_v45 = vpack.c.bf16 %v2899_v28, %v2898_v41 }
 0x25f   : > { %v7029_v26 = vadd.f32 %v2337_v10, %v2111_v13  ;;  %v5461_v62 = vpop.f32.mrf.mxu1  ;;  %v7578_v10 = vld [vmem:[#allocation7_spill] sm:$0xff] }
 0x260   : > { %v1972_v23 = vpop.f32.mrf.mxu0 }
 0x261   : > { %v2112_v8 = vadd.f32 %v1972_v23, %v7577_v44  ;;  %v2340_v43 = vpop.f32.mrf.mxu1 }
 0x262   : > { %v5362_v58 = vpop.f32.mrf.mxu0 }
 0x263   : > { %v7032_v34 = vadd.f32 %v2340_v43, %v2112_v8  ;;  %v5462_v2 = vpop.f32.mrf.mxu1  ;;  %v2901_v58 = vld [vmem:[#allocation2 + $0xd2] sm:$0xff] }
 0x264   : > { %v1977_v38 = vpop.f32.mrf.mxu0  ;;  %5576 = vmatmul.mubr.bf16.gmra.mxu0 %v6725_v56 }
 0x265   : > { %v2113_v0 = vadd.f32 %v1977_v38, %v6722_v63  ;;  %v2345_v29 = vpop.f32.mrf.mxu1  ;;  %5676 = vmatmul.mubr.bf16.gmra.mxu1 %v2929_v47  ;;  %5579 = vmatprep.mubr.msk.bf16.mxu0 %vm6050_vm0, %v7561_v48  ;;  %v2900_v47 = vld [vmem:[#allocation2 + $0xca] sm:$0xff] }
 0x266   : > { %v5365_v20 = vpop.f32.mrf.mxu0  ;;  %5679 = vmatprep.mubr.msk.bf16.mxu1 %vm6050_vm0, %v7561_v48  ;;  %v2931_v41 = vpack.c.bf16 %v2901_v58, %v2900_v47 }
 0x267   : > { %v7040_v59 = vadd.f32 %v2345_v29, %v2113_v0  ;;  %v5465_v31 = vpop.f32.mrf.mxu1  ;;  %v7579_v29 = vld [vmem:[#allocation8_spill] sm:$0xff] }
 0x268   : > { %v1980_v13 = vpop.f32.mrf.mxu0 }
 0x269   : > { %v2114_v17 = vadd.f32 %v1980_v13, %v7578_v10  ;;  %v2348_v56 = vpop.f32.mrf.mxu1 }
 0x26a   : > { %v5366_v63 = vpop.f32.mrf.mxu0 }
 0x26b   : > { %v7043_v25 = vadd.f32 %v2348_v56, %v2114_v17  ;;  %v5466_v62 = vpop.f32.mrf.mxu1  ;;  %v2903_v63 = vld [vmem:[#allocation2 + $0xe2] sm:$0xff] }
 0x26c   : > { %v1985_v23 = vpop.f32.mrf.mxu0  ;;  %5580 = vmatmul.mubr.bf16.gmra.mxu0 %v6738_v7 }
 0x26d   : > { %v2115_v44 = vadd.f32 %v1985_v23, %v6735_v1  ;;  %v2353_v8 = vpop.f32.mrf.mxu1  ;;  %5680 = vmatmul.mubr.bf16.gmra.mxu1 %v2930_v45  ;;  %5583 = vmatprep.mubr.msk.bf16.mxu0 %vm6050_vm0, %v7561_v48  ;;  %v2902_v45 = vld [vmem:[#allocation2 + $0xda] sm:$0xff] }
 0x26e   : > { %v5369_v43 = vpop.f32.mrf.mxu0  ;;  %5683 = vmatprep.mubr.msk.bf16.mxu1 %vm6050_vm0, %v7561_v48  ;;  %v2932_v47 = vpack.c.bf16 %v2903_v63, %v2902_v45 }
 0x26f   : > { %v7051_v2 = vadd.f32 %v2353_v8, %v2115_v44  ;;  %v5469_v38 = vpop.f32.mrf.mxu1  ;;  %v7580_v8 = vld [vmem:[#allocation9_spill] sm:$0xff] }
 0x270   : > { %v1988_v0 = vpop.f32.mrf.mxu0 }
 0x271   : > { %v2116_v20 = vadd.f32 %v1988_v0, %v7579_v29  ;;  %v2356_v7 = vpop.f32.mrf.mxu1 }
 0x272   : > { %v5370_v1 = vpop.f32.mrf.mxu0 }
 0x273   : > { %v7054_v28 = vadd.f32 %v2356_v7, %v2116_v20  ;;  %v5470_v31 = vpop.f32.mrf.mxu1  ;;  %v2905_v1 = vld [vmem:[#allocation2 + $0xf2] sm:$0xff] }
 0x274   : > { %v1993_v13 = vpop.f32.mrf.mxu0  ;;  %5584 = vmatmul.mubr.bf16.gmra.mxu0 %v6751_v22 }
 0x275   : > { %v2117_v10 = vadd.f32 %v1993_v13, %v6748_v3  ;;  %v2361_v17 = vpop.f32.mrf.mxu1  ;;  %5684 = vmatmul.mubr.bf16.gmra.mxu1 %v2931_v41  ;;  %5587 = vmatprep.mubr.msk.bf16.mxu0 %vm6050_vm0, %v7561_v48  ;;  %v2904_v41 = vld [vmem:[#allocation2 + $0xea] sm:$0xff] }
 0x276   : > { %v5373_v56 = vpop.f32.mrf.mxu0  ;;  %5687 = vmatprep.mubr.msk.bf16.mxu1 %vm6050_vm0, %v7561_v48  ;;  %v2933_v45 = vpack.c.bf16 %v2905_v1, %v2904_v41 }
 0x277   : > { %v7062_v62 = vadd.f32 %v2361_v17, %v2117_v10  ;;  %v5473_v23 = vpop.f32.mrf.mxu1  ;;  %v7581_v17 = vld [vmem:[#allocation10_spill] sm:$0xff] }
 0x278   : > { %v1996_v44 = vpop.f32.mrf.mxu0 }
 0x279   : > { %v2118_v43 = vadd.f32 %v1996_v44, %v7580_v8  ;;  %v2364_v22 = vpop.f32.mrf.mxu1 }
 0x27a   : > { %v5374_v3 = vpop.f32.mrf.mxu0 }
 0x27b   : > { %v7065_v58 = vadd.f32 %v2364_v22, %v2118_v43  ;;  %v5474_v38 = vpop.f32.mrf.mxu1  ;;  %v2907_v3 = vld [vmem:[#allocation2 + $0x102] sm:$0xff] }
 0x27c   : > { %v2001_v0 = vpop.f32.mrf.mxu0  ;;  %5588 = vmatmul.mubr.bf16.gmra.mxu0 %v6764_v37 }
 0x27d   : > { %v2119_v29 = vadd.f32 %v2001_v0, %v6761_v36  ;;  %v2369_v20 = vpop.f32.mrf.mxu1  ;;  %5688 = vmatmul.mubr.bf16.gmra.mxu1 %v2932_v47  ;;  %5591 = vmatprep.mubr.msk.bf16.mxu0 %vm6050_vm0, %v7561_v48  ;;  %v2906_v47 = vld [vmem:[#allocation2 + $0xfa] sm:$0xff] }
 0x27e   : > { %v5377_v7 = vpop.f32.mrf.mxu0  ;;  %5691 = vmatprep.mubr.msk.bf16.mxu1 %vm6050_vm0, %v7561_v48  ;;  %v2934_v41 = vpack.c.bf16 %v2907_v3, %v2906_v47 }
 0x27f   : > { %v7073_v31 = vadd.f32 %v2369_v20, %v2119_v29  ;;  %v5477_v13 = vpop.f32.mrf.mxu1  ;;  %v7582_v20 = vld [vmem:[#allocation11_spill] sm:$0xff] }
 0x280   : > { %v2004_v10 = vpop.f32.mrf.mxu0 }
 0x281   : > { %v2120_v56 = vadd.f32 %v2004_v10, %v7581_v17  ;;  %v2372_v37 = vpop.f32.mrf.mxu1 }
 0x282   : > { %v5378_v36 = vpop.f32.mrf.mxu0 }
 0x283   : > { %v7076_v63 = vadd.f32 %v2372_v37, %v2120_v56  ;;  %v5478_v23 = vpop.f32.mrf.mxu1  ;;  %v2909_v36 = vld [vmem:[#allocation2 + $0x112] sm:$0xff] }
 0x284   : > { %v2009_v44 = vpop.f32.mrf.mxu0  ;;  %5592 = vmatmul.mubr.bf16.gmra.mxu0 %v6777_v53 }
 0x285   : > { %v2121_v8 = vadd.f32 %v2009_v44, %v6774_v21  ;;  %v2377_v43 = vpop.f32.mrf.mxu1  ;;  %5692 = vmatmul.mubr.bf16.gmra.mxu1 %v2933_v45  ;;  %5595 = vmatprep.mubr.msk.bf16.mxu0 %vm6050_vm0, %v7561_v48  ;;  %v2908_v45 = vld [vmem:[#allocation2 + $0x10a] sm:$0xff] }
 0x286   : > { %v5381_v22 = vpop.f32.mrf.mxu0  ;;  %5695 = vmatprep.mubr.msk.bf16.mxu1 %vm6050_vm0, %v7561_v48  ;;  %v2935_v47 = vpack.c.bf16 %v2909_v36, %v2908_v45 }
 0x287   : > { %v7084_v38 = vadd.f32 %v2377_v43, %v2121_v8  ;;  %v5481_v0 = vpop.f32.mrf.mxu1  ;;  %v7583_v43 = vld [vmem:[#allocation12_spill] sm:$0xff] }
 0x288   : > { %v2012_v29 = vpop.f32.mrf.mxu0 }
 0x289   : > { %v2122_v7 = vadd.f32 %v2012_v29, %v7582_v20  ;;  %v2380_v53 = vpop.f32.mrf.mxu1 }
 0x28a   : > { %v5382_v21 = vpop.f32.mrf.mxu0 }
 0x28b   : > { %v7087_v1 = vadd.f32 %v2380_v53, %v2122_v7  ;;  %v5482_v13 = vpop.f32.mrf.mxu1  ;;  %v2911_v21 = vld [vmem:[#allocation2 + $0x122] sm:$0xff] }
 0x28c   : > { %v2017_v10 = vpop.f32.mrf.mxu0  ;;  %5596 = vmatmul.mubr.bf16.gmra.mxu0 %v6790_v6 }
 0x28d   : > { %v2123_v17 = vadd.f32 %v2017_v10, %v6787_v30  ;;  %v2385_v56 = vpop.f32.mrf.mxu1  ;;  %5696 = vmatmul.mubr.bf16.gmra.mxu1 %v2934_v41  ;;  %5599 = vmatprep.mubr.msk.bf16.mxu0 %vm6050_vm0, %v7561_v48  ;;  %v2910_v41 = vld [vmem:[#allocation2 + $0x11a] sm:$0xff] }
 0x28e   : > { %v5385_v37 = vpop.f32.mrf.mxu0  ;;  %5699 = vmatprep.mubr.msk.bf16.mxu1 %vm6050_vm0, %v7561_v48  ;;  %v2936_v45 = vpack.c.bf16 %v2911_v21, %v2910_v41 }
 0x28f   : > { %v7095_v23 = vadd.f32 %v2385_v56, %v2123_v17  ;;  %v5485_v44 = vpop.f32.mrf.mxu1  ;;  %v7584_v56 = vld [vmem:[#allocation13_spill] sm:$0xff] }
 0x290   : > { %v2020_v8 = vpop.f32.mrf.mxu0 }
 0x291   : > { %v2124_v22 = vadd.f32 %v2020_v8, %v7583_v43  ;;  %v2388_v6 = vpop.f32.mrf.mxu1 }
 0x292   : > { %v5386_v30 = vpop.f32.mrf.mxu0 }
 0x293   : > { %v7098_v3 = vadd.f32 %v2388_v6, %v2124_v22  ;;  %v5486_v0 = vpop.f32.mrf.mxu1  ;;  %v2913_v30 = vld [vmem:[#allocation2 + $0x132] sm:$0xff] }
 0x294   : > { %v2025_v29 = vpop.f32.mrf.mxu0  ;;  %5600 = vmatmul.mubr.bf16.gmra.mxu0 %v6803_v24 }
 0x295   : > { %v2125_v20 = vadd.f32 %v2025_v29, %v6800_v15  ;;  %v2393_v7 = vpop.f32.mrf.mxu1  ;;  %5700 = vmatmul.mubr.bf16.gmra.mxu1 %v2935_v47  ;;  %5603 = vmatprep.mubr.msk.bf16.mxu0 %vm6050_vm0, %v7561_v48  ;;  %v2912_v47 = vld [vmem:[#allocation2 + $0x12a] sm:$0xff] }
 0x296   : > { %v5389_v53 = vpop.f32.mrf.mxu0  ;;  %5703 = vmatprep.mubr.msk.bf16.mxu1 %vm6050_vm0, %v7561_v48  ;;  %v2937_v41 = vpack.c.bf16 %v2913_v30, %v2912_v47 }
 0x297   : > { %v7106_v13 = vadd.f32 %v2393_v7, %v2125_v20  ;;  %v5489_v10 = vpop.f32.mrf.mxu1  ;;  %v7585_v7 = vld [vmem:[#allocation14_spill] sm:$0xff] }
 0x298   : > { %v2028_v17 = vpop.f32.mrf.mxu0 }
 0x299   : > { %v2126_v37 = vadd.f32 %v2028_v17, %v7584_v56  ;;  %v2396_v24 = vpop.f32.mrf.mxu1 }
 0x29a   : > { %v5390_v15 = vpop.f32.mrf.mxu0 }
 0x29b   : > { %v7109_v36 = vadd.f32 %v2396_v24, %v2126_v37  ;;  %v5490_v44 = vpop.f32.mrf.mxu1  ;;  %v2915_v15 = vld [vmem:[#allocation2 + $0x142] sm:$0xff] }
 0x29c   : > { %v2033_v8 = vpop.f32.mrf.mxu0  ;;  %5604 = vmatmul.mubr.bf16.gmra.mxu0 %v6816_v42 }
 0x29d   : > { %v2127_v43 = vadd.f32 %v2033_v8, %v6813_v9  ;;  %v2401_v22 = vpop.f32.mrf.mxu1  ;;  %5704 = vmatmul.mubr.bf16.gmra.mxu1 %v2936_v45  ;;  %5607 = vmatprep.mubr.msk.bf16.mxu0 %vm6050_vm0, %v7561_v48  ;;  %v2914_v45 = vld [vmem:[#allocation2 + $0x13a] sm:$0xff] }
 0x29e   : > { %v5393_v6 = vpop.f32.mrf.mxu0  ;;  %5707 = vmatprep.mubr.msk.bf16.mxu1 %vm6050_vm0, %v7561_v48  ;;  %v2938_v47 = vpack.c.bf16 %v2915_v15, %v2914_v45 }
 0x29f   : > { %v7117_v0 = vadd.f32 %v2401_v22, %v2127_v43  ;;  %v5493_v29 = vpop.f32.mrf.mxu1  ;;  %v7586_v22 = vld [vmem:[#allocation15_spill] sm:$0xff] }
 0x2a0   : > { %v2036_v20 = vpop.f32.mrf.mxu0 }
 0x2a1   : > { %v2128_v53 = vadd.f32 %v2036_v20, %v7585_v7  ;;  %v2404_v42 = vpop.f32.mrf.mxu1 }
 0x2a2   : > { %v5394_v9 = vpop.f32.mrf.mxu0 }
 0x2a3   : > { %v7120_v21 = vadd.f32 %v2404_v42, %v2128_v53  ;;  %v5494_v10 = vpop.f32.mrf.mxu1  ;;  %v2917_v9 = vld [vmem:[#allocation2 + $0x152] sm:$0xff] }
 0x2a4   : > { %v2041_v17 = vpop.f32.mrf.mxu0  ;;  %5608 = vmatmul.mubr.bf16.gmra.mxu0 %v6829_v60 }
 0x2a5   : > { %v2129_v56 = vadd.f32 %v2041_v17, %v6826_v5  ;;  %v2409_v37 = vpop.f32.mrf.mxu1  ;;  %5708 = vmatmul.mubr.bf16.gmra.mxu1 %v2937_v41  ;;  %5611 = vmatprep.mubr.msk.bf16.mxu0 %vm6050_vm0, %v7561_v48  ;;  %v2916_v41 = vld [vmem:[#allocation2 + $0x14a] sm:$0xff] }
 0x2a6   : > { %v5397_v24 = vpop.f32.mrf.mxu0  ;;  %5711 = vmatprep.mubr.msk.bf16.mxu1 %vm6050_vm0, %v7561_v48  ;;  %v2939_v45 = vpack.c.bf16 %v2917_v9, %v2916_v41 }
 0x2a7   : > { %v7128_v44 = vadd.f32 %v2409_v37, %v2129_v56  ;;  %v5497_v8 = vpop.f32.mrf.mxu1  ;;  %v7587_v37 = vld [vmem:[#allocation16_spill] sm:$0xff] }
 0x2a8   : > { %v2044_v43 = vpop.f32.mrf.mxu0 }
 0x2a9   : > { %v2130_v6 = vadd.f32 %v2044_v43, %v7586_v22  ;;  %v2412_v60 = vpop.f32.mrf.mxu1 }
 0x2aa   : > { %v5398_v5 = vpop.f32.mrf.mxu0 }
 0x2ab   : > { %v7131_v30 = vadd.f32 %v2412_v60, %v2130_v6  ;;  %v5498_v29 = vpop.f32.mrf.mxu1  ;;  %v2550_v60 = vld [vmem:[#allocation2 + $0x159] sm:$0xff] }
 0x2ac   : > { %v2049_v20 = vpop.f32.mrf.mxu0  ;;  %5612 = vmatmul.mubr.bf16.gmra.mxu0 %v6842_v19  ;;  %v2918_v29 = vld [vmem:[#allocation2 + $0x15a] sm:$0xff] }
 0x2ad   : > { %v2131_v7 = vadd.f32 %v2049_v20, %v6839_v12  ;;  %v2417_v53 = vpop.f32.mrf.mxu1  ;;  %5712 = vmatmul.mubr.bf16.gmra.mxu1 %v2938_v47  ;;  %5615 = vmatprep.mubr.msk.bf16.mxu0 %vm6050_vm0, %v7561_v48  ;;  %v2551_v47 = vld [vmem:[#allocation2 + $0x161] sm:$0xff] }
 0x2ae   : > { %v5401_v42 = vpop.f32.mrf.mxu0  ;;  %5715 = vmatprep.mubr.msk.bf16.mxu1 %vm6050_vm0, %v7561_v48  ;;  %v2919_v20 = vld [vmem:[#allocation2 + $0x162] sm:$0xff] }
 0x2af   : > { %v7139_v10 = vadd.f32 %v2417_v53, %v2131_v7  ;;  %v5501_v17 = vpop.f32.mrf.mxu1  ;;  %v2940_v9 = vpack.c.bf16 %v2919_v20, %v2918_v29 }
 0x2b0   : > { %v2052_v56 = vpop.f32.mrf.mxu0 }
 0x2b1   : > { %v2132_v24 = vadd.f32 %v2052_v56, %v7587_v37  ;;  %v2420_v19 = vpop.f32.mrf.mxu1 }
 0x2b2   : > { %v5402_v12 = vpop.f32.mrf.mxu0 }
 0x2b3   : > { %v7142_v15 = vadd.f32 %v2420_v19, %v2132_v24  ;;  %v5502_v8 = vpop.f32.mrf.mxu1  ;;  %v2552_v12 = vld [vmem:[#allocation2 + $0x169] sm:$0xf] }
 0x2b4   : > { %v2057_v43 = vpop.f32.mrf.mxu0  ;;  %5616 = vmatmul.mubr.bf16.gmra.mxu0 %v6855_v40  ;;  %v2572_v40 = vpack.c.bf16 %v2551_v47, %v2550_v60  ;;  %v2573_v60 = vpack.c.bf16 %v2552_v12, %v2552_v12 }
 0x2b5   : > { %v2133_v22 = vadd.f32 %v2057_v43, %v6852_v49  ;;  %v2425_v6 = vpop.f32.mrf.mxu1  ;;  %5716 = vmatmul.mubr.bf16.gmra.mxu1 %v2939_v45  ;;  %5619 = vmatprep.mubr.msk.bf16.mxu0 %vm6050_vm0, %v7561_v48 }
 0x2b6   : > { %v5405_v5 = vpop.f32.mrf.mxu0  ;;  %5719 = vmatprep.mubr.msk.bf16.mxu1 %vm6050_vm0, %v7561_v48 }
 0x2b7   : > { %v7150_v7 = vadd.f32 %v2425_v6, %v2133_v22  ;;  %v5505_v53 = vpop.f32.mrf.mxu1 }
 0x2b8   : > { %v2060_v42 = vpop.f32.mrf.mxu0 }
 0x2b9   : > { %v2134_v49 = vadd.f32 %v2060_v42, %v6857_v16  ;;  %v2428_v41 = vpop.f32.mrf.mxu1  ;;  %v2920_v16 = vld [vmem:[#allocation2 + $0x16a] sm:$0xf] }
 0x2ba   : > { %v5406_v17 = vpop.f32.mrf.mxu0 }
 0x2bb   : > { %v7153_v56 = vadd.f32 %v2428_v41, %v2134_v49  ;;  %v5506_v37 = vpop.f32.mrf.mxu1  ;;  %v3248_v41 = vld [vmem:[#allocation2 + $0x2b] sm:$0xff] }
 0x2bc   : > { %v2065_v24 = vpop.f32.mrf.mxu0  ;;  %5620 = vmatmul.mubr.bf16.gmra.mxu0 %v2572_v40 }
 0x2bd   : > { %v2135_v19 = vadd.f32 %v2065_v24, %v6865_v27  ;;  %v2433_v45 = vpop.f32.mrf.mxu1  ;;  %5720 = vmatmul.mubr.bf16.gmra.mxu1 %v2940_v9  ;;  %5623 = vmatprep.mubr.msk.bf16.mxu0 %vm6050_vm0, %v7561_v48  ;;  %v2941_v27 = vpack.c.bf16 %v2920_v16, %v2920_v16  ;;  %v3249_v9 = vld [vmem:[#allocation2 + $0x33] sm:$0xff] }
 0x2be   : > { %v5409_v8 = vpop.f32.mrf.mxu0  ;;  %5723 = vmatprep.mubr.msk.bf16.mxu1 %vm6050_vm0, %v7561_v48 }
 0x2bf   : > { %v7160_v43 = vadd.f32 %v2433_v45, %v2135_v19  ;;  %v5509_v22 = vpop.f32.mrf.mxu1  ;;  %v3289_v19 = vpack.c.bf16 %v3249_v9, %v3248_v41 }
 0x2c0   : > { %v2068_v6 = vpop.f32.mrf.mxu0 }
 0x2c1   : > { %v2136_v47 = vadd.f32 %v2068_v6, %v6868_v61  ;;  %v2436_v5 = vpop.f32.mrf.mxu1 }
 0x2c2   : > { %v5410_v29 = vpop.f32.mrf.mxu0 }
 0x2c3   : > { %v7163_v20 = vadd.f32 %v2436_v5, %v2136_v47  ;;  %v5510_v53 = vpop.f32.mrf.mxu1  ;;  %v3250_v5 = vld [vmem:[#allocation2 + $0x3b] sm:$0xff] }
 0x2c4   : > { %v2073_v42 = vpop.f32.mrf.mxu0  ;;  %5624 = vmatmul.mubr.bf16.gmra.mxu0 %v2573_v60 }
 0x2c5   : > { %v2137_v40 = vadd.f32 %v2073_v42, %v6875_v51  ;;  %v2441_v49 = vpop.f32.mrf.mxu1  ;;  %5724 = vmatmul.mubr.bf16.gmra.mxu1 %v2941_v27  ;;  %5743 = vmatprep.mubr.msk.bf16.mxu0 %vm6050_vm0, %v7561_v48  ;;  %v6020_v51 = vld [vmem:[%s6997_s6] sm:$0xff]  }
 0x2c6   : > { %v5413_v17 = vpop.f32.mrf.mxu0  ;;  %5843 = vmatprep.mubr.msk.bf16.mxu1 %vm6050_vm0, %v7561_v48  ;;  %v3251_v27 = vld [vmem:[#allocation2 + $0x43] sm:$0xff] }
 0x2c7   : > { %v7170_v61 = vadd.f32 %v2441_v49, %v2137_v40  ;;  %v5513_v37 = vpop.f32.mrf.mxu1  ;;  %v3290_v40 = vpack.c.bf16 %v3251_v27, %v3250_v5 }
 0x2c8   : > { %v2076_v24 = vpop.f32.mrf.mxu0 }
 0x2c9   : > { %v2138_v45 = vadd.f32 %v2076_v24, %v6884_v18  ;;  %v2444_v12 = vpop.f32.mrf.mxu1 }
 0x2ca   : > { %v5414_v8 = vpop.f32.mrf.mxu0 }
 0x2cb   : > { %v7174_v16 = vadd.f32 %v2444_v12, %v2138_v45  ;;  %v5514_v22 = vpop.f32.mrf.mxu1  ;;  %v3252_v12 = vld [vmem:[#allocation2 + $0x4b] sm:$0xff] }
 0x2cc   : > { %v2081_v6 = vpop.f32.mrf.mxu0  ;;  %5744 = vmatmul.mubr.bf16.vlgmr.msra.gmra.mxu0 %v3289_v19 }
 0x2cd   : > { %v2139_v60 = vadd.f32 %v2081_v6, %v6896_v52  ;;  %v2449_v47 = vpop.f32.mrf.mxu1  ;;  %5844 = vmatmul.mubr.bf16.vlgmr.msra.gmra.mxu1 %v6020_v51  ;;  %5747 = vmatprep.mubr.msk.bf16.mxu0 %vm6050_vm0, %v7561_v48  ;;  %v6021_v52 = vld [vmem:[%s6997_s6 + $0x8] sm:$0xff]   ;;  %v3253_v51 = vld [vmem:[#allocation2 + $0x53] sm:$0xff] }
 0x2ce   : > { %v5417_v29 = vpop.f32.mrf.mxu0  ;;  %5847 = vmatprep.mubr.msk.bf16.mxu1 %vm6050_vm0, %v7561_v48 }
 0x2cf   : > { %v7181_v18 = vadd.f32 %v2449_v47, %v2139_v60  ;;  %v5517_v53 = vpop.f32.mrf.mxu1  ;;  %v3291_v60 = vpack.c.bf16 %v3253_v51, %v3252_v12  ;;  %v6023_v12 = vld [vmem:[%s6997_s6 + $0x18] sm:$0xff]  }
 0x2d0   : > { %v2084_v42 = vpop.f32.mrf.mxu0 }
 0x2d1   : > { %v2140_v49 = vadd.f32 %v2084_v42, %v6907_v35  ;;  %v2452_v41 = vpop.f32.mrf.mxu1 }
 0x2d2   : > { %v5418_v9 = vpop.f32.mrf.mxu0 }
 0x2d3   : > { %v7185_v17 = vadd.f32 %v2452_v41, %v2140_v49  ;;  %v5518_v37 = vpop.f32.mrf.mxu1  ;;  %v3254_v41 = vld [vmem:[#allocation2 + $0x5b] sm:$0xff] }
 0x2d4   : > { %v2089_v24 = vpop.f32.mrf.mxu0  ;;  %5748 = vmatmul.mubr.bf16.gmra.mxu0 %v3290_v40 }
 0x2d5   : > { %v2141_v19 = vadd.f32 %v2089_v24, %v6922_v39  ;;  %v2457_v45 = vpop.f32.mrf.mxu1  ;;  %5848 = vmatmul.mubr.bf16.gmra.mxu1 %v6021_v52  ;;  %5751 = vmatprep.mubr.msk.bf16.mxu0 %vm6050_vm0, %v7561_v48  ;;  %v6022_v39 = vld [vmem:[%s6997_s6 + $0x10] sm:$0xff]   ;;  %v3255_v52 = vld [vmem:[#allocation2 + $0x63] sm:$0xff] }
 0x2d6   : > { %v5421_v8 = vpop.f32.mrf.mxu0  ;;  %5851 = vmatprep.mubr.msk.bf16.mxu1 %vm6050_vm0, %v7561_v48 }
 0x2d7   : > { %v7192_v35 = vadd.f32 %v2457_v45, %v2141_v19  ;;  %v5521_v22 = vpop.f32.mrf.mxu1  ;;  %v3292_v19 = vpack.c.bf16 %v3255_v52, %v3254_v41 }
 0x2d8   : > { %v2092_v6 = vpop.f32.mrf.mxu0 }
 0x2d9   : > { %v2142_v47 = vadd.f32 %v2092_v6, %v6934_v57  ;;  %v2460_v5 = vpop.f32.mrf.mxu1 }
 0x2da   : > { %v5422_v27 = vpop.f32.mrf.mxu0 }
 0x2db   : > { %v7196_v29 = vadd.f32 %v2460_v5, %v2142_v47  ;;  %v5522_v53 = vpop.f32.mrf.mxu1  ;;  %v3257_v47 = vld [vmem:[#allocation2 + $0x73] sm:$0xff] }
 0x2dc   : > { %v2097_v42 = vpop.f32.mrf.mxu0  ;;  %5752 = vmatmul.mubr.bf16.gmra.mxu0 %v3291_v60  ;;  %v3256_v60 = vld [vmem:[#allocation2 + $0x6b] sm:$0xff] }
 0x2dd   : > { %v2143_v40 = vadd.f32 %v2097_v42, %v6950_v14  ;;  %v2465_v49 = vpop.f32.mrf.mxu1  ;;  %5852 = vmatmul.mubr.bf16.gmra.mxu1 %v6022_v39  ;;  %5755 = vmatprep.mubr.msk.bf16.mxu0 %vm6050_vm0, %v7561_v48  ;;  %v3293_v42 = vpack.c.bf16 %v3257_v47, %v3256_v60 }
 0x2de   : > { %v5425_v9 = vpop.f32.mrf.mxu0  ;;  %5855 = vmatprep.mubr.msk.bf16.mxu1 %vm6050_vm0, %v7561_v48 }
 0x2df   : > { %v7203_v57 = vadd.f32 %v2465_v49, %v2143_v40  ;;  %v5525_v37 = vpop.f32.mrf.mxu1 }
 0x2e0   : > { %v2100_v24 = vpop.f32.mrf.mxu0 }
 0x2e1   : > { %v2468_v45 = vpop.f32.mrf.mxu1 }
 0x2e2   : > { %v5426_v51 = vpop.f32.mrf.mxu0  ;;  %v3258_v45 = vld [vmem:[#allocation2 + $0x7b] sm:$0xff] }
 0x2e3   : > { %v5526_v14 = vpop.f32.mrf.mxu1 }
 0x2e4   : > { %v2673_v8 = vpop.f32.mrf.mxu0  ;;  %5756 = vmatmul.mubr.bf16.gmra.mxu0 %v3292_v19 }
 0x2e5   : > { %v2839_v22 = vadd.f32 %v2673_v8, %v6974_v11  ;;  %v3041_v6 = vpop.f32.mrf.mxu1  ;;  %5856 = vmatmul.mubr.bf16.gmra.mxu1 %v6023_v12  ;;  %5759 = vmatprep.mubr.msk.bf16.mxu0 %vm6050_vm0, %v7561_v48  ;;  %v6024_v11 = vld [vmem:[%s6997_s6 + $0x20] sm:$0xff]  }
 0x2e6   : > { %v5545_v5 = vpop.f32.mrf.mxu0  ;;  %5859 = vmatprep.mubr.msk.bf16.mxu1 %vm6050_vm0, %v7561_v48  ;;  %v3259_v12 = vld [vmem:[#allocation2 + $0x83] sm:$0xff] }
 0x2e7   : > { %v7211_v39 = vadd.f32 %v3041_v6, %v2839_v22  ;;  %v5645_v27 = vpop.f32.mrf.mxu1  ;;  %v3294_v22 = vpack.c.bf16 %v3259_v12, %v3258_v45 }
 0x2e8   : > { %v2676_v53 = vpop.f32.mrf.mxu0 }
 0x2e9   : > { %v2840_v40 = vadd.f32 %v2676_v53, %v6982_v50  ;;  %v3044_v49 = vpop.f32.mrf.mxu1 }
 0x2ea   : > { %v5546_v41 = vpop.f32.mrf.mxu0 }
 0x2eb   : > { %v7215_v52 = vadd.f32 %v3044_v49, %v2840_v40  ;;  %v5646_v9 = vpop.f32.mrf.mxu1  ;;  %v3260_v49 = vld [vmem:[#allocation2 + $0x8b] sm:$0xff] }
 0x2ec   : > { %v2681_v37 = vpop.f32.mrf.mxu0  ;;  %5760 = vmatmul.mubr.bf16.gmra.mxu0 %v3293_v42 }
 0x2ed   : > { %v2841_v24 = vadd.f32 %v2681_v37, %v6990_v55  ;;  %v3049_v19 = vpop.f32.mrf.mxu1  ;;  %5860 = vmatmul.mubr.bf16.gmra.mxu1 %v6024_v11  ;;  %5763 = vmatprep.mubr.msk.bf16.mxu0 %vm6050_vm0, %v7561_v48  ;;  %v6025_v55 = vld [vmem:[%s6997_s6 + $0x28] sm:$0xff]   ;;  %v3261_v11 = vld [vmem:[#allocation2 + $0x93] sm:$0xff] }
 0x2ee   : > { %v5549_v51 = vpop.f32.mrf.mxu0  ;;  %5863 = vmatprep.mubr.msk.bf16.mxu1 %vm6050_vm0, %v7561_v48 }
 0x2ef   : > { %v7222_v50 = vadd.f32 %v3049_v19, %v2841_v24  ;;  %v5649_v14 = vpop.f32.mrf.mxu1  ;;  %v3295_v24 = vpack.c.bf16 %v3261_v11, %v3260_v49 }
 0x2f0   : > { %v2684_v8 = vpop.f32.mrf.mxu0 }
 0x2f1   : > { %v2842_v6 = vadd.f32 %v2684_v8, %v6999_v32  ;;  %v3052_v60 = vpop.f32.mrf.mxu1 }
 0x2f2   : > { %v5550_v47 = vpop.f32.mrf.mxu0 }
 0x2f3   : > { %v7226_v5 = vadd.f32 %v3052_v60, %v2842_v6  ;;  %v5650_v27 = vpop.f32.mrf.mxu1  ;;  %v3262_v60 = vld [vmem:[#allocation2 + $0x9b] sm:$0xff] }
 0x2f4   : > { %v2689_v53 = vpop.f32.mrf.mxu0  ;;  %5764 = vmatmul.mubr.bf16.gmra.mxu0 %v3294_v22 }
 0x2f5   : > { %v2843_v42 = vadd.f32 %v2689_v53, %v7007_v4  ;;  %v3057_v40 = vpop.f32.mrf.mxu1  ;;  %5864 = vmatmul.mubr.bf16.gmra.mxu1 %v6025_v55  ;;  %5767 = vmatprep.mubr.msk.bf16.mxu0 %vm6050_vm0, %v7561_v48  ;;  %v6026_v4 = vld [vmem:[%s6997_s6 + $0x30] sm:$0xff]   ;;  %v3263_v55 = vld [vmem:[#allocation2 + $0xa3] sm:$0xff] }
 0x2f6   : > { %v5553_v41 = vpop.f32.mrf.mxu0  ;;  %5867 = vmatprep.mubr.msk.bf16.mxu1 %vm6050_vm0, %v7561_v48 }
 0x2f7   : > { %v7233_v32 = vadd.f32 %v3057_v40, %v2843_v42  ;;  %v5653_v9 = vpop.f32.mrf.mxu1  ;;  %v3296_v42 = vpack.c.bf16 %v3263_v55, %v3262_v60 }
 0x2f8   : > { %v2692_v37 = vpop.f32.mrf.mxu0 }
 0x2f9   : > { %v2844_v19 = vadd.f32 %v2692_v37, %v7010_v54  ;;  %v3060_v45 = vpop.f32.mrf.mxu1 }
 0x2fa   : > { %v5554_v12 = vpop.f32.mrf.mxu0 }
 0x2fb   : > { %v7237_v51 = vadd.f32 %v3060_v45, %v2844_v19  ;;  %v5654_v14 = vpop.f32.mrf.mxu1  ;;  %v3264_v45 = vld [vmem:[#allocation2 + $0xab] sm:$0xff] }
 0x2fc   : > { %v2697_v8 = vpop.f32.mrf.mxu0  ;;  %5768 = vmatmul.mubr.bf16.gmra.mxu0 %v3295_v24 }
 0x2fd   : > { %v2845_v22 = vadd.f32 %v2697_v8, %v7018_v46  ;;  %v3065_v6 = vpop.f32.mrf.mxu1  ;;  %5868 = vmatmul.mubr.bf16.gmra.mxu1 %v6026_v4  ;;  %5771 = vmatprep.mubr.msk.bf16.mxu0 %vm6050_vm0, %v7561_v48  ;;  %v6027_v46 = vld [vmem:[%s6997_s6 + $0x38] sm:$0xff]  }
 0x2fe   : > { %v5557_v47 = vpop.f32.mrf.mxu0  ;;  %5871 = vmatprep.mubr.msk.bf16.mxu1 %vm6050_vm0, %v7561_v48  ;;  %v3265_v4 = vld [vmem:[#allocation2 + $0xb3] sm:$0xff] }
 0x2ff   : > { %v7244_v54 = vadd.f32 %v3065_v6, %v2845_v22  ;;  %v5657_v27 = vpop.f32.mrf.mxu1  ;;  %v3297_v22 = vpack.c.bf16 %v3265_v4, %v3264_v45 }
 0x300   : > { %v2700_v53 = vpop.f32.mrf.mxu0 }
 0x301   : > { %v2846_v40 = vadd.f32 %v2700_v53, %v7021_v33  ;;  %v3068_v49 = vpop.f32.mrf.mxu1 }
 0x302   : > { %v5558_v11 = vpop.f32.mrf.mxu0 }
 0x303   : > { %v7248_v41 = vadd.f32 %v3068_v49, %v2846_v40  ;;  %v5658_v9 = vpop.f32.mrf.mxu1  ;;  %v3266_v49 = vld [vmem:[#allocation2 + $0xbb] sm:$0xff] }
 0x304   : > { %v2705_v37 = vpop.f32.mrf.mxu0  ;;  %5772 = vmatmul.mubr.bf16.gmra.mxu0 %v3296_v42 }
 0x305   : > { %v2847_v24 = vadd.f32 %v2705_v37, %v7029_v26  ;;  %v3073_v19 = vpop.f32.mrf.mxu1  ;;  %5872 = vmatmul.mubr.bf16.gmra.mxu1 %v6027_v46  ;;  %5775 = vmatprep.mubr.msk.bf16.mxu0 %vm6050_vm0, %v7561_v48  ;;  %v6028_v26 = vld [vmem:[%s6997_s6 + $0x40] sm:$0xff]  }
 0x306   : > { %v5561_v12 = vpop.f32.mrf.mxu0  ;;  %5875 = vmatprep.mubr.msk.bf16.mxu1 %vm6050_vm0, %v7561_v48  ;;  %v3267_v46 = vld [vmem:[#allocation2 + $0xc3] sm:$0xff] }
 0x307   : > { %v7255_v33 = vadd.f32 %v3073_v19, %v2847_v24  ;;  %v5661_v14 = vpop.f32.mrf.mxu1  ;;  %v3298_v24 = vpack.c.bf16 %v3267_v46, %v3266_v49 }
 0x308   : > { %v2708_v8 = vpop.f32.mrf.mxu0 }
 0x309   : > { %v2848_v6 = vadd.f32 %v2708_v8, %v7032_v34  ;;  %v3076_v60 = vpop.f32.mrf.mxu1 }
 0x30a   : > { %v5562_v55 = vpop.f32.mrf.mxu0 }
 0x30b   : > { %v7259_v47 = vadd.f32 %v3076_v60, %v2848_v6  ;;  %v5662_v27 = vpop.f32.mrf.mxu1  ;;  %v3268_v60 = vld [vmem:[#allocation2 + $0xcb] sm:$0xff] }
 0x30c   : > { %v2713_v53 = vpop.f32.mrf.mxu0  ;;  %5776 = vmatmul.mubr.bf16.gmra.mxu0 %v3297_v22 }
 0x30d   : > { %v2849_v42 = vadd.f32 %v2713_v53, %v7040_v59  ;;  %v3081_v40 = vpop.f32.mrf.mxu1  ;;  %5876 = vmatmul.mubr.bf16.gmra.mxu1 %v6028_v26  ;;  %5779 = vmatprep.mubr.msk.bf16.mxu0 %vm6050_vm0, %v7561_v48  ;;  %v6029_v59 = vld [vmem:[%s6997_s6 + $0x48] sm:$0xff]   ;;  %v3269_v26 = vld [vmem:[#allocation2 + $0xd3] sm:$0xff] }
 0x30e   : > { %v5565_v11 = vpop.f32.mrf.mxu0  ;;  %5879 = vmatprep.mubr.msk.bf16.mxu1 %vm6050_vm0, %v7561_v48 }
 0x30f   : > { %v7266_v34 = vadd.f32 %v3081_v40, %v2849_v42  ;;  %v5665_v9 = vpop.f32.mrf.mxu1  ;;  %v3299_v42 = vpack.c.bf16 %v3269_v26, %v3268_v60 }
 0x310   : > { %v2716_v37 = vpop.f32.mrf.mxu0 }
 0x311   : > { %v2850_v19 = vadd.f32 %v2716_v37, %v7043_v25  ;;  %v3084_v45 = vpop.f32.mrf.mxu1 }
 0x312   : > { %v5566_v4 = vpop.f32.mrf.mxu0 }
 0x313   : > { %v7270_v12 = vadd.f32 %v3084_v45, %v2850_v19  ;;  %v5666_v14 = vpop.f32.mrf.mxu1  ;;  %v3270_v45 = vld [vmem:[#allocation2 + $0xdb] sm:$0xff] }
 0x314   : > { %v2721_v8 = vpop.f32.mrf.mxu0  ;;  %5780 = vmatmul.mubr.bf16.gmra.mxu0 %v3298_v24 }
 0x315   : > { %v2851_v22 = vadd.f32 %v2721_v8, %v7051_v2  ;;  %v3089_v6 = vpop.f32.mrf.mxu1  ;;  %5880 = vmatmul.mubr.bf16.gmra.mxu1 %v6029_v59  ;;  %5783 = vmatprep.mubr.msk.bf16.mxu0 %vm6050_vm0, %v7561_v48  ;;  %v6030_v2 = vld [vmem:[%s6997_s6 + $0x50] sm:$0xff]   ;;  %v3271_v59 = vld [vmem:[#allocation2 + $0xe3] sm:$0xff] }
 0x316   : > { %v5569_v55 = vpop.f32.mrf.mxu0  ;;  %5883 = vmatprep.mubr.msk.bf16.mxu1 %vm6050_vm0, %v7561_v48 }
 0x317   : > { %v7277_v25 = vadd.f32 %v3089_v6, %v2851_v22  ;;  %v5669_v27 = vpop.f32.mrf.mxu1  ;;  %v3300_v22 = vpack.c.bf16 %v3271_v59, %v3270_v45 }
 0x318   : > { %v2724_v53 = vpop.f32.mrf.mxu0 }
 0x319   : > { %v2852_v40 = vadd.f32 %v2724_v53, %v7054_v28  ;;  %v3092_v49 = vpop.f32.mrf.mxu1 }
 0x31a   : > { %v5570_v46 = vpop.f32.mrf.mxu0 }
 0x31b   : > { %v7281_v11 = vadd.f32 %v3092_v49, %v2852_v40  ;;  %v5670_v9 = vpop.f32.mrf.mxu1  ;;  %v3272_v49 = vld [vmem:[#allocation2 + $0xeb] sm:$0xff] }
 0x31c   : > { %v2729_v37 = vpop.f32.mrf.mxu0  ;;  %5784 = vmatmul.mubr.bf16.gmra.mxu0 %v3299_v42 }
 0x31d   : > { %v2853_v24 = vadd.f32 %v2729_v37, %v7062_v62  ;;  %v3097_v19 = vpop.f32.mrf.mxu1  ;;  %5884 = vmatmul.mubr.bf16.gmra.mxu1 %v6030_v2  ;;  %5787 = vmatprep.mubr.msk.bf16.mxu0 %vm6050_vm0, %v7561_v48  ;;  %v6031_v62 = vld [vmem:[%s6997_s6 + $0x58] sm:$0xff]  }
 0x31e   : > { %v5573_v4 = vpop.f32.mrf.mxu0  ;;  %5887 = vmatprep.mubr.msk.bf16.mxu1 %vm6050_vm0, %v7561_v48  ;;  %v3273_v2 = vld [vmem:[#allocation2 + $0xf3] sm:$0xff] }
 0x31f   : > { %v7288_v28 = vadd.f32 %v3097_v19, %v2853_v24  ;;  %v5673_v14 = vpop.f32.mrf.mxu1  ;;  %v3301_v24 = vpack.c.bf16 %v3273_v2, %v3272_v49 }
 0x320   : > { %v2732_v8 = vpop.f32.mrf.mxu0 }
 0x321   : > { %v2854_v6 = vadd.f32 %v2732_v8, %v7065_v58  ;;  %v3100_v60 = vpop.f32.mrf.mxu1 }
 0x322   : > { %v5574_v26 = vpop.f32.mrf.mxu0 }
 0x323   : > { %v7292_v55 = vadd.f32 %v3100_v60, %v2854_v6  ;;  %v5674_v27 = vpop.f32.mrf.mxu1  ;;  %v3274_v60 = vld [vmem:[#allocation2 + $0xfb] sm:$0xff] }
 0x324   : > { %v2737_v53 = vpop.f32.mrf.mxu0  ;;  %5788 = vmatmul.mubr.bf16.gmra.mxu0 %v3300_v22 }
 0x325   : > { %v2855_v42 = vadd.f32 %v2737_v53, %v7073_v31  ;;  %v3105_v40 = vpop.f32.mrf.mxu1  ;;  %5888 = vmatmul.mubr.bf16.gmra.mxu1 %v6031_v62  ;;  %5791 = vmatprep.mubr.msk.bf16.mxu0 %vm6050_vm0, %v7561_v48  ;;  %v6032_v31 = vld [vmem:[%s6997_s6 + $0x60] sm:$0xff]  }
 0x326   : > { %v5577_v46 = vpop.f32.mrf.mxu0  ;;  %5891 = vmatprep.mubr.msk.bf16.mxu1 %vm6050_vm0, %v7561_v48  ;;  %v3275_v62 = vld [vmem:[#allocation2 + $0x103] sm:$0xff] }
 0x327   : > { %v7299_v58 = vadd.f32 %v3105_v40, %v2855_v42  ;;  %v5677_v9 = vpop.f32.mrf.mxu1  ;;  %v3302_v42 = vpack.c.bf16 %v3275_v62, %v3274_v60 }
 0x328   : > { %v2740_v37 = vpop.f32.mrf.mxu0 }
 0x329   : > { %v2856_v19 = vadd.f32 %v2740_v37, %v7076_v63  ;;  %v3108_v45 = vpop.f32.mrf.mxu1 }
 0x32a   : > { %v5578_v59 = vpop.f32.mrf.mxu0 }
 0x32b   : > { %v7303_v4 = vadd.f32 %v3108_v45, %v2856_v19  ;;  %v5678_v14 = vpop.f32.mrf.mxu1  ;;  %v3276_v45 = vld [vmem:[#allocation2 + $0x10b] sm:$0xff] }
 0x32c   : > { %v2745_v8 = vpop.f32.mrf.mxu0  ;;  %5792 = vmatmul.mubr.bf16.gmra.mxu0 %v3301_v24 }
 0x32d   : > { %v2857_v22 = vadd.f32 %v2745_v8, %v7084_v38  ;;  %v3113_v6 = vpop.f32.mrf.mxu1  ;;  %5892 = vmatmul.mubr.bf16.gmra.mxu1 %v6032_v31  ;;  %5795 = vmatprep.mubr.msk.bf16.mxu0 %vm6050_vm0, %v7561_v48  ;;  %v6033_v38 = vld [vmem:[%s6997_s6 + $0x68] sm:$0xff]   ;;  %v3277_v31 = vld [vmem:[#allocation2 + $0x113] sm:$0xff] }
 0x32e   : > { %v5581_v26 = vpop.f32.mrf.mxu0  ;;  %5895 = vmatprep.mubr.msk.bf16.mxu1 %vm6050_vm0, %v7561_v48 }
 0x32f   : > { %v7310_v63 = vadd.f32 %v3113_v6, %v2857_v22  ;;  %v5681_v27 = vpop.f32.mrf.mxu1  ;;  %v3303_v22 = vpack.c.bf16 %v3277_v31, %v3276_v45 }
 0x330   : > { %v2748_v53 = vpop.f32.mrf.mxu0 }
 0x331   : > { %v2858_v40 = vadd.f32 %v2748_v53, %v7087_v1  ;;  %v3116_v49 = vpop.f32.mrf.mxu1 }
 0x332   : > { %v5582_v2 = vpop.f32.mrf.mxu0 }
 0x333   : > { %v7314_v46 = vadd.f32 %v3116_v49, %v2858_v40  ;;  %v5682_v9 = vpop.f32.mrf.mxu1  ;;  %v3278_v49 = vld [vmem:[#allocation2 + $0x11b] sm:$0xff] }
 0x334   : > { %v2753_v37 = vpop.f32.mrf.mxu0  ;;  %5796 = vmatmul.mubr.bf16.gmra.mxu0 %v3302_v42 }
 0x335   : > { %v2859_v24 = vadd.f32 %v2753_v37, %v7095_v23  ;;  %v3121_v19 = vpop.f32.mrf.mxu1  ;;  %5896 = vmatmul.mubr.bf16.gmra.mxu1 %v6033_v38  ;;  %5799 = vmatprep.mubr.msk.bf16.mxu0 %vm6050_vm0, %v7561_v48  ;;  %v6034_v23 = vld [vmem:[%s6997_s6 + $0x70] sm:$0xff]   ;;  %v3279_v38 = vld [vmem:[#allocation2 + $0x123] sm:$0xff] }
 0x336   : > { %v5585_v59 = vpop.f32.mrf.mxu0  ;;  %5899 = vmatprep.mubr.msk.bf16.mxu1 %vm6050_vm0, %v7561_v48 }
 0x337   : > { %v7321_v1 = vadd.f32 %v3121_v19, %v2859_v24  ;;  %v5685_v14 = vpop.f32.mrf.mxu1  ;;  %v3304_v24 = vpack.c.bf16 %v3279_v38, %v3278_v49 }
 0x338   : > { %v2756_v8 = vpop.f32.mrf.mxu0 }
 0x339   : > { %v2860_v6 = vadd.f32 %v2756_v8, %v7098_v3  ;;  %v3124_v60 = vpop.f32.mrf.mxu1 }
 0x33a   : > { %v5586_v62 = vpop.f32.mrf.mxu0 }
 0x33b   : > { %v7325_v26 = vadd.f32 %v3124_v60, %v2860_v6  ;;  %v5686_v27 = vpop.f32.mrf.mxu1  ;;  %v3280_v60 = vld [vmem:[#allocation2 + $0x12b] sm:$0xff] }
 0x33c   : > { %v2761_v53 = vpop.f32.mrf.mxu0  ;;  %5800 = vmatmul.mubr.bf16.gmra.mxu0 %v3303_v22 }
 0x33d   : > { %v2861_v42 = vadd.f32 %v2761_v53, %v7106_v13  ;;  %v3129_v40 = vpop.f32.mrf.mxu1  ;;  %5900 = vmatmul.mubr.bf16.gmra.mxu1 %v6034_v23  ;;  %5803 = vmatprep.mubr.msk.bf16.mxu0 %vm6050_vm0, %v7561_v48  ;;  %v6035_v13 = vld [vmem:[%s6997_s6 + $0x78] sm:$0xff]  }
 0x33e   : > { %v5589_v2 = vpop.f32.mrf.mxu0  ;;  %5903 = vmatprep.mubr.msk.bf16.mxu1 %vm6050_vm0, %v7561_v48  ;;  %v3281_v23 = vld [vmem:[#allocation2 + $0x133] sm:$0xff] }
 0x33f   : > { %v7332_v3 = vadd.f32 %v3129_v40, %v2861_v42  ;;  %v5689_v9 = vpop.f32.mrf.mxu1  ;;  %v3305_v42 = vpack.c.bf16 %v3281_v23, %v3280_v60 }
 0x340   : > { %v2764_v37 = vpop.f32.mrf.mxu0 }
 0x341   : > { %v2862_v19 = vadd.f32 %v2764_v37, %v7109_v36  ;;  %v3132_v45 = vpop.f32.mrf.mxu1 }
 0x342   : > { %v5590_v31 = vpop.f32.mrf.mxu0 }
 0x343   : > { %v7336_v59 = vadd.f32 %v3132_v45, %v2862_v19  ;;  %v5690_v14 = vpop.f32.mrf.mxu1  ;;  %v3282_v45 = vld [vmem:[#allocation2 + $0x13b] sm:$0xff] }
 0x344   : > { %v2769_v8 = vpop.f32.mrf.mxu0  ;;  %5804 = vmatmul.mubr.bf16.gmra.mxu0 %v3304_v24 }
 0x345   : > { %v2863_v22 = vadd.f32 %v2769_v8, %v7117_v0  ;;  %v3137_v6 = vpop.f32.mrf.mxu1  ;;  %5904 = vmatmul.mubr.bf16.gmra.mxu1 %v6035_v13  ;;  %5807 = vmatprep.mubr.msk.bf16.mxu0 %vm6050_vm0, %v7561_v48  ;;  %v6036_v0 = vld [vmem:[%s6997_s6 + $0x80] sm:$0xff]  }
 0x346   : > { %v5593_v62 = vpop.f32.mrf.mxu0  ;;  %5907 = vmatprep.mubr.msk.bf16.mxu1 %vm6050_vm0, %v7561_v48  ;;  %v3283_v13 = vld [vmem:[#allocation2 + $0x143] sm:$0xff] }
 0x347   : > { %v7343_v36 = vadd.f32 %v3137_v6, %v2863_v22  ;;  %v5693_v27 = vpop.f32.mrf.mxu1  ;;  %v3306_v22 = vpack.c.bf16 %v3283_v13, %v3282_v45 }
 0x348   : > { %v2772_v53 = vpop.f32.mrf.mxu0 }
 0x349   : > { %v2864_v40 = vadd.f32 %v2772_v53, %v7120_v21  ;;  %v3140_v49 = vpop.f32.mrf.mxu1 }
 0x34a   : > { %v5594_v38 = vpop.f32.mrf.mxu0 }
 0x34b   : > { %v7347_v2 = vadd.f32 %v3140_v49, %v2864_v40  ;;  %v5694_v9 = vpop.f32.mrf.mxu1  ;;  %v3284_v49 = vld [vmem:[#allocation2 + $0x14b] sm:$0xff] }
 0x34c   : > { %v2777_v37 = vpop.f32.mrf.mxu0  ;;  %5808 = vmatmul.mubr.bf16.gmra.mxu0 %v3305_v42 }
 0x34d   : > { %v2865_v24 = vadd.f32 %v2777_v37, %v7128_v44  ;;  %v3145_v19 = vpop.f32.mrf.mxu1  ;;  %5908 = vmatmul.mubr.bf16.gmra.mxu1 %v6036_v0  ;;  %5811 = vmatprep.mubr.msk.bf16.mxu0 %vm6050_vm0, %v7561_v48  ;;  %v6037_v44 = vld [vmem:[%s6997_s6 + $0x88] sm:$0xff]   ;;  %v3285_v0 = vld [vmem:[#allocation2 + $0x153] sm:$0xff] }
 0x34e   : > { %v5597_v31 = vpop.f32.mrf.mxu0  ;;  %5911 = vmatprep.mubr.msk.bf16.mxu1 %vm6050_vm0, %v7561_v48 }
 0x34f   : > { %v7354_v21 = vadd.f32 %v3145_v19, %v2865_v24  ;;  %v5697_v14 = vpop.f32.mrf.mxu1  ;;  %v3307_v24 = vpack.c.bf16 %v3285_v0, %v3284_v49 }
 0x350   : > { %v2780_v8 = vpop.f32.mrf.mxu0 }
 0x351   : > { %v2866_v6 = vadd.f32 %v2780_v8, %v7131_v30  ;;  %v3148_v60 = vpop.f32.mrf.mxu1 }
 0x352   : > { %v5598_v23 = vpop.f32.mrf.mxu0 }
 0x353   : > { %v7358_v62 = vadd.f32 %v3148_v60, %v2866_v6  ;;  %v5698_v27 = vpop.f32.mrf.mxu1  ;;  %v3286_v60 = vld [vmem:[#allocation2 + $0x15b] sm:$0xff] }
 0x354   : > { %v2785_v53 = vpop.f32.mrf.mxu0  ;;  %5812 = vmatmul.mubr.bf16.gmra.mxu0 %v3306_v22 }
 0x355   : > { %v2867_v42 = vadd.f32 %v2785_v53, %v7139_v10  ;;  %v3153_v40 = vpop.f32.mrf.mxu1  ;;  %5912 = vmatmul.mubr.bf16.gmra.mxu1 %v6037_v44  ;;  %5815 = vmatprep.mubr.msk.bf16.mxu0 %vm6050_vm0, %v7561_v48  ;;  %v6038_v10 = vld [vmem:[%s6997_s6 + $0x90] sm:$0xff]   ;;  %v3287_v44 = vld [vmem:[#allocation2 + $0x163] sm:$0xff] }
 0x356   : > { %v5601_v38 = vpop.f32.mrf.mxu0  ;;  %5915 = vmatprep.mubr.msk.bf16.mxu1 %vm6050_vm0, %v7561_v48 }
 0x357   : > { %v7365_v30 = vadd.f32 %v3153_v40, %v2867_v42  ;;  %v5701_v9 = vpop.f32.mrf.mxu1  ;;  %v3308_v42 = vpack.c.bf16 %v3287_v44, %v3286_v60  ;;  %v6040_v60 = vld [vmem:[%s6997_s6 + $0xa0] ss:$0 sps:$4 sm:$0x33]  }
 0x358   : > { %v2788_v37 = vpop.f32.mrf.mxu0 }
 0x359   : > { %v2868_v19 = vadd.f32 %v2788_v37, %v7142_v15  ;;  %v3156_v45 = vpop.f32.mrf.mxu1 }
 0x35a   : > { %v5602_v13 = vpop.f32.mrf.mxu0 }
 0x35b   : > { %v7369_v31 = vadd.f32 %v3156_v45, %v2868_v19  ;;  %v5702_v14 = vpop.f32.mrf.mxu1  ;;  %v3288_v45 = vld [vmem:[#allocation2 + $0x16b] sm:$0xf] }
 0x35c   : > { %v2793_v8 = vpop.f32.mrf.mxu0  ;;  %5816 = vmatmul.mubr.bf16.gmra.mxu0 %v3307_v24 }
 0x35d   : > { %v2869_v22 = vadd.f32 %v2793_v8, %v7150_v7  ;;  %v3161_v6 = vpop.f32.mrf.mxu1  ;;  %5916 = vmatmul.mubr.bf16.gmra.mxu1 %v6038_v10  ;;  %5819 = vmatprep.mubr.msk.bf16.mxu0 %vm6050_vm0, %v7561_v48  ;;  %v6039_v7 = vld [vmem:[%s6997_s6 + $0x98] sm:$0xff]   ;;  %v3309_v8 = vpack.c.bf16 %v3288_v45, %v3288_v45 }
 0x35e   : > { %v5605_v23 = vpop.f32.mrf.mxu0  ;;  %5919 = vmatprep.mubr.msk.bf16.mxu1 %vm6050_vm0, %v7561_v48 }
 0x35f   : > { %v7376_v15 = vadd.f32 %v3161_v6, %v2869_v22  ;;  %v5705_v27 = vpop.f32.mrf.mxu1 }
 0x360   : > { %v2796_v53 = vpop.f32.mrf.mxu0 }
 0x361   : > { %v2870_v40 = vadd.f32 %v2796_v53, %v7153_v56  ;;  %v3164_v49 = vpop.f32.mrf.mxu1 }
 0x362   : > { %v5606_v0 = vpop.f32.mrf.mxu0 }
 0x363   : > { %v7380_v38 = vadd.f32 %v3164_v49, %v2870_v40  ;;  %v5706_v9 = vpop.f32.mrf.mxu1 }
 0x364   : > { %v2801_v37 = vpop.f32.mrf.mxu0  ;;  %5820 = vmatmul.mubr.bf16.gmra.mxu0 %v3308_v42 }
 0x365   : > { %v2871_v24 = vadd.f32 %v2801_v37, %v7160_v43  ;;  %v3169_v19 = vpop.f32.mrf.mxu1  ;;  %5920 = vmatmul.mubr.bf16.gmra.mxu1 %v6039_v7  ;;  %5823 = vmatprep.mubr.msk.bf16.mxu0 %vm6050_vm0, %v7561_v48 }
 0x366   : > { %v5609_v10 = vpop.f32.mrf.mxu0  ;;  %5923 = vmatprep.mubr.msk.bf16.mxu1 %vm6050_vm0, %v7561_v48 }
 0x367   : > { %v7387_v56 = vadd.f32 %v3169_v19, %v2871_v24  ;;  %v5709_v13 = vpop.f32.mrf.mxu1 }
 0x368   : > { %v2804_v14 = vpop.f32.mrf.mxu0 }
 0x369   : > { %v2872_v22 = vadd.f32 %v2804_v14, %v7163_v20  ;;  %v3172_v6 = vpop.f32.mrf.mxu1 }
 0x36a   : > { %v5610_v43 = vpop.f32.mrf.mxu0 }
 0x36b   : > { %v7391_v44 = vadd.f32 %v3172_v6, %v2872_v22  ;;  %v5710_v23 = vpop.f32.mrf.mxu1 }
 0x36c   : > { %v2809_v27 = vpop.f32.mrf.mxu0  ;;  %5824 = vmatmul.mubr.bf16.gmra.mxu0 %v3309_v8 }
 0x36d   : > { %v2873_v53 = vadd.f32 %v2809_v27, %v7170_v61  ;;  %v3177_v42 = vpop.f32.mrf.mxu1  ;;  %5924 = vmatmul.mubr.bf16.gmra.mxu1 %v6040_v60 }
 0x36e   : > { %v5613_v48 = vpop.f32.mrf.mxu0 }
 0x36f   : > { %v7394_v40 = vadd.f32 %v3177_v42, %v2873_v53  ;;  %v5713_v49 = vpop.f32.mrf.mxu1 }
 0x370   : > { %v2812_v7 = vpop.f32.mrf.mxu0 }
 0x371   : > { %v2874_v0 = vadd.f32 %v2812_v7, %v7174_v16  ;;  %v3180_v20 = vpop.f32.mrf.mxu1 }
 0x372   : > { %v5614_v9 = vpop.f32.mrf.mxu0 }
 0x373   : > { %v7397_v37 = vadd.f32 %v3180_v20, %v2874_v0  ;;  %v5714_v24 = vpop.f32.mrf.mxu1 }
 0x374   : > { %v2817_v19 = vpop.f32.mrf.mxu0 }
 0x375   : > { %v2875_v45 = vadd.f32 %v2817_v19, %v7181_v18  ;;  %v3185_v10 = vpop.f32.mrf.mxu1 }
 0x376   : > { %v5617_v13 = vpop.f32.mrf.mxu0 }
 0x377   : > { %v7400_v61 = vadd.f32 %v3185_v10, %v2875_v45  ;;  %v5717_v14 = vpop.f32.mrf.mxu1 }
 0x378   : > { %v2820_v8 = vpop.f32.mrf.mxu0 }
 0x379   : > { %v2876_v22 = vadd.f32 %v2820_v8, %v7185_v17  ;;  %v3188_v6 = vpop.f32.mrf.mxu1 }
 0x37a   : > { %v5618_v60 = vpop.f32.mrf.mxu0 }
 0x37b   : > { %v7403_v43 = vadd.f32 %v3188_v6, %v2876_v22  ;;  %v5718_v16 = vpop.f32.mrf.mxu1 }
 0x37c   : > { %v2825_v23 = vpop.f32.mrf.mxu0 }
 0x37d   : > { %v2877_v27 = vadd.f32 %v2825_v23, %v7192_v35  ;;  %v3193_v53 = vpop.f32.mrf.mxu1 }
 0x37e   : > { %v5621_v42 = vpop.f32.mrf.mxu0 }
 0x37f   : > { %v7406_v48 = vadd.f32 %v3193_v53, %v2877_v27  ;;  %v5721_v18 = vpop.f32.mrf.mxu1 }
 0x380   : > { %v2828_v49 = vpop.f32.mrf.mxu0 }
 0x381   : > { %v2878_v7 = vadd.f32 %v2828_v49, %v7196_v29  ;;  %v3196_v0 = vpop.f32.mrf.mxu1  ;;  %v7417_v29 = vld [vmem:[%s7553_s2] ss:$0 sm:$0xff] }
 0x382   : > { %v5622_v20 = vpop.f32.mrf.mxu0 }
 0x383   : > { %v7409_v9 = vadd.f32 %v3196_v0, %v2878_v7  ;;  %v5722_v17 = vpop.f32.mrf.mxu1 }
 0x384   : > { %v2833_v24 = vpop.f32.mrf.mxu0 }
 0x385   : > { %v2879_v19 = vadd.f32 %v2833_v24, %v7203_v57  ;;  %v3201_v45 = vpop.f32.mrf.mxu1 }
 0x386   : > { %v5625_v10 = vpop.f32.mrf.mxu0 }
 0x387   : > { %v7412_v35 = vadd.f32 %v3201_v45, %v2879_v19  ;;  %v5725_v13 = vpop.f32.mrf.mxu1 }
 0x388   : > { %v2836_v14 = vpop.f32.mrf.mxu0 }
 0x389   : > { %v3204_v8 = vpop.f32.mrf.mxu1 }
 0x38a   : > { %v5626_v22 = vpop.f32.mrf.mxu0 }
 0x38b   : > { %v5726_v6 = vpop.f32.mrf.mxu1 }
 0x38c   : > { %v3409_v60 = vpop.f32.mrf.mxu0 }
 0x38d   : > { %v3575_v16 = vadd.f32 %v3409_v60, %v7211_v39  ;;  %v3927_v23 = vpop.f32.mrf.mxu1 }
 0x38e   : > { %v5745_v57 = vpop.f32.mrf.mxu0 }
 0x38f   : > { %v3623_v27 = vadd.f32 %v7417_v29, %v3575_v16  ;;  %v5845_v53 = vpop.f32.mrf.mxu1 }
 0x390   : > { %v3412_v42 = vpop.f32.mrf.mxu0 }
 0x391   : > { %v4093_v18 = vadd.f32 %v3927_v23, %v3623_v27  ;;  %v3576_v49 = vadd.f32 %v3412_v42, %v7215_v52  ;;  %v3930_v7 = vpop.f32.mrf.mxu1 }
 0x392   : > { %v5746_v0 = vpop.f32.mrf.mxu0 }
 0x393   : > { %v4134_v39 = vmul.f32 0.70710677, %v4093_v18  ;;  %v3624_v20 = vadd.f32 %v7417_v29, %v3576_v49  ;;  %v5846_v17 = vpop.f32.mrf.mxu1 }
 0x394   : > { %v3417_v24 = vpop.f32.mrf.mxu0 }
 0x395   : > { %4175 = vst [vmem:[%s7426_s12] sm:$0xff] %v4134_v39  ;;  %v4094_v19 = vadd.f32 %v3930_v7, %v3624_v20  ;;  %v3577_v45 = vadd.f32 %v3417_v24, %v7222_v50  ;;  %v3935_v52 = vpop.f32.mrf.mxu1 }
 0x396   : > { %v5749_v10 = vpop.f32.mrf.mxu0 }
 0x397   : > { %v4135_v13 = vmul.f32 0.70710677, %v4094_v19  ;;  %v3625_v14 = vadd.f32 %v7417_v29, %v3577_v45  ;;  %v5849_v8 = vpop.f32.mrf.mxu1 }
 0x398   : > { %v3420_v22 = vpop.f32.mrf.mxu0 }
 0x399   : > { %4176 = vst [vmem:[%s7426_s12 + $0x8] sm:$0xff] %v4135_v13  ;;  %v4095_v6 = vadd.f32 %v3935_v52, %v3625_v14  ;;  %v3578_v60 = vadd.f32 %v3420_v22, %v7226_v5  ;;  %v3938_v16 = vpop.f32.mrf.mxu1 }
 0x39a   : > { %v5750_v23 = vpop.f32.mrf.mxu0 }
 0x39b   : > { %v4136_v57 = vmul.f32 0.70710677, %v4095_v6  ;;  %v3626_v27 = vadd.f32 %v7417_v29, %v3578_v60  ;;  %v5850_v53 = vpop.f32.mrf.mxu1 }
 0x39c   : > { %v3425_v50 = vpop.f32.mrf.mxu0 }
 0x39d   : > { %4177 = vst [vmem:[%s7426_s12 + $0x10] sm:$0xff] %v4136_v57  ;;  %v4096_v42 = vadd.f32 %v3938_v16, %v3626_v27  ;;  %v3579_v18 = vadd.f32 %v3425_v50, %v7233_v32  ;;  %v3943_v49 = vpop.f32.mrf.mxu1 }
 0x39e   : > { %v5753_v7 = vpop.f32.mrf.mxu0 }
 0x39f   : > { %v4137_v0 = vmul.f32 0.70710677, %v4096_v42  ;;  %v3627_v39 = vadd.f32 %v7417_v29, %v3579_v18  ;;  %v5853_v20 = vpop.f32.mrf.mxu1 }
 0x3a0   : > { %v3428_v5 = vpop.f32.mrf.mxu0 }
 0x3a1   : > { %4178 = vst [vmem:[%s7426_s12 + $0x18] sm:$0xff] %v4137_v0  ;;  %v4097_v17 = vadd.f32 %v3943_v49, %v3627_v39  ;;  %v3580_v24 = vadd.f32 %v3428_v5, %v7237_v51  ;;  %v3946_v19 = vpop.f32.mrf.mxu1 }
 0x3a2   : > { %v5754_v45 = vpop.f32.mrf.mxu0 }
 0x3a3   : > { %v4138_v52 = vmul.f32 0.70710677, %v4097_v17  ;;  %v3628_v10 = vadd.f32 %v7417_v29, %v3580_v24  ;;  %v5854_v13 = vpop.f32.mrf.mxu1 }
 0x3a4   : > { %v3433_v32 = vpop.f32.mrf.mxu0 }
 0x3a5   : > { %4179 = vst [vmem:[%s7426_s12 + $0x20] sm:$0xff] %v4138_v52  ;;  %v4098_v14 = vadd.f32 %v3946_v19, %v3628_v10  ;;  %v3581_v8 = vadd.f32 %v3433_v32, %v7244_v54  ;;  %v3951_v22 = vpop.f32.mrf.mxu1 }
 0x3a6   : > { %v5757_v6 = vpop.f32.mrf.mxu0 }
 0x3a7   : > { %v4139_v60 = vmul.f32 0.70710677, %v4098_v14  ;;  %v3629_v16 = vadd.f32 %v7417_v29, %v3581_v8  ;;  %v5857_v23 = vpop.f32.mrf.mxu1 }
 0x3a8   : > { %v3436_v51 = vpop.f32.mrf.mxu0 }
 0x3a9   : > { %4180 = vst [vmem:[%s7426_s12 + $0x28] sm:$0xff] %v4139_v60  ;;  %v4099_v57 = vadd.f32 %v3951_v22, %v3629_v16  ;;  %v3582_v27 = vadd.f32 %v3436_v51, %v7248_v41  ;;  %v3954_v53 = vpop.f32.mrf.mxu1 }
 0x3aa   : > { %v5758_v50 = vpop.f32.mrf.mxu0 }
 0x3ab   : > { %v4140_v42 = vmul.f32 0.70710677, %v4099_v57  ;;  %v3630_v18 = vadd.f32 %v7417_v29, %v3582_v27  ;;  %v5858_v49 = vpop.f32.mrf.mxu1 }
 0x3ac   : > { %v3441_v54 = vpop.f32.mrf.mxu0 }
 0x3ad   : > { %4181 = vst [vmem:[%s7426_s12 + $0x30] sm:$0xff] %v4140_v42  ;;  %v4100_v7 = vadd.f32 %v3954_v53, %v3630_v18  ;;  %v3583_v0 = vadd.f32 %v3441_v54, %v7255_v33  ;;  %v3959_v39 = vpop.f32.mrf.mxu1 }
 0x3ae   : > { %v5761_v20 = vpop.f32.mrf.mxu0 }
 0x3af   : > { %v4141_v5 = vmul.f32 0.70710677, %v4100_v7  ;;  %v3631_v17 = vadd.f32 %v7417_v29, %v3583_v0  ;;  %v5861_v24 = vpop.f32.mrf.mxu1 }
 0x3b0   : > { %v3444_v41 = vpop.f32.mrf.mxu0 }
 0x3b1   : > { %4182 = vst [vmem:[%s7426_s12 + $0x38] sm:$0xff] %v4141_v5  ;;  %v4101_v19 = vadd.f32 %v3959_v39, %v3631_v17  ;;  %v3584_v45 = vadd.f32 %v3444_v41, %v7259_v47  ;;  %v3962_v52 = vpop.f32.mrf.mxu1 }
 0x3b2   : > { %v5762_v10 = vpop.f32.mrf.mxu0 }
 0x3b3   : > { %v4142_v13 = vmul.f32 0.70710677, %v4101_v19  ;;  %v3632_v32 = vadd.f32 %v7417_v29, %v3584_v45  ;;  %v5862_v14 = vpop.f32.mrf.mxu1 }
 0x3b4   : > { %v3449_v33 = vpop.f32.mrf.mxu0 }
 0x3b5   : > { %4183 = vst [vmem:[%s7426_s12 + $0x40] sm:$0xff] %v4142_v13  ;;  %v4102_v8 = vadd.f32 %v3962_v52, %v3632_v32  ;;  %v3585_v22 = vadd.f32 %v3449_v33, %v7266_v34  ;;  %v3967_v6 = vpop.f32.mrf.mxu1 }
 0x3b6   : > { %v5765_v60 = vpop.f32.mrf.mxu0 }
 0x3b7   : > { %v4143_v16 = vmul.f32 0.70710677, %v4102_v8  ;;  %v3633_v23 = vadd.f32 %v7417_v29, %v3585_v22  ;;  %v5865_v51 = vpop.f32.mrf.mxu1 }
 0x3b8   : > { %v3452_v47 = vpop.f32.mrf.mxu0 }
 0x3b9   : > { %4184 = vst [vmem:[%s7426_s12 + $0x48] sm:$0xff] %v4143_v16  ;;  %v4103_v57 = vadd.f32 %v3967_v6, %v3633_v23  ;;  %v3586_v27 = vadd.f32 %v3452_v47, %v7270_v12  ;;  %v3970_v53 = vpop.f32.mrf.mxu1 }
 0x3ba   : > { %v5766_v50 = vpop.f32.mrf.mxu0 }
 0x3bb   : > { %v4144_v42 = vmul.f32 0.70710677, %v4103_v57  ;;  %v3634_v18 = vadd.f32 %v7417_v29, %v3586_v27  ;;  %v5866_v49 = vpop.f32.mrf.mxu1 }
 0x3bc   : > { %v3457_v34 = vpop.f32.mrf.mxu0 }
 0x3bd   : > { %4185 = vst [vmem:[%s7426_s12 + $0x50] sm:$0xff] %v4144_v42  ;;  %v4104_v54 = vadd.f32 %v3970_v53, %v3634_v18  ;;  %v3587_v7 = vadd.f32 %v3457_v34, %v7277_v25  ;;  %v3975_v0 = vpop.f32.mrf.mxu1 }
 0x3be   : > { %v5769_v39 = vpop.f32.mrf.mxu0 }
 0x3bf   : > { %v4145_v20 = vmul.f32 0.70710677, %v4104_v54  ;;  %v3635_v5 = vadd.f32 %v7417_v29, %v3587_v7  ;;  %v5869_v17 = vpop.f32.mrf.mxu1 }
 0x3c0   : > { %v3460_v12 = vpop.f32.mrf.mxu0 }
 0x3c1   : > { %4186 = vst [vmem:[%s7426_s12 + $0x58] sm:$0xff] %v4145_v20  ;;  %v4105_v24 = vadd.f32 %v3975_v0, %v3635_v5  ;;  %v3588_v41 = vadd.f32 %v3460_v12, %v7281_v11  ;;  %v3978_v19 = vpop.f32.mrf.mxu1 }
 0x3c2   : > { %v5770_v45 = vpop.f32.mrf.mxu0 }
 0x3c3   : > { %v4146_v52 = vmul.f32 0.70710677, %v4105_v24  ;;  %v3636_v10 = vadd.f32 %v7417_v29, %v3588_v41  ;;  %v5870_v13 = vpop.f32.mrf.mxu1 }
 0x3c4   : > { %v3465_v25 = vpop.f32.mrf.mxu0 }
 0x3c5   : > { %4187 = vst [vmem:[%s7426_s12 + $0x60] sm:$0xff] %v4146_v52  ;;  %v4106_v32 = vadd.f32 %v3978_v19, %v3636_v10  ;;  %v3589_v14 = vadd.f32 %v3465_v25, %v7288_v28  ;;  %v3983_v33 = vpop.f32.mrf.mxu1 }
 0x3c6   : > { %v5773_v8 = vpop.f32.mrf.mxu0 }
 0x3c7   : > { %v4147_v22 = vmul.f32 0.70710677, %v4106_v32  ;;  %v3637_v6 = vadd.f32 %v7417_v29, %v3589_v14  ;;  %v5873_v60 = vpop.f32.mrf.mxu1 }
 0x3c8   : > { %v3468_v11 = vpop.f32.mrf.mxu0 }
 0x3c9   : > { %4188 = vst [vmem:[%s7426_s12 + $0x68] sm:$0xff] %v4147_v22  ;;  %v4107_v16 = vadd.f32 %v3983_v33, %v3637_v6  ;;  %v3590_v23 = vadd.f32 %v3468_v11, %v7292_v55  ;;  %v3986_v51 = vpop.f32.mrf.mxu1 }
 0x3ca   : > { %v5774_v47 = vpop.f32.mrf.mxu0 }
 0x3cb   : > { %v4148_v57 = vmul.f32 0.70710677, %v4107_v16  ;;  %v3638_v27 = vadd.f32 %v7417_v29, %v3590_v23  ;;  %v5874_v53 = vpop.f32.mrf.mxu1 }
 0x3cc   : > { %v3473_v28 = vpop.f32.mrf.mxu0 }
 0x3cd   : > { %4189 = vst [vmem:[%s7426_s12 + $0x70] sm:$0xff] %v4148_v57  ;;  %v4108_v50 = vadd.f32 %v3986_v51, %v3638_v27  ;;  %v3591_v42 = vadd.f32 %v3473_v28, %v7299_v58  ;;  %v3991_v18 = vpop.f32.mrf.mxu1 }
 0x3ce   : > { %v5777_v49 = vpop.f32.mrf.mxu0 }
 0x3cf   : > { %v4149_v34 = vmul.f32 0.70710677, %v4108_v50  ;;  %v3639_v54 = vadd.f32 %v7417_v29, %v3591_v42  ;;  %v5877_v7 = vpop.f32.mrf.mxu1 }
 0x3d0   : > { %v3476_v55 = vpop.f32.mrf.mxu0 }
 0x3d1   : > { %4190 = vst [vmem:[%s7426_s12 + $0x78] sm:$0xff] %v4149_v34  ;;  %v4109_v0 = vadd.f32 %v3991_v18, %v3639_v54  ;;  %v3592_v39 = vadd.f32 %v3476_v55, %v7303_v4  ;;  %v3994_v20 = vpop.f32.mrf.mxu1 }
 0x3d2   : > { %v5778_v5 = vpop.f32.mrf.mxu0 }
 0x3d3   : > { %v4150_v17 = vmul.f32 0.70710677, %v4109_v0  ;;  %v3640_v12 = vadd.f32 %v7417_v29, %v3592_v39  ;;  %v5878_v24 = vpop.f32.mrf.mxu1 }
 0x3d4   : > { %v3481_v58 = vpop.f32.mrf.mxu0 }
 0x3d5   : > { %4191 = vst [vmem:[%s7426_s12 + $0x80] sm:$0xff] %v4150_v17  ;;  %v4110_v41 = vadd.f32 %v3994_v20, %v3640_v12  ;;  %v3593_v19 = vadd.f32 %v3481_v58, %v7310_v63  ;;  %v3999_v45 = vpop.f32.mrf.mxu1 }
 0x3d6   : > { %v5781_v52 = vpop.f32.mrf.mxu0 }
 0x3d7   : > { %v4151_v10 = vmul.f32 0.70710677, %v4110_v41  ;;  %v3641_v13 = vadd.f32 %v7417_v29, %v3593_v19  ;;  %v5881_v25 = vpop.f32.mrf.mxu1 }
 0x3d8   : > { %v3484_v4 = vpop.f32.mrf.mxu0 }
 0x3d9   : > { %4192 = vst [vmem:[%s7426_s12 + $0x88] sm:$0xff] %v4151_v10  ;;  %v4111_v32 = vadd.f32 %v3999_v45, %v3641_v13  ;;  %v3594_v14 = vadd.f32 %v3484_v4, %v7314_v46  ;;  %v4002_v33 = vpop.f32.mrf.mxu1 }
 0x3da   : > { %v5782_v8 = vpop.f32.mrf.mxu0 }
 0x3db   : > { %v4152_v22 = vmul.f32 0.70710677, %v4111_v32  ;;  %v3642_v6 = vadd.f32 %v7417_v29, %v3594_v14  ;;  %v5882_v60 = vpop.f32.mrf.mxu1 }
 0x3dc   : > { %v3489_v63 = vpop.f32.mrf.mxu0 }
 0x3dd   : > { %4193 = vst [vmem:[%s7426_s12 + $0x90] sm:$0xff] %v4152_v22  ;;  %v4112_v11 = vadd.f32 %v4002_v33, %v3642_v6  ;;  %v3595_v16 = vadd.f32 %v3489_v63, %v7321_v1  ;;  %v4007_v23 = vpop.f32.mrf.mxu1 }
 0x3de   : > { %v5785_v51 = vpop.f32.mrf.mxu0 }
 0x3df   : > { %v4153_v47 = vmul.f32 0.70710677, %v4112_v11  ;;  %v3643_v57 = vadd.f32 %v7417_v29, %v3595_v16  ;;  %v5885_v27 = vpop.f32.mrf.mxu1 }
 0x3e0   : > { %v3492_v46 = vpop.f32.mrf.mxu0 }
 0x3e1   : > { %4194 = vst [vmem:[%s7426_s12 + $0x98] sm:$0xff] %v4153_v47  ;;  %v4113_v53 = vadd.f32 %v4007_v23, %v3643_v57  ;;  %v3596_v28 = vadd.f32 %v3492_v46, %v7325_v26  ;;  %v4010_v50 = vpop.f32.mrf.mxu1 }
 0x3e2   : > { %v5786_v42 = vpop.f32.mrf.mxu0 }
 0x3e3   : > { %v4154_v18 = vmul.f32 0.70710677, %v4113_v53  ;;  %v3644_v49 = vadd.f32 %v7417_v29, %v3596_v28  ;;  %v5886_v34 = vpop.f32.mrf.mxu1 }
 0x3e4   : > { %v3497_v1 = vpop.f32.mrf.mxu0 }
 0x3e5   : > { %4195 = vst [vmem:[%s7426_s12 + $0xa0] sm:$0xff] %v4154_v18  ;;  %v4114_v54 = vadd.f32 %v4010_v50, %v3644_v49  ;;  %v3597_v7 = vadd.f32 %v3497_v1, %v7332_v3  ;;  %v4015_v55 = vpop.f32.mrf.mxu1 }
 0x3e6   : > { %v5789_v0 = vpop.f32.mrf.mxu0 }
 0x3e7   : > { %v4155_v39 = vmul.f32 0.70710677, %v4114_v54  ;;  %v3645_v20 = vadd.f32 %v7417_v29, %v3597_v7  ;;  %v5889_v5 = vpop.f32.mrf.mxu1 }
 0x3e8   : > { %v3500_v26 = vpop.f32.mrf.mxu0 }
 0x3e9   : > { %4196 = vst [vmem:[%s7426_s12 + $0xa8] sm:$0xff] %v4155_v39  ;;  %v4115_v17 = vadd.f32 %v4015_v55, %v3645_v20  ;;  %v3598_v12 = vadd.f32 %v3500_v26, %v7336_v59  ;;  %v4018_v24 = vpop.f32.mrf.mxu1 }
 0x3ea   : > { %v5790_v58 = vpop.f32.mrf.mxu0 }
 0x3eb   : > { %v4156_v41 = vmul.f32 0.70710677, %v4115_v17  ;;  %v3646_v19 = vadd.f32 %v7417_v29, %v3598_v12  ;;  %v5890_v45 = vpop.f32.mrf.mxu1 }
 0x3ec   : > { %v3505_v3 = vpop.f32.mrf.mxu0 }
 0x3ed   : > { %4197 = vst [vmem:[%s7426_s12 + $0xb0] sm:$0xff] %v4156_v41  ;;  %v4116_v52 = vadd.f32 %v4018_v24, %v3646_v19  ;;  %v3599_v10 = vadd.f32 %v3505_v3, %v7343_v36  ;;  %v4023_v13 = vpop.f32.mrf.mxu1 }
 0x3ee   : > { %v5793_v25 = vpop.f32.mrf.mxu0 }
 0x3ef   : > { %v4157_v4 = vmul.f32 0.70710677, %v4116_v52  ;;  %v3647_v32 = vadd.f32 %v7417_v29, %v3599_v10  ;;  %v5893_v14 = vpop.f32.mrf.mxu1 }
 0x3f0   : > { %v3508_v59 = vpop.f32.mrf.mxu0 }
 0x3f1   : > { %4198 = vst [vmem:[%s7426_s12 + $0xb8] sm:$0xff] %v4157_v4  ;;  %v4117_v33 = vadd.f32 %v4023_v13, %v3647_v32  ;;  %v3600_v8 = vadd.f32 %v3508_v59, %v7347_v2  ;;  %v4026_v22 = vpop.f32.mrf.mxu1 }
 0x3f2   : > { %v5794_v6 = vpop.f32.mrf.mxu0 }
 0x3f3   : > { %v4158_v60 = vmul.f32 0.70710677, %v4117_v33  ;;  %v3648_v63 = vadd.f32 %v7417_v29, %v3600_v8  ;;  %v5894_v11 = vpop.f32.mrf.mxu1 }
 0x3f4   : > { %v3513_v36 = vpop.f32.mrf.mxu0 }
 0x3f5   : > { %4199 = vst [vmem:[%s7426_s12 + $0xc0] sm:$0xff] %v4158_v60  ;;  %v4118_v16 = vadd.f32 %v4026_v22, %v3648_v63  ;;  %v3601_v23 = vadd.f32 %v3513_v36, %v7354_v21  ;;  %v4031_v51 = vpop.f32.mrf.mxu1 }
 0x3f6   : > { %v5797_v47 = vpop.f32.mrf.mxu0 }
 0x3f7   : > { %v4159_v57 = vmul.f32 0.70710677, %v4118_v16  ;;  %v3649_v27 = vadd.f32 %v7417_v29, %v3601_v23  ;;  %v5897_v46 = vpop.f32.mrf.mxu1 }
 0x3f8   : > { %v3516_v2 = vpop.f32.mrf.mxu0 }
 0x3f9   : > { %4200 = vst [vmem:[%s7426_s12 + $0xc8] sm:$0xff] %v4159_v57  ;;  %v4119_v53 = vadd.f32 %v4031_v51, %v3649_v27  ;;  %v3602_v28 = vadd.f32 %v3516_v2, %v7358_v62  ;;  %v4034_v50 = vpop.f32.mrf.mxu1 }
 0x3fa   : > { %v5798_v42 = vpop.f32.mrf.mxu0 }
 0x3fb   : > { %v4160_v18 = vmul.f32 0.70710677, %v4119_v53  ;;  %v3650_v49 = vadd.f32 %v7417_v29, %v3602_v28  ;;  %v5898_v34 = vpop.f32.mrf.mxu1 }
 0x3fc   : > { %v3521_v21 = vpop.f32.mrf.mxu0 }
 0x3fd   : > { %4201 = vst [vmem:[%s7426_s12 + $0xd0] sm:$0xff] %v4160_v18  ;;  %v4120_v1 = vadd.f32 %v4034_v50, %v3650_v49  ;;  %v3603_v54 = vadd.f32 %v3521_v21, %v7365_v30  ;;  %v4039_v7 = vpop.f32.mrf.mxu1 }
 0x3fe   : > { %v5801_v55 = vpop.f32.mrf.mxu0 }
 0x3ff   : > { %v4161_v0 = vmul.f32 0.70710677, %v4120_v1  ;;  %v3651_v39 = vadd.f32 %v7417_v29, %v3603_v54  ;;  %v5901_v20 = vpop.f32.mrf.mxu1 }
 0x400   : > { %v3524_v62 = vpop.f32.mrf.mxu0 }
 0x401   : > { %4202 = vst [vmem:[%s7426_s12 + $0xd8] sm:$0xff] %v4161_v0  ;;  %v4121_v5 = vadd.f32 %v4039_v7, %v3651_v39  ;;  %v3604_v26 = vadd.f32 %v3524_v62, %v7369_v31  ;;  %v4042_v17 = vpop.f32.mrf.mxu1 }
 0x402   : > { %v5802_v12 = vpop.f32.mrf.mxu0 }
 0x403   : > { %v4162_v24 = vmul.f32 0.70710677, %v4121_v5  ;;  %v3652_v58 = vadd.f32 %v7417_v29, %v3604_v26  ;;  %v5902_v41 = vpop.f32.mrf.mxu1 }
 0x404   : > { %v3529_v30 = vpop.f32.mrf.mxu0 }
 0x405   : > { %4203 = vst [vmem:[%s7426_s12 + $0xe0] sm:$0xff] %v4162_v24  ;;  %v4122_v19 = vadd.f32 %v4042_v17, %v3652_v58  ;;  %v3605_v45 = vadd.f32 %v3529_v30, %v7376_v15  ;;  %v4047_v3 = vpop.f32.mrf.mxu1 }
 0x406   : > { %v5805_v52 = vpop.f32.mrf.mxu0 }
 0x407   : > { %v4163_v10 = vmul.f32 0.70710677, %v4122_v19  ;;  %v3653_v13 = vadd.f32 %v7417_v29, %v3605_v45  ;;  %v5905_v25 = vpop.f32.mrf.mxu1 }
 0x408   : > { %v3532_v31 = vpop.f32.mrf.mxu0 }
 0x409   : > { %4204 = vst [vmem:[%s7426_s12 + $0xe8] sm:$0xff] %v4163_v10  ;;  %v4123_v4 = vadd.f32 %v4047_v3, %v3653_v13  ;;  %v3606_v32 = vadd.f32 %v3532_v31, %v7380_v38  ;;  %v4050_v14 = vpop.f32.mrf.mxu1 }
 0x40a   : > { %v5806_v59 = vpop.f32.mrf.mxu0 }
 0x40b   : > { %v4164_v33 = vmul.f32 0.70710677, %v4123_v4  ;;  %v3654_v8 = vadd.f32 %v7417_v29, %v3606_v32  ;;  %v5906_v22 = vpop.f32.mrf.mxu1 }
 0x40c   : > { %v3537_v15 = vpop.f32.mrf.mxu0 }
 0x40d   : > { %4205 = vst [vmem:[%s7426_s12 + $0xf0] sm:$0xff] %v4164_v33  ;;  %v4124_v6 = vadd.f32 %v4050_v14, %v3654_v8  ;;  %v3607_v60 = vadd.f32 %v3537_v15, %v7387_v56  ;;  %v4055_v63 = vpop.f32.mrf.mxu1 }
 0x40e   : > { %v5809_v11 = vpop.f32.mrf.mxu0 }
 0x40f   : > { %v4165_v36 = vmul.f32 0.70710677, %v4124_v6  ;;  %v3655_v16 = vadd.f32 %v7417_v29, %v3607_v60  ;;  %v5909_v23 = vpop.f32.mrf.mxu1 }
 0x410   : > { %v3540_v38 = vpop.f32.mrf.mxu0 }
 0x411   : > { %4206 = vst [vmem:[%s7426_s12 + $0xf8] sm:$0xff] %v4165_v36  ;;  %v4125_v51 = vadd.f32 %v4055_v63, %v3655_v16  ;;  %v3608_v47 = vadd.f32 %v3540_v38, %v7391_v44  ;;  %v4058_v57 = vpop.f32.mrf.mxu1 }
 0x412   : > { %v5810_v27 = vpop.f32.mrf.mxu0 }
 0x413   : > { %v4166_v46 = vmul.f32 0.70710677, %v4125_v51  ;;  %v3656_v2 = vadd.f32 %v7417_v29, %v3608_v47  ;;  %v5910_v53 = vpop.f32.mrf.mxu1 }
 0x414   : > { %v3545_v56 = vpop.f32.mrf.mxu0 }
 0x415   : > { %4207 = vst [vmem:[%s7426_s12 + $0x100] sm:$0xff] %v4166_v46  ;;  %v4126_v28 = vadd.f32 %v4058_v57, %v3656_v2  ;;  %v3609_v50 = vadd.f32 %v3545_v56, %v7394_v40  ;;  %v4063_v42 = vpop.f32.mrf.mxu1 }
 0x416   : > { %v5813_v18 = vpop.f32.mrf.mxu0 }
 0x417   : > { %v4167_v49 = vmul.f32 0.70710677, %v4126_v28  ;;  %v3657_v34 = vadd.f32 %v7417_v29, %v3609_v50  ;;  %v5913_v21 = vpop.f32.mrf.mxu1 }
 0x418   : > { %v3548_v44 = vpop.f32.mrf.mxu0 }
 0x419   : > { %4208 = vst [vmem:[%s7426_s12 + $0x108] sm:$0xff] %v4167_v49  ;;  %v4127_v1 = vadd.f32 %v4063_v42, %v3657_v34  ;;  %v3610_v54 = vadd.f32 %v3548_v44, %v7397_v37  ;;  %v4066_v7 = vpop.f32.mrf.mxu1 }
 0x41a   : > { %v5814_v55 = vpop.f32.mrf.mxu0 }
 0x41b   : > { %v4168_v0 = vmul.f32 0.70710677, %v4127_v1  ;;  %v3658_v39 = vadd.f32 %v7417_v29, %v3610_v54  ;;  %v5914_v20 = vpop.f32.mrf.mxu1 }
 0x41c   : > { %v3553_v40 = vpop.f32.mrf.mxu0 }
 0x41d   : > { %4209 = vst [vmem:[%s7426_s12 + $0x110] sm:$0xff] %v4168_v0  ;;  %v4128_v62 = vadd.f32 %v4066_v7, %v3658_v39  ;;  %v3611_v5 = vadd.f32 %v3553_v40, %v7400_v61  ;;  %v4071_v26 = vpop.f32.mrf.mxu1 }
 0x41e   : > { %v5817_v17 = vpop.f32.mrf.mxu0 }
 0x41f   : > { %v4169_v12 = vmul.f32 0.70710677, %v4128_v62  ;;  %v3659_v24 = vadd.f32 %v7417_v29, %v3611_v5  ;;  %v5917_v58 = vpop.f32.mrf.mxu1 }
 0x420   : > { %v3556_v37 = vpop.f32.mrf.mxu0 }
 0x421   : > { %4210 = vst [vmem:[%s7426_s12 + $0x118] sm:$0xff] %v4169_v12  ;;  %v4129_v41 = vadd.f32 %v4071_v26, %v3659_v24  ;;  %v3612_v30 = vadd.f32 %v3556_v37, %v7403_v43  ;;  %v4074_v19 = vpop.f32.mrf.mxu1 }
 0x422   : > { %v5818_v45 = vpop.f32.mrf.mxu0 }
 0x423   : > { %v4170_v3 = vmul.f32 0.70710677, %v4129_v41  ;;  %v3660_v52 = vadd.f32 %v7417_v29, %v3612_v30  ;;  %v5918_v10 = vpop.f32.mrf.mxu1 }
 0x424   : > { %v3561_v61 = vpop.f32.mrf.mxu0 }
 0x425   : > { %4211 = vst [vmem:[%s7426_s12 + $0x120] sm:$0xff] %v4170_v3  ;;  %v4130_v13 = vadd.f32 %v4074_v19, %v3660_v52  ;;  %v3613_v25 = vadd.f32 %v3561_v61, %v7406_v48  ;;  %v4079_v31 = vpop.f32.mrf.mxu1 }
 0x426   : > { %v5821_v4 = vpop.f32.mrf.mxu0 }
 0x427   : > { %v4171_v32 = vmul.f32 0.70710677, %v4130_v13  ;;  %v3661_v14 = vadd.f32 %v7417_v29, %v3613_v25  ;;  %v5921_v59 = vpop.f32.mrf.mxu1 }
 0x428   : > { %v3564_v43 = vpop.f32.mrf.mxu0 }
 0x429   : > { %4212 = vst [vmem:[%s7426_s12 + $0x128] sm:$0xff] %v4171_v32  ;;  %v4131_v33 = vadd.f32 %v4079_v31, %v3661_v14  ;;  %v3614_v8 = vadd.f32 %v3564_v43, %v7409_v9  ;;  %v4082_v22 = vpop.f32.mrf.mxu1 }
 0x42a   : > { %v5822_v15 = vpop.f32.mrf.mxu0 }
 0x42b   : > { %v4172_v6 = vmul.f32 0.70710677, %v4131_v33  ;;  %v3662_v60 = vadd.f32 %v7417_v29, %v3614_v8  ;;  %v5922_v63 = vpop.f32.mrf.mxu1 }
 0x42c   : > { %v3569_v48 = vpop.f32.mrf.mxu0 }
 0x42d   : > { %4213 = vst [vmem:[%s7426_s12 + $0x130] sm:$0xff] %v4172_v6  ;;  %v4132_v11 = vadd.f32 %v4082_v22, %v3662_v60  ;;  %v3615_v36 = vadd.f32 %v3569_v48, %v7412_v35  ;;  %v4087_v16 = vpop.f32.mrf.mxu1 }
 0x42e   : > { %v5825_v23 = vpop.f32.mrf.mxu0 }
 0x42f   : > { %v4173_v38 = vmul.f32 0.70710677, %v4132_v11  ;;  %v3663_v51 = vadd.f32 %v7417_v29, %v3615_v36  ;;  %v5925_v47 = vpop.f32.mrf.mxu1 }
 0x430   : > { %v3572_v9 = vpop.f32.mrf.mxu0 }
 0x431   : > { %4214 = vst [vmem:[%s7426_s12 + $0x138] sm:$0xff] %v4173_v38  ;;  %v4133_v57 = vadd.f32 %v4087_v16, %v3663_v51  ;;  %v4090_v27 = vpop.f32.mrf.mxu1 }
 0x432   : > { %v5826_v46 = vpop.f32.mrf.mxu0 }
 0x433   : > { %v4174_v2 = vmul.f32 0.70710677, %v4133_v57  ;;  %v5926_v53 = vpop.f32.mrf.mxu1 }
 0x435   : > { %4215 = vst [vmem:[%s7426_s12 + $0x140] sm:$0xf] %v4174_v2 }
 0x436 PF: > { %s15_s18 = sadd.s32 1, %s6047_s18  }
 0x437   : > { %p12_p4 = scmp.ge.s32.totalorder %s15_s18, 4  }
 0x439   :  { %14 = sbr.rel (!%p12_p4) target bundleno = 1 (0x1), region = 81 }

// kernel: adain_resblk_pallas.4
= control target key start
LH: loop header
LB: loop body
LE: loop exit
PB: predicated region body
PF: predicated region fallthrough
CT: control target
= control target key end

     0   :  { %s6739_s18 = smov 0   ;;  %s8907_s0 = inlined_call_operand.vmem [shape: bf16[2,420,128], index: 0, kind: input, shape index: {}]   ;;  %s8908_s1 = inlined_call_operand.vmem [shape: bf16[9,128,128], index: 1, kind: input, shape index: {}]   ;;  %s8909_s2 = inlined_call_operand.vmem [shape: f32[1,128], index: 2, kind: input, shape index: {}]   ;;  %s8910_s3 = inlined_call_operand.vmem [shape: f32[2,2,128], index: 3, kind: input, shape index: {}]   ;;  %s8911_s4 = inlined_call_operand.vmem [shape: f32[372,1], index: 4, kind: input, shape index: {}]   ;;  %s8912_s5 = inlined_call_operand.vmem [shape: bf16[2,372,128], index: 5, kind: output, shape index: {}]  }
   0x1 LB: > { %s5155_s19 = sadd.s32 4294967295, %s6706_s18   ;;  %p5159_p0 = scmp.ge.s32.totalorder %s6706_s18, 1  ;;  %s6706_s18 = sphi %s6739_s18, %s15_s18  }
   0x2   : > { %p196_p1 = scmp.lt.s32.totalorder %s6706_s18, 3 }
   0x4   : > { %p197_p2 = pnand %p5159_p0, %p196_p1 }
   0x6   : > { %200 = sbr.rel (%p197_p2) target bundleno = 816 (0x330), region = 40 }
   0xb   : > { %v6619_v0 = vld [vmem:[%s8908_s1 + $0x78] sm:$0xff]   ;;  %p228_p3 = scmp.lt.s32.totalorder %s5155_s19, 1  ;;  %v6620_v1 = vld [vmem:[%s8908_s1 + $0x70] sm:$0xff]   ;;  %v6621_v2 = vld [vmem:[%s8908_s1 + $0x68] sm:$0xff]   ;;  %vm4399_vm0 = vcmask 1043456  }
   0xc   : > { %6014 = vmatprep.subr.bf16.mxu0 %v6619_v0  ;;  %6590 = vmatprep.subr.bf16.mxu1 %v6619_v0  ;;  %v6622_v3 = vld [vmem:[%s8908_s1 + $0x60] sm:$0xff]   ;;  %v6623_v19 = vld [vmem:[%s8908_s1 + $0x58] sm:$0xff]   ;;  %v6624_v33 = vld [vmem:[%s8908_s1 + $0x50] sm:$0xff]  }
   0xd   : > { %s9309_s19 = smov (!%p228_p3, %s5155_s19), 1  ;;  %6015 = vmatpush3.bf16.msra.mxu0 %v6619_v0  ;;  %6598 = vmatpush3.bf16.msra.mxu1 %v6619_v0  ;;  %v6625_v42 = vld [vmem:[%s8908_s1 + $0x48] sm:$0xff]   ;;  %v6626_v55 = vld [vmem:[%s8908_s1 + $0x40] sm:$0xff]   ;;  %v6627_v59 = vld [vmem:[%s8908_s1 + $0x38] sm:$0xff]  }
   0xe   : > { %6016 = vmatprep.subr.bf16.mxu0 %v6620_v1  ;;  %6591 = vmatprep.subr.bf16.mxu1 %v6620_v1  ;;  %s6606_s26 = smul.u32 212, %s9309_s19  ;;  %v6628_v60 = vld [vmem:[%s8908_s1 + $0xb8] sm:$0xff]   ;;  %s5161_s13 = sshll.u32 %s9309_s19, 1 }
   0xf   : > { %s236_s16 = scalar_lea.vmem %s8910_s3, %s5161_s13  ;;  %s6607_s17 = smul.u32 188, %s9309_s19 }
  0x10   : > { %s6762_s29 = scalar_lea.vmem %s8907_s0, %s6606_s26 }
  0x11   : > { %6017 = vmatpush3.bf16.msra.mxu0 %v6620_v1  ;;  %6599 = vmatpush3.bf16.msra.mxu1 %v6620_v1  ;;  %v5461_v4 = vld [vmem:[%s6762_s29] sm:$0xff]   ;;  %v5679_v5 = vld [vmem:[%s6762_s29 + $0x8] sm:$0xff]   ;;  %v5680_v13 = vld [vmem:[%s6762_s29 + $0x10] sm:$0xff]   ;;  %s8871_s21 = scalar_lea.vmem %s8912_s5, %s6607_s17 }
  0x12   : > { %6018 = vmatprep.subr.bf16.mxu0 %v6621_v2  ;;  %6592 = vmatprep.subr.bf16.mxu1 %v6621_v2  ;;  %v5462_v6 = vunpack.c.l.bf16 %v5461_v4  ;;  %v5463_v7 = vunpack.c.h.bf16 %v5461_v4  ;;  %v5466_v8 = vunpack.c.l.bf16 %v5679_v5  ;;  %v5467_v9 = vunpack.c.h.bf16 %v5679_v5  ;;  %v5690_v10 = vld [vmem:[%s6762_s29 + $0x60] sm:$0xff]   ;;  %v5691_v11 = vld [vmem:[%s6762_s29 + $0x68] sm:$0xff]   ;;  %v5692_v14 = vld [vmem:[%s6762_s29 + $0x70] sm:$0xff]  }
  0x13   : > { %v5510_v12 = vunpack.c.l.bf16 %v5690_v10  ;;  %v5511_v15 = vunpack.c.h.bf16 %v5690_v10  ;;  %v5514_v16 = vunpack.c.l.bf16 %v5691_v11  ;;  %v5515_v17 = vunpack.c.h.bf16 %v5691_v11  ;;  %v5681_v23 = vld [vmem:[%s6762_s29 + $0x18] sm:$0xff]   ;;  %v5682_v27 = vld [vmem:[%s6762_s29 + $0x20] sm:$0xff]   ;;  %v5683_v39 = vld [vmem:[%s6762_s29 + $0x28] sm:$0xff]  }
  0x14   : > { %349 = vst [vmem:[#allocation2] sm:$0xff] %v5462_v6  ;;  %350 = vst [vmem:[#allocation2 + $0x8] sm:$0xff] %v5463_v7  ;;  %v5470_v18 = vunpack.c.l.bf16 %v5680_v13  ;;  %v5518_v20 = vunpack.c.l.bf16 %v5692_v14  ;;  %v5471_v21 = vunpack.c.h.bf16 %v5680_v13  ;;  %v5519_v22 = vunpack.c.h.bf16 %v5692_v14  ;;  %v5693_v25 = vld [vmem:[%s6762_s29 + $0x78] sm:$0xff]   ;;  %v5694_v28 = vld [vmem:[%s6762_s29 + $0x80] sm:$0xff]  }
  0x15   : > { %6019 = vmatpush3.bf16.msra.mxu0 %v6621_v2  ;;  %6600 = vmatpush3.bf16.msra.mxu1 %v6621_v2  ;;  %351 = vst [vmem:[#allocation2 + $0x10] sm:$0xff] %v5466_v8  ;;  %352 = vst [vmem:[#allocation2 + $0x18] sm:$0xff] %v5467_v9  ;;  %v5474_v24 = vunpack.c.l.bf16 %v5681_v23  ;;  %v5475_v26 = vunpack.c.h.bf16 %v5681_v23  ;;  %v5522_v29 = vunpack.c.l.bf16 %v5693_v25  ;;  %v5478_v30 = vunpack.c.l.bf16 %v5682_v27  ;;  %v5695_v40 = vld [vmem:[%s6762_s29 + $0x88] sm:$0xff]   ;;  %v5684_v41 = vld [vmem:[%s6762_s29 + $0x30] sm:$0xff]  }
  0x16   : > { %6020 = vmatprep.subr.bf16.mxu0 %v6622_v3  ;;  %6593 = vmatprep.subr.bf16.mxu1 %v6622_v3  ;;  %373 = vst [vmem:[#allocation2 + $0xc0] sm:$0xff] %v5510_v12  ;;  %374 = vst [vmem:[#allocation2 + $0xc8] sm:$0xff] %v5511_v15  ;;  %v5523_v31 = vunpack.c.h.bf16 %v5693_v25  ;;  %v5526_v32 = vunpack.c.l.bf16 %v5694_v28  ;;  %v5479_v34 = vunpack.c.h.bf16 %v5682_v27  ;;  %v5527_v35 = vunpack.c.h.bf16 %v5694_v28  ;;  %v5696_v52 = vld [vmem:[%s6762_s29 + $0x90] sm:$0xff]   ;;  %v5685_v62 = vld [vmem:[%s6762_s29 + $0x38] sm:$0xff]  }
  0x17   : > { %375 = vst [vmem:[#allocation2 + $0xd0] sm:$0xff] %v5514_v16  ;;  %376 = vst [vmem:[#allocation2 + $0xd8] sm:$0xff] %v5515_v17  ;;  %v5482_v45 = vunpack.c.l.bf16 %v5683_v39  ;;  %v5530_v46 = vunpack.c.l.bf16 %v5695_v40  ;;  %v5483_v47 = vunpack.c.h.bf16 %v5683_v39  ;;  %v5486_v48 = vunpack.c.l.bf16 %v5684_v41  ;;  %v5697_v63 = vld [vmem:[%s6762_s29 + $0x98] sm:$0xff]   ;;  %v5698_v5 = vld [vmem:[%s6762_s29 + $0xa0] sm:$0xff]  }
  0x18   : > { %353 = vst [vmem:[#allocation2 + $0x20] sm:$0xff] %v5470_v18  ;;  %377 = vst [vmem:[#allocation2 + $0xe0] sm:$0xff] %v5518_v20  ;;  %v5531_v50 = vunpack.c.h.bf16 %v5695_v40  ;;  %v5487_v51 = vunpack.c.h.bf16 %v5684_v41  ;;  %v5534_v53 = vunpack.c.l.bf16 %v5696_v52  ;;  %v5535_v54 = vunpack.c.h.bf16 %v5696_v52  ;;  %v6629_v16 = vld [vmem:[%s8908_s1 + $0x30] sm:$0xff]   ;;  %v6632_v25 = vld [vmem:[%s8908_s1 + $0xa8] sm:$0xff]  }
  0x19   : > { %354 = vst [vmem:[#allocation2 + $0x28] sm:$0xff] %v5471_v21  ;;  %378 = vst [vmem:[#allocation2 + $0xe8] sm:$0xff] %v5519_v22  ;;  %6021 = vmatpush3.bf16.msra.mxu0 %v6622_v3  ;;  %6601 = vmatpush3.bf16.msra.mxu1 %v6622_v3  ;;  %v5490_v0 = vunpack.c.l.bf16 %v5685_v62  ;;  %v5538_v1 = vunpack.c.l.bf16 %v5697_v63  ;;  %v5491_v2 = vunpack.c.h.bf16 %v5685_v62  ;;  %v5686_v3 = vld [vmem:[%s6762_s29 + $0x40] sm:$0xff]   ;;  %v5539_v4 = vunpack.c.h.bf16 %v5697_v63  ;;  %v6630_v18 = vld [vmem:[%s8908_s1 + $0xb0] sm:$0xff]  }
  0x1a   : > { %6022 = vmatprep.subr.bf16.mxu0 %v6623_v19  ;;  %6594 = vmatprep.subr.bf16.mxu1 %v6623_v19  ;;  %355 = vst [vmem:[#allocation2 + $0x30] sm:$0xff] %v5474_v24  ;;  %356 = vst [vmem:[#allocation2 + $0x38] sm:$0xff] %v5475_v26  ;;  %v5494_v8 = vunpack.c.l.bf16 %v5686_v3  ;;  %v5542_v9 = vunpack.c.l.bf16 %v5698_v5  ;;  %v5495_v10 = vunpack.c.h.bf16 %v5686_v3  ;;  %v5543_v11 = vunpack.c.h.bf16 %v5698_v5  ;;  %v6631_v24 = vld [vmem:[%s8908_s1 + $0x28] sm:$0xff]   ;;  %v5701_v52 = vld [vmem:[%s6762_s29 + $0xb8] sm:$0xff]  }
  0x1b   : > { %379 = vst [vmem:[#allocation2 + $0xf0] sm:$0xff] %v5522_v29  ;;  %357 = vst [vmem:[#allocation2 + $0x40] sm:$0xff] %v5478_v30  ;;  %v489_v36 = vld [vmem:[#allocation2 + $0x6] sm:$0xff]  ;;  %v6636_v63 = vld [vmem:[%s8908_s1 + $0x98] sm:$0xff]  }
  0x1c   : > { %380 = vst [vmem:[#allocation2 + $0xf8] sm:$0xff] %v5523_v31  ;;  %381 = vst [vmem:[#allocation2 + $0x100] sm:$0xff] %v5526_v32  ;;  %v490_v37 = vld [vmem:[#allocation2 + $0xe] sm:$0xff]  ;;  %v491_v56 = vld [vmem:[#allocation2 + $0x16] sm:$0xff] }
  0x1d   : > { %358 = vst [vmem:[#allocation2 + $0x48] sm:$0xff] %v5479_v34  ;;  %382 = vst [vmem:[#allocation2 + $0x108] sm:$0xff] %v5527_v35  ;;  %6023 = vmatpush3.bf16.msra.mxu0 %v6623_v19  ;;  %6602 = vmatpush3.bf16.msra.mxu1 %v6623_v19  ;;  %v536_v38 = vpack.c.bf16 %v490_v37, %v489_v36  ;;  %v513_v43 = vld [vmem:[#allocation2 + $0xc6] sm:$0xff]  ;;  %v5688_v32 = vld [vmem:[%s6762_s29 + $0x50] sm:$0xff]  }
  0x1e   : > { %6024 = vmatprep.subr.bf16.mxu0 %v6624_v33  ;;  %6595 = vmatprep.subr.bf16.mxu1 %v6624_v33  ;;  %v514_v44 = vld [vmem:[#allocation2 + $0xce] sm:$0xff]  ;;  %359 = vst [vmem:[#allocation2 + $0x50] sm:$0xff] %v5482_v45  ;;  %383 = vst [vmem:[#allocation2 + $0x110] sm:$0xff] %v5530_v46  ;;  %v515_v58 = vld [vmem:[#allocation2 + $0xd6] sm:$0xff]  ;;  %v5502_v36 = vunpack.c.l.bf16 %v5688_v32 }
  0x1f   : > { %6030 = vmatprep.mubr.bf16.mxu0 %v536_v38  ;;  %v548_v49 = vpack.c.bf16 %v514_v44, %v513_v43  ;;  %360 = vst [vmem:[#allocation2 + $0x58] sm:$0xff] %v5483_v47  ;;  %361 = vst [vmem:[#allocation2 + $0x60] sm:$0xff] %v5486_v48  ;;  %v492_v57 = vld [vmem:[#allocation2 + $0x1e] sm:$0xff]  ;;  %v5687_v27 = vld [vmem:[%s6762_s29 + $0x48] sm:$0xff]   ;;  %v5503_v38 = vunpack.c.h.bf16 %v5688_v32 }
  0x20   : > { %384 = vst [vmem:[#allocation2 + $0x118] sm:$0xff] %v5531_v50  ;;  %362 = vst [vmem:[#allocation2 + $0x68] sm:$0xff] %v5487_v51  ;;  %v516_v61 = vld [vmem:[#allocation2 + $0xde] sm:$0xff]  ;;  %v493_v6 = vld [vmem:[#allocation2 + $0x26] sm:$0xff]  ;;  %v537_v12 = vpack.c.bf16 %v492_v57, %v491_v56  ;;  %v5498_v29 = vunpack.c.l.bf16 %v5687_v27  ;;  %v5499_v31 = vunpack.c.h.bf16 %v5687_v27  ;;  %v5554_v56 = vunpack.c.l.bf16 %v5701_v52 }
  0x21   : > { %6025 = vmatpush3.bf16.msra.mxu0 %v6624_v33  ;;  %6603 = vmatpush3.bf16.msra.mxu1 %v6624_v33  ;;  %385 = vst [vmem:[#allocation2 + $0x120] sm:$0xff] %v5534_v53  ;;  %386 = vst [vmem:[#allocation2 + $0x128] sm:$0xff] %v5535_v54  ;;  %v494_v7 = vld [vmem:[#allocation2 + $0x2e] sm:$0xff]  ;;  %v549_v13 = vpack.c.bf16 %v516_v61, %v515_v58  ;;  %v517_v14 = vld [vmem:[#allocation2 + $0xe6] sm:$0xff]  ;;  %v5555_v58 = vunpack.c.h.bf16 %v5701_v52 }
  0x22   : > { %6026 = vmatprep.subr.bf16.mxu0 %v6625_v42  ;;  %6596 = vmatprep.subr.bf16.mxu1 %v6625_v42  ;;  %v518_v15 = vld [vmem:[#allocation2 + $0xee] sm:$0xff]  ;;  %363 = vst [vmem:[#allocation2 + $0x70] sm:$0xff] %v5490_v0  ;;  %387 = vst [vmem:[#allocation2 + $0x130] sm:$0xff] %v5538_v1  ;;  %v538_v17 = vpack.c.bf16 %v494_v7, %v493_v6  ;;  %v495_v20 = vld [vmem:[#allocation2 + $0x36] sm:$0xff] }
  0x23   : > { %6054 = vmatprep.mubr.bf16.mxu1 %v548_v49  ;;  %364 = vst [vmem:[#allocation2 + $0x78] sm:$0xff] %v5491_v2  ;;  %388 = vst [vmem:[#allocation2 + $0x138] sm:$0xff] %v5539_v4  ;;  %v550_v19 = vpack.c.bf16 %v518_v15, %v517_v14  ;;  %v496_v21 = vld [vmem:[#allocation2 + $0x3e] sm:$0xff]  ;;  %v519_v22 = vld [vmem:[#allocation2 + $0xf6] sm:$0xff] }
  0x24   : > { %365 = vst [vmem:[#allocation2 + $0x80] sm:$0xff] %v5494_v8  ;;  %389 = vst [vmem:[#allocation2 + $0x140] sm:$0xff] %v5542_v9  ;;  %v520_v23 = vld [vmem:[#allocation2 + $0xfe] sm:$0xff]  ;;  %v497_v26 = vld [vmem:[#allocation2 + $0x46] sm:$0xff] }
  0x25   : > { %6027 = vmatpush3.bf16.msra.mxu0 %v6625_v42  ;;  %6604 = vmatpush3.bf16.msra.mxu1 %v6625_v42  ;;  %366 = vst [vmem:[#allocation2 + $0x88] sm:$0xff] %v5495_v10  ;;  %390 = vst [vmem:[#allocation2 + $0x148] sm:$0xff] %v5543_v11  ;;  %v5699_v28 = vld [vmem:[%s6762_s29 + $0xa8] sm:$0xff]   ;;  %v5700_v34 = vld [vmem:[%s6762_s29 + $0xb0] sm:$0xff]   ;;  %v539_v42 = vpack.c.bf16 %v496_v21, %v495_v20  ;;  %v551_v43 = vpack.c.bf16 %v520_v23, %v519_v22 }
  0x26   : > { %6028 = vmatprep.subr.bf16.mxu0 %v6626_v55  ;;  %6597 = vmatprep.subr.bf16.mxu1 %v6626_v55  ;;  %v5546_v30 = vunpack.c.l.bf16 %v5699_v28  ;;  %v5547_v33 = vunpack.c.h.bf16 %v5699_v28  ;;  %v498_v35 = vld [vmem:[#allocation2 + $0x4e] sm:$0xff]  ;;  %v5550_v37 = vunpack.c.l.bf16 %v5700_v34  ;;  %v5551_v39 = vunpack.c.h.bf16 %v5700_v34  ;;  %v521_v40 = vld [vmem:[#allocation2 + $0x106] sm:$0xff]  ;;  %367 = vst [vmem:[#allocation2 + $0x90] sm:$0xff] %v5498_v29  ;;  %368 = vst [vmem:[#allocation2 + $0x98] sm:$0xff] %v5499_v31 }
  0x27   : > { %v522_v41 = vld [vmem:[#allocation2 + $0x10e] sm:$0xff]  ;;  %369 = vst [vmem:[#allocation2 + $0xa0] sm:$0xff] %v5502_v36  ;;  %370 = vst [vmem:[#allocation2 + $0xa8] sm:$0xff] %v5503_v38  ;;  %v540_v44 = vpack.c.bf16 %v498_v35, %v497_v26  ;;  %v6633_v45 = vld [vmem:[%s8908_s1 + $0x20] sm:$0xff]  }
  0x28   : > { %391 = vst [vmem:[#allocation2 + $0x150] sm:$0xff] %v5546_v30  ;;  %392 = vst [vmem:[#allocation2 + $0x158] sm:$0xff] %v5547_v33  ;;  %v552_v46 = vpack.c.bf16 %v522_v41, %v521_v40  ;;  %v6634_v47 = vld [vmem:[%s8908_s1 + $0xa0] sm:$0xff]   ;;  %v499_v48 = vld [vmem:[#allocation2 + $0x56] sm:$0xff] }
  0x29   : > { %6029 = vmatpush3.bf16.msra.mxu0 %v6626_v55  ;;  %6605 = vmatpush3.bf16.msra.mxu1 %v6626_v55  ;;  %393 = vst [vmem:[#allocation2 + $0x160] sm:$0xff] %v5550_v37  ;;  %394 = vst [vmem:[#allocation2 + $0x168] sm:$0xff] %v5551_v39  ;;  %v500_v49 = vld [vmem:[#allocation2 + $0x5e] sm:$0xff]  ;;  %v523_v50 = vld [vmem:[#allocation2 + $0x116] sm:$0xff] }
  0x2a   : > { %6078 = vmatprep.subr.bf16.mxu1 %v6627_v59  ;;  %6142 = vmatprep.subr.bf16.mxu0 %v6628_v60  ;;  %v6826_v51 = vld [vmem:[%s6762_s29 + $0x58] sm:$0xff]   ;;  %v501_v53 = vld [vmem:[#allocation2 + $0x66] sm:$0xff]  ;;  %v526_v62 = vld [vmem:[#allocation2 + $0x12e] sm:$0xff]  ;;  %395 = vst [vmem:[#allocation2 + $0x170] sm:$0xff] %v5554_v56  ;;  %v541_v0 = vpack.c.bf16 %v500_v49, %v499_v48 }
  0x2b   : > { %v6635_v54 = vld [vmem:[%s8908_s1 + $0x18] sm:$0xff]   ;;  %v5506_v55 = vunpack.c.l.bf16 %v6826_v51  ;;  %v5507_v57 = vunpack.c.h.bf16 %v6826_v51  ;;  %v525_v61 = vld [vmem:[#allocation2 + $0x126] sm:$0xff]  ;;  %396 = vst [vmem:[#allocation2 + $0x178] sm:$0xff] %v5555_v58  ;;  %v6637_v4 = vld [vmem:[%s8908_s1 + $0x10] sm:$0xff]  }
  0x2c   : > { %6031 = vmatmul.mubr.bf16.vlgmr.msra.gmra.mxu0 %v537_v12  ;;  %6055 = vmatmul.mubr.bf16.vlgmr.msra.gmra.mxu1 %v549_v13  ;;  %v554_v3 = vpack.c.bf16 %v526_v62, %v525_v61  ;;  %v6638_v5 = vld [vmem:[%s8908_s1 + $0x90] sm:$0xff]   ;;  %v504_v7 = vld [vmem:[#allocation2 + $0x7e] sm:$0xff]  ;;  %v505_v10 = vld [vmem:[#allocation2 + $0x86] sm:$0xff] }
  0x2d   : > { %6079 = vmatpush3.bf16.msra.mxu1 %v6627_v59  ;;  %6143 = vmatpush3.bf16.msra.mxu0 %v6628_v60  ;;  %v524_v59 = vld [vmem:[#allocation2 + $0x11e] sm:$0xff]  ;;  %v502_v60 = vld [vmem:[#allocation2 + $0x6e] sm:$0xff]  ;;  %371 = vst [vmem:[#allocation2 + $0xb0] sm:$0xff] %v5506_v55  ;;  %372 = vst [vmem:[#allocation2 + $0xb8] sm:$0xff] %v5507_v57 }
  0x2e   : > { %6080 = vmatprep.subr.bf16.mxu1 %v6629_v16  ;;  %6034 = vmatprep.mubr.bf16.mxu0 %v538_v17  ;;  %v553_v1 = vpack.c.bf16 %v524_v59, %v523_v50  ;;  %v542_v2 = vpack.c.bf16 %v502_v60, %v501_v53  ;;  %v503_v6 = vld [vmem:[#allocation2 + $0x76] sm:$0xff]  ;;  %v528_v9 = vld [vmem:[#allocation2 + $0x13e] sm:$0xff]  ;;  %v506_v11 = vld [vmem:[#allocation2 + $0x8e] sm:$0xff] }
  0x2f   : > { %6058 = vmatprep.mubr.bf16.mxu1 %v550_v19  ;;  %6144 = vmatprep.subr.bf16.mxu0 %v6630_v18  ;;  %v527_v8 = vld [vmem:[#allocation2 + $0x136] sm:$0xff]  ;;  %v529_v12 = vld [vmem:[#allocation2 + $0x146] sm:$0xff]  ;;  %v530_v13 = vld [vmem:[#allocation2 + $0x14e] sm:$0xff] }
  0x30   : > { %v6639_v14 = vld [vmem:[%s8908_s1 + $0x8] sm:$0xff]   ;;  %v555_v17 = vpack.c.bf16 %v528_v9, %v527_v8  ;;  %v556_v19 = vpack.c.bf16 %v530_v13, %v529_v12  ;;  %v6641_v20 = vld [vmem:[%s8908_s1] sm:$0xff]   ;;  %v507_v22 = vld [vmem:[#allocation2 + $0x96] sm:$0xff] }
  0x31   : > { %6081 = vmatpush3.bf16.msra.mxu1 %v6629_v16  ;;  %6145 = vmatpush3.bf16.msra.mxu0 %v6630_v18  ;;  %v6640_v15 = vld [vmem:[%s8908_s1 + $0x88] sm:$0xff]   ;;  %v543_v16 = vpack.c.bf16 %v504_v7, %v503_v6  ;;  %v544_v18 = vpack.c.bf16 %v506_v11, %v505_v10  ;;  %v6642_v21 = vld [vmem:[%s8908_s1 + $0x80] sm:$0xff]   ;;  %v6643_v30 = vld [vmem:[%s8908_s1 + $0xf8] sm:$0xff]  }
  0x32   : > { %6082 = vmatprep.subr.bf16.mxu1 %v6631_v24  ;;  %6146 = vmatprep.subr.bf16.mxu0 %v6632_v25  ;;  %v508_v23 = vld [vmem:[#allocation2 + $0x9e] sm:$0xff]  ;;  %v509_v26 = vld [vmem:[#allocation2 + $0xa6] sm:$0xff]  ;;  %v534_v29 = vld [vmem:[#allocation2 + $0x16e] sm:$0xff] }
  0x33   : > { %v533_v28 = vld [vmem:[#allocation2 + $0x166] sm:$0xff]  ;;  %v6644_v31 = vld [vmem:[%s8908_s1 + $0x138] sm:$0xff]   ;;  %v545_v32 = vpack.c.bf16 %v508_v23, %v507_v22  ;;  %v1126_v55 = vld [vmem:[#allocation2 + $0x2f] sm:$0xff] }
  0x34   : > { %6035 = vmatmul.mubr.bf16.gmra.mxu0 %v539_v42  ;;  %6059 = vmatmul.mubr.bf16.gmra.mxu1 %v551_v43  ;;  %v510_v27 = vld [vmem:[#allocation2 + $0xae] sm:$0xff]  ;;  %v558_v35 = vpack.c.bf16 %v534_v29, %v533_v28  ;;  %v511_v36 = vld [vmem:[#allocation2 + $0xb6] sm:$0xff]  ;;  %v402_v37 = vld [vmem:[#allocation2 + $0x5] sm:$0xff] }
  0x35   : > { %6083 = vmatpush3.bf16.msra.mxu1 %v6631_v24  ;;  %6038 = vmatprep.mubr.bf16.mxu0 %v540_v44  ;;  %v531_v24 = vld [vmem:[#allocation2 + $0x156] sm:$0xff]  ;;  %v546_v34 = vpack.c.bf16 %v510_v27, %v509_v26  ;;  %v403_v38 = vld [vmem:[#allocation2 + $0xd] sm:$0xff]  ;;  %v512_v40 = vld [vmem:[#allocation2 + $0xbe] sm:$0xff] }
  0x36   : > { %6062 = vmatprep.mubr.bf16.mxu1 %v552_v46  ;;  %6147 = vmatpush3.bf16.msra.mxu0 %v6632_v25  ;;  %v532_v25 = vld [vmem:[#allocation2 + $0x15e] sm:$0xff]  ;;  %v1121_v39 = vld [vmem:[#allocation2 + $0x7] sm:$0xff]  ;;  %v535_v41 = vld [vmem:[#allocation2 + $0x176] sm:$0xf]  ;;  %v547_v43 = vpack.c.bf16 %v512_v40, %v511_v36 }
  0x37   : > { %6084 = vmatprep.subr.bf16.mxu1 %v6633_v45  ;;  %6148 = vmatprep.subr.bf16.mxu0 %v6634_v47  ;;  %v557_v33 = vpack.c.bf16 %v532_v25, %v531_v24  ;;  %v1122_v42 = vld [vmem:[#allocation2 + $0xf] sm:$0xff]  ;;  %v559_v44 = vpack.c.bf16 %v535_v41, %v535_v41  ;;  %v405_v48 = vld [vmem:[#allocation2 + $0x1d] sm:$0xff]  ;;  %v406_v52 = vld [vmem:[#allocation2 + $0x25] sm:$0xff] }
  0x38   : > { %v1168_v46 = vpack.c.bf16 %v1122_v42, %v1121_v39  ;;  %v1123_v49 = vld [vmem:[#allocation2 + $0x17] sm:$0xff]  ;;  %v1124_v50 = vld [vmem:[#allocation2 + $0x1f] sm:$0xff]  ;;  %v407_v53 = vld [vmem:[#allocation2 + $0x2d] sm:$0xff] }
  0x39   : > { %6085 = vmatpush3.bf16.msra.mxu1 %v6633_v45  ;;  %v449_v45 = vpack.c.bf16 %v403_v38, %v402_v37  ;;  %v6863_v58 = vpack.c.bf16 %v1124_v50, %v1123_v49  ;;  %v451_v59 = vpack.c.bf16 %v407_v53, %v406_v52  ;;  %v408_v61 = vld [vmem:[#allocation2 + $0x35] sm:$0xff]  ;;  %v6647_v7 = vld [vmem:[%s8908_s1 + $0xe8] sm:$0xff]   ;;  %v6658_v49 = vld [vmem:[%s8908_s1 + $0x100] sm:$0xff]  }
  0x3a   : > { %6149 = vmatpush3.bf16.msra.mxu0 %v6634_v47  ;;  %6086 = vmatprep.subr.bf16.mxu1 %v6635_v54  ;;  %v404_v47 = vld [vmem:[#allocation2 + $0x15] sm:$0xff]  ;;  %v6648_v8 = vld [vmem:[%s8908_s1 + $0x128] sm:$0xff]   ;;  %v1140_v50 = vld [vmem:[#allocation2 + $0x9f] sm:$0xff] }
  0x3b   : > { %6150 = vmatprep.subr.bf16.mxu0 %v6636_v63  ;;  %v450_v56 = vpack.c.bf16 %v405_v48, %v404_v47  ;;  %v6645_v62 = vld [vmem:[%s8908_s1 + $0xf0] sm:$0xff]   ;;  %v6651_v23 = vld [vmem:[%s8908_s1 + $0xd8] sm:$0xff]   ;;  %v1137_v37 = vld [vmem:[#allocation2 + $0x87] sm:$0xff] }
  0x3c   : > { %6039 = vmatmul.mubr.bf16.gmra.mxu0 %v541_v0  ;;  %6063 = vmatmul.mubr.bf16.gmra.mxu1 %v553_v1  ;;  %v409_v0 = vld [vmem:[#allocation2 + $0x3d] sm:$0xff]  ;;  %v1130_v6 = vld [vmem:[#allocation2 + $0x4f] sm:$0xff]  ;;  %v422_v52 = vld [vmem:[#allocation2 + $0xa5] sm:$0xff] }
  0x3d   : > { %6042 = vmatprep.mubr.bf16.mxu0 %v542_v2  ;;  %6066 = vmatprep.mubr.bf16.mxu1 %v554_v3  ;;  %v1127_v1 = vld [vmem:[#allocation2 + $0x37] sm:$0xff]  ;;  %v1128_v2 = vld [vmem:[#allocation2 + $0x3f] sm:$0xff]  ;;  %v452_v9 = vpack.c.bf16 %v409_v0, %v408_v61  ;;  %v1134_v22 = vld [vmem:[#allocation2 + $0x6f] sm:$0xff] }
  0x3e   : > { %6087 = vmatpush3.bf16.msra.mxu1 %v6635_v54  ;;  %6151 = vmatpush3.bf16.msra.mxu0 %v6636_v63  ;;  %v1125_v54 = vld [vmem:[#allocation2 + $0x27] sm:$0xff]  ;;  %v6646_v63 = vld [vmem:[%s8908_s1 + $0x130] sm:$0xff]   ;;  %v6881_v10 = vpack.c.bf16 %v1128_v2, %v1127_v1  ;;  %v6652_v24 = vld [vmem:[%s8908_s1 + $0x118] sm:$0xff]  }
  0x3f   : > { %6088 = vmatprep.subr.bf16.mxu1 %v6637_v4  ;;  %6152 = vmatprep.subr.bf16.mxu0 %v6638_v5  ;;  %v6865_v60 = vpack.c.bf16 %v1126_v55, %v1125_v54  ;;  %v410_v3 = vld [vmem:[#allocation2 + $0x45] sm:$0xff]  ;;  %v412_v13 = vld [vmem:[#allocation2 + $0x55] sm:$0xff]  ;;  %v419_v36 = vld [vmem:[#allocation2 + $0x8d] sm:$0xff] }
  0x40   : > { %v6653_v29 = vld [vmem:[%s8908_s1 + $0xd0] sm:$0xff]   ;;  %v6655_v39 = vld [vmem:[%s8908_s1 + $0xc8] sm:$0xff]   ;;  %v6657_v48 = vld [vmem:[%s8908_s1 + $0xc0] sm:$0xff]  }
  0x41   : > { %v1138_v38 = vld [vmem:[#allocation2 + $0x8f] sm:$0xff]  ;;  %v1139_v47 = vld [vmem:[#allocation2 + $0x97] sm:$0xff]  ;;  %v1141_v54 = vld [vmem:[#allocation2 + $0xa7] sm:$0xff] }
  0x42   : > { %6089 = vmatpush3.bf16.msra.mxu1 %v6637_v4  ;;  %6153 = vmatpush3.bf16.msra.mxu0 %v6638_v5  ;;  %v411_v4 = vld [vmem:[#allocation2 + $0x4d] sm:$0xff]  ;;  %v424_v1 = vld [vmem:[#allocation2 + $0xb5] sm:$0xff]  ;;  %v425_v2 = vld [vmem:[#allocation2 + $0xbd] sm:$0xff] }
  0x43   : > { %6090 = vmatprep.subr.bf16.mxu1 %v6639_v14  ;;  %6154 = vmatprep.subr.bf16.mxu0 %v6640_v15  ;;  %v1129_v5 = vld [vmem:[#allocation2 + $0x47] sm:$0xff]  ;;  %v453_v11 = vpack.c.bf16 %v411_v4, %v410_v3  ;;  %v1142_v55 = vld [vmem:[#allocation2 + $0xaf] sm:$0xff]  ;;  %v1143_v3 = vld [vmem:[#allocation2 + $0xb7] sm:$0xff] }
  0x44   : > { %6043 = vmatmul.mubr.bf16.gmra.mxu0 %v543_v16  ;;  %6067 = vmatmul.mubr.bf16.gmra.mxu1 %v555_v17  ;;  %v6883_v12 = vpack.c.bf16 %v1130_v6, %v1129_v5  ;;  %v6650_v16 = vld [vmem:[%s8908_s1 + $0x120] sm:$0xff]   ;;  %v1131_v17 = vld [vmem:[#allocation2 + $0x57] sm:$0xff]  ;;  %v6656_v40 = vld [vmem:[%s8908_s1 + $0x108] sm:$0xff]   ;;  %v6941_v0 = vpack.c.bf16 %v1142_v55, %v1141_v54 }
  0x45   : > { %6046 = vmatprep.mubr.bf16.mxu0 %v544_v18  ;;  %6070 = vmatprep.mubr.bf16.mxu1 %v556_v19  ;;  %v1132_v18 = vld [vmem:[#allocation2 + $0x5f] sm:$0xff]  ;;  %v423_v53 = vld [vmem:[#allocation2 + $0xad] sm:$0xff] }
  0x46   : > { %6091 = vmatpush3.bf16.msra.mxu1 %v6639_v14  ;;  %6155 = vmatpush3.bf16.msra.mxu0 %v6640_v15  ;;  %v413_v14 = vld [vmem:[#allocation2 + $0x5d] sm:$0xff]  ;;  %v414_v19 = vld [vmem:[#allocation2 + $0x65] sm:$0xff]  ;;  %v6899_v26 = vpack.c.bf16 %v1132_v18, %v1131_v17  ;;  %v427_v6 = vld [vmem:[#allocation2 + $0xcd] sm:$0xff] }
  0x47   : > { %6092 = vmatprep.subr.bf16.mxu1 %v6641_v20  ;;  %6156 = vmatprep.subr.bf16.mxu0 %v6642_v21  ;;  %v6649_v15 = vld [vmem:[%s8908_s1 + $0xe0] sm:$0xff]   ;;  %v454_v25 = vpack.c.bf16 %v413_v14, %v412_v13  ;;  %v1147_v17 = vld [vmem:[#allocation2 + $0xd7] sm:$0xff]  ;;  %v1158_v54 = vld [vmem:[#allocation2 + $0x12f] sm:$0xff] }
  0x48   : > { %v1144_v4 = vld [vmem:[#allocation2 + $0xbf] sm:$0xff] }
  0x49   : > { %v426_v5 = vld [vmem:[#allocation2 + $0xc5] sm:$0xff] }
  0x4a   : > { %6093 = vmatpush3.bf16.msra.mxu1 %v6641_v20  ;;  %6157 = vmatpush3.bf16.msra.mxu0 %v6642_v21  ;;  %v415_v20 = vld [vmem:[#allocation2 + $0x6d] sm:$0xff]  ;;  %v461_v13 = vpack.c.bf16 %v427_v6, %v426_v5  ;;  %v1148_v18 = vld [vmem:[#allocation2 + $0xdf] sm:$0xff] }
  0x4b   : > { %6206 = vmatprep.subr.bf16.mxu1 %v6643_v30  ;;  %6270 = vmatprep.subr.bf16.mxu0 %v6644_v31  ;;  %v1133_v21 = vld [vmem:[#allocation2 + $0x67] sm:$0xff]  ;;  %v455_v27 = vpack.c.bf16 %v415_v20, %v414_v19  ;;  %v1160_v5 = vld [vmem:[#allocation2 + $0x13f] sm:$0xff] }
  0x4c   : > { %6047 = vmatmul.mubr.bf16.gmra.mxu0 %v545_v32  ;;  %6071 = vmatmul.mubr.bf16.gmra.mxu1 %v557_v33  ;;  %v6901_v28 = vpack.c.bf16 %v1134_v22, %v1133_v21  ;;  %v1135_v32 = vld [vmem:[#allocation2 + $0x77] sm:$0xff]  ;;  %v1136_v33 = vld [vmem:[#allocation2 + $0x7f] sm:$0xff]  ;;  %v431_v20 = vld [vmem:[#allocation2 + $0xed] sm:$0xff] }
  0x4d   : > { %6050 = vmatprep.mubr.bf16.mxu0 %v546_v34  ;;  %6074 = vmatprep.mubr.bf16.mxu1 %v558_v35  ;;  %v6654_v34 = vld [vmem:[%s8908_s1 + $0x110] sm:$0xff]   ;;  %v418_v35 = vld [vmem:[#allocation2 + $0x85] sm:$0xff]  ;;  %v6917_v42 = vpack.c.bf16 %v1136_v33, %v1135_v32  ;;  %v433_v33 = vld [vmem:[#allocation2 + $0xfd] sm:$0xff] }
  0x4e   : > { %v430_v19 = vld [vmem:[#allocation2 + $0xe5] sm:$0xff]  ;;  %v1150_v22 = vld [vmem:[#allocation2 + $0xef] sm:$0xff] }
  0x4f   : > { %v1149_v21 = vld [vmem:[#allocation2 + $0xe7] sm:$0xff]  ;;  %v432_v32 = vld [vmem:[#allocation2 + $0xf5] sm:$0xff] }
  0x50   : > { %v442_v6 = vld [vmem:[#allocation2 + $0x145] sm:$0xff] }
  0x54   : > { %6051 = vmatmul.mubr.bf16.gmra.mxu0 %v547_v43  ;;  %6075 = vmatmul.mubr.bf16.gmra.mxu1 %v559_v44  ;;  %v457_v43 = vpack.c.bf16 %v419_v36, %v418_v35  ;;  %v6919_v44 = vpack.c.bf16 %v1138_v38, %v1137_v37  ;;  %v1152_v35 = vld [vmem:[#allocation2 + $0xff] sm:$0xff]  ;;  %v435_v37 = vld [vmem:[#allocation2 + $0x10d] sm:$0xff] }
  0x55   : > { %6094 = vmatprep.mubr.bf16.mxu1 %v449_v45  ;;  %6158 = vmatprep.mubr.bf16.mxu0 %v1168_v46  ;;  %v420_v45 = vld [vmem:[#allocation2 + $0x95] sm:$0xff]  ;;  %v421_v46 = vld [vmem:[#allocation2 + $0x9d] sm:$0xff]  ;;  %v434_v36 = vld [vmem:[#allocation2 + $0x105] sm:$0xff] }
  0x56   : > { %v458_v61 = vpack.c.bf16 %v421_v46, %v420_v45  ;;  %v1153_v38 = vld [vmem:[#allocation2 + $0x107] sm:$0xff]  ;;  %v436_v46 = vld [vmem:[#allocation2 + $0x115] sm:$0xff] }
  0x5c   : > { %6095 = vmatmul.mubr.bf16.vlgmr.msra.gmra.mxu1 %v450_v56  ;;  %6159 = vmatmul.mubr.bf16.vlgmr.msra.gmra.mxu0 %v6863_v58  ;;  %v6932_v56 = vld [vmem:[%s8908_s1 + $0x178] sm:$0xff]  }
  0x5d   : > { %6207 = vmatpush3.bf16.msra.mxu1 %v6643_v30  ;;  %6271 = vmatpush3.bf16.msra.mxu0 %v6644_v31  ;;  %v416_v30 = vld [vmem:[#allocation2 + $0x75] sm:$0xff]  ;;  %v417_v31 = vld [vmem:[#allocation2 + $0x7d] sm:$0xff] }
  0x5e   : > { %6098 = vmatprep.mubr.bf16.mxu1 %v451_v59  ;;  %6162 = vmatprep.mubr.bf16.mxu0 %v6865_v60  ;;  %v456_v41 = vpack.c.bf16 %v417_v31, %v416_v30  ;;  %v6937_v59 = vld [vmem:[%s8908_s1 + $0x1b8] sm:$0xff]   ;;  %v463_v30 = vpack.c.bf16 %v431_v20, %v430_v19  ;;  %v6960_v31 = vpack.c.bf16 %v1150_v22, %v1149_v21  ;;  %v446_v22 = vld [vmem:[#allocation2 + $0x165] sm:$0xff] }
  0x5f   : > { %6208 = vmatprep.subr.bf16.mxu1 %v6645_v62  ;;  %6272 = vmatprep.subr.bf16.mxu0 %v6646_v63  ;;  %v445_v19 = vld [vmem:[#allocation2 + $0x15d] sm:$0xff] }
  0x60   : > { %v1163_v20 = vld [vmem:[#allocation2 + $0x157] sm:$0xff]  ;;  %v1164_v21 = vld [vmem:[#allocation2 + $0x15f] sm:$0xff] }
  0x61   : > { %6209 = vmatpush3.bf16.msra.mxu1 %v6645_v62  ;;  %6273 = vmatpush3.bf16.msra.mxu0 %v6646_v63  ;;  %v6939_v62 = vpack.c.bf16 %v1140_v50, %v1139_v47  ;;  %v459_v63 = vpack.c.bf16 %v423_v53, %v422_v52  ;;  %v437_v47 = vld [vmem:[#allocation2 + $0x11d] sm:$0xff]  ;;  %v438_v50 = vld [vmem:[#allocation2 + $0x125] sm:$0xff]  ;;  %v439_v52 = vld [vmem:[#allocation2 + $0x12d] sm:$0xff] }
  0x62   : > { %6210 = vmatprep.subr.bf16.mxu1 %v6647_v7  ;;  %6274 = vmatprep.subr.bf16.mxu0 %v6648_v8  ;;  %v1157_v53 = vld [vmem:[#allocation2 + $0x127] sm:$0xff]  ;;  %v466_v55 = vpack.c.bf16 %v437_v47, %v436_v46 }
  0x63   : > { %v1937_v47 = vld [vmem:[#allocation2 + $0x28] sm:$0xff] }
  0x64   : > { %6099 = vmatmul.mubr.bf16.gmra.mxu1 %v452_v9  ;;  %6163 = vmatmul.mubr.bf16.gmra.mxu0 %v6881_v10  ;;  %v460_v9 = vpack.c.bf16 %v425_v2, %v424_v1  ;;  %v6974_v1 = vpack.c.bf16 %v1158_v54, %v1157_v53  ;;  %v440_v2 = vld [vmem:[#allocation2 + $0x135] sm:$0xff] }
  0x65   : > { %6102 = vmatprep.mubr.bf16.mxu1 %v453_v11  ;;  %6166 = vmatprep.mubr.bf16.mxu0 %v6883_v12  ;;  %v6947_v11 = vpack.c.bf16 %v1144_v4, %v1143_v3  ;;  %v441_v3 = vld [vmem:[#allocation2 + $0x13d] sm:$0xff]  ;;  %v6662_v54 = vld [vmem:[%s8908_s1 + $0x170] sm:$0xff]  }
  0x66   : > { %6211 = vmatpush3.bf16.msra.mxu1 %v6647_v7  ;;  %6275 = vmatpush3.bf16.msra.mxu0 %v6648_v8  ;;  %v1145_v7 = vld [vmem:[#allocation2 + $0xc7] sm:$0xff]  ;;  %v1146_v8 = vld [vmem:[#allocation2 + $0xcf] sm:$0xff]  ;;  %v1159_v4 = vld [vmem:[#allocation2 + $0x137] sm:$0xff] }
  0x67   : > { %6212 = vmatprep.subr.bf16.mxu1 %v6649_v15  ;;  %6276 = vmatprep.subr.bf16.mxu0 %v6650_v16  ;;  %v6949_v14 = vpack.c.bf16 %v1146_v8, %v1145_v7  ;;  %v443_v7 = vld [vmem:[#allocation2 + $0x14d] sm:$0xff] }
  0x68   : > { %v1161_v8 = vld [vmem:[#allocation2 + $0x147] sm:$0xff] }
  0x6a   : > { %6213 = vmatpush3.bf16.msra.mxu1 %v6649_v15  ;;  %6277 = vmatpush3.bf16.msra.mxu0 %v6650_v16  ;;  %v428_v15 = vld [vmem:[#allocation2 + $0xd5] sm:$0xff]  ;;  %v429_v16 = vld [vmem:[#allocation2 + $0xdd] sm:$0xff] }
  0x6b   : > { %6214 = vmatprep.subr.bf16.mxu1 %v6651_v23  ;;  %6278 = vmatprep.subr.bf16.mxu0 %v6652_v24 }
  0x6c   : > { %6103 = vmatmul.mubr.bf16.gmra.mxu1 %v454_v25  ;;  %6167 = vmatmul.mubr.bf16.gmra.mxu0 %v6899_v26  ;;  %v462_v25 = vpack.c.bf16 %v429_v16, %v428_v15  ;;  %v6978_v15 = vpack.c.bf16 %v1160_v5, %v1159_v4  ;;  %v469_v16 = vpack.c.bf16 %v443_v7, %v442_v6  ;;  %v6665_v4 = vld [vmem:[%s6762_s29 + $0x34] ss:$4 sps:$4 sm:$0xff]   ;;  %v6666_v5 = vld [vmem:[%s6762_s29 + $0x3c] ss:$4 sps:$4 sm:$0xff]   ;;  %v6678_v6 = vld [vmem:[%s8908_s1 + $0x148] sm:$0xff]  }
  0x6d   : > { %6106 = vmatprep.mubr.bf16.mxu1 %v455_v27  ;;  %6170 = vmatprep.mubr.bf16.mxu0 %v6901_v28  ;;  %v6957_v27 = vpack.c.bf16 %v1148_v18, %v1147_v17  ;;  %v444_v18 = vld [vmem:[#allocation2 + $0x155] sm:$0xff]  ;;  %v6679_v7 = vld [vmem:[%s8908_s1 + $0x188] sm:$0xff]  }
  0x6e   : > { %6215 = vmatpush3.bf16.msra.mxu1 %v6651_v23  ;;  %6279 = vmatpush3.bf16.msra.mxu0 %v6652_v24  ;;  %v6954_v23 = vld [vmem:[%s6762_s29 + $0xc0] sm:$0xff]  }
  0x6f   : > { %6216 = vmatprep.subr.bf16.mxu1 %v6653_v29  ;;  %6280 = vmatprep.subr.bf16.mxu0 %v6654_v34  ;;  %v5558_v24 = vunpack.c.l.bf16 %v6954_v23 }
  0x71   : > { %397 = vst [vmem:[#allocation2 + $0x180] sm:$0xff] %v5558_v24 }
  0x72   : > { %6217 = vmatpush3.bf16.msra.mxu1 %v6653_v29  ;;  %6281 = vmatpush3.bf16.msra.mxu0 %v6654_v34  ;;  %v5559_v29 = vunpack.c.h.bf16 %v6954_v23  ;;  %v1151_v34 = vld [vmem:[#allocation2 + $0xf7] sm:$0xff]  ;;  %v4041_v23 = vld [vmem:[%s8911_s4 + $0x80] sm:$0xff] }
  0x73   : > { %6218 = vmatprep.subr.bf16.mxu1 %v6655_v39  ;;  %6282 = vmatprep.subr.bf16.mxu0 %v6656_v40 }
  0x74   : > { %6107 = vmatmul.mubr.bf16.gmra.mxu1 %v456_v41  ;;  %6171 = vmatmul.mubr.bf16.gmra.mxu0 %v6917_v42  ;;  %398 = vst [vmem:[#allocation2 + $0x188] sm:$0xff] %v5559_v29  ;;  %v6966_v41 = vpack.c.bf16 %v1152_v35, %v1151_v34  ;;  %v1165_v29 = vld [vmem:[#allocation2 + $0x167] sm:$0xff] }
  0x75   : > { %6110 = vmatprep.mubr.bf16.mxu1 %v457_v43  ;;  %6174 = vmatprep.mubr.bf16.mxu0 %v6919_v44  ;;  %v465_v43 = vpack.c.bf16 %v435_v37, %v434_v36  ;;  %v448_v36 = vld [vmem:[#allocation2 + $0x175] sm:$0xf] }
  0x76   : > { %6219 = vmatpush3.bf16.msra.mxu1 %v6655_v39  ;;  %6283 = vmatpush3.bf16.msra.mxu0 %v6656_v40  ;;  %v1154_v39 = vld [vmem:[#allocation2 + $0x10f] sm:$0xff]  ;;  %v464_v40 = vpack.c.bf16 %v433_v33, %v432_v32  ;;  %v470_v32 = vpack.c.bf16 %v445_v19, %v444_v18  ;;  %v6984_v33 = vpack.c.bf16 %v1164_v21, %v1163_v20  ;;  %v1167_v37 = vld [vmem:[#allocation2 + $0x177] sm:$0xf] }
  0x77   : > { %6220 = vmatprep.subr.bf16.mxu1 %v6657_v48  ;;  %6284 = vmatprep.subr.bf16.mxu0 %v6658_v49  ;;  %v6968_v45 = vpack.c.bf16 %v1154_v39, %v1153_v38  ;;  %v1935_v38 = vld [vmem:[#allocation2 + $0x18] sm:$0xff]  ;;  %v1936_v39 = vld [vmem:[#allocation2 + $0x20] sm:$0xff]  ;;  %v1957_v19 = vld [vmem:[#allocation2 + $0xc8] sm:$0xff] }
  0x78   : > { %v1982_v46 = vpack.c.bf16 %v1936_v39, %v1935_v38  ;;  %v7057_v18 = vld [vmem:[%s8908_s1 + $0x238] sm:$0xff]   ;;  %v1958_v20 = vld [vmem:[#allocation2 + $0xd0] sm:$0xff] }
  0x79   : > { %v1959_v21 = vld [vmem:[#allocation2 + $0xd8] sm:$0xff] }
  0x7a   : > { %6221 = vmatpush3.bf16.msra.mxu1 %v6657_v48  ;;  %6285 = vmatpush3.bf16.msra.mxu0 %v6658_v49  ;;  %v1155_v48 = vld [vmem:[#allocation2 + $0x117] sm:$0xff]  ;;  %v1156_v49 = vld [vmem:[#allocation2 + $0x11f] sm:$0xff] }
  0x7b   : > { %6334 = vmatprep.subr.bf16.mxu1 %v6932_v56  ;;  %6398 = vmatprep.subr.bf16.mxu0 %v6937_v59 }
  0x7c   : > { %6111 = vmatmul.mubr.bf16.gmra.mxu1 %v458_v61  ;;  %6175 = vmatmul.mubr.bf16.gmra.mxu0 %v6939_v62  ;;  %v6972_v61 = vpack.c.bf16 %v1156_v49, %v1155_v48  ;;  %v1938_v48 = vld [vmem:[#allocation2 + $0x30] sm:$0xff]  ;;  %v1939_v49 = vld [vmem:[#allocation2 + $0x38] sm:$0xff] }
  0x7d   : > { %6114 = vmatprep.mubr.bf16.mxu1 %v459_v63  ;;  %6178 = vmatprep.mubr.bf16.mxu0 %v6941_v0  ;;  %v467_v63 = vpack.c.bf16 %v439_v52, %v438_v50  ;;  %v1940_v50 = vld [vmem:[#allocation2 + $0x40] sm:$0xff]  ;;  %v1983_v52 = vpack.c.bf16 %v1938_v48, %v1937_v47  ;;  %v1967_v47 = vld [vmem:[#allocation2 + $0x118] sm:$0xff] }
  0x7e   : > { %v1984_v53 = vpack.c.bf16 %v1940_v50, %v1939_v49  ;;  %v1968_v48 = vld [vmem:[#allocation2 + $0x120] sm:$0xff]  ;;  %v6708_v49 = vmov 0  }
  0x7f   : > { %6617 = vset.pattern.permute.xlu0 %v6708_v49  ;;  %6618 = vset.pattern.permute.xlu1 %v6708_v49  ;;  %v1979_v49 = vld [vmem:[#allocation2 + $0x178] sm:$0xff] }
  0x84   : > { %6115 = vmatmul.mubr.bf16.gmra.mxu1 %v460_v9  ;;  %6179 = vmatmul.mubr.bf16.gmra.mxu0 %v6947_v11  ;;  %v1162_v9 = vld [vmem:[#allocation2 + $0x14f] sm:$0xff] }
  0x85   : > { %6118 = vmatprep.mubr.bf16.mxu1 %v461_v13  ;;  %6182 = vmatprep.mubr.bf16.mxu0 %v6949_v14  ;;  %v468_v13 = vpack.c.bf16 %v441_v3, %v440_v2  ;;  %v6980_v17 = vpack.c.bf16 %v1162_v9, %v1161_v8  ;;  %v6661_v2 = vld [vmem:[%s6762_s29 + $0x24] ss:$4 sps:$4 sm:$0xff]   ;;  %v6675_v3 = vld [vmem:[%s8908_s1 + $0x198] sm:$0xff]   ;;  %v6670_v9 = vld [vmem:[%s6762_s29 + $0x4c] ss:$4 sps:$4 sm:$0xff]  }
  0x86   : > { %v6667_v8 = vld [vmem:[%s6762_s29 + $0x44] ss:$4 sps:$4 sm:$0xff]  }
  0x8c   : > { %6119 = vmatmul.mubr.bf16.gmra.mxu1 %v462_v25  ;;  %6183 = vmatmul.mubr.bf16.gmra.mxu0 %v6957_v27  ;;  %v447_v25 = vld [vmem:[#allocation2 + $0x16d] sm:$0xff] }
  0x8d   : > { %6122 = vmatprep.mubr.bf16.mxu1 %v463_v30  ;;  %6186 = vmatprep.mubr.bf16.mxu0 %v6960_v31  ;;  %v1166_v30 = vld [vmem:[#allocation2 + $0x16f] sm:$0xff]  ;;  %v471_v34 = vpack.c.bf16 %v447_v25, %v446_v22  ;;  %v1960_v22 = vld [vmem:[#allocation2 + $0xe0] sm:$0xff]  ;;  %v1993_v25 = vpack.c.bf16 %v1958_v20, %v1957_v19 }
  0x8e   : > { %v6986_v35 = vpack.c.bf16 %v1166_v30, %v1165_v29  ;;  %v1994_v51 = vpack.c.bf16 %v1960_v22, %v1959_v21  ;;  %v1962_v29 = vld [vmem:[#allocation2 + $0xf0] sm:$0xff]  ;;  %v1964_v30 = vld [vmem:[#allocation2 + $0x100] sm:$0xff]  ;;  %v1975_v22 = vld [vmem:[#allocation2 + $0x158] sm:$0xff] }
  0x8f   : > { %v1974_v19 = vld [vmem:[#allocation2 + $0x150] sm:$0xff] }
  0x94   : > { %6123 = vmatmul.mubr.bf16.gmra.mxu1 %v464_v40  ;;  %6187 = vmatmul.mubr.bf16.gmra.mxu0 %v6966_v41  ;;  %v472_v40 = vpack.c.bf16 %v448_v36, %v448_v36 }
  0x95   : > { %6126 = vmatprep.mubr.bf16.mxu1 %v465_v43  ;;  %6190 = vmatprep.mubr.bf16.mxu0 %v6968_v45  ;;  %v1191_v43 = vpack.c.bf16 %v1167_v37, %v1167_v37 }
  0x9c   : > { %6127 = vmatmul.mubr.bf16.gmra.mxu1 %v466_v55  ;;  %6191 = vmatmul.mubr.bf16.gmra.mxu0 %v6972_v61  ;;  %v6663_v55 = vld [vmem:[%s8908_s1 + $0x1b0] sm:$0xff]  }
  0x9d   : > { %6130 = vmatprep.mubr.bf16.mxu1 %v467_v63  ;;  %6194 = vmatprep.mubr.bf16.mxu0 %v6974_v1  ;;  %v6669_v63 = vld [vmem:[%s8908_s1 + $0x1a8] sm:$0xff]  }
  0xa4   : > { %6131 = vmatmul.mubr.bf16.gmra.mxu1 %v468_v13  ;;  %6195 = vmatmul.mubr.bf16.gmra.mxu0 %v6978_v15  ;;  %v1956_v13 = vld [vmem:[#allocation2 + $0xc0] sm:$0xff] }
  0xa5   : > { %6134 = vmatprep.mubr.bf16.mxu1 %v469_v16  ;;  %6198 = vmatprep.mubr.bf16.mxu0 %v6980_v17  ;;  %v7052_v16 = vld [vmem:[%s8908_s1 + $0x1f8] sm:$0xff]  }
  0xac   : > { %6135 = vmatmul.mubr.bf16.gmra.mxu1 %v470_v32  ;;  %6199 = vmatmul.mubr.bf16.gmra.mxu0 %v6984_v33  ;;  %v5703_v32 = vld [vmem:[%s6762_s29 + $0xc8] sm:$0xff]  }
  0xad   : > { %6138 = vmatprep.mubr.bf16.mxu1 %v471_v34  ;;  %6202 = vmatprep.mubr.bf16.mxu0 %v6986_v35  ;;  %v5563_v34 = vunpack.c.h.bf16 %v5703_v32 }
  0xaf   : > { %400 = vst [vmem:[#allocation2 + $0x198] sm:$0xff] %v5563_v34 }
  0xb4   : > { %6139 = vmatmul.mubr.bf16.gmra.mxu1 %v472_v40  ;;  %6203 = vmatmul.mubr.bf16.gmra.mxu0 %v1191_v43  ;;  %v1966_v40 = vld [vmem:[#allocation2 + $0x110] sm:$0xff] }
  0xb5   : > { %6222 = vmatprep.mubr.bf16.mxu1 %v6863_v58  ;;  %6286 = vmatprep.mubr.bf16.mxu0 %v1982_v46  ;;  %v6668_v58 = vld [vmem:[%s8908_s1 + $0x168] sm:$0xff]  }
  0xbc   : > { %6223 = vmatmul.mubr.bf16.vlgmr.msra.gmra.mxu1 %v6865_v60  ;;  %6287 = vmatmul.mubr.bf16.vlgmr.msra.gmra.mxu0 %v1983_v52  ;;  %v6664_v60 = vld [vmem:[%s6762_s29 + $0x2c] ss:$4 sps:$4 sm:$0xff]  }
  0xbd   : > { %6335 = vmatpush3.bf16.msra.mxu1 %v6932_v56  ;;  %6399 = vmatpush3.bf16.msra.mxu0 %v6937_v59  ;;  %v6673_v56 = vld [vmem:[%s8908_s1 + $0x1a0] sm:$0xff]   ;;  %v6674_v59 = vld [vmem:[%s8908_s1 + $0x158] sm:$0xff]  }
  0xbe   : > { %6226 = vmatprep.mubr.bf16.mxu1 %v6881_v10  ;;  %6290 = vmatprep.mubr.bf16.mxu0 %v1984_v53  ;;  %v6672_v10 = vld [vmem:[%s8908_s1 + $0x160] sm:$0xff]   ;;  %v1998_v53 = vpack.c.bf16 %v1968_v48, %v1967_v47  ;;  %v1572_v48 = vld [vmem:[#allocation2 + $0x177] sm:$0xff] }
  0xbf   : > { %6336 = vmatprep.subr.bf16.mxu1 %v6662_v54  ;;  %6400 = vmatprep.subr.bf16.mxu0 %v6663_v55 }
  0xc1   : > { %6337 = vmatpush3.bf16.msra.mxu1 %v6662_v54  ;;  %6401 = vmatpush3.bf16.msra.mxu0 %v6663_v55 }
  0xc2   : > { %6338 = vmatprep.subr.bf16.mxu1 %v6668_v58  ;;  %6402 = vmatprep.subr.bf16.mxu0 %v6669_v63 }
  0xc4   : > { %6227 = vmatmul.mubr.bf16.gmra.mxu1 %v6883_v12  ;;  %6291 = vmatmul.mubr.bf16.gmra.mxu0 %v6661_v2  ;;  %v6676_v12 = vld [vmem:[%s8908_s1 + $0x150] sm:$0xff]  }
  0xc5   : > { %6230 = vmatprep.mubr.bf16.mxu1 %v6899_v26  ;;  %6294 = vmatprep.mubr.bf16.mxu0 %v6664_v60  ;;  %v6677_v26 = vld [vmem:[%s8908_s1 + $0x190] sm:$0xff]   ;;  %v4029_v60 = vld [vmem:[%s8911_s4 + $0x20] sm:$0xff] }
  0xc6   : > { %6339 = vmatpush3.bf16.msra.mxu1 %v6668_v58  ;;  %6403 = vmatpush3.bf16.msra.mxu0 %v6669_v63  ;;  %v4027_v2 = vld [vmem:[%s8911_s4 + $0x10] sm:$0xff] }
  0xc7   : > { %6340 = vmatprep.subr.bf16.mxu1 %v6672_v10  ;;  %6404 = vmatprep.subr.bf16.mxu0 %v6673_v56 }
  0xc8   : > { %4084 = vperm.xlu1 %6618, %v4027_v2   ;;  %v4039_v2 = vld [vmem:[%s8911_s4 + $0x70] sm:$0xff] }
  0xca   : > { %6341 = vmatpush3.bf16.msra.mxu1 %v6672_v10  ;;  %6405 = vmatpush3.bf16.msra.mxu0 %v6673_v56  ;;  %v1969_v10 = vld [vmem:[#allocation2 + $0x128] sm:$0xff]  ;;  %v1970_v56 = vld [vmem:[#allocation2 + $0x130] sm:$0xff] }
  0xcb   : > { %6342 = vmatprep.subr.bf16.mxu1 %v6674_v59  ;;  %6406 = vmatprep.subr.bf16.mxu0 %v6675_v3 }
  0xcc   : > { %6231 = vmatmul.mubr.bf16.gmra.mxu1 %v6901_v28  ;;  %6295 = vmatmul.mubr.bf16.gmra.mxu0 %v6665_v4  ;;  %v6680_v28 = vld [vmem:[%s8908_s1 + $0x140] sm:$0xff]   ;;  %v1971_v4 = vld [vmem:[#allocation2 + $0x138] sm:$0xff] }
  0xcd   : > { %6234 = vmatprep.mubr.bf16.mxu1 %v6917_v42  ;;  %6298 = vmatprep.mubr.bf16.mxu0 %v6666_v5  ;;  %v6681_v42 = vld [vmem:[%s8908_s1 + $0x180] sm:$0xff]  }
  0xce   : > { %6343 = vmatpush3.bf16.msra.mxu1 %v6674_v59  ;;  %6407 = vmatpush3.bf16.msra.mxu0 %v6675_v3 }
  0xcf   : > { %6344 = vmatprep.subr.bf16.mxu1 %v6676_v12  ;;  %6408 = vmatprep.subr.bf16.mxu0 %v6677_v26 }
  0xd2   : > { %6345 = vmatpush3.bf16.msra.mxu1 %v6676_v12  ;;  %6409 = vmatpush3.bf16.msra.mxu0 %v6677_v26  ;;  %v1999_v26 = vpack.c.bf16 %v1970_v56, %v1969_v10  ;;  %v2004_v10 = vpack.c.bf16 %v5558_v24, %v1979_v49  ;;  %v1574_v24 = vld [vmem:[#allocation2 + $0x187] sm:$0xf] }
  0xd3   : > { %6346 = vmatprep.subr.bf16.mxu1 %v6678_v6  ;;  %6410 = vmatprep.subr.bf16.mxu0 %v6679_v7  ;;  %v4042_v49 = vld [vmem:[%s8911_s4 + $0x88] sm:$0xff] }
  0xd4   : > { %6235 = vmatmul.mubr.bf16.gmra.mxu1 %v6919_v44  ;;  %6299 = vmatmul.mubr.bf16.gmra.mxu0 %v6667_v8  ;;  %v6671_v44 = vld [vmem:[%s6762_s29 + $0x54] ss:$4 sps:$4 sm:$0xff]  }
  0xd5   : > { %6238 = vmatprep.mubr.bf16.mxu1 %v6939_v62  ;;  %6302 = vmatprep.mubr.bf16.mxu0 %v6670_v9  ;;  %v1992_v62 = vpack.c.bf16 %v1956_v13, %v5507_v57  ;;  %v1961_v57 = vld [vmem:[#allocation2 + $0xe8] sm:$0xff] }
  0xd6   : > { %6347 = vmatpush3.bf16.msra.mxu1 %v6678_v6  ;;  %6411 = vmatpush3.bf16.msra.mxu0 %v6679_v7  ;;  %v1995_v36 = vpack.c.bf16 %v1962_v29, %v1961_v57  ;;  %v4031_v6 = vld [vmem:[%s8911_s4 + $0x30] sm:$0xff]  ;;  %v4030_v13 = vld [vmem:[%s8911_s4 + $0x28] sm:$0xff] }
  0xd7   : > { %6348 = vmatprep.subr.bf16.mxu1 %v6680_v28  ;;  %6412 = vmatprep.subr.bf16.mxu0 %v6681_v42  ;;  %v4035_v29 = vld [vmem:[%s8911_s4 + $0x50] sm:$0xff] }
  0xda   : > { %6349 = vmatpush3.bf16.msra.mxu1 %v6680_v28  ;;  %6413 = vmatpush3.bf16.msra.mxu0 %v6681_v42 }
  0xdb   : > { %6462 = vmatprep.subr.bf16.mxu1 %v7052_v16  ;;  %6526 = vmatprep.subr.bf16.mxu0 %v7057_v18 }
  0xdc   : > { %6239 = vmatmul.mubr.bf16.gmra.mxu1 %v6941_v0  ;;  %6303 = vmatmul.mubr.bf16.gmra.mxu0 %v6671_v44  ;;  %v1963_v0 = vld [vmem:[#allocation2 + $0xf8] sm:$0xff]  ;;  %v4033_v44 = vld [vmem:[%s8911_s4 + $0x40] sm:$0xff] }
  0xdd   : > { %6242 = vmatprep.mubr.bf16.mxu1 %v6947_v11  ;;  %6306 = vmatprep.mubr.bf16.mxu0 %v1992_v62  ;;  %v5562_v11 = vunpack.c.l.bf16 %v5703_v32  ;;  %v1996_v37 = vpack.c.bf16 %v1964_v30, %v1963_v0  ;;  %v1973_v62 = vld [vmem:[#allocation2 + $0x148] sm:$0xff] }
  0xde   : > { %v2001_v57 = vpack.c.bf16 %v1974_v19, %v1973_v62  ;;  %v2343_v62 = vld [vmem:[#allocation2 + $0x21] sm:$0xff]  ;;  %v2750_v19 = vld [vmem:[#allocation2 + $0x31] sm:$0xff] }
  0xdf   : > { %399 = vst [vmem:[#allocation2 + $0x190] sm:$0xff] %v5562_v11 }
  0xe4   : > { %6243 = vmatmul.mubr.bf16.gmra.mxu1 %v6949_v14  ;;  %6307 = vmatmul.mubr.bf16.gmra.mxu0 %v1993_v25  ;;  %v4025_v14 = vld [vmem:[%s8911_s4] sm:$0xff] }
  0xe5   : > { %6246 = vmatprep.mubr.bf16.mxu1 %v6957_v27  ;;  %6310 = vmatprep.mubr.bf16.mxu0 %v1994_v51  ;;  %v1965_v27 = vld [vmem:[#allocation2 + $0x108] sm:$0xff] }
  0xe6   : > { %4074 = vperm.xlu0 %6617, %v4025_v14   ;;  %v1997_v52 = vpack.c.bf16 %v1966_v40, %v1965_v27  ;;  %v1977_v14 = vld [vmem:[#allocation2 + $0x168] sm:$0xff]  ;;  %v1978_v27 = vld [vmem:[#allocation2 + $0x170] sm:$0xff] }
  0xec   : > { %v7069_v38 = vpop.f32.mrf.mxu0  ;;  %v7071_v39 = vpop.f32.mrf.mxu1  ;;  %6247 = vmatmul.mubr.bf16.gmra.mxu1 %v6960_v31  ;;  %6311 = vmatmul.mubr.bf16.gmra.mxu0 %v1995_v36  ;;  %v4034_v36 = vld [vmem:[%s8911_s4 + $0x48] sm:$0xff] }
  0xed   : > { %6250 = vmatprep.mubr.bf16.mxu1 %v6966_v41  ;;  %6314 = vmatprep.mubr.bf16.mxu0 %v1996_v37  ;;  %v4026_v41 = vld [vmem:[%s8911_s4 + $0x8] sm:$0xff]  ;;  %v4037_v37 = vld [vmem:[%s8911_s4 + $0x60] sm:$0xff] }
  0xee   : > { %v7078_v43 = vpop.f32.mrf.mxu0  ;;  %v7080_v46 = vpop.f32.mrf.mxu1  ;;  %4079 = vperm.xlu0 %6617, %v4026_v41  }
  0xf0   : > { %v7082_v31 = vpop.f32.mrf.mxu0  ;;  %v7084_v50 = vpop.f32.mrf.mxu1 }
  0xf2   : > { %v7089_v54 = vpop.f32.mrf.mxu0  ;;  %v7091_v55 = vpop.f32.mrf.mxu1  ;;  %4094 = vperm.xlu0 %6617, %v4029_v60  }
  0xf4   : > { %v7093_v58 = vpop.f32.mrf.mxu0  ;;  %v7095_v63 = vpop.f32.mrf.mxu1  ;;  %6251 = vmatmul.mubr.bf16.gmra.mxu1 %v6968_v45  ;;  %6315 = vmatmul.mubr.bf16.gmra.mxu0 %v1997_v52  ;;  %v1972_v45 = vld [vmem:[#allocation2 + $0x140] sm:$0xff] }
  0xf5   : > { %6254 = vmatprep.mubr.bf16.mxu1 %v6972_v61  ;;  %6318 = vmatprep.mubr.bf16.mxu0 %v1998_v53  ;;  %v4028_v61 = vld [vmem:[%s8911_s4 + $0x18] sm:$0xff]  ;;  %v2000_v7 = vpack.c.bf16 %v1972_v45, %v1971_v4  ;;  %v2003_v53 = vpack.c.bf16 %v1978_v27, %v1977_v14 }
  0xf6   : > { %v7105_v59 = vpop.f32.mrf.mxu0  ;;  %v7107_v3 = vpop.f32.mrf.mxu1  ;;  %4089 = vperm.xlu1 %6618, %v4028_v61   ;;  %4104 = vperm.xlu0 %6617, %v4031_v6   ;;  %v4038_v61 = vld [vmem:[%s8911_s4 + $0x68] sm:$0xff] }
  0xf7   : > { %v1981_v6 = vld [vmem:[#allocation2 + $0x188] sm:$0xf] }
  0xf8   : > { %v7109_v5 = vpop.f32.mrf.mxu0  ;;  %v7111_v12 = vpop.f32.mrf.mxu1 }
  0xfa   : > { %v7119_v8 = vpop.f32.mrf.mxu0  ;;  %v7121_v9 = vpop.f32.mrf.mxu1  ;;  %4099 = vperm.xlu1 %6618, %v4030_v13   ;;  %4114 = vperm.xlu0 %6617, %v4033_v44  }
  0xfc   : > { %v7123_v28 = vpop.f32.mrf.mxu0  ;;  %v7125_v42 = vpop.f32.mrf.mxu1  ;;  %6255 = vmatmul.mubr.bf16.gmra.mxu1 %v6974_v1  ;;  %6319 = vmatmul.mubr.bf16.gmra.mxu0 %v1999_v26  ;;  %v1976_v1 = vld [vmem:[#allocation2 + $0x160] sm:$0xff] }
  0xfd   : > { %6258 = vmatprep.mubr.bf16.mxu1 %v6978_v15  ;;  %6322 = vmatprep.mubr.bf16.mxu0 %v2000_v7  ;;  %v4032_v15 = vld [vmem:[%s8911_s4 + $0x38] sm:$0xff]  ;;  %v2002_v0 = vpack.c.bf16 %v1976_v1, %v1975_v22 }
  0xfe   : > { %v7135_v20 = vpop.f32.mrf.mxu0  ;;  %v7137_v21 = vpop.f32.mrf.mxu1  ;;  %4109 = vperm.xlu1 %6618, %v4032_v15   ;;  %4124 = vperm.xlu0 %6617, %v4035_v29   ;;  %v2342_v7 = vld [vmem:[#allocation2 + $0x19] sm:$0xff]  ;;  %v2005_v15 = vpack.c.bf16 %v1981_v6, %v1981_v6 }
  0xff   : > { %v4040_v29 = vld [vmem:[%s8911_s4 + $0x78] sm:$0xff] }
 0x100   : > { %v7139_v25 = vpop.f32.mrf.mxu0  ;;  %v7141_v51 = vpop.f32.mrf.mxu1 }
 0x102   : > { %v7149_v30 = vpop.f32.mrf.mxu0  ;;  %v7151_v32 = vpop.f32.mrf.mxu1  ;;  %4119 = vperm.xlu1 %6618, %v4034_v36   ;;  %4134 = vperm.xlu0 %6617, %v4037_v37   ;;  %v2389_v36 = vpack.c.bf16 %v2343_v62, %v2342_v7  ;;  %v4044_v62 = vld [vmem:[%s8911_s4 + $0x98] sm:$0xff] }
 0x104   : > { %v7153_v11 = vpop.f32.mrf.mxu0  ;;  %v7155_v34 = vpop.f32.mrf.mxu1  ;;  %6259 = vmatmul.mubr.bf16.gmra.mxu1 %v6980_v17  ;;  %6323 = vmatmul.mubr.bf16.gmra.mxu0 %v2001_v57  ;;  %v1573_v17 = vld [vmem:[#allocation2 + $0x17f] sm:$0xff]  ;;  %v1598_v57 = vpack.c.bf16 %v1574_v24, %v1574_v24 }
 0x105   : > { %6262 = vmatprep.mubr.bf16.mxu1 %v6984_v33  ;;  %6326 = vmatprep.mubr.bf16.mxu0 %v2002_v0  ;;  %v4036_v33 = vld [vmem:[%s8911_s4 + $0x58] sm:$0xff]  ;;  %v1597_v60 = vpack.c.bf16 %v1573_v17, %v1572_v48  ;;  %v4043_v0 = vld [vmem:[%s8911_s4 + $0x90] sm:$0xff] }
 0x106   : > { %v7165_v40 = vpop.f32.mrf.mxu0  ;;  %v7167_v47 = vpop.f32.mrf.mxu1  ;;  %4129 = vperm.xlu1 %6618, %v4036_v33   ;;  %4144 = vperm.xlu0 %6617, %v4039_v2   ;;  %v2751_v33 = vld [vmem:[#allocation2 + $0x39] sm:$0xff]  ;;  %v2752_v2 = vld [vmem:[#allocation2 + $0x41] sm:$0xff] }
 0x107   : > { %v2797_v7 = vpack.c.bf16 %v2752_v2, %v2751_v33  ;;  %v2756_v33 = vld [vmem:[#allocation2 + $0x61] sm:$0xff] }
 0x108   : > { %v7169_v52 = vpop.f32.mrf.mxu0  ;;  %v7171_v41 = vpop.f32.mrf.mxu1 }
 0x10a   : > { %v7181_v56 = vpop.f32.mrf.mxu0  ;;  %v7183_v4 = vpop.f32.mrf.mxu1  ;;  %4139 = vperm.xlu1 %6618, %v4038_v61   ;;  %4154 = vperm.xlu0 %6617, %v4041_v23   ;;  %v2753_v61 = vld [vmem:[#allocation2 + $0x49] sm:$0xff]  ;;  %v2754_v23 = vld [vmem:[#allocation2 + $0x51] sm:$0xff] }
 0x10c   : > { %v7185_v45 = vpop.f32.mrf.mxu0  ;;  %v7187_v26 = vpop.f32.mrf.mxu1  ;;  %6263 = vmatmul.mubr.bf16.gmra.mxu1 %v6986_v35  ;;  %6327 = vmatmul.mubr.bf16.gmra.mxu0 %v2003_v53  ;;  %v2749_v35 = vld [vmem:[#allocation2 + $0x29] sm:$0xff]  ;;  %v4045_v53 = vld [vmem:[%s8911_s4 + $0xa0] sm:$0xff] }
 0x10d   : > { %9011 = vst [vmem:[#allocation3_spill] sm:$0xff] %v7187_v26  ;;  %6266 = vmatprep.mubr.bf16.mxu1 %v1597_v60  ;;  %6330 = vmatprep.mubr.bf16.mxu0 %v2004_v10  ;;  %v2796_v37 = vpack.c.bf16 %v2750_v19, %v2749_v35  ;;  %v4047_v35 = vld [vmem:[%s8911_s4 + $0xb0] sm:$0xff] }
 0x10e   : > { %v7196_v13 = vpop.f32.mrf.mxu0  ;;  %v7198_v44 = vpop.f32.mrf.mxu1  ;;  %4149 = vperm.xlu1 %6618, %v4040_v29   ;;  %4164 = vperm.xlu0 %6617, %v4043_v0   ;;  %v6684_v29 = vld [vmem:[%s8908_s1 + $0x1f0] sm:$0xff]  }
 0x10f   : > { %9012 = vst [vmem:[#allocation4_spill] sm:$0xff] %v7198_v44  ;;  %v6685_v0 = vld [vmem:[%s8908_s1 + $0x230] sm:$0xff]  }
 0x110   : > { %v7200_v22 = vpop.f32.mrf.mxu0  ;;  %v7202_v1 = vpop.f32.mrf.mxu1 }
 0x111   : > { %9013 = vst [vmem:[#allocation5_spill] sm:$0xff] %v7202_v1 }
 0x112   : > { %v7210_v14 = vpop.f32.mrf.mxu0  ;;  %v7212_v27 = vpop.f32.mrf.mxu1  ;;  %4159 = vperm.xlu1 %6618, %v4042_v49   ;;  %4174 = vperm.xlu0 %6617, %v4045_v53   ;;  %v2755_v53 = vld [vmem:[#allocation2 + $0x59] sm:$0xff] }
 0x113   : > { %9014 = vst [vmem:[#allocation6_spill] sm:$0xff] %v7212_v27 }
 0x114   : > { %v7214_v48 = vpop.f32.mrf.mxu0  ;;  %v7216_v17 = vpop.f32.mrf.mxu1  ;;  %6267 = vmatmul.mubr.bf16.gmra.mxu1 %v1598_v57  ;;  %6331 = vmatmul.mubr.bf16.gmra.mxu0 %v2005_v15  ;;  %v2798_v15 = vpack.c.bf16 %v2754_v23, %v2753_v61  ;;  %v2757_v61 = vld [vmem:[#allocation2 + $0x69] sm:$0xff] }
 0x115   : > { %9015 = vst [vmem:[#allocation7_spill] sm:$0xff] %v7216_v17  ;;  %6350 = vmatprep.mubr.bf16.mxu1 %v2389_v36  ;;  %6414 = vmatprep.mubr.bf16.mxu0 %v2796_v37  ;;  %v4046_v23 = vld [vmem:[%s8911_s4 + $0xa8] sm:$0xff]  ;;  %v2799_v17 = vpack.c.bf16 %v2756_v33, %v2755_v53  ;;  %v6688_v53 = vld [vmem:[%s8908_s1 + $0x1e0] sm:$0xff]  }
 0x116   : > { %v7224_v60 = vpop.f32.mrf.mxu0  ;;  %v7226_v10 = vpop.f32.mrf.mxu1  ;;  %4169 = vperm.xlu1 %6618, %v4044_v62   ;;  %4184 = vperm.xlu0 %6617, %v4047_v35   ;;  %v2758_v35 = vld [vmem:[#allocation2 + $0x71] sm:$0xff]  ;;  %v6689_v33 = vld [vmem:[%s8908_s1 + $0x220] sm:$0xff]  }
 0x117   : > { %9016 = vst [vmem:[#allocation8_spill] sm:$0xff] %v7226_v10  ;;  %v2800_v1 = vpack.c.bf16 %v2758_v35, %v2757_v61 }
 0x118   : > { %v7228_v24 = vpop.f32.mrf.mxu0  ;;  %v6077_v6 = vpop.f32.mrf.mxu1 }
 0x119   : > { %v4049_v6 = vld [vmem:[%s8911_s4 + $0xc0] sm:$0xff] }
 0x11a   : > { %v7236_v19 = vpop.f32.mrf.mxu0  ;;  %v7238_v57 = vpop.f32.mrf.mxu1  ;;  %4179 = vperm.xlu1 %6618, %v4046_v23   ;;  %4194 = vperm.xlu0 %6617, %v4049_v6   ;;  %v2762_v23 = vld [vmem:[#allocation2 + $0x91] sm:$0xff] }
 0x11b   : > { %9017 = vst [vmem:[#allocation9_spill] sm:$0xff] %v7238_v57  ;;  %v6691_v6 = vld [vmem:[%s8908_s1 + $0x218] sm:$0xff]  }
 0x11c   : > { %v6096_v36 = vpop.f32.mrf.mxu1  ;;  %v6160_v49 = vpop.f32.mrf.mxu0  ;;  %6351 = vmatmul.mubr.bf16.vlgmr.msra.gmra.mxu1 %v2796_v37  ;;  %6415 = vmatmul.mubr.bf16.vlgmr.msra.gmra.mxu0 %v2797_v7 }
 0x11d   : > { %v940_v2 = vadd.f32 %v6096_v36, %v7069_v38  ;;  %6463 = vmatpush3.bf16.msra.mxu1 %v7052_v16  ;;  %6527 = vmatpush3.bf16.msra.mxu0 %v7057_v18  ;;  %v6686_v16 = vld [vmem:[%s8908_s1 + $0x1e8] sm:$0xff]  }
 0x11e   : > { %v931_v62 = vpop.f32.mrf.mxu1  ;;  %v1291_v37 = vpop.f32.mrf.mxu0  ;;  %6354 = vmatprep.mubr.bf16.mxu1 %v2797_v7  ;;  %6418 = vmatprep.mubr.bf16.mxu0 %v2798_v15  ;;  %v6687_v18 = vld [vmem:[%s8908_s1 + $0x228] sm:$0xff]  }
 0x11f   : > { %v7261_v38 = vadd.f32 %v6160_v49, %v940_v2  ;;  %v932_v36 = vadd.f32 %v931_v62, %v7078_v43  ;;  %6464 = vmatprep.subr.bf16.mxu1 %v6684_v29  ;;  %6528 = vmatprep.subr.bf16.mxu0 %v6685_v0 }
 0x120   : > { %v6097_v57 = vpop.f32.mrf.mxu1  ;;  %v6161_v10 = vpop.f32.mrf.mxu0 }
 0x121   : > { %v7264_v7 = vadd.f32 %v1291_v37, %v932_v36  ;;  %v943_v27 = vadd.f32 %v6097_v57, %v7082_v31  ;;  %6465 = vmatpush3.bf16.msra.mxu1 %v6684_v29  ;;  %6529 = vmatpush3.bf16.msra.mxu0 %v6685_v0  ;;  %v2759_v29 = vld [vmem:[#allocation2 + $0x79] sm:$0xff] }
 0x122   : > { %v934_v44 = vpop.f32.mrf.mxu1  ;;  %v1294_v26 = vpop.f32.mrf.mxu0  ;;  %6466 = vmatprep.subr.bf16.mxu1 %v6686_v16  ;;  %6530 = vmatprep.subr.bf16.mxu0 %v6687_v18 }
 0x123   : > { %v7267_v49 = vadd.f32 %v6161_v10, %v943_v27  ;;  %v935_v43 = vadd.f32 %v934_v44, %v7089_v54  ;;  %v2760_v54 = vld [vmem:[#allocation2 + $0x81] sm:$0xff]  ;;  %v4048_v44 = vld [vmem:[%s8911_s4 + $0xb8] sm:$0xff]  ;;  %v4051_v10 = vld [vmem:[%s8911_s4 + $0xd0] sm:$0xff] }
 0x124   : > { %v6100_v31 = vpop.f32.mrf.mxu1  ;;  %v6164_v57 = vpop.f32.mrf.mxu0  ;;  %6355 = vmatmul.mubr.bf16.gmra.mxu1 %v2798_v15  ;;  %6419 = vmatmul.mubr.bf16.gmra.mxu0 %v2799_v17  ;;  %v2761_v15 = vld [vmem:[#allocation2 + $0x89] sm:$0xff]  ;;  %v2801_v35 = vpack.c.bf16 %v2760_v54, %v2759_v29 }
 0x125   : > { %v7276_v0 = vadd.f32 %v1294_v26, %v935_v43  ;;  %v956_v27 = vadd.f32 %v6100_v31, %v7093_v58  ;;  %6358 = vmatprep.mubr.bf16.mxu1 %v2799_v17  ;;  %6422 = vmatprep.mubr.bf16.mxu0 %v2800_v1  ;;  %v6690_v17 = vld [vmem:[%s8908_s1 + $0x1d8] sm:$0xff]   ;;  %v6692_v29 = vld [vmem:[%s8908_s1 + $0x1d0] sm:$0xff]  }
 0x126   : > { %v947_v2 = vpop.f32.mrf.mxu1  ;;  %v1307_v61 = vpop.f32.mrf.mxu0  ;;  %6467 = vmatpush3.bf16.msra.mxu1 %v6686_v16  ;;  %6531 = vmatpush3.bf16.msra.mxu0 %v6687_v18 }
 0x127   : > { %v7285_v26 = vadd.f32 %v6164_v57, %v956_v27  ;;  %v948_v58 = vadd.f32 %v947_v2, %v7105_v59  ;;  %6468 = vmatprep.subr.bf16.mxu1 %v6688_v53  ;;  %6532 = vmatprep.subr.bf16.mxu0 %v6689_v33  ;;  %v2802_v59 = vpack.c.bf16 %v2762_v23, %v2761_v15  ;;  %v6693_v27 = vld [vmem:[%s8908_s1 + $0x210] sm:$0xff]   ;;  %v4053_v2 = vld [vmem:[%s8911_s4 + $0xe0] sm:$0xff] }
 0x128   : > { %v6101_v62 = vpop.f32.mrf.mxu1  ;;  %v6165_v37 = vpop.f32.mrf.mxu0  ;;  %4189 = vperm.xlu1 %6618, %v4048_v44   ;;  %4204 = vperm.xlu0 %6617, %v4051_v10   ;;  %v4050_v10 = vld [vmem:[%s8911_s4 + $0xc8] sm:$0xff]  ;;  %v2766_v23 = vld [vmem:[#allocation2 + $0xb1] sm:$0xff] }
 0x129   : > { %v7294_v16 = vadd.f32 %v1307_v61, %v948_v58  ;;  %v959_v18 = vadd.f32 %v6101_v62, %v7109_v5  ;;  %v6694_v62 = vld [vmem:[%s8908_s1 + $0x1c8] sm:$0xff]  }
 0x12a   : > { %v950_v36 = vpop.f32.mrf.mxu1  ;;  %v1310_v43 = vpop.f32.mrf.mxu0  ;;  %6469 = vmatpush3.bf16.msra.mxu1 %v6688_v53  ;;  %6533 = vmatpush3.bf16.msra.mxu0 %v6689_v33  ;;  %v2763_v53 = vld [vmem:[#allocation2 + $0x99] sm:$0xff] }
 0x12b   : > { %v7297_v31 = vadd.f32 %v6165_v37, %v959_v18  ;;  %v951_v57 = vadd.f32 %v950_v36, %v7119_v8  ;;  %6470 = vmatprep.subr.bf16.mxu1 %v6690_v17  ;;  %6534 = vmatprep.subr.bf16.mxu0 %v6691_v6  ;;  %v2764_v8 = vld [vmem:[#allocation2 + $0xa1] sm:$0xff] }
 0x12c   : > { %v6104_v5 = vpop.f32.mrf.mxu1  ;;  %v6168_v54 = vpop.f32.mrf.mxu0  ;;  %6359 = vmatmul.mubr.bf16.gmra.mxu1 %v2800_v1  ;;  %6423 = vmatmul.mubr.bf16.gmra.mxu0 %v2801_v35  ;;  %v2765_v1 = vld [vmem:[#allocation2 + $0xa9] sm:$0xff]  ;;  %v2803_v36 = vpack.c.bf16 %v2764_v8, %v2763_v53  ;;  %v6696_v53 = vld [vmem:[%s8908_s1 + $0x1c0] sm:$0xff]  }
 0x12d   : > { %v7306_v33 = vadd.f32 %v1310_v43, %v951_v57  ;;  %v972_v44 = vadd.f32 %v6104_v5, %v7123_v28  ;;  %6362 = vmatprep.mubr.bf16.mxu1 %v2801_v35  ;;  %6426 = vmatprep.mubr.bf16.mxu0 %v2802_v59  ;;  %v6695_v37 = vld [vmem:[%s8908_s1 + $0x208] sm:$0xff]  }
 0x12e   : > { %v963_v61 = vpop.f32.mrf.mxu1  ;;  %v1323_v15 = vpop.f32.mrf.mxu0  ;;  %6471 = vmatpush3.bf16.msra.mxu1 %v6690_v17  ;;  %6535 = vmatpush3.bf16.msra.mxu0 %v6691_v6 }
 0x12f   : > { %v7315_v58 = vadd.f32 %v6168_v54, %v972_v44  ;;  %v964_v28 = vadd.f32 %v963_v61, %v7135_v20  ;;  %6472 = vmatprep.subr.bf16.mxu1 %v6692_v29  ;;  %6536 = vmatprep.subr.bf16.mxu0 %v6693_v27  ;;  %v2804_v20 = vpack.c.bf16 %v2766_v23, %v2765_v1  ;;  %v6697_v44 = vld [vmem:[%s8908_s1 + $0x200] sm:$0xff]   ;;  %v4055_v61 = vld [vmem:[%s8911_s4 + $0xf0] sm:$0xff] }
 0x130   : > { %v6105_v35 = vpop.f32.mrf.mxu1  ;;  %v6169_v18 = vpop.f32.mrf.mxu0  ;;  %4199 = vperm.xlu1 %6618, %v4050_v10   ;;  %4214 = vperm.xlu0 %6617, %v4053_v2   ;;  %v4052_v2 = vld [vmem:[%s8911_s4 + $0xd8] sm:$0xff] }
 0x131   : > { %v7324_v17 = vadd.f32 %v1323_v15, %v964_v28  ;;  %v975_v6 = vadd.f32 %v6105_v35, %v7139_v25  ;;  %v2770_v23 = vld [vmem:[#allocation2 + $0xd1] sm:$0xff] }
 0x132   : > { %v966_v43 = vpop.f32.mrf.mxu1  ;;  %v1326_v57 = vpop.f32.mrf.mxu0  ;;  %6473 = vmatpush3.bf16.msra.mxu1 %v6692_v29  ;;  %6537 = vmatpush3.bf16.msra.mxu0 %v6693_v27  ;;  %v2767_v29 = vld [vmem:[#allocation2 + $0xb9] sm:$0xff] }
 0x133   : > { %v7327_v5 = vadd.f32 %v6169_v18, %v975_v6  ;;  %v967_v54 = vadd.f32 %v966_v43, %v7149_v30  ;;  %6474 = vmatprep.subr.bf16.mxu1 %v6694_v62  ;;  %6538 = vmatprep.subr.bf16.mxu0 %v6695_v37  ;;  %v2768_v30 = vld [vmem:[#allocation2 + $0xc1] sm:$0xff] }
 0x134   : > { %v6108_v25 = vpop.f32.mrf.mxu1  ;;  %v6172_v8 = vpop.f32.mrf.mxu0  ;;  %6363 = vmatmul.mubr.bf16.gmra.mxu1 %v2802_v59  ;;  %6427 = vmatmul.mubr.bf16.gmra.mxu0 %v2803_v36  ;;  %v2769_v59 = vld [vmem:[#allocation2 + $0xc9] sm:$0xff] }
 0x135   : > { %v7336_v27 = vadd.f32 %v1326_v57, %v967_v54  ;;  %v988_v10 = vadd.f32 %v6108_v25, %v7153_v11  ;;  %6366 = vmatprep.mubr.bf16.mxu1 %v2803_v36  ;;  %6430 = vmatprep.mubr.bf16.mxu0 %v2804_v20  ;;  %v2805_v36 = vpack.c.bf16 %v2768_v30, %v2767_v29 }
 0x136   : > { %v979_v15 = vpop.f32.mrf.mxu1  ;;  %v1339_v1 = vpop.f32.mrf.mxu0  ;;  %6475 = vmatpush3.bf16.msra.mxu1 %v6694_v62  ;;  %6539 = vmatpush3.bf16.msra.mxu0 %v6695_v37  ;;  %v2806_v57 = vpack.c.bf16 %v2770_v23, %v2769_v59  ;;  %v4054_v37 = vld [vmem:[%s8911_s4 + $0xe8] sm:$0xff] }
 0x137   : > { %v7345_v28 = vadd.f32 %v6172_v8, %v988_v10  ;;  %v980_v11 = vadd.f32 %v979_v15, %v7165_v40  ;;  %6476 = vmatprep.subr.bf16.mxu1 %v6696_v53  ;;  %6540 = vmatprep.subr.bf16.mxu0 %v6697_v44  ;;  %v4057_v8 = vld [vmem:[%s8911_s4 + $0x100] sm:$0xff]  ;;  %v2774_v15 = vld [vmem:[#allocation2 + $0xf1] sm:$0xff] }
 0x138   : > { %v6109_v35 = vpop.f32.mrf.mxu1  ;;  %v6173_v18 = vpop.f32.mrf.mxu0  ;;  %4209 = vperm.xlu1 %6618, %v4052_v2   ;;  %4224 = vperm.xlu0 %6617, %v4055_v61   ;;  %v2773_v61 = vld [vmem:[#allocation2 + $0xe9] sm:$0xff] }
 0x139   : > { %v7348_v6 = vadd.f32 %v1339_v1, %v980_v11  ;;  %v991_v43 = vadd.f32 %v6109_v35, %v7169_v52 }
 0x13a   : > { %v982_v54 = vpop.f32.mrf.mxu1  ;;  %v1342_v25 = vpop.f32.mrf.mxu0  ;;  %6477 = vmatpush3.bf16.msra.mxu1 %v6696_v53  ;;  %6541 = vmatpush3.bf16.msra.mxu0 %v6697_v44  ;;  %v2771_v44 = vld [vmem:[#allocation2 + $0xd9] sm:$0xff] }
 0x13b   : > { %v7351_v62 = vadd.f32 %v6173_v18, %v991_v43  ;;  %v983_v40 = vadd.f32 %v982_v54, %v7181_v56  ;;  %v2772_v56 = vld [vmem:[#allocation2 + $0xe1] sm:$0xff]  ;;  %v2808_v43 = vpack.c.bf16 %v2774_v15, %v2773_v61  ;;  %v2778_v61 = vld [vmem:[#allocation2 + $0x111] sm:$0xff] }
 0x13c   : > { %v6112_v29 = vpop.f32.mrf.mxu1  ;;  %v6176_v10 = vpop.f32.mrf.mxu0  ;;  %6367 = vmatmul.mubr.bf16.gmra.mxu1 %v2804_v20  ;;  %6431 = vmatmul.mubr.bf16.gmra.mxu0 %v2805_v36  ;;  %v4056_v20 = vld [vmem:[%s8911_s4 + $0xf8] sm:$0xff]  ;;  %v2807_v35 = vpack.c.bf16 %v2772_v56, %v2771_v44 }
 0x13d   : > { %v7360_v52 = vadd.f32 %v1342_v25, %v983_v40  ;;  %v1004_v53 = vadd.f32 %v6112_v29, %v7185_v45  ;;  %6370 = vmatprep.mubr.bf16.mxu1 %v2805_v36  ;;  %6434 = vmatprep.mubr.bf16.mxu0 %v2806_v57  ;;  %v4059_v45 = vld [vmem:[%s8911_s4 + $0x110] sm:$0xff]  ;;  %v2775_v44 = vld [vmem:[#allocation2 + $0xf9] sm:$0xff] }
 0x13e   : > { %v995_v30 = vpop.f32.mrf.mxu1  ;;  %v1355_v2 = vpop.f32.mrf.mxu0  ;;  %4219 = vperm.xlu1 %6618, %v4054_v37   ;;  %4234 = vperm.xlu0 %6617, %v4057_v8   ;;  %v4058_v37 = vld [vmem:[%s8911_s4 + $0x108] sm:$0xff]  ;;  %v4061_v8 = vld [vmem:[%s8911_s4 + $0x120] sm:$0xff] }
 0x13f   : > { %v7363_v1 = vadd.f32 %v6176_v10, %v1004_v53  ;;  %v996_v59 = vadd.f32 %v995_v30, %v7196_v13 }
 0x140   : > { %v6113_v23 = vpop.f32.mrf.mxu1  ;;  %v6177_v11 = vpop.f32.mrf.mxu0 }
 0x141   : > { %v7372_v18 = vadd.f32 %v1355_v2, %v996_v59  ;;  %v1007_v36 = vadd.f32 %v6113_v23, %v7200_v22  ;;  %v2777_v2 = vld [vmem:[#allocation2 + $0x109] sm:$0xff] }
 0x142   : > { %v998_v54 = vpop.f32.mrf.mxu1  ;;  %v1358_v25 = vpop.f32.mrf.mxu0  ;;  %4229 = vperm.xlu1 %6618, %v4056_v20   ;;  %4244 = vperm.xlu0 %6617, %v4059_v45  }
 0x143   : > { %v7375_v13 = vadd.f32 %v6177_v11, %v1007_v36  ;;  %v999_v40 = vadd.f32 %v998_v54, %v7210_v14  ;;  %v2776_v14 = vld [vmem:[#allocation2 + $0x101] sm:$0xff]  ;;  %v2810_v36 = vpack.c.bf16 %v2778_v61, %v2777_v2  ;;  %v2782_v2 = vld [vmem:[#allocation2 + $0x131] sm:$0xff] }
 0x144   : > { %v6116_v29 = vpop.f32.mrf.mxu1  ;;  %v6180_v10 = vpop.f32.mrf.mxu0  ;;  %6371 = vmatmul.mubr.bf16.gmra.mxu1 %v2806_v57  ;;  %6435 = vmatmul.mubr.bf16.gmra.mxu0 %v2807_v35  ;;  %v4060_v57 = vld [vmem:[%s8911_s4 + $0x118] sm:$0xff]  ;;  %v2809_v23 = vpack.c.bf16 %v2776_v14, %v2775_v44 }
 0x145   : > { %v7384_v22 = vadd.f32 %v1358_v25, %v999_v40  ;;  %v1020_v53 = vadd.f32 %v6116_v29, %v7214_v48  ;;  %6374 = vmatprep.mubr.bf16.mxu1 %v2807_v35  ;;  %6438 = vmatprep.mubr.bf16.mxu0 %v2808_v43  ;;  %v4063_v48 = vld [vmem:[%s8911_s4 + $0x130] sm:$0xff]  ;;  %v2779_v44 = vld [vmem:[#allocation2 + $0x119] sm:$0xff] }
 0x146   : > { %v1011_v56 = vpop.f32.mrf.mxu1  ;;  %v1371_v30 = vpop.f32.mrf.mxu0  ;;  %4239 = vperm.xlu1 %6618, %v4058_v37   ;;  %4254 = vperm.xlu0 %6617, %v4061_v8   ;;  %v4062_v37 = vld [vmem:[%s8911_s4 + $0x128] sm:$0xff]  ;;  %v4065_v8 = vld [vmem:[%s8911_s4 + $0x140] sm:$0xff] }
 0x147   : > { %v7387_v15 = vadd.f32 %v6180_v10, %v1020_v53  ;;  %v1012_v59 = vadd.f32 %v1011_v56, %v7224_v60 }
 0x148   : > { %v6117_v20 = vpop.f32.mrf.mxu1  ;;  %v6181_v45 = vpop.f32.mrf.mxu0 }
 0x149   : > { %v7396_v11 = vadd.f32 %v1371_v30, %v1012_v59  ;;  %v1023_v35 = vadd.f32 %v6117_v20, %v7228_v24  ;;  %v2781_v30 = vld [vmem:[#allocation2 + $0x129] sm:$0xff] }
 0x14a   : > { %v1014_v54 = vpop.f32.mrf.mxu1  ;;  %v1374_v25 = vpop.f32.mrf.mxu0  ;;  %4249 = vperm.xlu1 %6618, %v4060_v57   ;;  %4264 = vperm.xlu0 %6617, %v4063_v48  }
 0x14b   : > { %v7399_v60 = vadd.f32 %v6181_v45, %v1023_v35  ;;  %v1015_v40 = vadd.f32 %v1014_v54, %v7236_v19  ;;  %v2780_v19 = vld [vmem:[#allocation2 + $0x121] sm:$0xff]  ;;  %v2812_v35 = vpack.c.bf16 %v2782_v2, %v2781_v30  ;;  %v2786_v30 = vld [vmem:[#allocation2 + $0x151] sm:$0xff] }
 0x14c   : > { %v6120_v29 = vpop.f32.mrf.mxu1  ;;  %v6184_v10 = vpop.f32.mrf.mxu0  ;;  %6375 = vmatmul.mubr.bf16.gmra.mxu1 %v2808_v43  ;;  %6439 = vmatmul.mubr.bf16.gmra.mxu0 %v2809_v23  ;;  %v4064_v43 = vld [vmem:[%s8911_s4 + $0x138] sm:$0xff]  ;;  %v2811_v20 = vpack.c.bf16 %v2780_v19, %v2779_v44 }
 0x14d   : > { %v7408_v24 = vadd.f32 %v1374_v25, %v1015_v40  ;;  %v1036_v53 = vadd.f32 %v6120_v29, %v7071_v39  ;;  %6378 = vmatprep.mubr.bf16.mxu1 %v2809_v23  ;;  %6442 = vmatprep.mubr.bf16.mxu0 %v2810_v36  ;;  %v4067_v39 = vld [vmem:[%s8911_s4 + $0x150] sm:$0xff]  ;;  %v2783_v44 = vld [vmem:[#allocation2 + $0x139] sm:$0xff] }
 0x14e   : > { %v1027_v14 = vpop.f32.mrf.mxu1  ;;  %v1387_v56 = vpop.f32.mrf.mxu0  ;;  %4259 = vperm.xlu1 %6618, %v4062_v37   ;;  %4274 = vperm.xlu0 %6617, %v4065_v8   ;;  %v4066_v37 = vld [vmem:[%s8911_s4 + $0x148] sm:$0xff]  ;;  %v4069_v8 = vld [vmem:[%s8911_s4 + $0x160] sm:$0xff] }
 0x14f   : > { %v7411_v61 = vadd.f32 %v6184_v10, %v1036_v53  ;;  %v1028_v59 = vadd.f32 %v1027_v14, %v7080_v46 }
 0x150   : > { %v6121_v57 = vpop.f32.mrf.mxu1  ;;  %v6185_v48 = vpop.f32.mrf.mxu0 }
 0x151   : > { %v7420_v45 = vadd.f32 %v1387_v56, %v1028_v59  ;;  %v1039_v23 = vadd.f32 %v6121_v57, %v7084_v50  ;;  %v2785_v56 = vld [vmem:[#allocation2 + $0x149] sm:$0xff] }
 0x152   : > { %v1030_v54 = vpop.f32.mrf.mxu1  ;;  %v1390_v25 = vpop.f32.mrf.mxu0  ;;  %4269 = vperm.xlu1 %6618, %v4064_v43   ;;  %4284 = vperm.xlu0 %6617, %v4067_v39  }
 0x153   : > { %v7423_v46 = vadd.f32 %v6185_v48, %v1039_v23  ;;  %v1031_v40 = vadd.f32 %v1030_v54, %v7091_v55  ;;  %v2784_v55 = vld [vmem:[#allocation2 + $0x141] sm:$0xff]  ;;  %v2814_v23 = vpack.c.bf16 %v2786_v30, %v2785_v56 }
 0x154   : > { %v6124_v29 = vpop.f32.mrf.mxu1  ;;  %v6188_v10 = vpop.f32.mrf.mxu0  ;;  %6379 = vmatmul.mubr.bf16.gmra.mxu1 %v2810_v36  ;;  %6443 = vmatmul.mubr.bf16.gmra.mxu0 %v2811_v20  ;;  %v4068_v36 = vld [vmem:[%s8911_s4 + $0x158] sm:$0xff]  ;;  %v2813_v57 = vpack.c.bf16 %v2784_v55, %v2783_v44  ;;  %v2788_v44 = vld [vmem:[#allocation2 + $0x161] sm:$0xff] }
 0x155   : > { %v7432_v50 = vadd.f32 %v1390_v25, %v1031_v40  ;;  %v1052_v53 = vadd.f32 %v6124_v29, %v7095_v63  ;;  %6382 = vmatprep.mubr.bf16.mxu1 %v2811_v20  ;;  %6446 = vmatprep.mubr.bf16.mxu0 %v2812_v35  ;;  %v4071_v63 = vld [vmem:[%s8911_s4 + $0x170] sm:$0xf] }
 0x156   : > { %v1043_v19 = vpop.f32.mrf.mxu1  ;;  %v1403_v14 = vpop.f32.mrf.mxu0  ;;  %4279 = vperm.xlu1 %6618, %v4066_v37   ;;  %4294 = vperm.xlu0 %6617, %v4069_v8   ;;  %v4070_v37 = vld [vmem:[%s8911_s4 + $0x168] sm:$0xff] }
 0x157   : > { %v7435_v2 = vadd.f32 %v6188_v10, %v1052_v53  ;;  %v1044_v59 = vadd.f32 %v1043_v19, %v7107_v3  ;;  %v2787_v53 = vld [vmem:[#allocation2 + $0x159] sm:$0xff] }
 0x158   : > { %v6125_v43 = vpop.f32.mrf.mxu1  ;;  %v6189_v39 = vpop.f32.mrf.mxu0 }
 0x159   : > { %v7444_v48 = vadd.f32 %v1403_v14, %v1044_v59  ;;  %v1055_v20 = vadd.f32 %v6125_v43, %v7111_v12  ;;  %v2789_v14 = vld [vmem:[#allocation2 + $0x169] sm:$0xff] }
 0x15a   : > { %v1046_v54 = vpop.f32.mrf.mxu1  ;;  %v1406_v25 = vpop.f32.mrf.mxu0  ;;  %4289 = vperm.xlu1 %6618, %v4068_v36   ;;  %4304 = vperm.xlu0 %6617, %v4071_v63   ;;  %v2815_v36 = vpack.c.bf16 %v2788_v44, %v2787_v53  ;;  %v2793_v53 = vld [vmem:[#allocation2 + $0x189] sm:$0xff]  ;;  %v2794_v44 = vld [vmem:[#allocation2 + $0x191] sm:$0xff] }
 0x15b   : > { %v7447_v3 = vadd.f32 %v6189_v39, %v1055_v20  ;;  %v1047_v40 = vadd.f32 %v1046_v54, %v7121_v9  ;;  %v2790_v9 = vld [vmem:[#allocation2 + $0x171] sm:$0xff] }
 0x15c   : > { %v6128_v8 = vpop.f32.mrf.mxu1  ;;  %v6192_v29 = vpop.f32.mrf.mxu0  ;;  %6383 = vmatmul.mubr.bf16.gmra.mxu1 %v2812_v35  ;;  %6447 = vmatmul.mubr.bf16.gmra.mxu0 %v2813_v57  ;;  %v2816_v43 = vpack.c.bf16 %v2790_v9, %v2789_v14 }
 0x15d   : > { %v7453_v10 = vadd.f32 %v1406_v25, %v1047_v40  ;;  %v1068_v12 = vadd.f32 %v6128_v8, %v7125_v42  ;;  %6386 = vmatprep.mubr.bf16.mxu1 %v2813_v57  ;;  %6450 = vmatprep.mubr.bf16.mxu0 %v2814_v23  ;;  %v2791_v8 = vld [vmem:[#allocation2 + $0x179] sm:$0xff] }
 0x15e   : > { %v1059_v55 = vpop.f32.mrf.mxu1  ;;  %v1419_v19 = vpop.f32.mrf.mxu0  ;;  %4299 = vperm.xlu1 %6618, %v4070_v37  }
 0x15f   : > { %v7456_v56 = vadd.f32 %v6192_v29, %v1068_v12  ;;  %v1060_v30 = vadd.f32 %v1059_v55, %v7137_v21  ;;  %v2792_v29 = vld [vmem:[#allocation2 + $0x181] sm:$0xff] }
 0x160   : > { %v6129_v59 = vpop.f32.mrf.mxu1  ;;  %v6193_v35 = vpop.f32.mrf.mxu0 }
 0x161   : > { %v7459_v63 = vadd.f32 %v1419_v19, %v1060_v30  ;;  %v1071_v42 = vadd.f32 %v6129_v59, %v7141_v51 }
 0x162   : > { %v1062_v39 = vpop.f32.mrf.mxu1  ;;  %v1422_v57 = vpop.f32.mrf.mxu0 }
 0x163   : > { %v7462_v20 = vadd.f32 %v6193_v35, %v1071_v42  ;;  %v1063_v54 = vadd.f32 %v1062_v39, %v7151_v32 }
 0x164   : > { %v6132_v25 = vpop.f32.mrf.mxu1  ;;  %v6196_v40 = vpop.f32.mrf.mxu0  ;;  %6387 = vmatmul.mubr.bf16.gmra.mxu1 %v2814_v23  ;;  %6451 = vmatmul.mubr.bf16.gmra.mxu0 %v2815_v36  ;;  %v2817_v23 = vpack.c.bf16 %v2792_v29, %v2791_v8 }
 0x165   : > { %v7465_v37 = vadd.f32 %v1422_v57, %v1063_v54  ;;  %v1084_v21 = vadd.f32 %v6132_v25, %v7155_v34  ;;  %6390 = vmatprep.mubr.bf16.mxu1 %v2815_v36  ;;  %6454 = vmatprep.mubr.bf16.mxu0 %v2816_v43  ;;  %v2818_v34 = vpack.c.bf16 %v2794_v44, %v2793_v53  ;;  %v3564_v53 = vld [vmem:[#allocation2 + $0x33] sm:$0xff] }
 0x166   : > { %v1075_v51 = vpop.f32.mrf.mxu1  ;;  %v1435_v12 = vpop.f32.mrf.mxu0 }
 0x167   : > { %v7468_v55 = vadd.f32 %v6196_v40, %v1084_v21  ;;  %v1076_v32 = vadd.f32 %v1075_v51, %v7167_v47  ;;  %v9022_v47 = vld [vmem:[#allocation3_spill] sm:$0xff]  ;;  %v2795_v21 = vld [vmem:[#allocation2 + $0x199] sm:$0xf] }
 0x168   : > { %v6133_v19 = vpop.f32.mrf.mxu1  ;;  %v6197_v14 = vpop.f32.mrf.mxu0  ;;  %v2388_v40 = vld [vmem:[#allocation2 + $0x189] sm:$0xf]  ;;  %v3157_v51 = vld [vmem:[#allocation2 + $0x32] sm:$0xff] }
 0x169   : > { %9018 = vst [vmem:[#allocation10_spill] sm:$0xff] %v7468_v55  ;;  %v7471_v9 = vadd.f32 %v1435_v12, %v1076_v32  ;;  %v1087_v30 = vadd.f32 %v6133_v19, %v7171_v41  ;;  %v3156_v41 = vld [vmem:[#allocation2 + $0x2a] sm:$0xff] }
 0x16a   : > { %v1078_v59 = vpop.f32.mrf.mxu1  ;;  %v1438_v35 = vpop.f32.mrf.mxu0  ;;  %v3563_v12 = vld [vmem:[#allocation2 + $0x2b] sm:$0xff] }
 0x16b   : > { %9019 = vst [vmem:[#allocation11_spill] sm:$0xff] %v7471_v9  ;;  %v7474_v36 = vadd.f32 %v6197_v14, %v1087_v30  ;;  %v1079_v42 = vadd.f32 %v1078_v59, %v7183_v4  ;;  %v9024_v4 = vld [vmem:[#allocation4_spill] sm:$0xff]  ;;  %v2412_v14 = vpack.c.bf16 %v2388_v40, %v2388_v40  ;;  %v2819_v30 = vpack.c.bf16 %v2795_v21, %v2795_v21  ;;  %v9030_v21 = vld [vmem:[#allocation7_spill] sm:$0xff] }
 0x16c   : > { %v6136_v39 = vpop.f32.mrf.mxu1  ;;  %v6200_v57 = vpop.f32.mrf.mxu0  ;;  %6391 = vmatmul.mubr.bf16.gmra.mxu1 %v2816_v43  ;;  %6455 = vmatmul.mubr.bf16.gmra.mxu0 %v2817_v23 }
 0x16d   : > { %9020 = vst [vmem:[#allocation12_spill] sm:$0xff] %v7474_v36  ;;  %v7477_v54 = vadd.f32 %v1438_v35, %v1079_v42  ;;  %v1100_v25 = vadd.f32 %v6136_v39, %v9022_v47  ;;  %6394 = vmatprep.mubr.bf16.mxu1 %v2817_v23  ;;  %6458 = vmatprep.mubr.bf16.mxu0 %v2818_v34  ;;  %v9026_v23 = vld [vmem:[#allocation5_spill] sm:$0xff]  ;;  %v9028_v36 = vld [vmem:[#allocation6_spill] sm:$0xff] }
 0x16e   : > { %v1091_v8 = vpop.f32.mrf.mxu1  ;;  %v1451_v29 = vpop.f32.mrf.mxu0  ;;  %v3203_v35 = vpack.c.bf16 %v3157_v51, %v3156_v41  ;;  %v3610_v42 = vpack.c.bf16 %v3564_v53, %v3563_v12  ;;  %v3565_v41 = vld [vmem:[#allocation2 + $0x3b] sm:$0xff]  ;;  %v3566_v51 = vld [vmem:[#allocation2 + $0x43] sm:$0xff] }
 0x16f   : > { %9021 = vst [vmem:[#allocation13_spill] sm:$0xff] %v7477_v54  ;;  %v7480_v44 = vadd.f32 %v6200_v57, %v1100_v25  ;;  %v1092_v32 = vadd.f32 %v1091_v8, %v9024_v4  ;;  %v3158_v8 = vld [vmem:[#allocation2 + $0x3a] sm:$0xff]  ;;  %v3159_v4 = vld [vmem:[#allocation2 + $0x42] sm:$0xff]  ;;  %v3160_v12 = vld [vmem:[#allocation2 + $0x4a] sm:$0xff] }
 0x170   : > { %v6137_v43 = vpop.f32.mrf.mxu1  ;;  %v6201_v19 = vpop.f32.mrf.mxu0 }
 0x171   : > { %9023 = vst [vmem:[#allocation3_spill] sm:$0xff] %v7480_v44  ;;  %v7483_v59 = vadd.f32 %v1451_v29, %v1092_v32  ;;  %v1103_v34 = vadd.f32 %v6137_v43, %v9026_v23  ;;  %v3161_v43 = vld [vmem:[#allocation2 + $0x52] sm:$0xff] }
 0x172   : > { %v1094_v39 = vpop.f32.mrf.mxu1  ;;  %v1454_v47 = vpop.f32.mrf.mxu0 }
 0x173   : > { %9025 = vst [vmem:[#allocation4_spill] sm:$0xff] %v7483_v59  ;;  %v7486_v54 = vadd.f32 %v6201_v19, %v1103_v34  ;;  %v1095_v9 = vadd.f32 %v1094_v39, %v9028_v36  ;;  %v3567_v19 = vld [vmem:[#allocation2 + $0x4b] sm:$0xff]  ;;  %v3568_v36 = vld [vmem:[#allocation2 + $0x53] sm:$0xff] }
 0x174   : > { %v6140_v57 = vpop.f32.mrf.mxu1  ;;  %v6204_v25 = vpop.f32.mrf.mxu0  ;;  %6395 = vmatmul.mubr.bf16.gmra.mxu1 %v2412_v14  ;;  %6459 = vmatmul.mubr.bf16.gmra.mxu0 %v2819_v30  ;;  %v9032_v14 = vld [vmem:[#allocation8_spill] sm:$0xff] }
 0x175   : > { %9027 = vst [vmem:[#allocation5_spill] sm:$0xff] %v7486_v54  ;;  %v7489_v40 = vadd.f32 %v1454_v47, %v1095_v9  ;;  %v1116_v29 = vadd.f32 %v6140_v57, %v9030_v21  ;;  %6478 = vmatprep.mubr.bf16.mxu1 %v3203_v35  ;;  %6542 = vmatprep.mubr.bf16.mxu0 %v3610_v42  ;;  %v9033_v54 = vld [vmem:[#allocation9_spill] sm:$0xff] }
 0x176   : > { %v1107_v53 = vpop.f32.mrf.mxu1  ;;  %v1467_v32 = vpop.f32.mrf.mxu0  ;;  %v3204_v9 = vpack.c.bf16 %v3159_v4, %v3158_v8  ;;  %v3611_v47 = vpack.c.bf16 %v3566_v51, %v3565_v41  ;;  %v3205_v35 = vpack.c.bf16 %v3161_v43, %v3160_v12  ;;  %v3612_v42 = vpack.c.bf16 %v3568_v36, %v3567_v19  ;;  %v3569_v8 = vld [vmem:[#allocation2 + $0x5b] sm:$0xff]  ;;  %v3570_v4 = vld [vmem:[#allocation2 + $0x63] sm:$0xff]  ;;  %v3571_v43 = vld [vmem:[#allocation2 + $0x6b] sm:$0xff] }
 0x177   : > { %9029 = vst [vmem:[#allocation6_spill] sm:$0xff] %v7489_v40  ;;  %v7492_v23 = vadd.f32 %v6204_v25, %v1116_v29  ;;  %v1108_v30 = vadd.f32 %v1107_v53, %v9032_v14  ;;  %v3162_v25 = vld [vmem:[#allocation2 + $0x5a] sm:$0xff]  ;;  %v3163_v29 = vld [vmem:[#allocation2 + $0x62] sm:$0xff]  ;;  %v3164_v41 = vld [vmem:[#allocation2 + $0x6a] sm:$0xff] }
 0x178   : > { %v6141_v34 = vpop.f32.mrf.mxu1  ;;  %v6205_v39 = vpop.f32.mrf.mxu0 }
 0x179   : > { %9031 = vst [vmem:[#allocation7_spill] sm:$0xff] %v7492_v23  ;;  %v7495_v40 = vadd.f32 %v1467_v32, %v1108_v30  ;;  %v3165_v32 = vld [vmem:[#allocation2 + $0x72] sm:$0xff]  ;;  %v3613_v34 = vpack.c.bf16 %v3570_v4, %v3569_v8  ;;  %v3574_v8 = vld [vmem:[#allocation2 + $0x83] sm:$0xff] }
 0x17a   : > { %v1110_v57 = vpop.f32.mrf.mxu1  ;;  %v1470_v21 = vpop.f32.mrf.mxu0  ;;  %v3168_v4 = vld [vmem:[#allocation2 + $0x8a] sm:$0xff] }
 0x17b   : > { %v1111_v59 = vadd.f32 %v1110_v57, %v9033_v54  ;;  %v3572_v54 = vld [vmem:[#allocation2 + $0x73] sm:$0xff] }
 0x17c   : > { %v6224_v44 = vpop.f32.mrf.mxu1  ;;  %v6288_v55 = vpop.f32.mrf.mxu0  ;;  %6479 = vmatmul.mubr.bf16.vlgmr.msra.gmra.mxu1 %v3204_v9  ;;  %6543 = vmatmul.mubr.bf16.vlgmr.msra.gmra.mxu0 %v3611_v47  ;;  %v3614_v9 = vpack.c.bf16 %v3572_v54, %v3571_v43 }
 0x17d   : > { %v7498_v23 = vadd.f32 %v1470_v21, %v1111_v59  ;;  %v1890_v53 = vadd.f32 %v6224_v44, %v7261_v38  ;;  %6482 = vmatprep.mubr.bf16.mxu1 %v3205_v35  ;;  %6546 = vmatprep.mubr.bf16.mxu0 %v3612_v42  ;;  %v3206_v59 = vpack.c.bf16 %v3163_v29, %v3162_v25 }
 0x17e   : > { %v1698_v51 = vpop.f32.mrf.mxu1  ;;  %v2105_v12 = vpop.f32.mrf.mxu0  ;;  %v3207_v44 = vpack.c.bf16 %v3165_v32, %v3164_v41  ;;  %v3575_v32 = vld [vmem:[#allocation2 + $0x8b] sm:$0xff] }
 0x17f   : > { %v7501_v19 = vadd.f32 %v6288_v55, %v1890_v53  ;;  %v1888_v36 = vadd.f32 %v1698_v51, %v7264_v7  ;;  %v3166_v7 = vld [vmem:[#allocation2 + $0x7a] sm:$0xff]  ;;  %v3167_v53 = vld [vmem:[#allocation2 + $0x82] sm:$0xff] }
 0x180   : > { %v6225_v14 = vpop.f32.mrf.mxu1  ;;  %v6289_v30 = vpop.f32.mrf.mxu0 }
 0x181   : > { %v7504_v39 = vadd.f32 %v2105_v12, %v1888_v36  ;;  %v1891_v38 = vadd.f32 %v6225_v14, %v7267_v49  ;;  %v3573_v49 = vld [vmem:[#allocation2 + $0x7b] sm:$0xff]  ;;  %v3169_v12 = vld [vmem:[#allocation2 + $0x92] sm:$0xff] }
 0x182   : > { %v1701_v47 = vpop.f32.mrf.mxu1  ;;  %v2108_v35 = vpop.f32.mrf.mxu0 }
 0x183   : > { %v7507_v42 = vadd.f32 %v6289_v30, %v1891_v38  ;;  %v1889_v57 = vadd.f32 %v1701_v47, %v7276_v0  ;;  %v3576_v0 = vld [vmem:[#allocation2 + $0x93] sm:$0xff]  ;;  %v3208_v30 = vpack.c.bf16 %v3167_v53, %v3166_v7  ;;  %v3209_v38 = vpack.c.bf16 %v3169_v12, %v3168_v4  ;;  %v3579_v12 = vld [vmem:[#allocation2 + $0xab] sm:$0xff] }
 0x184   : > { %v6228_v55 = vpop.f32.mrf.mxu1  ;;  %v6292_v21 = vpop.f32.mrf.mxu0  ;;  %6483 = vmatmul.mubr.bf16.gmra.mxu1 %v3206_v59  ;;  %6547 = vmatmul.mubr.bf16.gmra.mxu0 %v3613_v34  ;;  %v3615_v59 = vpack.c.bf16 %v3574_v8, %v3573_v49  ;;  %v3578_v49 = vld [vmem:[#allocation2 + $0xa3] sm:$0xff] }
 0x185   : > { %v7510_v25 = vadd.f32 %v2108_v35, %v1889_v57  ;;  %v1894_v29 = vadd.f32 %v6228_v55, %v7285_v26  ;;  %6486 = vmatprep.mubr.bf16.mxu1 %v3207_v44  ;;  %6550 = vmatprep.mubr.bf16.mxu0 %v3614_v9  ;;  %v3616_v44 = vpack.c.bf16 %v3576_v0, %v3575_v32  ;;  %v3172_v8 = vld [vmem:[#allocation2 + $0xaa] sm:$0xff] }
 0x186   : > { %v1714_v41 = vpop.f32.mrf.mxu1  ;;  %v2121_v51 = vpop.f32.mrf.mxu0 }
 0x187   : > { %v7513_v43 = vadd.f32 %v6292_v21, %v1894_v29  ;;  %v1892_v54 = vadd.f32 %v1714_v41, %v7294_v16  ;;  %v3170_v16 = vld [vmem:[#allocation2 + $0x9a] sm:$0xff]  ;;  %v3171_v29 = vld [vmem:[#allocation2 + $0xa2] sm:$0xff] }
 0x188   : > { %v6229_v36 = vpop.f32.mrf.mxu1  ;;  %v6293_v14 = vpop.f32.mrf.mxu0 }
 0x189   : > { %v7516_v34 = vadd.f32 %v2121_v51, %v1892_v54  ;;  %v1895_v26 = vadd.f32 %v6229_v36, %v7297_v31  ;;  %v3577_v31 = vld [vmem:[#allocation2 + $0x9b] sm:$0xff]  ;;  %v3173_v51 = vld [vmem:[#allocation2 + $0xb2] sm:$0xff] }
 0x18a   : > { %v1717_v9 = vpop.f32.mrf.mxu1  ;;  %v2124_v47 = vpop.f32.mrf.mxu0 }
 0x18b   : > { %v7519_v35 = vadd.f32 %v6293_v14, %v1895_v26  ;;  %v1893_v57 = vadd.f32 %v1717_v9, %v7306_v33  ;;  %v3580_v33 = vld [vmem:[#allocation2 + $0xb3] sm:$0xff]  ;;  %v3210_v14 = vpack.c.bf16 %v3171_v29, %v3170_v16  ;;  %v3211_v26 = vpack.c.bf16 %v3173_v51, %v3172_v8  ;;  %v3583_v51 = vld [vmem:[#allocation2 + $0xcb] sm:$0xff] }
 0x18c   : > { %v6232_v55 = vpop.f32.mrf.mxu1  ;;  %v6296_v21 = vpop.f32.mrf.mxu0  ;;  %6487 = vmatmul.mubr.bf16.gmra.mxu1 %v3208_v30  ;;  %6551 = vmatmul.mubr.bf16.gmra.mxu0 %v3615_v59  ;;  %v3617_v30 = vpack.c.bf16 %v3578_v49, %v3577_v31  ;;  %v3582_v31 = vld [vmem:[#allocation2 + $0xc3] sm:$0xff] }
 0x18d   : > { %v7522_v7 = vadd.f32 %v2124_v47, %v1893_v57  ;;  %v1898_v53 = vadd.f32 %v6232_v55, %v7315_v58  ;;  %6490 = vmatprep.mubr.bf16.mxu1 %v3209_v38  ;;  %6554 = vmatprep.mubr.bf16.mxu0 %v3616_v44  ;;  %v3618_v38 = vpack.c.bf16 %v3580_v33, %v3579_v12  ;;  %v3176_v49 = vld [vmem:[#allocation2 + $0xca] sm:$0xff] }
 0x18e   : > { %v1730_v4 = vpop.f32.mrf.mxu1  ;;  %v2137_v41 = vpop.f32.mrf.mxu0 }
 0x18f   : > { %v7525_v32 = vadd.f32 %v6296_v21, %v1898_v53  ;;  %v1896_v0 = vadd.f32 %v1730_v4, %v7324_v17  ;;  %v3174_v17 = vld [vmem:[#allocation2 + $0xba] sm:$0xff]  ;;  %v3175_v53 = vld [vmem:[#allocation2 + $0xc2] sm:$0xff] }
 0x190   : > { %v6233_v54 = vpop.f32.mrf.mxu1  ;;  %v6297_v36 = vpop.f32.mrf.mxu0 }
 0x191   : > { %v7528_v59 = vadd.f32 %v2137_v41, %v1896_v0  ;;  %v1899_v58 = vadd.f32 %v6233_v54, %v7327_v5  ;;  %v3581_v5 = vld [vmem:[#allocation2 + $0xbb] sm:$0xff]  ;;  %v3177_v41 = vld [vmem:[#allocation2 + $0xd2] sm:$0xff] }
 0x192   : > { %v1733_v44 = vpop.f32.mrf.mxu1  ;;  %v2140_v9 = vpop.f32.mrf.mxu0 }
 0x193   : > { %v7531_v47 = vadd.f32 %v6297_v36, %v1899_v58  ;;  %v1897_v57 = vadd.f32 %v1733_v44, %v7336_v27  ;;  %v3584_v27 = vld [vmem:[#allocation2 + $0xd3] sm:$0xff]  ;;  %v3212_v36 = vpack.c.bf16 %v3175_v53, %v3174_v17  ;;  %v3213_v58 = vpack.c.bf16 %v3177_v41, %v3176_v49  ;;  %v3587_v41 = vld [vmem:[#allocation2 + $0xeb] sm:$0xff] }
 0x194   : > { %v6236_v55 = vpop.f32.mrf.mxu1  ;;  %v6300_v21 = vpop.f32.mrf.mxu0  ;;  %6491 = vmatmul.mubr.bf16.gmra.mxu1 %v3210_v14  ;;  %6555 = vmatmul.mubr.bf16.gmra.mxu0 %v3617_v30  ;;  %v3619_v14 = vpack.c.bf16 %v3582_v31, %v3581_v5  ;;  %v3586_v5 = vld [vmem:[#allocation2 + $0xe3] sm:$0xff] }
 0x195   : > { %v7534_v16 = vadd.f32 %v2140_v9, %v1897_v57  ;;  %v1902_v29 = vadd.f32 %v6236_v55, %v7345_v28  ;;  %6494 = vmatprep.mubr.bf16.mxu1 %v3211_v26  ;;  %6558 = vmatprep.mubr.bf16.mxu0 %v3618_v38  ;;  %v3620_v26 = vpack.c.bf16 %v3584_v27, %v3583_v51  ;;  %v3180_v31 = vld [vmem:[#allocation2 + $0xea] sm:$0xff] }
 0x196   : > { %v1746_v8 = vpop.f32.mrf.mxu1  ;;  %v2153_v4 = vpop.f32.mrf.mxu0 }
 0x197   : > { %v7537_v12 = vadd.f32 %v6300_v21, %v1902_v29  ;;  %v1900_v33 = vadd.f32 %v1746_v8, %v7348_v6  ;;  %v3178_v6 = vld [vmem:[#allocation2 + $0xda] sm:$0xff]  ;;  %v3179_v29 = vld [vmem:[#allocation2 + $0xe2] sm:$0xff] }
 0x198   : > { %v6237_v0 = vpop.f32.mrf.mxu1  ;;  %v6301_v54 = vpop.f32.mrf.mxu0 }
 0x199   : > { %v7540_v30 = vadd.f32 %v2153_v4, %v1900_v33  ;;  %v1903_v28 = vadd.f32 %v6237_v0, %v7351_v62  ;;  %v3585_v62 = vld [vmem:[#allocation2 + $0xdb] sm:$0xff]  ;;  %v3181_v4 = vld [vmem:[#allocation2 + $0xf2] sm:$0xff] }
 0x19a   : > { %v1749_v38 = vpop.f32.mrf.mxu1  ;;  %v2156_v44 = vpop.f32.mrf.mxu0 }
 0x19b   : > { %v7543_v9 = vadd.f32 %v6301_v54, %v1903_v28  ;;  %v1901_v57 = vadd.f32 %v1749_v38, %v7360_v52  ;;  %v3588_v52 = vld [vmem:[#allocation2 + $0xf3] sm:$0xff]  ;;  %v3214_v54 = vpack.c.bf16 %v3179_v29, %v3178_v6  ;;  %v3215_v28 = vpack.c.bf16 %v3181_v4, %v3180_v31  ;;  %v3591_v4 = vld [vmem:[#allocation2 + $0x10b] sm:$0xff] }
 0x19c   : > { %v6240_v55 = vpop.f32.mrf.mxu1  ;;  %v6304_v21 = vpop.f32.mrf.mxu0  ;;  %6495 = vmatmul.mubr.bf16.gmra.mxu1 %v3212_v36  ;;  %6559 = vmatmul.mubr.bf16.gmra.mxu0 %v3619_v14  ;;  %v3621_v36 = vpack.c.bf16 %v3586_v5, %v3585_v62  ;;  %v3590_v62 = vld [vmem:[#allocation2 + $0x103] sm:$0xff] }
 0x19d   : > { %v7546_v17 = vadd.f32 %v2156_v44, %v1901_v57  ;;  %v1906_v53 = vadd.f32 %v6240_v55, %v7363_v1  ;;  %6498 = vmatprep.mubr.bf16.mxu1 %v3213_v58  ;;  %6562 = vmatprep.mubr.bf16.mxu0 %v3620_v26  ;;  %v3622_v58 = vpack.c.bf16 %v3588_v52, %v3587_v41  ;;  %v3184_v5 = vld [vmem:[#allocation2 + $0x10a] sm:$0xff] }
 0x19e   : > { %v1762_v49 = vpop.f32.mrf.mxu1  ;;  %v2169_v8 = vpop.f32.mrf.mxu0 }
 0x19f   : > { %v7549_v51 = vadd.f32 %v6304_v21, %v1906_v53  ;;  %v1904_v27 = vadd.f32 %v1762_v49, %v7372_v18  ;;  %v3182_v18 = vld [vmem:[#allocation2 + $0xfa] sm:$0xff]  ;;  %v3183_v53 = vld [vmem:[#allocation2 + $0x102] sm:$0xff] }
 0x1a0   : > { %v6241_v33 = vpop.f32.mrf.mxu1  ;;  %v6305_v0 = vpop.f32.mrf.mxu0 }
 0x1a1   : > { %v7552_v14 = vadd.f32 %v2169_v8, %v1904_v27  ;;  %v1907_v1 = vadd.f32 %v6241_v33, %v7375_v13  ;;  %v3589_v13 = vld [vmem:[#allocation2 + $0xfb] sm:$0xff]  ;;  %v3185_v8 = vld [vmem:[#allocation2 + $0x112] sm:$0xff] }
 0x1a2   : > { %v1765_v26 = vpop.f32.mrf.mxu1  ;;  %v2172_v38 = vpop.f32.mrf.mxu0 }
 0x1a3   : > { %v7555_v44 = vadd.f32 %v6305_v0, %v1907_v1  ;;  %v1905_v57 = vadd.f32 %v1765_v26, %v7384_v22  ;;  %v3592_v22 = vld [vmem:[#allocation2 + $0x113] sm:$0xff]  ;;  %v3216_v0 = vpack.c.bf16 %v3183_v53, %v3182_v18  ;;  %v3217_v1 = vpack.c.bf16 %v3185_v8, %v3184_v5  ;;  %v3595_v8 = vld [vmem:[#allocation2 + $0x12b] sm:$0xff] }
 0x1a4   : > { %v6244_v55 = vpop.f32.mrf.mxu1  ;;  %v6308_v21 = vpop.f32.mrf.mxu0  ;;  %6499 = vmatmul.mubr.bf16.gmra.mxu1 %v3214_v54  ;;  %6563 = vmatmul.mubr.bf16.gmra.mxu0 %v3621_v36  ;;  %v3623_v54 = vpack.c.bf16 %v3590_v62, %v3589_v13  ;;  %v3594_v13 = vld [vmem:[#allocation2 + $0x123] sm:$0xff] }
 0x1a5   : > { %v7558_v6 = vadd.f32 %v2172_v38, %v1905_v57  ;;  %v1910_v29 = vadd.f32 %v6244_v55, %v7387_v15  ;;  %6502 = vmatprep.mubr.bf16.mxu1 %v3215_v28  ;;  %6566 = vmatprep.mubr.bf16.mxu0 %v3622_v58  ;;  %v3624_v28 = vpack.c.bf16 %v3592_v22, %v3591_v4  ;;  %v3188_v62 = vld [vmem:[#allocation2 + $0x12a] sm:$0xff] }
 0x1a6   : > { %v1778_v31 = vpop.f32.mrf.mxu1  ;;  %v2185_v49 = vpop.f32.mrf.mxu0 }
 0x1a7   : > { %v7561_v41 = vadd.f32 %v6308_v21, %v1910_v29  ;;  %v1908_v52 = vadd.f32 %v1778_v31, %v7396_v11  ;;  %v3186_v11 = vld [vmem:[#allocation2 + $0x11a] sm:$0xff]  ;;  %v3187_v29 = vld [vmem:[#allocation2 + $0x122] sm:$0xff] }
 0x1a8   : > { %v6245_v27 = vpop.f32.mrf.mxu1  ;;  %v6309_v33 = vpop.f32.mrf.mxu0 }
 0x1a9   : > { %v7564_v36 = vadd.f32 %v2185_v49, %v1908_v52  ;;  %v1911_v15 = vadd.f32 %v6245_v27, %v7399_v60  ;;  %v3593_v60 = vld [vmem:[#allocation2 + $0x11b] sm:$0xff]  ;;  %v3189_v49 = vld [vmem:[#allocation2 + $0x132] sm:$0xff] }
 0x1aa   : > { %v1781_v58 = vpop.f32.mrf.mxu1  ;;  %v2188_v26 = vpop.f32.mrf.mxu0 }
 0x1ab   : > { %v7567_v38 = vadd.f32 %v6309_v33, %v1911_v15  ;;  %v1909_v57 = vadd.f32 %v1781_v58, %v7408_v24  ;;  %v3596_v24 = vld [vmem:[#allocation2 + $0x133] sm:$0xff]  ;;  %v3218_v33 = vpack.c.bf16 %v3187_v29, %v3186_v11  ;;  %v3219_v15 = vpack.c.bf16 %v3189_v49, %v3188_v62  ;;  %v3599_v49 = vld [vmem:[#allocation2 + $0x14b] sm:$0xff] }
 0x1ac   : > { %v6248_v55 = vpop.f32.mrf.mxu1  ;;  %v6312_v21 = vpop.f32.mrf.mxu0  ;;  %6503 = vmatmul.mubr.bf16.gmra.mxu1 %v3216_v0  ;;  %6567 = vmatmul.mubr.bf16.gmra.mxu0 %v3623_v54  ;;  %v3625_v0 = vpack.c.bf16 %v3594_v13, %v3593_v60  ;;  %v3598_v60 = vld [vmem:[#allocation2 + $0x143] sm:$0xff] }
 0x1ad   : > { %v7570_v18 = vadd.f32 %v2188_v26, %v1909_v57  ;;  %v1914_v53 = vadd.f32 %v6248_v55, %v7411_v61  ;;  %6506 = vmatprep.mubr.bf16.mxu1 %v3217_v1  ;;  %6570 = vmatprep.mubr.bf16.mxu0 %v3624_v28  ;;  %v3626_v1 = vpack.c.bf16 %v3596_v24, %v3595_v8  ;;  %v3192_v13 = vld [vmem:[#allocation2 + $0x14a] sm:$0xff] }
 0x1ae   : > { %v1794_v5 = vpop.f32.mrf.mxu1  ;;  %v2201_v31 = vpop.f32.mrf.mxu0 }
 0x1af   : > { %v7573_v4 = vadd.f32 %v6312_v21, %v1914_v53  ;;  %v1912_v22 = vadd.f32 %v1794_v5, %v7420_v45  ;;  %v3190_v45 = vld [vmem:[#allocation2 + $0x13a] sm:$0xff]  ;;  %v3191_v53 = vld [vmem:[#allocation2 + $0x142] sm:$0xff] }
 0x1b0   : > { %v6249_v52 = vpop.f32.mrf.mxu1  ;;  %v6313_v27 = vpop.f32.mrf.mxu0 }
 0x1b1   : > { %v7576_v54 = vadd.f32 %v2201_v31, %v1912_v22  ;;  %v1915_v61 = vadd.f32 %v6249_v52, %v7423_v46  ;;  %v3597_v46 = vld [vmem:[#allocation2 + $0x13b] sm:$0xff]  ;;  %v3193_v31 = vld [vmem:[#allocation2 + $0x152] sm:$0xff] }
 0x1b2   : > { %v1797_v28 = vpop.f32.mrf.mxu1  ;;  %v2204_v58 = vpop.f32.mrf.mxu0 }
 0x1b3   : > { %v7579_v26 = vadd.f32 %v6313_v27, %v1915_v61  ;;  %v1913_v57 = vadd.f32 %v1797_v28, %v7432_v50  ;;  %v3600_v50 = vld [vmem:[#allocation2 + $0x153] sm:$0xff]  ;;  %v3220_v27 = vpack.c.bf16 %v3191_v53, %v3190_v45  ;;  %v3221_v61 = vpack.c.bf16 %v3193_v31, %v3192_v13  ;;  %v3603_v31 = vld [vmem:[#allocation2 + $0x16b] sm:$0xff] }
 0x1b4   : > { %v6252_v55 = vpop.f32.mrf.mxu1  ;;  %v6316_v21 = vpop.f32.mrf.mxu0  ;;  %6507 = vmatmul.mubr.bf16.gmra.mxu1 %v3218_v33  ;;  %6571 = vmatmul.mubr.bf16.gmra.mxu0 %v3625_v0  ;;  %v3627_v33 = vpack.c.bf16 %v3598_v60, %v3597_v46  ;;  %v3602_v46 = vld [vmem:[#allocation2 + $0x163] sm:$0xff] }
 0x1b5   : > { %v7582_v11 = vadd.f32 %v2204_v58, %v1913_v57  ;;  %v1918_v29 = vadd.f32 %v6252_v55, %v7435_v2  ;;  %6510 = vmatprep.mubr.bf16.mxu1 %v3219_v15  ;;  %6574 = vmatprep.mubr.bf16.mxu0 %v3626_v1  ;;  %v3628_v15 = vpack.c.bf16 %v3600_v50, %v3599_v49  ;;  %v3196_v60 = vld [vmem:[#allocation2 + $0x16a] sm:$0xff] }
 0x1b6   : > { %v1810_v62 = vpop.f32.mrf.mxu1  ;;  %v2217_v5 = vpop.f32.mrf.mxu0 }
 0x1b7   : > { %v7585_v8 = vadd.f32 %v6316_v21, %v1918_v29  ;;  %v1916_v24 = vadd.f32 %v1810_v62, %v7444_v48  ;;  %v3194_v48 = vld [vmem:[#allocation2 + $0x15a] sm:$0xff]  ;;  %v3195_v29 = vld [vmem:[#allocation2 + $0x162] sm:$0xff] }
 0x1b8   : > { %v6253_v22 = vpop.f32.mrf.mxu1  ;;  %v6317_v52 = vpop.f32.mrf.mxu0 }
 0x1b9   : > { %v7588_v0 = vadd.f32 %v2217_v5, %v1916_v24  ;;  %v1919_v2 = vadd.f32 %v6253_v22, %v7447_v3  ;;  %v3601_v3 = vld [vmem:[#allocation2 + $0x15b] sm:$0xff]  ;;  %v3197_v5 = vld [vmem:[#allocation2 + $0x172] sm:$0xff] }
 0x1ba   : > { %v1813_v1 = vpop.f32.mrf.mxu1  ;;  %v2220_v28 = vpop.f32.mrf.mxu0 }
 0x1bb   : > { %v7591_v58 = vadd.f32 %v6317_v52, %v1919_v2  ;;  %v1917_v57 = vadd.f32 %v1813_v1, %v7453_v10  ;;  %v3604_v10 = vld [vmem:[#allocation2 + $0x173] sm:$0xff]  ;;  %v3222_v52 = vpack.c.bf16 %v3195_v29, %v3194_v48  ;;  %v3223_v2 = vpack.c.bf16 %v3197_v5, %v3196_v60  ;;  %v9037_v29 = vld [vmem:[#allocation10_spill] sm:$0xff]  ;;  %v3200_v60 = vld [vmem:[#allocation2 + $0x18a] sm:$0xff] }
 0x1bc   : > { %v6256_v55 = vpop.f32.mrf.mxu1  ;;  %v6320_v21 = vpop.f32.mrf.mxu0  ;;  %6511 = vmatmul.mubr.bf16.gmra.mxu1 %v3220_v27  ;;  %6575 = vmatmul.mubr.bf16.gmra.mxu0 %v3627_v33  ;;  %v3629_v27 = vpack.c.bf16 %v3602_v46, %v3601_v3  ;;  %v3606_v46 = vld [vmem:[#allocation2 + $0x183] sm:$0xff]  ;;  %v3201_v5 = vld [vmem:[#allocation2 + $0x192] sm:$0xff] }
 0x1bd   : > { %v7594_v45 = vadd.f32 %v2220_v28, %v1917_v57  ;;  %v1922_v53 = vadd.f32 %v6256_v55, %v7456_v56  ;;  %6514 = vmatprep.mubr.bf16.mxu1 %v3221_v61  ;;  %6578 = vmatprep.mubr.bf16.mxu0 %v3628_v15  ;;  %v3630_v61 = vpack.c.bf16 %v3604_v10, %v3603_v31  ;;  %v3607_v31 = vld [vmem:[#allocation2 + $0x18b] sm:$0xff] }
 0x1be   : > { %v1826_v13 = vpop.f32.mrf.mxu1  ;;  %v2233_v62 = vpop.f32.mrf.mxu0 }
 0x1bf   : > { %v7597_v49 = vadd.f32 %v6320_v21, %v1922_v53  ;;  %v1920_v50 = vadd.f32 %v1826_v13, %v7459_v63  ;;  %v3198_v63 = vld [vmem:[#allocation2 + $0x17a] sm:$0xff]  ;;  %v3199_v53 = vld [vmem:[#allocation2 + $0x182] sm:$0xff] }
 0x1c0   : > { %v6257_v24 = vpop.f32.mrf.mxu1  ;;  %v6321_v22 = vpop.f32.mrf.mxu0 }
 0x1c1   : > { %v7600_v33 = vadd.f32 %v2233_v62, %v1920_v50  ;;  %v1923_v56 = vadd.f32 %v6257_v24, %v7462_v20  ;;  %v3605_v20 = vld [vmem:[#allocation2 + $0x17b] sm:$0xff]  ;;  %v9038_v50 = vld [vmem:[#allocation11_spill] sm:$0xff] }
 0x1c2   : > { %v1829_v15 = vpop.f32.mrf.mxu1  ;;  %v2236_v1 = vpop.f32.mrf.mxu0 }
 0x1c3   : > { %9034 = vst [vmem:[#allocation8_spill] sm:$0xff] %v7600_v33  ;;  %v7603_v28 = vadd.f32 %v6321_v22, %v1923_v56  ;;  %v1921_v57 = vadd.f32 %v1829_v15, %v7465_v37  ;;  %v3608_v37 = vld [vmem:[#allocation2 + $0x193] sm:$0xff]  ;;  %v3631_v56 = vpack.c.bf16 %v3606_v46, %v3605_v20  ;;  %v3609_v46 = vld [vmem:[#allocation2 + $0x19b] sm:$0xf] }
 0x1c4   : > { %v6260_v55 = vpop.f32.mrf.mxu1  ;;  %v6324_v21 = vpop.f32.mrf.mxu0  ;;  %6515 = vmatmul.mubr.bf16.gmra.mxu1 %v3222_v52  ;;  %6579 = vmatmul.mubr.bf16.gmra.mxu0 %v3629_v27  ;;  %v3224_v27 = vpack.c.bf16 %v3199_v53, %v3198_v63  ;;  %v9041_v63 = vld [vmem:[#allocation3_spill] sm:$0xff]  ;;  %v3202_v20 = vld [vmem:[#allocation2 + $0x19a] sm:$0xf] }
 0x1c5   : > { %9035 = vst [vmem:[#allocation9_spill] sm:$0xff] %v7603_v28  ;;  %v7606_v48 = vadd.f32 %v2236_v1, %v1921_v57  ;;  %v1926_v3 = vadd.f32 %v6260_v55, %v9037_v29  ;;  %6518 = vmatprep.mubr.bf16.mxu1 %v3223_v2  ;;  %6582 = vmatprep.mubr.bf16.mxu0 %v3630_v61  ;;  %v9039_v2 = vld [vmem:[#allocation12_spill] sm:$0xff]  ;;  %v9040_v28 = vld [vmem:[#allocation13_spill] sm:$0xff] }
 0x1c6   : > { %v1842_v13 = vpop.f32.mrf.mxu1  ;;  %v2249_v62 = vpop.f32.mrf.mxu0  ;;  %v3225_v1 = vpack.c.bf16 %v3201_v5, %v3200_v60  ;;  %v3632_v57 = vpack.c.bf16 %v3608_v37, %v3607_v31  ;;  %v9042_v31 = vld [vmem:[#allocation4_spill] sm:$0xff] }
 0x1c7   : > { %9036 = vst [vmem:[#allocation14_spill] sm:$0xff] %v7606_v48  ;;  %v7609_v10 = vadd.f32 %v6324_v21, %v1926_v3  ;;  %v1924_v24 = vadd.f32 %v1842_v13, %v9038_v50 }
 0x1c8   : > { %v6261_v22 = vpop.f32.mrf.mxu1  ;;  %v6325_v52 = vpop.f32.mrf.mxu0 }
 0x1c9   : > { %v7612_v15 = vadd.f32 %v2249_v62, %v1924_v24  ;;  %v1927_v61 = vadd.f32 %v6261_v22, %v9039_v2  ;;  %v3226_v24 = vpack.c.bf16 %v3202_v20, %v3202_v20  ;;  %v3633_v22 = vpack.c.bf16 %v3609_v46, %v3609_v46 }
 0x1ca   : > { %v1845_v55 = vpop.f32.mrf.mxu1  ;;  %v2252_v29 = vpop.f32.mrf.mxu0 }
 0x1cb   : > { %v7615_v48 = vadd.f32 %v6325_v52, %v1927_v61  ;;  %v1925_v33 = vadd.f32 %v1845_v55, %v9040_v28 }
 0x1cc   : > { %v6264_v21 = vpop.f32.mrf.mxu1  ;;  %v6328_v3 = vpop.f32.mrf.mxu0  ;;  %6519 = vmatmul.mubr.bf16.gmra.mxu1 %v3224_v27  ;;  %6583 = vmatmul.mubr.bf16.gmra.mxu0 %v3631_v56 }
 0x1cd   : > { %v7618_v13 = vadd.f32 %v2252_v29, %v1925_v33  ;;  %v1930_v53 = vadd.f32 %v6264_v21, %v9041_v63  ;;  %6522 = vmatprep.mubr.bf16.mxu1 %v3225_v1  ;;  %6586 = vmatprep.mubr.bf16.mxu0 %v3632_v57  ;;  %v9043_v33 = vld [vmem:[#allocation5_spill] sm:$0xff]  ;;  %v9044_v1 = vld [vmem:[#allocation6_spill] sm:$0xff] }
 0x1ce   : > { %v1858_v60 = vpop.f32.mrf.mxu1  ;;  %v2265_v62 = vpop.f32.mrf.mxu0 }
 0x1cf   : > { %v7621_v5 = vadd.f32 %v6328_v3, %v1930_v53  ;;  %v1928_v37 = vadd.f32 %v1858_v60, %v9042_v31  ;;  %v9045_v3 = vld [vmem:[#allocation7_spill] sm:$0xff] }
 0x1d0   : > { %v6265_v50 = vpop.f32.mrf.mxu1  ;;  %v6329_v28 = vpop.f32.mrf.mxu0 }
 0x1d1   : > { %v7624_v52 = vadd.f32 %v2265_v62, %v1928_v37  ;;  %v1931_v27 = vadd.f32 %v6265_v50, %v9043_v33 }
 0x1d2   : > { %v1861_v56 = vpop.f32.mrf.mxu1  ;;  %v2268_v2 = vpop.f32.mrf.mxu0 }
 0x1d3   : > { %v7627_v61 = vadd.f32 %v6329_v28, %v1931_v27  ;;  %v1929_v57 = vadd.f32 %v1861_v56, %v9044_v1 }
 0x1d4   : > { %v6268_v55 = vpop.f32.mrf.mxu1  ;;  %v6332_v29 = vpop.f32.mrf.mxu0  ;;  %6523 = vmatmul.mubr.bf16.gmra.mxu1 %v3226_v24  ;;  %6587 = vmatmul.mubr.bf16.gmra.mxu0 %v3633_v22 }
 0x1d5   : > { %v7630_v21 = vadd.f32 %v2268_v2, %v1929_v57  ;;  %v1934_v63 = vadd.f32 %v6268_v55, %v9045_v3 }
 0x1d6   : > { %v1874_v53 = vpop.f32.mrf.mxu1  ;;  %v2281_v20 = vpop.f32.mrf.mxu0 }
 0x1d7   : > { %v7633_v46 = vadd.f32 %v6332_v29, %v1934_v63  ;;  %v1932_v60 = vadd.f32 %v1874_v53, %v7495_v40 }
 0x1d8   : > { %v6269_v62 = vpop.f32.mrf.mxu1  ;;  %v6333_v31 = vpop.f32.mrf.mxu0 }
 0x1d9   : > { %v7636_v37 = vadd.f32 %v2281_v20, %v1932_v60 }
 0x1da   : > { %v1877_v50 = vpop.f32.mrf.mxu1  ;;  %v2284_v28 = vpop.f32.mrf.mxu0 }
 0x1db   : > { %v1933_v33 = vadd.f32 %v1877_v50, %v7498_v23 }
 0x1dc   : > { %v6352_v24 = vpop.f32.mrf.mxu1  ;;  %v6416_v22 = vpop.f32.mrf.mxu0 }
 0x1dd   : > { %v7639_v27 = vadd.f32 %v2284_v28, %v1933_v33  ;;  %v2704_v56 = vadd.f32 %v6352_v24, %v7501_v19 }
 0x1de   : > { %v2512_v2 = vpop.f32.mrf.mxu1  ;;  %v2919_v1 = vpop.f32.mrf.mxu0 }
 0x1df   : > { %v7642_v57 = vadd.f32 %v6416_v22, %v2704_v56  ;;  %v2702_v40 = vadd.f32 %v2512_v2, %v7504_v39 }
 0x1e0   : > { %v6353_v55 = vpop.f32.mrf.mxu1  ;;  %v6417_v29 = vpop.f32.mrf.mxu0 }
 0x1e1   : > { %v7645_v3 = vadd.f32 %v2919_v1, %v2702_v40  ;;  %v2705_v63 = vadd.f32 %v6353_v55, %v7507_v42 }
 0x1e2   : > { %v2515_v53 = vpop.f32.mrf.mxu1  ;;  %v2922_v23 = vpop.f32.mrf.mxu0 }
 0x1e3   : > { %v7648_v20 = vadd.f32 %v6417_v29, %v2705_v63  ;;  %v2703_v60 = vadd.f32 %v2515_v53, %v7510_v25 }
 0x1e4   : > { %v6356_v62 = vpop.f32.mrf.mxu1  ;;  %v6420_v19 = vpop.f32.mrf.mxu0 }
 0x1e5   : > { %v7651_v31 = vadd.f32 %v2922_v23, %v2703_v60  ;;  %v2708_v50 = vadd.f32 %v6356_v62, %v7513_v43 }
 0x1e6   : > { %v2528_v28 = vpop.f32.mrf.mxu1  ;;  %v2935_v39 = vpop.f32.mrf.mxu0 }
 0x1e7   : > { %v7654_v33 = vadd.f32 %v6420_v19, %v2708_v50  ;;  %v2706_v24 = vadd.f32 %v2528_v28, %v7516_v34 }
 0x1e8   : > { %v6357_v22 = vpop.f32.mrf.mxu1  ;;  %v6421_v42 = vpop.f32.mrf.mxu0 }
 0x1e9   : > { %v7657_v56 = vadd.f32 %v2935_v39, %v2706_v24  ;;  %v2709_v2 = vadd.f32 %v6357_v22, %v7519_v35 }
 0x1ea   : > { %v2531_v1 = vpop.f32.mrf.mxu1  ;;  %v2938_v25 = vpop.f32.mrf.mxu0 }
 0x1eb   : > { %v7660_v40 = vadd.f32 %v6421_v42, %v2709_v2  ;;  %v2707_v55 = vadd.f32 %v2531_v1, %v7522_v7 }
 0x1ec   : > { %v6360_v29 = vpop.f32.mrf.mxu1  ;;  %v6424_v43 = vpop.f32.mrf.mxu0 }
 0x1ed   : > { %v7663_v63 = vadd.f32 %v2938_v25, %v2707_v55  ;;  %v2712_v53 = vadd.f32 %v6360_v29, %v7525_v32 }
 0x1ee   : > { %v2544_v23 = vpop.f32.mrf.mxu1  ;;  %v2951_v34 = vpop.f32.mrf.mxu0 }
 0x1ef   : > { %v7666_v60 = vadd.f32 %v6424_v43, %v2712_v53  ;;  %v2710_v62 = vadd.f32 %v2544_v23, %v7528_v59 }
 0x1f0   : > { %v6361_v19 = vpop.f32.mrf.mxu1  ;;  %v6425_v35 = vpop.f32.mrf.mxu0 }
 0x1f1   : > { %v7669_v50 = vadd.f32 %v2951_v34, %v2710_v62  ;;  %v2713_v28 = vadd.f32 %v6361_v19, %v7531_v47 }
 0x1f2   : > { %v2547_v39 = vpop.f32.mrf.mxu1  ;;  %v2954_v7 = vpop.f32.mrf.mxu0 }
 0x1f3   : > { %v7672_v24 = vadd.f32 %v6425_v35, %v2713_v28  ;;  %v2711_v22 = vadd.f32 %v2547_v39, %v7534_v16 }
 0x1f4   : > { %v6364_v42 = vpop.f32.mrf.mxu1  ;;  %v6428_v32 = vpop.f32.mrf.mxu0 }
 0x1f5   : > { %v7675_v2 = vadd.f32 %v2954_v7, %v2711_v22  ;;  %v2716_v1 = vadd.f32 %v6364_v42, %v7537_v12 }
 0x1f6   : > { %v2560_v25 = vpop.f32.mrf.mxu1  ;;  %v2967_v59 = vpop.f32.mrf.mxu0 }
 0x1f7   : > { %v7678_v55 = vadd.f32 %v6428_v32, %v2716_v1  ;;  %v2714_v29 = vadd.f32 %v2560_v25, %v7540_v30 }
 0x1f8   : > { %v6365_v43 = vpop.f32.mrf.mxu1  ;;  %v6429_v47 = vpop.f32.mrf.mxu0 }
 0x1f9   : > { %v7681_v53 = vadd.f32 %v2967_v59, %v2714_v29  ;;  %v2717_v23 = vadd.f32 %v6365_v43, %v7543_v9 }
 0x1fa   : > { %v2563_v34 = vpop.f32.mrf.mxu1  ;;  %v2970_v16 = vpop.f32.mrf.mxu0 }
 0x1fb   : > { %v7684_v62 = vadd.f32 %v6429_v47, %v2717_v23  ;;  %v2715_v19 = vadd.f32 %v2563_v34, %v7546_v17 }
 0x1fc   : > { %v6368_v35 = vpop.f32.mrf.mxu1  ;;  %v6432_v12 = vpop.f32.mrf.mxu0 }
 0x1fd   : > { %v7687_v28 = vadd.f32 %v2970_v16, %v2715_v19  ;;  %v2720_v39 = vadd.f32 %v6368_v35, %v7549_v51 }
 0x1fe   : > { %v2576_v7 = vpop.f32.mrf.mxu1  ;;  %v2983_v30 = vpop.f32.mrf.mxu0 }
 0x1ff   : > { %v7690_v22 = vadd.f32 %v6432_v12, %v2720_v39  ;;  %v2718_v42 = vadd.f32 %v2576_v7, %v7552_v14 }
 0x200   : > { %v6369_v32 = vpop.f32.mrf.mxu1  ;;  %v6433_v9 = vpop.f32.mrf.mxu0 }
 0x201   : > { %v7693_v1 = vadd.f32 %v2983_v30, %v2718_v42  ;;  %v2721_v25 = vadd.f32 %v6369_v32, %v7555_v44 }
 0x202   : > { %v2579_v59 = vpop.f32.mrf.mxu1  ;;  %v2986_v17 = vpop.f32.mrf.mxu0 }
 0x203   : > { %v7696_v29 = vadd.f32 %v6433_v9, %v2721_v25  ;;  %v2719_v43 = vadd.f32 %v2579_v59, %v7558_v6 }
 0x204   : > { %v6372_v47 = vpop.f32.mrf.mxu1  ;;  %v6436_v51 = vpop.f32.mrf.mxu0 }
 0x205   : > { %v7699_v23 = vadd.f32 %v2986_v17, %v2719_v43  ;;  %v2724_v34 = vadd.f32 %v6372_v47, %v7561_v41 }
 0x206   : > { %v2592_v16 = vpop.f32.mrf.mxu1  ;;  %v2999_v14 = vpop.f32.mrf.mxu0 }
 0x207   : > { %v7702_v19 = vadd.f32 %v6436_v51, %v2724_v34  ;;  %v2722_v35 = vadd.f32 %v2592_v16, %v7564_v36 }
 0x208   : > { %v6373_v12 = vpop.f32.mrf.mxu1  ;;  %v6437_v44 = vpop.f32.mrf.mxu0 }
 0x209   : > { %v7705_v39 = vadd.f32 %v2999_v14, %v2722_v35  ;;  %v2725_v7 = vadd.f32 %v6373_v12, %v7567_v38  ;;  %v7720_v35 = vpop.permute.xlu0 %4074 }
 0x20a   : > { %v2595_v30 = vpop.f32.mrf.mxu1  ;;  %v3002_v6 = vpop.f32.mrf.mxu0  ;;  %9046 = vst [vmem:[#allocation10_spill] sm:$0xff] %v7720_v35 }
 0x20b   : > { %v7708_v42 = vadd.f32 %v6437_v44, %v2725_v7  ;;  %v2723_v32 = vadd.f32 %v2595_v30, %v7570_v18 }
 0x20c   : > { %v6376_v9 = vpop.f32.mrf.mxu1  ;;  %v6440_v41 = vpop.f32.mrf.mxu0 }
 0x20d   : > { %v7711_v25 = vadd.f32 %v3002_v6, %v2723_v32  ;;  %v2728_v59 = vadd.f32 %v6376_v9, %v7573_v4 }
 0x20e   : > { %v2608_v17 = vpop.f32.mrf.mxu1  ;;  %v3015_v36 = vpop.f32.mrf.mxu0 }
 0x20f   : > { %v7714_v43 = vadd.f32 %v6440_v41, %v2728_v59  ;;  %v2726_v47 = vadd.f32 %v2608_v17, %v7576_v54  ;;  %v7731_v17 = vpop.permute.xlu0 %4079 }
 0x210   : > { %v6377_v51 = vpop.f32.mrf.mxu1  ;;  %v6441_v38 = vpop.f32.mrf.mxu0  ;;  %9047 = vst [vmem:[#allocation11_spill] sm:$0xff] %v7731_v17 }
 0x211   : > { %v7717_v34 = vadd.f32 %v3015_v36, %v2726_v47  ;;  %v2729_v16 = vadd.f32 %v6377_v51, %v7579_v26 }
 0x212   : > { %v2611_v14 = vpop.f32.mrf.mxu1  ;;  %v3018_v18 = vpop.f32.mrf.mxu0 }
 0x213   : > { %v7722_v12 = vadd.f32 %v6441_v38, %v2729_v16  ;;  %v2727_v4 = vadd.f32 %v2611_v14, %v7582_v11  ;;  %v7736_v38 = vpop.permute.xlu1 %4084 }
 0x214   : > { %v6380_v44 = vpop.f32.mrf.mxu1  ;;  %v6444_v7 = vpop.f32.mrf.mxu0  ;;  %9049 = vst [vmem:[#allocation13_spill] sm:$0xff] %v7736_v38 }
 0x215   : > { %v7725_v30 = vadd.f32 %v3018_v18, %v2727_v4  ;;  %v2732_v54 = vadd.f32 %v6380_v44, %v7585_v8 }
 0x216   : > { %v2624_v6 = vpop.f32.mrf.mxu1  ;;  %v3031_v32 = vpop.f32.mrf.mxu0 }
 0x217   : > { %v7728_v9 = vadd.f32 %v6444_v7, %v2732_v54  ;;  %v2730_v26 = vadd.f32 %v2624_v6, %v7588_v0  ;;  %v7744_v54 = vpop.permute.xlu0 %4094 }
 0x218   : > { %v6381_v41 = vpop.f32.mrf.mxu1  ;;  %v6445_v59 = vpop.f32.mrf.mxu0  ;;  %9052 = vst [vmem:[#allocation5_spill] sm:$0xff] %v7744_v54 }
 0x219   : > { %v7733_v36 = vadd.f32 %v3031_v32, %v2730_v26  ;;  %v2733_v11 = vadd.f32 %v6381_v41, %v7591_v58  ;;  %v9054_v58 = vld [vmem:[#allocation8_spill] sm:$0xff] }
 0x21a   : > { %v2627_v47 = vpop.f32.mrf.mxu1  ;;  %v3034_v51 = vpop.f32.mrf.mxu0 }
 0x21b   : > { %9048 = vst [vmem:[#allocation12_spill] sm:$0xff] %v7733_v36  ;;  %v7738_v16 = vadd.f32 %v6445_v59, %v2733_v11  ;;  %v2731_v8 = vadd.f32 %v2627_v47, %v7594_v45  ;;  %v7749_v59 = vpop.permute.xlu1 %4089  ;;  %v9057_v45 = vld [vmem:[#allocation9_spill] sm:$0xff] }
 0x21c   : > { %v6384_v14 = vpop.f32.mrf.mxu1  ;;  %v6448_v18 = vpop.f32.mrf.mxu0  ;;  %9055 = vst [vmem:[#allocation7_spill] sm:$0xff] %v7749_v59 }
 0x21d   : > { %9050 = vst [vmem:[#allocation3_spill] sm:$0xff] %v7738_v16  ;;  %v7741_v4 = vadd.f32 %v3034_v51, %v2731_v8  ;;  %v2736_v0 = vadd.f32 %v6384_v14, %v7597_v49  ;;  %v9059_v49 = vld [vmem:[#allocation14_spill] sm:$0xff] }
 0x21e   : > { %v2640_v44 = vpop.f32.mrf.mxu1  ;;  %v3047_v7 = vpop.f32.mrf.mxu0 }
 0x21f   : > { %9051 = vst [vmem:[#allocation4_spill] sm:$0xff] %v7741_v4  ;;  %v7746_v6 = vadd.f32 %v6448_v18, %v2736_v0  ;;  %v2734_v32 = vadd.f32 %v2640_v44, %v9054_v58  ;;  %v7757_v18 = vpop.permute.xlu0 %4104 }
 0x220   : > { %v6385_v26 = vpop.f32.mrf.mxu1  ;;  %v6449_v41 = vpop.f32.mrf.mxu0  ;;  %9060 = vst [vmem:[#allocation14_spill] sm:$0xff] %v7757_v18 }
 0x221   : > { %9053 = vst [vmem:[#allocation6_spill] sm:$0xff] %v7746_v6  ;;  %v7751_v11 = vadd.f32 %v3047_v7, %v2734_v32  ;;  %v2737_v47 = vadd.f32 %v6385_v26, %v9057_v45  ;;  %v7762_v7 = vpop.permute.xlu1 %4099 }
 0x222   : > { %v2643_v51 = vpop.f32.mrf.mxu1  ;;  %v3050_v8 = vpop.f32.mrf.mxu0  ;;  %9062 = vst [vmem:[#allocation16_spill] sm:$0xff] %v7762_v7 }
 0x223   : > { %9056 = vst [vmem:[#allocation8_spill] sm:$0xff] %v7751_v11  ;;  %v7754_v4 = vadd.f32 %v6449_v41, %v2737_v47  ;;  %v2735_v14 = vadd.f32 %v2643_v51, %v9059_v49 }
 0x224   : > { %v6388_v16 = vpop.f32.mrf.mxu1  ;;  %v6452_v36 = vpop.f32.mrf.mxu0 }
 0x225   : > { %9058 = vst [vmem:[#allocation9_spill] sm:$0xff] %v7754_v4  ;;  %v7759_v0 = vadd.f32 %v3050_v8, %v2735_v14  ;;  %v2740_v44 = vadd.f32 %v6388_v16, %v7609_v10  ;;  %v7770_v8 = vpop.permute.xlu0 %4114 }
 0x226   : > { %v2656_v58 = vpop.f32.mrf.mxu1  ;;  %v3063_v6 = vpop.f32.mrf.mxu0  ;;  %9065 = vst [vmem:[#allocation19_spill] sm:$0xff] %v7770_v8 }
 0x227   : > { %9061 = vst [vmem:[#allocation15_spill] sm:$0xff] %v7759_v0  ;;  %v7764_v32 = vadd.f32 %v6452_v36, %v2740_v44  ;;  %v2738_v26 = vadd.f32 %v2656_v58, %v7612_v15  ;;  %v7775_v36 = vpop.permute.xlu1 %4109 }
 0x228   : > { %v6389_v41 = vpop.f32.mrf.mxu1  ;;  %v6453_v45 = vpop.f32.mrf.mxu0  ;;  %9067 = vst [vmem:[#allocation21_spill] sm:$0xff] %v7775_v36 }
 0x229   : > { %9063 = vst [vmem:[#allocation17_spill] sm:$0xff] %v7764_v32  ;;  %v7767_v47 = vadd.f32 %v3063_v6, %v2738_v26  ;;  %v2741_v51 = vadd.f32 %v6389_v41, %v7615_v48 }
 0x22a   : > { %v2659_v49 = vpop.f32.mrf.mxu1  ;;  %v3066_v4 = vpop.f32.mrf.mxu0 }
 0x22b   : > { %9064 = vst [vmem:[#allocation18_spill] sm:$0xff] %v7767_v47  ;;  %v7772_v14 = vadd.f32 %v6453_v45, %v2741_v51  ;;  %v2739_v10 = vadd.f32 %v2659_v49, %v7618_v13  ;;  %v7783_v45 = vpop.permute.xlu0 %4124 }
 0x22c   : > { %v6392_v16 = vpop.f32.mrf.mxu1  ;;  %v6456_v0 = vpop.f32.mrf.mxu0  ;;  %9070 = vst [vmem:[#allocation24_spill] sm:$0xff] %v7783_v45 }
 0x22d   : > { %9066 = vst [vmem:[#allocation20_spill] sm:$0xff] %v7772_v14  ;;  %v7777_v44 = vadd.f32 %v3066_v4, %v2739_v10  ;;  %v2744_v15 = vadd.f32 %v6392_v16, %v7621_v5  ;;  %v7788_v4 = vpop.permute.xlu1 %4119 }
 0x22e   : > { %v2672_v6 = vpop.f32.mrf.mxu1  ;;  %v3079_v58 = vpop.f32.mrf.mxu0  ;;  %9072 = vst [vmem:[#allocation26_spill] sm:$0xff] %v7788_v4 }
 0x22f   : > { %9068 = vst [vmem:[#allocation22_spill] sm:$0xff] %v7777_v44  ;;  %v7780_v26 = vadd.f32 %v6456_v0, %v2744_v15  ;;  %v2742_v48 = vadd.f32 %v2672_v6, %v7624_v52 }
 0x230   : > { %v6393_v41 = vpop.f32.mrf.mxu1  ;;  %v6457_v47 = vpop.f32.mrf.mxu0 }
 0x231   : > { %9069 = vst [vmem:[#allocation23_spill] sm:$0xff] %v7780_v26  ;;  %v7785_v51 = vadd.f32 %v3079_v58, %v2742_v48  ;;  %v2745_v13 = vadd.f32 %v6393_v41, %v7627_v61  ;;  %v7796_v58 = vpop.permute.xlu0 %4134 }
 0x232   : > { %v2675_v49 = vpop.f32.mrf.mxu1  ;;  %v3082_v14 = vpop.f32.mrf.mxu0  ;;  %9075 = vst [vmem:[#allocation29_spill] sm:$0xff] %v7796_v58 }
 0x233   : > { %9071 = vst [vmem:[#allocation25_spill] sm:$0xff] %v7785_v51  ;;  %v7790_v10 = vadd.f32 %v6457_v47, %v2745_v13  ;;  %v2743_v5 = vadd.f32 %v2675_v49, %v7630_v21  ;;  %v7801_v47 = vpop.permute.xlu1 %4129 }
 0x234   : > { %v6396_v0 = vpop.f32.mrf.mxu1  ;;  %v6460_v16 = vpop.f32.mrf.mxu0  ;;  %9077 = vst [vmem:[#allocation31_spill] sm:$0xff] %v7801_v47 }
 0x235   : > { %9073 = vst [vmem:[#allocation27_spill] sm:$0xff] %v7790_v10  ;;  %v7793_v15 = vadd.f32 %v3082_v14, %v2743_v5  ;;  %v2748_v52 = vadd.f32 %v6396_v0, %v7633_v46  ;;  %v7806_v0 = vpop.permute.xlu0 %4144 }
 0x236   : > { %v2688_v6 = vpop.f32.mrf.mxu1  ;;  %v3095_v26 = vpop.f32.mrf.mxu0  ;;  %9079 = vst [vmem:[#allocation33_spill] sm:$0xff] %v7806_v0 }
 0x237   : > { %9074 = vst [vmem:[#allocation28_spill] sm:$0xff] %v7793_v15  ;;  %v7798_v48 = vadd.f32 %v6460_v16, %v2748_v52  ;;  %v2746_v61 = vadd.f32 %v2688_v6, %v7636_v37  ;;  %v7811_v6 = vpop.permute.xlu1 %4139 }
 0x238   : > { %v6397_v41 = vpop.f32.mrf.mxu1  ;;  %v6461_v51 = vpop.f32.mrf.mxu0  ;;  %9081 = vst [vmem:[#allocation35_spill] sm:$0xff] %v7811_v6 }
 0x239   : > { %9076 = vst [vmem:[#allocation30_spill] sm:$0xff] %v7798_v48  ;;  %v7803_v13 = vadd.f32 %v3095_v26, %v2746_v61 }
 0x23a   : > { %v2691_v21 = vpop.f32.mrf.mxu1  ;;  %v3098_v49 = vpop.f32.mrf.mxu0 }
 0x23b   : > { %9078 = vst [vmem:[#allocation32_spill] sm:$0xff] %v7803_v13  ;;  %v2747_v14 = vadd.f32 %v2691_v21, %v7639_v27  ;;  %v7818_v21 = vld [vmem:[%s8909_s2] ss:$0 sm:$0xff] }
 0x23c   : > { %v6480_v5 = vpop.f32.mrf.mxu1  ;;  %v6544_v46 = vpop.f32.mrf.mxu0 }
 0x23d   : > { %v7808_v15 = vadd.f32 %v3098_v49, %v2747_v14  ;;  %v3518_v16 = vadd.f32 %v6480_v5, %v7642_v57  ;;  %v7820_v57 = vpop.permute.xlu0 %4154 }
 0x23e   : > { %v3326_v52 = vpop.f32.mrf.mxu1  ;;  %v3733_v37 = vpop.f32.mrf.mxu0  ;;  %9082 = vst [vmem:[#allocation36_spill] sm:$0xff] %v7820_v57 }
 0x23f   : > { %9080 = vst [vmem:[#allocation34_spill] sm:$0xff] %v7808_v15  ;;  %v3925_v51 = vadd.f32 %v6544_v46, %v3518_v16  ;;  %v3516_v26 = vadd.f32 %v3326_v52, %v7645_v3 }
 0x240   : > { %v6481_v61 = vpop.f32.mrf.mxu1  ;;  %v6545_v41 = vpop.f32.mrf.mxu0 }
 0x241   : > { %v3923_v13 = vadd.f32 %v3733_v37, %v3516_v26  ;;  %v3519_v27 = vadd.f32 %v6481_v61, %v7648_v20  ;;  %v7826_v37 = vpop.permute.xlu1 %4149  ;;  %v7829_v20 = vadd.f32 %v7818_v21, %v3925_v51  ;;  %v7841_v44 = vpop.permute.xlu0 %4164 }
 0x242   : > { %v3329_v49 = vpop.f32.mrf.mxu1  ;;  %v3736_v14 = vpop.f32.mrf.mxu0  ;;  %9084 = vst [vmem:[#allocation38_spill] sm:$0xff] %v7826_v37  ;;  %9086 = vst [vmem:[#allocation40_spill] sm:$0xff] %v7841_v44 }
 0x243   : > { %v7823_v5 = vadd.f32 %v7818_v21, %v3923_v13  ;;  %v3926_v46 = vadd.f32 %v6545_v41, %v3519_v27  ;;  %v3517_v3 = vadd.f32 %v3329_v49, %v7651_v31 }
 0x244   : > { %v6484_v16 = vpop.f32.mrf.mxu1  ;;  %v6548_v52 = vpop.f32.mrf.mxu0 }
 0x245   : > { %9083 = vst [vmem:[#allocation37_spill] sm:$0xff] %v7823_v5  ;;  %v3924_v26 = vadd.f32 %v3736_v14, %v3517_v3  ;;  %v4307_v61 = vmul.f32 %v7720_v35, %v7823_v5  ;;  %v7834_v15 = vadd.f32 %v7818_v21, %v3926_v46  ;;  %v3522_v13 = vadd.f32 %v6484_v16, %v7654_v33 }
 0x246   : > { %v3342_v48 = vpop.f32.mrf.mxu1  ;;  %v3749_v41 = vpop.f32.mrf.mxu0  ;;  %v4309_v14 = vmul.f32 %v7736_v38, %v7829_v20 }
 0x247   : > { %v7838_v31 = vadd.f32 %v7818_v21, %v3924_v26  ;;  %v3520_v27 = vadd.f32 %v3342_v48, %v7657_v56  ;;  %v3929_v49 = vadd.f32 %v6548_v52, %v3522_v13  ;;  %v4409_v16 = vmul.f32 %v4307_v61, %v7823_v5  ;;  %v7851_v52 = vpop.permute.xlu1 %4159 }
 0x248   : > { %v6485_v10 = vpop.f32.mrf.mxu1  ;;  %v6549_v51 = vpop.f32.mrf.mxu0  ;;  %v4310_v26 = vmul.f32 %v7749_v59, %v7834_v15  ;;  %9087 = vst [vmem:[#allocation41_spill] sm:$0xff] %v7851_v52 }
 0x249   : > { %9085 = vst [vmem:[#allocation39_spill] sm:$0xff] %v7838_v31  ;;  %v4308_v46 = vmul.f32 %v7731_v17, %v7838_v31  ;;  %v3927_v3 = vadd.f32 %v3749_v41, %v3520_v27  ;;  %v3523_v33 = vadd.f32 %v6485_v10, %v7660_v40  ;;  %v4411_v10 = vmul.f32 %v4309_v14, %v7829_v20 }
 0x24a   : > { %v3345_v56 = vpop.f32.mrf.mxu1  ;;  %v3752_v48 = vpop.f32.mrf.mxu0  ;;  %v7862_v11 = vadd.f32 %v7818_v21, %v3929_v49 }
 0x24b   : > { %v4354_v13 = vadd.f32 %v4308_v46, %v4307_v61  ;;  %v4410_v35 = vmul.f32 %v4308_v46, %v7838_v31  ;;  %v7855_v38 = vadd.f32 %v7818_v21, %v3927_v3  ;;  %v3930_v32 = vadd.f32 %v6549_v51, %v3523_v33  ;;  %v7865_v51 = vpop.permute.xlu0 %4174 }
 0x24c   : > { %v3521_v41 = vadd.f32 %v3345_v56, %v7663_v63  ;;  %v6488_v27 = vpop.f32.mrf.mxu1  ;;  %v6552_v40 = vpop.f32.mrf.mxu0  ;;  %9088 = vst [vmem:[#allocation42_spill] sm:$0xff] %v7865_v51  ;;  %v4412_v63 = vmul.f32 %v4310_v26, %v7834_v15 }
 0x24d   : > { %v4355_v17 = vadd.f32 %v4354_v13, %v4309_v14  ;;  %v4456_v5 = vadd.f32 %v4410_v35, %v4409_v16  ;;  %v4311_v59 = vmul.f32 %v7744_v54, %v7855_v38  ;;  %v3526_v46 = vadd.f32 %v6488_v27, %v7666_v60  ;;  %v7875_v60 = vpop.permute.xlu1 %4169 }
 0x24e   : > { %v3928_v61 = vadd.f32 %v3752_v48, %v3521_v41  ;;  %v3358_v3 = vpop.f32.mrf.mxu1  ;;  %v3765_v31 = vpop.f32.mrf.mxu0  ;;  %v7869_v14 = vadd.f32 %v7818_v21, %v3930_v32  ;;  %9089 = vst [vmem:[#allocation43_spill] sm:$0xff] %v7875_v60 }
 0x24f   : > { %v4457_v33 = vadd.f32 %v4456_v5, %v4411_v10  ;;  %v4356_v56 = vadd.f32 %v4355_v17, %v4310_v26  ;;  %v3933_v16 = vadd.f32 %v6552_v40, %v3526_v46  ;;  %v3524_v49 = vadd.f32 %v3358_v3, %v7669_v50 }
 0x250   : > { %v7872_v35 = vadd.f32 %v7818_v21, %v3928_v61  ;;  %v6489_v48 = vpop.f32.mrf.mxu1  ;;  %v6553_v13 = vpop.f32.mrf.mxu0  ;;  %v4413_v27 = vmul.f32 %v4311_v59, %v7855_v38  ;;  %v4313_v17 = vmul.f32 %v7757_v18, %v7862_v11  ;;  %v4314_v3 = vmul.f32 %v7775_v36, %v7869_v14 }
 0x251   : > { %v4357_v41 = vadd.f32 %v4356_v56, %v4311_v59  ;;  %v4458_v54 = vadd.f32 %v4457_v33, %v4412_v63  ;;  %v3527_v5 = vadd.f32 %v6489_v48, %v7672_v24  ;;  %v3931_v26 = vadd.f32 %v3765_v31, %v3524_v49  ;;  %v7890_v48 = vpop.permute.xlu0 %4184 }
 0x252   : > { %v4312_v32 = vmul.f32 %v7762_v7, %v7872_v35  ;;  %v3361_v40 = vpop.f32.mrf.mxu1  ;;  %v3768_v10 = vpop.f32.mrf.mxu0  ;;  %9090 = vst [vmem:[#allocation44_spill] sm:$0xff] %v7890_v48  ;;  %v7893_v31 = vadd.f32 %v7818_v21, %v3933_v16 }
 0x253   : > { %v4459_v50 = vadd.f32 %v4458_v54, %v4413_v27  ;;  %v3934_v61 = vadd.f32 %v6553_v13, %v3527_v5  ;;  %v3525_v46 = vadd.f32 %v3361_v40, %v7675_v2  ;;  %v7888_v24 = vadd.f32 %v7818_v21, %v3931_v26  ;;  %v7899_v26 = vpop.permute.xlu1 %4179 }
 0x254   : > { %v4358_v59 = vadd.f32 %v4357_v41, %v4312_v32  ;;  %v4414_v63 = vmul.f32 %v4312_v32, %v7872_v35  ;;  %v6492_v33 = vpop.f32.mrf.mxu1  ;;  %v6556_v56 = vpop.f32.mrf.mxu0  ;;  %v4415_v2 = vmul.f32 %v4313_v17, %v7862_v11  ;;  %9091 = vst [vmem:[#allocation45_spill] sm:$0xff] %v7899_v26 }
 0x255   : > { %v3932_v54 = vadd.f32 %v3768_v10, %v3525_v46  ;;  %v3530_v49 = vadd.f32 %v6492_v33, %v7678_v55  ;;  %v4315_v41 = vmul.f32 %v7770_v8, %v7888_v24  ;;  %v4416_v10 = vmul.f32 %v4314_v3, %v7869_v14 }
 0x256   : > { %v4359_v13 = vadd.f32 %v4358_v59, %v4313_v17  ;;  %v4460_v27 = vadd.f32 %v4459_v50, %v4414_v63  ;;  %v3374_v5 = vpop.f32.mrf.mxu1  ;;  %v3781_v32 = vpop.f32.mrf.mxu0  ;;  %v7907_v17 = vadd.f32 %v7818_v21, %v3934_v61  ;;  %v4317_v63 = vmul.f32 %v7783_v45, %v7893_v31 }
 0x257   : > { %v7902_v40 = vadd.f32 %v7818_v21, %v3932_v54  ;;  %v3937_v36 = vadd.f32 %v6556_v56, %v3530_v49  ;;  %v3528_v16 = vadd.f32 %v3374_v5, %v7681_v53  ;;  %v4417_v56 = vmul.f32 %v4315_v41, %v7888_v24 }
 0x258   : > { %v4461_v55 = vadd.f32 %v4460_v27, %v4415_v2  ;;  %v4360_v46 = vadd.f32 %v4359_v13, %v4314_v3  ;;  %v6493_v50 = vpop.f32.mrf.mxu1  ;;  %v6557_v59 = vpop.f32.mrf.mxu0 }
 0x259   : > { %v4316_v33 = vmul.f32 %v7788_v4, %v7902_v40  ;;  %v3935_v54 = vadd.f32 %v3781_v32, %v3528_v16  ;;  %v3531_v49 = vadd.f32 %v6493_v50, %v7684_v62  ;;  %v7915_v13 = vpop.permute.xlu0 %4194  ;;  %v4318_v32 = vmul.f32 %v7801_v47, %v7907_v17  ;;  %v7924_v62 = vpop.permute.xlu1 %4189 }
 0x25a   : > { %v4361_v8 = vadd.f32 %v4360_v46, %v4315_v41  ;;  %v4462_v53 = vadd.f32 %v4461_v55, %v4416_v10  ;;  %v3377_v2 = vpop.f32.mrf.mxu1  ;;  %v3784_v3 = vpop.f32.mrf.mxu0  ;;  %9092 = vst [vmem:[#allocation46_spill] sm:$0xff] %v7915_v13  ;;  %9093 = vst [vmem:[#allocation47_spill] sm:$0xff] %v7924_v62  ;;  %v7927_v46 = vadd.f32 %v7818_v21, %v3937_v36 }
 0x25b   : > { %v4418_v61 = vmul.f32 %v4316_v33, %v7902_v40  ;;  %v7919_v27 = vadd.f32 %v7818_v21, %v3935_v54  ;;  %v3529_v5 = vadd.f32 %v3377_v2, %v7687_v28  ;;  %v3938_v41 = vadd.f32 %v6557_v59, %v3531_v49 }
 0x25c   : > { %v4463_v45 = vadd.f32 %v4462_v53, %v4417_v56  ;;  %v4362_v16 = vadd.f32 %v4361_v8, %v4316_v33  ;;  %v6496_v10 = vpop.f32.mrf.mxu1  ;;  %v6560_v55 = vpop.f32.mrf.mxu0  ;;  %v4419_v54 = vmul.f32 %v4317_v63, %v7893_v31 }
 0x25d   : > { %v3936_v50 = vadd.f32 %v3784_v3, %v3529_v5  ;;  %v3534_v4 = vadd.f32 %v6496_v10, %v7690_v22  ;;  %v4319_v56 = vmul.f32 %v7796_v58, %v7919_v27  ;;  %v7934_v59 = vadd.f32 %v7818_v21, %v3938_v41 }
 0x25e   : > { %v4363_v18 = vadd.f32 %v4362_v16, %v4317_v63  ;;  %v4464_v28 = vadd.f32 %v4463_v45, %v4418_v61  ;;  %v3390_v53 = vpop.f32.mrf.mxu1  ;;  %v3797_v8 = vpop.f32.mrf.mxu0  ;;  %v4420_v22 = vmul.f32 %v4318_v32, %v7907_v17  ;;  %v4321_v5 = vmul.f32 %v7806_v0, %v7927_v46 }
 0x25f   : > { %v7937_v33 = vadd.f32 %v7818_v21, %v3936_v50  ;;  %v3941_v36 = vadd.f32 %v6560_v55, %v3534_v4  ;;  %v3532_v49 = vadd.f32 %v3390_v53, %v7693_v1  ;;  %v7941_v61 = vpop.permute.xlu0 %4204  ;;  %v4421_v1 = vmul.f32 %v4319_v56, %v7919_v27 }
 0x260   : > { %v4465_v2 = vadd.f32 %v4464_v28, %v4419_v54  ;;  %v4364_v3 = vadd.f32 %v4363_v18, %v4318_v32  ;;  %v6497_v63 = vpop.f32.mrf.mxu1  ;;  %v6561_v45 = vpop.f32.mrf.mxu0  ;;  %9094 = vst [vmem:[#allocation48_spill] sm:$0xff] %v7941_v61  ;;  %v4322_v32 = vmul.f32 %v7826_v37, %v7934_v59 }
 0x261   : > { %v4320_v16 = vmul.f32 %v7811_v6, %v7937_v33  ;;  %v3939_v41 = vadd.f32 %v3797_v8, %v3532_v49  ;;  %v3535_v10 = vadd.f32 %v6497_v63, %v7696_v29  ;;  %v7949_v18 = vpop.permute.xlu1 %4199 }
 0x262   : > { %v4365_v4 = vadd.f32 %v4364_v3, %v4319_v56  ;;  %v4466_v55 = vadd.f32 %v4465_v2, %v4420_v22  ;;  %v3393_v50 = vpop.f32.mrf.mxu1  ;;  %v3800_v54 = vpop.f32.mrf.mxu0  ;;  %9095 = vst [vmem:[#allocation49_spill] sm:$0xff] %v7949_v18  ;;  %v4423_v22 = vmul.f32 %v4321_v5, %v7927_v46  ;;  %v7960_v2 = vadd.f32 %v7818_v21, %v3941_v36 }
 0x263   : > { %v4422_v28 = vmul.f32 %v4320_v16, %v7937_v33  ;;  %v7955_v53 = vadd.f32 %v7818_v21, %v3939_v41  ;;  %v3942_v0 = vadd.f32 %v6561_v45, %v3535_v10  ;;  %v3533_v29 = vadd.f32 %v3393_v50, %v7699_v23 }
 0x264   : > { %v4467_v8 = vadd.f32 %v4466_v55, %v4421_v1  ;;  %v4366_v49 = vadd.f32 %v4365_v4, %v4320_v16  ;;  %v6500_v3 = vpop.f32.mrf.mxu1  ;;  %v6564_v56 = vpop.f32.mrf.mxu0  ;;  %v4424_v23 = vmul.f32 %v4322_v32, %v7934_v59 }
 0x265   : > { %v3538_v63 = vadd.f32 %v6500_v3, %v7702_v19  ;;  %v4323_v41 = vmul.f32 %v7820_v57, %v7955_v53  ;;  %v3940_v58 = vadd.f32 %v3800_v54, %v3533_v29  ;;  %v7965_v16 = vpop.permute.xlu0 %4214  ;;  %v7970_v50 = vadd.f32 %v7818_v21, %v3942_v0  ;;  %v7975_v54 = vpop.permute.xlu1 %4209 }
 0x266   : > { %v4367_v37 = vadd.f32 %v4366_v49, %v4321_v5  ;;  %v4468_v6 = vadd.f32 %v4467_v8, %v4422_v28  ;;  %v3406_v45 = vpop.f32.mrf.mxu1  ;;  %v3813_v10 = vpop.f32.mrf.mxu0  ;;  %9096 = vst [vmem:[#allocation50_spill] sm:$0xff] %v7965_v16  ;;  %9097 = vst [vmem:[#allocation51_spill] sm:$0xff] %v7975_v54  ;;  %v4325_v8 = vmul.f32 %v7841_v44, %v7960_v2 }
 0x267   : > { %v3945_v4 = vadd.f32 %v6564_v56, %v3538_v63  ;;  %v3536_v1 = vadd.f32 %v3406_v45, %v7705_v39  ;;  %v7973_v19 = vadd.f32 %v7818_v21, %v3940_v58  ;;  %v4425_v39 = vmul.f32 %v4323_v41, %v7955_v53 }
 0x268   : > { %v4469_v55 = vadd.f32 %v4468_v6, %v4423_v22  ;;  %v4368_v36 = vadd.f32 %v4367_v37, %v4322_v32  ;;  %v6501_v5 = vpop.f32.mrf.mxu1  ;;  %v6565_v28 = vpop.f32.mrf.mxu0  ;;  %v4326_v45 = vmul.f32 %v7875_v60, %v7970_v50 }
 0x269   : > { %v3943_v49 = vadd.f32 %v3813_v10, %v3536_v1  ;;  %v3539_v29 = vadd.f32 %v6501_v5, %v7708_v42  ;;  %v4324_v0 = vmul.f32 %v7851_v52, %v7973_v19  ;;  %v7990_v1 = vpop.permute.xlu0 %4224 }
 0x26a   : > { %v4369_v3 = vadd.f32 %v4368_v36, %v4323_v41  ;;  %v4470_v6 = vadd.f32 %v4469_v55, %v4424_v23  ;;  %v3409_v37 = vpop.f32.mrf.mxu1  ;;  %v3816_v58 = vpop.f32.mrf.mxu0  ;;  %9098 = vst [vmem:[#allocation52_spill] sm:$0xff] %v7990_v1  ;;  %v4427_v55 = vmul.f32 %v4325_v8, %v7960_v2  ;;  %v7994_v36 = vadd.f32 %v7818_v21, %v3945_v4 }
 0x26b   : > { %v7984_v32 = vadd.f32 %v7818_v21, %v3943_v49  ;;  %v3946_v56 = vadd.f32 %v6565_v28, %v3539_v29  ;;  %v3537_v22 = vadd.f32 %v3409_v37, %v7711_v25  ;;  %v4426_v10 = vmul.f32 %v4324_v0, %v7973_v19 }
 0x26c   : > { %v4471_v63 = vadd.f32 %v4470_v6, %v4425_v39  ;;  %v4370_v42 = vadd.f32 %v4369_v3, %v4324_v0  ;;  %v6504_v41 = vpop.f32.mrf.mxu1  ;;  %v6568_v23 = vpop.f32.mrf.mxu0  ;;  %9099 = vst [vmem:[#allocation53_spill] sm:$0xff] %v7994_v36  ;;  %v4428_v60 = vmul.f32 %v4326_v45, %v7970_v50 }
 0x26d   : > { %v4327_v5 = vmul.f32 %v7865_v51, %v7984_v32  ;;  %v3944_v25 = vadd.f32 %v3816_v58, %v3537_v22  ;;  %v7999_v29 = vadd.f32 %v7818_v21, %v3946_v56  ;;  %v3542_v3 = vadd.f32 %v6504_v41, %v7714_v43  ;;  %v8002_v0 = vpop.permute.xlu1 %4219 }
 0x26e   : > { %v4371_v28 = vadd.f32 %v4370_v42, %v4325_v8  ;;  %v4472_v49 = vadd.f32 %v4471_v63, %v4426_v10  ;;  %v3422_v39 = vpop.f32.mrf.mxu1  ;;  %v3829_v6 = vpop.f32.mrf.mxu0  ;;  %9101 = vst [vmem:[#allocation55_spill] sm:$0xff] %v8002_v0  ;;  %v4329_v56 = vmul.f32 %v7890_v48, %v7994_v36 }
 0x26f   : > { %9100 = vst [vmem:[#allocation54_spill] sm:$0xff] %v7999_v29  ;;  %v8005_v37 = vadd.f32 %v7818_v21, %v3944_v25  ;;  %v3540_v4 = vadd.f32 %v3422_v39, %v7717_v34  ;;  %v3949_v8 = vadd.f32 %v6568_v23, %v3542_v3  ;;  %v4429_v25 = vmul.f32 %v4327_v5, %v7984_v32 }
 0x270   : > { %v4473_v51 = vadd.f32 %v4472_v49, %v4427_v55  ;;  %v4372_v58 = vadd.f32 %v4371_v28, %v4326_v45  ;;  %v6505_v22 = vpop.f32.mrf.mxu1  ;;  %v6569_v63 = vpop.f32.mrf.mxu0  ;;  %v4330_v55 = vmul.f32 %v7924_v62, %v7999_v29  ;;  %v4431_v48 = vmul.f32 %v4329_v56, %v7994_v36 }
 0x271   : > { %v4328_v43 = vmul.f32 %v7899_v26, %v8005_v37  ;;  %v3947_v42 = vadd.f32 %v3829_v6, %v3540_v4  ;;  %v3543_v10 = vadd.f32 %v6505_v22, %v7722_v12  ;;  %v8017_v28 = vpop.permute.xlu0 %4234 }
 0x272   : > { %v4373_v41 = vadd.f32 %v4372_v58, %v4327_v5  ;;  %v4474_v34 = vadd.f32 %v4473_v51, %v4428_v60  ;;  %v3425_v45 = vpop.f32.mrf.mxu1  ;;  %v3832_v23 = vpop.f32.mrf.mxu0  ;;  %9102 = vst [vmem:[#allocation56_spill] sm:$0xff] %v8017_v28  ;;  %v8027_v60 = vadd.f32 %v7818_v21, %v3949_v8 }
 0x273   : > { %v4430_v49 = vmul.f32 %v4328_v43, %v8005_v37  ;;  %v8021_v3 = vadd.f32 %v7818_v21, %v3947_v42  ;;  %v3950_v39 = vadd.f32 %v6569_v63, %v3543_v10  ;;  %v3541_v6 = vadd.f32 %v3425_v45, %v7725_v30  ;;  %v8024_v51 = vpop.permute.xlu1 %4229 }
 0x274   : > { %v4475_v12 = vadd.f32 %v4474_v34, %v4429_v25  ;;  %v4374_v4 = vadd.f32 %v4373_v41, %v4328_v43  ;;  %v6508_v58 = vpop.f32.mrf.mxu1  ;;  %v6572_v5 = vpop.f32.mrf.mxu0  ;;  %9104 = vst [vmem:[#allocation58_spill] sm:$0xff] %v8024_v51  ;;  %9105 = vst [vmem:[#allocation59_spill] sm:$0xff] %v8027_v60  ;;  %v4432_v43 = vmul.f32 %v4330_v55, %v7999_v29 }
 0x275   : > { %9103 = vst [vmem:[#allocation57_spill] sm:$0xff] %v8021_v3  ;;  %v3948_v22 = vadd.f32 %v3832_v23, %v3541_v6  ;;  %v3546_v62 = vadd.f32 %v6508_v58, %v7728_v9  ;;  %v4331_v63 = vmul.f32 %v7915_v13, %v8021_v3  ;;  %v8038_v45 = vadd.f32 %v7818_v21, %v3950_v39  ;;  %v9108_v9 = vld [vmem:[#allocation12_spill] sm:$0xff]  ;;  %v8041_v6 = vpop.permute.xlu0 %4244  ;;  %v9110_v58 = vld [vmem:[#allocation3_spill] sm:$0xff] }
 0x276   : > { %v4375_v26 = vadd.f32 %v4374_v4, %v4329_v56  ;;  %v4476_v42 = vadd.f32 %v4475_v12, %v4430_v49  ;;  %v3438_v30 = vpop.f32.mrf.mxu1  ;;  %v3845_v10 = vpop.f32.mrf.mxu0  ;;  %9109 = vst [vmem:[#allocation12_spill] sm:$0xff] %v8041_v6  ;;  %v4333_v12 = vmul.f32 %v7941_v61, %v8027_v60  ;;  %v9112_v13 = vld [vmem:[#allocation4_spill] sm:$0xff] }
 0x277   : > { %v8035_v41 = vadd.f32 %v7818_v21, %v3948_v22  ;;  %v3953_v25 = vadd.f32 %v6572_v5, %v3546_v62  ;;  %9107 = vst [vmem:[#allocation61_spill] sm:$0xff] %v8038_v45  ;;  %v3544_v23 = vadd.f32 %v3438_v30, %v9108_v9 }
 0x278   : > { %v4477_v8 = vadd.f32 %v4476_v42, %v4431_v48  ;;  %v4376_v34 = vadd.f32 %v4375_v26, %v4330_v55  ;;  %v6509_v56 = vpop.f32.mrf.mxu1  ;;  %v6573_v49 = vpop.f32.mrf.mxu0  ;;  %v4433_v48 = vmul.f32 %v4331_v63, %v8021_v3 }
 0x279   : > { %9106 = vst [vmem:[#allocation60_spill] sm:$0xff] %v8035_v41  ;;  %v4332_v4 = vmul.f32 %v7949_v18, %v8035_v41  ;;  %v3547_v22 = vadd.f32 %v6509_v56, %v9110_v58  ;;  %v3951_v55 = vadd.f32 %v3845_v10, %v3544_v23  ;;  %v8049_v42 = vpop.permute.xlu1 %4239  ;;  %v4334_v18 = vmul.f32 %v7975_v54, %v8038_v45  ;;  %v9114_v23 = vld [vmem:[#allocation6_spill] sm:$0xff]  ;;  %v9119_v54 = vld [vmem:[#allocation15_spill] sm:$0xff] }
 0x27a   : > { %v4377_v62 = vadd.f32 %v4376_v34, %v4331_v63  ;;  %v4478_v26 = vadd.f32 %v4477_v8, %v4432_v43  ;;  %v3441_v39 = vpop.f32.mrf.mxu1  ;;  %v3848_v5 = vpop.f32.mrf.mxu0  ;;  %9111 = vst [vmem:[#allocation3_spill] sm:$0xff] %v8049_v42  ;;  %v8059_v10 = vadd.f32 %v7818_v21, %v3953_v25  ;;  %v9116_v25 = vld [vmem:[#allocation8_spill] sm:$0xff] }
 0x27b   : > { %v4434_v30 = vmul.f32 %v4332_v4, %v8035_v41  ;;  %v3954_v9 = vadd.f32 %v6573_v49, %v3547_v22  ;;  %v3545_v44 = vadd.f32 %v3441_v39, %v9112_v13  ;;  %v8056_v34 = vadd.f32 %v7818_v21, %v3951_v55 }
 0x27c   : > { %v4479_v61 = vadd.f32 %v4478_v26, %v4433_v48  ;;  %v4378_v52 = vadd.f32 %v4377_v62, %v4332_v4  ;;  %v6512_v63 = vpop.f32.mrf.mxu1  ;;  %v6576_v43 = vpop.f32.mrf.mxu0  ;;  %9113 = vst [vmem:[#allocation4_spill] sm:$0xff] %v8059_v10  ;;  %v4435_v49 = vmul.f32 %v4333_v12, %v8027_v60 }
 0x27d   : > { %v3952_v8 = vadd.f32 %v3848_v5, %v3545_v44  ;;  %v3550_v56 = vadd.f32 %v6512_v63, %v9114_v23  ;;  %v4335_v22 = vmul.f32 %v7965_v16, %v8056_v34  ;;  %v8065_v62 = vpop.permute.xlu0 %4254  ;;  %v4436_v44 = vmul.f32 %v4334_v18, %v8038_v45 }
 0x27e   : > { %v4379_v58 = vadd.f32 %v4378_v52, %v4333_v12  ;;  %v4480_v13 = vadd.f32 %v4479_v61, %v4434_v30  ;;  %v3454_v48 = vpop.f32.mrf.mxu1  ;;  %v3861_v4 = vpop.f32.mrf.mxu0  ;;  %9115 = vst [vmem:[#allocation6_spill] sm:$0xff] %v8065_v62  ;;  %v8073_v52 = vadd.f32 %v7818_v21, %v3954_v9  ;;  %v4337_v23 = vmul.f32 %v7990_v1, %v8059_v10 }
 0x27f   : > { %v8068_v26 = vadd.f32 %v7818_v21, %v3952_v8  ;;  %v3957_v55 = vadd.f32 %v6576_v43, %v3550_v56  ;;  %v3548_v39 = vadd.f32 %v3454_v48, %v9116_v25  ;;  %v8075_v30 = vpop.permute.xlu1 %4249  ;;  %v4437_v48 = vmul.f32 %v4335_v22, %v8056_v34 }
 0x280   : > { %v4481_v5 = vadd.f32 %v4480_v13, %v4435_v49  ;;  %v4380_v63 = vadd.f32 %v4379_v58, %v4334_v18  ;;  %v6513_v61 = vpop.f32.mrf.mxu1  ;;  %v6577_v12 = vpop.f32.mrf.mxu0  ;;  %9117 = vst [vmem:[#allocation8_spill] sm:$0xff] %v8075_v30  ;;  %v9118_v49 = vld [vmem:[#allocation9_spill] sm:$0xff] }
 0x281   : > { %v4336_v8 = vmul.f32 %v8002_v0, %v8068_v26  ;;  %v3955_v43 = vadd.f32 %v3861_v4, %v3548_v39  ;;  %v3551_v18 = vadd.f32 %v6513_v61, %v9118_v49  ;;  %v4338_v0 = vmul.f32 %v8024_v51, %v8073_v52  ;;  %v9121_v49 = vld [vmem:[#allocation17_spill] sm:$0xff] }
 0x282   : > { %v4381_v56 = vadd.f32 %v4380_v63, %v4335_v22  ;;  %v4482_v25 = vadd.f32 %v4481_v5, %v4436_v44  ;;  %v3457_v58 = vpop.f32.mrf.mxu1  ;;  %v3864_v9 = vpop.f32.mrf.mxu0  ;;  %v8093_v5 = vadd.f32 %v7818_v21, %v3957_v55  ;;  %v9123_v55 = vld [vmem:[#allocation18_spill] sm:$0xff] }
 0x283   : > { %v4438_v13 = vmul.f32 %v4336_v8, %v8068_v26  ;;  %v8085_v16 = vadd.f32 %v7818_v21, %v3955_v43  ;;  %v3549_v57 = vadd.f32 %v3457_v58, %v9119_v54  ;;  %v3958_v39 = vadd.f32 %v6577_v12, %v3551_v18  ;;  %v8090_v44 = vpop.permute.xlu0 %4264  ;;  %v8099_v12 = vpop.permute.xlu1 %4259 }
 0x284   : > { %v4483_v1 = vadd.f32 %v4482_v25, %v4437_v48  ;;  %v4382_v4 = vadd.f32 %v4381_v56, %v4336_v8  ;;  %v6516_v63 = vpop.f32.mrf.mxu1  ;;  %v6580_v22 = vpop.f32.mrf.mxu0  ;;  %9120 = vst [vmem:[#allocation9_spill] sm:$0xff] %v8090_v44  ;;  %v4439_v43 = vmul.f32 %v4337_v23, %v8059_v10  ;;  %9122 = vst [vmem:[#allocation15_spill] sm:$0xff] %v8099_v12  ;;  %v9128_v10 = vld [vmem:[#allocation23_spill] sm:$0xff] }
 0x285   : > { %v3956_v61 = vadd.f32 %v3864_v9, %v3549_v57  ;;  %v3554_v47 = vadd.f32 %v6516_v63, %v9121_v49  ;;  %v4339_v48 = vmul.f32 %v8017_v28, %v8085_v16  ;;  %v4440_v57 = vmul.f32 %v4338_v0, %v8073_v52  ;;  %v9124_v28 = vld [vmem:[#allocation20_spill] sm:$0xff] }
 0x286   : > { %v4383_v7 = vadd.f32 %v4382_v4, %v4337_v23  ;;  %v4484_v54 = vadd.f32 %v4483_v1, %v4438_v13  ;;  %v3470_v25 = vpop.f32.mrf.mxu1  ;;  %v3877_v8 = vpop.f32.mrf.mxu0  ;;  %v8107_v23 = vadd.f32 %v7818_v21, %v3958_v39  ;;  %v4341_v4 = vmul.f32 %v8041_v6, %v8093_v5 }
 0x287   : > { %v8102_v56 = vadd.f32 %v7818_v21, %v3956_v61  ;;  %v3961_v18 = vadd.f32 %v6580_v22, %v3554_v47  ;;  %v3552_v58 = vadd.f32 %v3470_v25, %v9123_v55  ;;  %v4441_v25 = vmul.f32 %v4339_v48, %v8085_v16 }
 0x288   : > { %v4485_v9 = vadd.f32 %v4484_v54, %v4439_v43  ;;  %v4384_v63 = vadd.f32 %v4383_v7, %v4338_v0  ;;  %v6517_v1 = vpop.f32.mrf.mxu1  ;;  %v6581_v13 = vpop.f32.mrf.mxu0 }
 0x289   : > { %v4340_v49 = vmul.f32 %v8049_v42, %v8102_v56  ;;  %v3959_v61 = vadd.f32 %v3877_v8, %v3552_v58  ;;  %v3555_v47 = vadd.f32 %v6517_v1, %v9124_v28  ;;  %v8115_v0 = vpop.permute.xlu0 %4274  ;;  %v4342_v8 = vmul.f32 %v8075_v30, %v8107_v23  ;;  %v9126_v28 = vld [vmem:[#allocation22_spill] sm:$0xff] }
 0x28a   : > { %v4385_v22 = vadd.f32 %v4384_v63, %v4339_v48  ;;  %v4486_v55 = vadd.f32 %v4485_v9, %v4440_v57  ;;  %v3473_v43 = vpop.f32.mrf.mxu1  ;;  %v3880_v7 = vpop.f32.mrf.mxu0  ;;  %9125 = vst [vmem:[#allocation17_spill] sm:$0xff] %v8115_v0  ;;  %v4443_v9 = vmul.f32 %v4341_v4, %v8093_v5  ;;  %v8128_v42 = vadd.f32 %v7818_v21, %v3961_v18 }
 0x28b   : > { %v4442_v39 = vmul.f32 %v4340_v49, %v8102_v56  ;;  %v8119_v54 = vadd.f32 %v7818_v21, %v3959_v61  ;;  %v3962_v6 = vadd.f32 %v6581_v13, %v3555_v47  ;;  %v3553_v63 = vadd.f32 %v3473_v43, %v9126_v28  ;;  %v8124_v57 = vpop.permute.xlu1 %4269  ;;  %v9129_v28 = vld [vmem:[#allocation25_spill] sm:$0xff] }
 0x28c   : > { %v4487_v51 = vadd.f32 %v4486_v55, %v4441_v25  ;;  %v4386_v58 = vadd.f32 %v4385_v22, %v4340_v49  ;;  %v6520_v1 = vpop.f32.mrf.mxu1  ;;  %v6584_v48 = vpop.f32.mrf.mxu0  ;;  %9127 = vst [vmem:[#allocation18_spill] sm:$0xff] %v8124_v57  ;;  %v4444_v60 = vmul.f32 %v4342_v8, %v8107_v23 }
 0x28d   : > { %v3558_v61 = vadd.f32 %v6520_v1, %v9128_v10  ;;  %v4343_v47 = vmul.f32 %v8065_v62, %v8119_v54  ;;  %v3960_v25 = vadd.f32 %v3880_v7, %v3553_v63  ;;  %v8134_v55 = vadd.f32 %v7818_v21, %v3962_v6  ;;  %v9131_v6 = vld [vmem:[#allocation27_spill] sm:$0xff] }
 0x28e   : > { %v4387_v45 = vadd.f32 %v4386_v58, %v4341_v4  ;;  %v4488_v13 = vadd.f32 %v4487_v51, %v4442_v39  ;;  %v3486_v49 = vpop.f32.mrf.mxu1  ;;  %v3893_v22 = vpop.f32.mrf.mxu0  ;;  %v4345_v7 = vmul.f32 %v8090_v44, %v8128_v42 }
 0x28f   : > { %v3965_v43 = vadd.f32 %v6584_v48, %v3558_v61  ;;  %v3556_v30 = vadd.f32 %v3486_v49, %v9129_v28  ;;  %v8139_v10 = vadd.f32 %v7818_v21, %v3960_v25  ;;  %v8141_v39 = vpop.permute.xlu0 %4284  ;;  %v4445_v48 = vmul.f32 %v4343_v47, %v8119_v54 }
 0x290   : > { %v4489_v18 = vadd.f32 %v4488_v13, %v4443_v9  ;;  %v4388_v41 = vadd.f32 %v4387_v45, %v4342_v8  ;;  %v6521_v51 = vpop.f32.mrf.mxu1  ;;  %v6585_v4 = vpop.f32.mrf.mxu0  ;;  %9130 = vst [vmem:[#allocation20_spill] sm:$0xff] %v8141_v39  ;;  %v4346_v25 = vmul.f32 %v8124_v57, %v8134_v55 }
 0x291   : > { %v3963_v58 = vadd.f32 %v3893_v22, %v3556_v30  ;;  %v3559_v63 = vadd.f32 %v6521_v51, %v9131_v6  ;;  %v4344_v45 = vmul.f32 %v8099_v12, %v8139_v10  ;;  %v8149_v13 = vpop.permute.xlu1 %4279  ;;  %v9133_v22 = vld [vmem:[#allocation28_spill] sm:$0xff]  ;;  %v4447_v6 = vmul.f32 %v4345_v7, %v8128_v42 }
 0x292   : > { %v4389_v1 = vadd.f32 %v4388_v41, %v4343_v47  ;;  %v4490_v61 = vadd.f32 %v4489_v18, %v4444_v60  ;;  %v3489_v8 = vpop.f32.mrf.mxu1  ;;  %v3896_v9 = vpop.f32.mrf.mxu0  ;;  %9132 = vst [vmem:[#allocation22_spill] sm:$0xff] %v8149_v13  ;;  %v8160_v44 = vadd.f32 %v7818_v21, %v3965_v43 }
 0x293   : > { %v8154_v49 = vadd.f32 %v7818_v21, %v3963_v58  ;;  %v3966_v30 = vadd.f32 %v6585_v4, %v3559_v63  ;;  %v3557_v28 = vadd.f32 %v3489_v8, %v9133_v22  ;;  %v4446_v60 = vmul.f32 %v4344_v45, %v8139_v10  ;;  %v9135_v4 = vld [vmem:[#allocation30_spill] sm:$0xff]  ;;  %v9137_v22 = vld [vmem:[#allocation32_spill] sm:$0xff] }
 0x294   : > { %v4491_v41 = vadd.f32 %v4490_v61, %v4445_v48  ;;  %v4390_v51 = vadd.f32 %v4389_v1, %v4344_v45  ;;  %v6524_v47 = vpop.f32.mrf.mxu1  ;;  %v6588_v18 = vpop.f32.mrf.mxu0  ;;  %9134 = vst [vmem:[#allocation23_spill] sm:$0xff] %v8160_v44  ;;  %v4448_v61 = vmul.f32 %v4346_v25, %v8134_v55 }
 0x295   : > { %v3964_v12 = vadd.f32 %v3896_v9, %v3557_v28  ;;  %v4347_v58 = vmul.f32 %v8115_v0, %v8154_v49  ;;  %v3562_v63 = vadd.f32 %v6524_v47, %v9135_v4  ;;  %v8165_v1 = vpop.permute.xlu0 %4294  ;;  %v8177_v4 = vpop.permute.xlu1 %4289 }
 0x296   : > { %v4391_v62 = vadd.f32 %v4390_v51, %v4345_v7  ;;  %v4492_v57 = vadd.f32 %v4491_v41, %v4446_v60  ;;  %v3502_v8 = vpop.f32.mrf.mxu1  ;;  %v3909_v48 = vpop.f32.mrf.mxu0  ;;  %9136 = vst [vmem:[#allocation25_spill] sm:$0xff] %v8165_v1  ;;  %v8173_v7 = vadd.f32 %v7818_v21, %v3966_v30  ;;  %9139 = vst [vmem:[#allocation28_spill] sm:$0xff] %v8177_v4 }
 0x297   : > { %v8169_v45 = vadd.f32 %v7818_v21, %v3964_v12  ;;  %v3560_v43 = vadd.f32 %v3502_v8, %v9137_v22  ;;  %v3969_v28 = vadd.f32 %v6588_v18, %v3562_v63  ;;  %v4349_v12 = vmul.f32 %v8141_v39, %v8160_v44 }
 0x298   : > { %v4493_v3 = vadd.f32 %v4492_v57, %v4447_v6  ;;  %v4392_v9 = vadd.f32 %v4391_v62, %v4346_v25  ;;  %9138 = vst [vmem:[#allocation27_spill] sm:$0xff] %v8173_v7  ;;  %v6525_v41 = vpop.f32.mrf.mxu1  ;;  %v6589_v51 = vpop.f32.mrf.mxu0  ;;  %v4449_v8 = vmul.f32 %v4347_v58, %v8154_v49  ;;  %v9142_v6 = vld [vmem:[#allocation34_spill] sm:$0xff]  ;;  %v4350_v22 = vmul.f32 %v8177_v4, %v8173_v7 }
 0x299   : > { %v4348_v60 = vmul.f32 %v8149_v13, %v8169_v45  ;;  %v3967_v47 = vadd.f32 %v3909_v48, %v3560_v43  ;;  %v8184_v30 = vadd.f32 %v7818_v21, %v3969_v28 }
 0x29a   : > { %v4393_v0 = vadd.f32 %v4392_v9, %v4347_v58  ;;  %v4494_v57 = vadd.f32 %v4493_v3, %v4448_v61  ;;  %v3505_v62 = vpop.f32.mrf.mxu1  ;;  %v3912_v9 = vpop.f32.mrf.mxu0  ;;  %v4451_v3 = vmul.f32 %v4349_v12, %v8160_v44 }
 0x29b   : > { %v4450_v25 = vmul.f32 %v4348_v60, %v8169_v45  ;;  %9140 = vst [vmem:[#allocation30_spill] sm:$0xff] %v8184_v30  ;;  %v8187_v18 = vadd.f32 %v7818_v21, %v3967_v47  ;;  %v3561_v63 = vadd.f32 %v3505_v62, %v9142_v6  ;;  %v8192_v58 = vpop.permute.xlu0 %4304 }
 0x29c   : > { %v4495_v48 = vadd.f32 %v4494_v57, %v4449_v8  ;;  %v4394_v43 = vadd.f32 %v4393_v0, %v4348_v60  ;;  %9143 = vst [vmem:[#allocation34_spill] sm:$0xff] %v8192_v58  ;;  %v4353_v47 = vmul.f32 %v8192_v58, %v8184_v30  ;;  %v8202_v57 = vpop.permute.xlu1 %4299  ;;  %v4452_v0 = vmul.f32 %v4350_v22, %v8173_v7 }
 0x29d   : > { %9141 = vst [vmem:[#allocation32_spill] sm:$0xff] %v8187_v18  ;;  %v3968_v41 = vadd.f32 %v3912_v9, %v3561_v63  ;;  %v4351_v28 = vmul.f32 %v8165_v1, %v8187_v18  ;;  %9145 = vst [vmem:[#allocation63_spill] sm:$0xff] %v8202_v57 }
 0x29e   : > { %v4395_v61 = vadd.f32 %v4394_v43, %v4349_v12  ;;  %v4496_v51 = vadd.f32 %v4495_v48, %v4450_v25  ;;  %v4455_v48 = vmul.f32 %v4353_v47, %v8184_v30 }
 0x29f   : > { %v8200_v8 = vadd.f32 %v7818_v21, %v3968_v41  ;;  %v4453_v25 = vmul.f32 %v4351_v28, %v8187_v18  ;;  %v4400_v41 = vsel %vm4399_vm0, %v4353_v47, 0.0 }
 0x2a0   : > { %v4497_v60 = vadd.f32 %v4496_v51, %v4451_v3  ;;  %v4396_v62 = vadd.f32 %v4395_v61, %v4350_v22  ;;  %v4501_v4 = vsel %vm4399_vm0, %v4455_v48, 0.0 }
 0x2a1   : > { %9144 = vst [vmem:[#allocation62_spill] sm:$0xff] %v8200_v8  ;;  %v4352_v6 = vmul.f32 %v8202_v57, %v8200_v8 }
 0x2a2   : > { %v4397_v12 = vadd.f32 %v4396_v62, %v4351_v28  ;;  %v4498_v63 = vadd.f32 %v4497_v60, %v4452_v0 }
 0x2a3   : > { %v4454_v43 = vmul.f32 %v4352_v6, %v8200_v8 }
 0x2a4   : > { %v4499_v21 = vadd.f32 %v4498_v63, %v4453_v25  ;;  %v4398_v9 = vadd.f32 %v4397_v12, %v4352_v6 }
 0x2a6   : > { %v4401_v58 = vadd.f32 %v4400_v41, %v4398_v9  ;;  %v4500_v1 = vadd.f32 %v4499_v21, %v4454_v43 }
 0x2a8   : > { %v4402_v3 = vrot.slane %v4401_v58, 4  ;;  %v4502_v22 = vadd.f32 %v4501_v4, %v4500_v1  ;;  %v4609_v1 = vlaneseq }
 0x2aa   : > { %v4403_v61 = vadd.f32 %v4402_v3, %v4401_v58  ;;  %v4503_v51 = vrot.slane %v4502_v22, 4  ;;  %v8214_v4 = vshrl.u32 %v4609_v1, 7 }
 0x2ac   : > { %v4404_v57 = vrot.slane %v4403_v61, 2  ;;  %v4504_v39 = vadd.f32 %v4503_v51, %v4502_v22  ;;  %9146 = vst [vmem:[#allocation64_spill] sm:$0xff] %v8214_v4 }
 0x2ae   : > { %v4405_v62 = vadd.f32 %v4404_v57, %v4403_v61  ;;  %v4505_v13 = vrot.slane %v4504_v39, 2 }
 0x2b0   : > { %v4406_v28 = vrot.slane %v4405_v62, 1  ;;  %v4506_v0 = vadd.f32 %v4505_v13, %v4504_v39 }
 0x2b2   : > { %v4407_v60 = vadd.f32 %v4406_v28, %v4405_v62  ;;  %v4507_v29 = vrot.slane %v4506_v0, 1 }
 0x2b4   : > { %v8210_v36 = vmul.f32 0.00390625, %v4407_v60  ;;  %v4508_v25 = vadd.f32 %v4507_v29, %v4506_v0  ;;  %v9149_v0 = vld [vmem:[#allocation37_spill] sm:$0xff]  ;;  %v9150_v60 = vld [vmem:[#allocation39_spill] sm:$0xff] }
 0x2b6   : > { %v4509_v6 = vmul.f32 0.00390625, %v4508_v25  ;;  %v4510_v47 = vmul.f32 %v8210_v36, %v8210_v36  ;;  %v4513_v28 = vsub.f32 %v9149_v0, %v8210_v36  ;;  %v4515_v62 = vsub.f32 %v7829_v20, %v8210_v36 }
 0x2b7   : > { %v4517_v51 = vsub.f32 %v7855_v38, %v8210_v36  ;;  %v4519_v1 = vsub.f32 %v7862_v11, %v8210_v36  ;;  %v4520_v0 = vsub.f32 %v7869_v14, %v8210_v36  ;;  %v4522_v20 = vsub.f32 %v7902_v40, %v8210_v36 }
 0x2b8   : > { %v4511_v12 = vsub.f32 %v4509_v6, %v4510_v47  ;;  %v4611_v6 = vsub.s32 0, %v8214_v4  ;;  %v8257_v47 = vld [vmem:[%s236_s16] sm:$0x3]  ;;  %v4524_v38 = vsub.f32 %v7907_v17, %v8210_v36  ;;  %v4526_v11 = vsub.f32 %v7937_v33, %v8210_v36 }
 0x2b9   : > { %9147 = vst [vmem:[#allocation65_spill] sm:$0xff] %v8257_v47  ;;  %v4527_v14 = vsub.f32 %v7927_v46, %v8210_v36  ;;  %v4529_v40 = vsub.f32 %v7955_v53, %v8210_v36  ;;  %v4531_v17 = vsub.f32 %v7960_v2, %v8210_v36  ;;  %v4533_v33 = vsub.f32 %v7984_v32, %v8210_v36  ;;  %v9152_v53 = vld [vmem:[#allocation54_spill] sm:$0xff]  ;;  %v9154_v2 = vld [vmem:[#allocation60_spill] sm:$0xff]  ;;  %v9156_v32 = vld [vmem:[#allocation61_spill] sm:$0xff] }
 0x2ba   : > { %v4512_v58 = vmax.f32 %v4511_v12, 0.0  ;;  %v8260_v12 = vrot.slane %v8257_v47, %v4611_v6  ;;  %v4518_v6 = vsub.f32 %v7872_v35, %v8210_v36  ;;  %v4525_v35 = vsub.f32 %v7919_v27, %v8210_v36 }
 0x2bb   : > { %v4532_v27 = vsub.f32 %v7970_v50, %v8210_v36  ;;  %v4534_v46 = vsub.f32 %v8005_v37, %v8210_v36  ;;  %v4536_v22 = vsub.f32 %v9152_v53, %v8210_v36  ;;  %v4538_v9 = vsub.f32 %v9154_v2, %v8210_v36  ;;  %v9155_v50 = vld [vmem:[#allocation59_spill] sm:$0xff]  ;;  %v9157_v37 = vld [vmem:[#allocation4_spill] sm:$0xff] }
 0x2bc   : > { %v4560_v25 = vadd.f32 1e-05, %v4512_v58  ;;  %9148 = vst [vmem:[#allocation66_spill] sm:$0xff] %v8260_v12  ;;  %v4514_v58 = vsub.f32 %v9150_v60, %v8210_v36  ;;  %v4521_v60 = vsub.f32 %v7888_v24, %v8210_v36  ;;  %v4528_v24 = vsub.f32 %v7934_v59, %v8210_v36  ;;  %v9151_v59 = vld [vmem:[#allocation53_spill] sm:$0xff] }
 0x2bd   : > { %v4535_v61 = vsub.f32 %v9151_v59, %v8210_v36  ;;  %v4539_v21 = vsub.f32 %v9155_v50, %v8210_v36  ;;  %v4540_v43 = vsub.f32 %v9156_v32, %v8210_v36  ;;  %v4543_v48 = vsub.f32 %v9157_v37, %v8210_v36 }
 0x2be   : > { %6698 = vrsqrt.f32 %v4560_v25  ;;  %v4516_v25 = vsub.f32 %v7834_v15, %v8210_v36  ;;  %v4523_v15 = vsub.f32 %v7893_v31, %v8210_v36  ;;  %v4530_v31 = vsub.f32 %v7973_v19, %v8210_v36  ;;  %v9153_v19 = vld [vmem:[#allocation57_spill] sm:$0xff] }
 0x2bf   : > { %v4537_v3 = vsub.f32 %v9153_v19, %v8210_v36 }
 0x2cb   : > { %v6699_v41 = vpop.eup %6698 }
 0x2cc   : > { %v4562_v59 = vmul.f32 %v6699_v41, %v4513_v28  ;;  %v4563_v63 = vmul.f32 %v6699_v41, %v4514_v58  ;;  %v4564_v29 = vmul.f32 %v6699_v41, %v4515_v62  ;;  %v4565_v53 = vmul.f32 %v6699_v41, %v4516_v25 }
 0x2cd   : > { %v4566_v13 = vmul.f32 %v6699_v41, %v4517_v51  ;;  %v4567_v39 = vmul.f32 %v6699_v41, %v4518_v6  ;;  %v4568_v19 = vmul.f32 %v6699_v41, %v4519_v1  ;;  %v4569_v57 = vmul.f32 %v6699_v41, %v4520_v0 }
 0x2ce   : > { %v4570_v12 = vmul.f32 %v6699_v41, %v4521_v60  ;;  %v4571_v30 = vmul.f32 %v6699_v41, %v4522_v20  ;;  %v4572_v2 = vmul.f32 %v6699_v41, %v4523_v15  ;;  %v4573_v8 = vmul.f32 %v6699_v41, %v4524_v38 }
 0x2cf   : > { %v4574_v18 = vmul.f32 %v6699_v41, %v4525_v35  ;;  %v4575_v50 = vmul.f32 %v6699_v41, %v4526_v11  ;;  %v4576_v47 = vmul.f32 %v6699_v41, %v4527_v14  ;;  %v4577_v4 = vmul.f32 %v6699_v41, %v4528_v24 }
 0x2d0   : > { %v4578_v32 = vmul.f32 %v6699_v41, %v4529_v40  ;;  %v4579_v7 = vmul.f32 %v6699_v41, %v4530_v31  ;;  %v4580_v44 = vmul.f32 %v6699_v41, %v4531_v17  ;;  %v4581_v37 = vmul.f32 %v6699_v41, %v4532_v27 }
 0x2d1   : > { %v4582_v28 = vmul.f32 %v6699_v41, %v4533_v33  ;;  %v4583_v58 = vmul.f32 %v6699_v41, %v4534_v46  ;;  %v4584_v62 = vmul.f32 %v6699_v41, %v4535_v61  ;;  %v4585_v25 = vmul.f32 %v6699_v41, %v4536_v22  ;;  %v9171_v33 = vld [vmem:[#allocation23_spill] sm:$0xff] }
 0x2d2   : > { %v4586_v51 = vmul.f32 %v6699_v41, %v4537_v3  ;;  %v4587_v6 = vmul.f32 %v6699_v41, %v4538_v9  ;;  %v4588_v1 = vmul.f32 %v6699_v41, %v4539_v21  ;;  %v4589_v0 = vmul.f32 %v6699_v41, %v4540_v43 }
 0x2d3   : > { %v9158_v60 = vsub.f32 %v8056_v34, %v8210_v36  ;;  %v9159_v15 = vsub.f32 %v8068_v26, %v8210_v36  ;;  %v4592_v35 = vmul.f32 %v6699_v41, %v4543_v48  ;;  %v9160_v11 = vsub.f32 %v8073_v52, %v8210_v36 }
 0x2d4   : > { %v9161_v22 = vsub.f32 %v8085_v16, %v8210_v36  ;;  %v9162_v43 = vsub.f32 %v8102_v56, %v8210_v36  ;;  %v9163_v34 = vsub.f32 %v8093_v5, %v8210_v36  ;;  %v9164_v26 = vsub.f32 %v8107_v23, %v8210_v36 }
 0x2d5   : > { %v4590_v20 = vmul.f32 %v6699_v41, %v9158_v60  ;;  %v4591_v38 = vmul.f32 %v6699_v41, %v9159_v15  ;;  %v4593_v14 = vmul.f32 %v6699_v41, %v9160_v11  ;;  %v9165_v52 = vsub.f32 %v8119_v54, %v8210_v36  ;;  %v9173_v60 = vld [vmem:[#allocation27_spill] sm:$0xff]  ;;  %v9175_v11 = vld [vmem:[#allocation64_spill] sm:$0xff] }
 0x2d6   : > { %v4594_v3 = vmul.f32 %v6699_v41, %v9161_v22  ;;  %v4595_v21 = vmul.f32 %v6699_v41, %v9162_v43  ;;  %v4596_v9 = vmul.f32 %v6699_v41, %v9163_v34  ;;  %v4597_v48 = vmul.f32 %v6699_v41, %v9164_v26  ;;  %v9178_v34 = vld [vmem:[#allocation32_spill] sm:$0xff] }
 0x2d7   : > { %v4598_v61 = vmul.f32 %v6699_v41, %v9165_v52  ;;  %v9166_v16 = vsub.f32 %v8139_v10, %v8210_v36  ;;  %v9167_v56 = vsub.f32 %v8128_v42, %v8210_v36  ;;  %v9168_v5 = vsub.f32 %v8134_v55, %v8210_v36  ;;  %v9177_v55 = vld [vmem:[#allocation65_spill] sm:$0xff]  ;;  %v9180_v52 = vld [vmem:[#allocation62_spill] sm:$0xff] }
 0x2d8   : > { %v9169_v23 = vsub.f32 %v8154_v49, %v8210_v36  ;;  %v9170_v54 = vsub.f32 %v8169_v45, %v8210_v36  ;;  %v9172_v10 = vsub.f32 %v9171_v33, %v8210_v36  ;;  %v9174_v42 = vsub.f32 %v9173_v60, %v8210_v36 }
 0x2d9   : > { %v4599_v24 = vmul.f32 %v6699_v41, %v9166_v16  ;;  %v4600_v40 = vmul.f32 %v6699_v41, %v9167_v56  ;;  %v4601_v31 = vmul.f32 %v6699_v41, %v9168_v5  ;;  %v9176_v22 = vsub.s32 1, %v9175_v11  ;;  %v9182_v56 = vld [vmem:[#allocation30_spill] sm:$0xff] }
 0x2da   : > { %v4602_v17 = vmul.f32 %v6699_v41, %v9169_v23  ;;  %v4603_v27 = vmul.f32 %v6699_v41, %v9170_v54  ;;  %v4604_v46 = vmul.f32 %v6699_v41, %v9172_v10  ;;  %v4605_v15 = vmul.f32 %v6699_v41, %v9174_v42  ;;  %v9184_v54 = vld [vmem:[#allocation66_spill] sm:$0xff] }
 0x2db   : > { %v8369_v43 = vrot.slane %v9177_v55, %v9176_v22  ;;  %v9179_v49 = vsub.f32 %v9178_v34, %v8210_v36  ;;  %v9181_v45 = vsub.f32 %v9180_v52, %v8210_v36  ;;  %v9183_v5 = vsub.f32 %v9182_v56, %v8210_v36 }
 0x2dc   : > { %v4613_v33 = vmul.f32 %v9184_v54, %v4562_v59  ;;  %v4614_v10 = vmul.f32 %v9184_v54, %v4563_v63  ;;  %v4615_v60 = vmul.f32 %v9184_v54, %v4564_v29  ;;  %v4616_v42 = vmul.f32 %v9184_v54, %v4565_v53 }
 0x2dd   : > { %v4606_v26 = vmul.f32 %v6699_v41, %v9179_v49  ;;  %v4607_v16 = vmul.f32 %v6699_v41, %v9181_v45  ;;  %v4608_v23 = vmul.f32 %v6699_v41, %v9183_v5  ;;  %v4617_v11 = vmul.f32 %v9184_v54, %v4566_v13 }
 0x2de   : > { %v4618_v22 = vmul.f32 %v9184_v54, %v4567_v39  ;;  %v4619_v55 = vmul.f32 %v9184_v54, %v4568_v19  ;;  %v4620_v34 = vmul.f32 %v9184_v54, %v4569_v57  ;;  %v4621_v49 = vmul.f32 %v9184_v54, %v4570_v12 }
 0x2df   : > { %v4622_v36 = vmul.f32 %v9184_v54, %v4571_v30  ;;  %v4623_v41 = vmul.f32 %v9184_v54, %v4572_v2  ;;  %v4624_v63 = vmul.f32 %v9184_v54, %v4573_v8  ;;  %v4625_v29 = vmul.f32 %v9184_v54, %v4574_v18 }
 0x2e0   : > { %v4626_v59 = vmul.f32 %v9184_v54, %v4575_v50  ;;  %v4627_v13 = vmul.f32 %v9184_v54, %v4576_v47  ;;  %v4628_v39 = vmul.f32 %v9184_v54, %v4577_v4  ;;  %v4629_v53 = vmul.f32 %v9184_v54, %v4578_v32 }
 0x2e1   : > { %v4630_v57 = vmul.f32 %v9184_v54, %v4579_v7  ;;  %v4631_v12 = vmul.f32 %v9184_v54, %v4580_v44  ;;  %v4632_v30 = vmul.f32 %v9184_v54, %v4581_v37  ;;  %v4633_v19 = vmul.f32 %v9184_v54, %v4582_v28 }
 0x2e2   : > { %v4634_v8 = vmul.f32 %v9184_v54, %v4583_v58  ;;  %v4635_v18 = vmul.f32 %v9184_v54, %v4584_v62  ;;  %v4636_v2 = vmul.f32 %v9184_v54, %v4585_v25  ;;  %v4637_v47 = vmul.f32 %v9184_v54, %v4586_v51 }
 0x2e3   : > { %v4638_v4 = vmul.f32 %v9184_v54, %v4587_v6  ;;  %v4639_v50 = vmul.f32 %v9184_v54, %v4588_v1  ;;  %v4640_v7 = vmul.f32 %v9184_v54, %v4589_v0  ;;  %v4641_v44 = vmul.f32 %v9184_v54, %v4590_v20 }
 0x2e4   : > { %v4642_v32 = vmul.f32 %v9184_v54, %v4591_v38  ;;  %v4643_v37 = vmul.f32 %v9184_v54, %v4592_v35  ;;  %v4644_v28 = vmul.f32 %v9184_v54, %v4593_v14  ;;  %v4645_v58 = vmul.f32 %v9184_v54, %v4594_v3 }
 0x2e5   : > { %v4646_v62 = vmul.f32 %v9184_v54, %v4595_v21  ;;  %v4647_v25 = vmul.f32 %v9184_v54, %v4596_v9  ;;  %v4648_v51 = vmul.f32 %v9184_v54, %v4597_v48  ;;  %v4649_v6 = vmul.f32 %v9184_v54, %v4598_v61 }
 0x2e6   : > { %v4650_v1 = vmul.f32 %v9184_v54, %v4599_v24  ;;  %v4651_v0 = vmul.f32 %v9184_v54, %v4600_v40  ;;  %v4652_v20 = vmul.f32 %v9184_v54, %v4601_v31  ;;  %v4653_v38 = vmul.f32 %v9184_v54, %v4602_v17 }
 0x2e7   : > { %v4654_v35 = vmul.f32 %v9184_v54, %v4603_v27  ;;  %v4655_v14 = vmul.f32 %v9184_v54, %v4604_v46  ;;  %v4656_v3 = vmul.f32 %v9184_v54, %v4605_v15  ;;  %v4657_v21 = vmul.f32 %v9184_v54, %v4606_v26 }
 0x2e8   : > { %v4658_v9 = vmul.f32 %v9184_v54, %v4607_v16  ;;  %v4659_v48 = vmul.f32 %v9184_v54, %v4608_v23  ;;  %v8428_v61 = vadd.f32 %v8369_v43, %v4613_v33  ;;  %v8431_v24 = vadd.f32 %v8369_v43, %v4614_v10 }
 0x2e9   : > { %v8434_v40 = vadd.f32 %v8369_v43, %v4615_v60  ;;  %v8437_v31 = vadd.f32 %v8369_v43, %v4616_v42  ;;  %v8440_v17 = vadd.f32 %v8369_v43, %v4617_v11  ;;  %v8443_v27 = vadd.f32 %v8369_v43, %v4618_v22 }
 0x2ea   : > { %9185 = vst [vmem:[#allocation37_spill] sm:$0xff] %v8428_v61  ;;  %9186 = vst [vmem:[#allocation39_spill] sm:$0xff] %v8431_v24  ;;  %v8446_v46 = vadd.f32 %v8369_v43, %v4619_v55  ;;  %v8449_v15 = vadd.f32 %v8369_v43, %v4620_v34  ;;  %v8452_v26 = vadd.f32 %v8369_v43, %v4621_v49 }
 0x2eb   : > { %9187 = vst [vmem:[#allocation53_spill] sm:$0xff] %v8434_v40  ;;  %9188 = vst [vmem:[#allocation54_spill] sm:$0xff] %v8437_v31  ;;  %v8455_v52 = vadd.f32 %v8369_v43, %v4622_v36  ;;  %v8458_v45 = vadd.f32 %v8369_v43, %v4623_v41  ;;  %v8461_v16 = vadd.f32 %v8369_v43, %v4624_v63 }
 0x2ec   : > { %9189 = vst [vmem:[#allocation57_spill] sm:$0xff] %v8440_v17  ;;  %9190 = vst [vmem:[#allocation60_spill] sm:$0xff] %v8443_v27  ;;  %v8464_v56 = vadd.f32 %v8369_v43, %v4625_v29  ;;  %v8467_v5 = vadd.f32 %v8369_v43, %v4626_v59  ;;  %v8470_v23 = vadd.f32 %v8369_v43, %v4627_v13 }
 0x2ed   : > { %9191 = vst [vmem:[#allocation59_spill] sm:$0xff] %v8446_v46  ;;  %9192 = vst [vmem:[#allocation61_spill] sm:$0xff] %v8449_v15  ;;  %v8473_v54 = vadd.f32 %v8369_v43, %v4628_v39  ;;  %v8476_v33 = vadd.f32 %v8369_v43, %v4629_v53  ;;  %v8479_v10 = vadd.f32 %v8369_v43, %v4630_v57 }
 0x2ee   : > { %9193 = vst [vmem:[#allocation4_spill] sm:$0xff] %v8470_v23  ;;  %v8482_v60 = vadd.f32 %v8369_v43, %v4631_v12  ;;  %v8485_v42 = vadd.f32 %v8369_v43, %v4632_v30  ;;  %v8488_v11 = vadd.f32 %v8369_v43, %v4633_v19  ;;  %v8491_v22 = vadd.f32 %v8369_v43, %v4634_v8 }
 0x2ef   : > { %9194 = vst [vmem:[#allocation23_spill] sm:$0xff] %v8479_v10  ;;  %v8494_v55 = vadd.f32 %v8369_v43, %v4635_v18  ;;  %v8497_v34 = vadd.f32 %v8369_v43, %v4636_v2  ;;  %v8500_v49 = vadd.f32 %v8369_v43, %v4637_v47  ;;  %v8503_v36 = vadd.f32 %v8369_v43, %v4638_v4 }
 0x2f0   : > { %9195 = vst [vmem:[#allocation27_spill] sm:$0xff] %v8488_v11  ;;  %v8506_v41 = vadd.f32 %v8369_v43, %v4639_v50  ;;  %v8509_v63 = vadd.f32 %v8369_v43, %v4640_v7  ;;  %v8512_v29 = vadd.f32 %v8369_v43, %v4641_v44  ;;  %v8515_v59 = vadd.f32 %v8369_v43, %v4642_v32 }
 0x2f1   : > { %9196 = vst [vmem:[#allocation64_spill] sm:$0xff] %v8497_v34  ;;  %v8518_v13 = vadd.f32 %v8369_v43, %v4643_v37  ;;  %v8521_v39 = vadd.f32 %v8369_v43, %v4644_v28  ;;  %v8524_v53 = vadd.f32 %v8369_v43, %v4645_v58  ;;  %v8527_v57 = vadd.f32 %v8369_v43, %v4646_v62 }
 0x2f2   : > { %9197 = vst [vmem:[#allocation65_spill] sm:$0xff] %v8506_v41  ;;  %9198 = vst [vmem:[#allocation32_spill] sm:$0xff] %v8515_v59  ;;  %v8530_v12 = vadd.f32 %v8369_v43, %v4647_v25  ;;  %v8533_v30 = vadd.f32 %v8369_v43, %v4648_v51  ;;  %v8536_v19 = vadd.f32 %v8369_v43, %v4649_v6  ;;  %v8566_v37 = vmul.f32 0.2, %v8428_v61 }
 0x2f3   : > { %9199 = vst [vmem:[#allocation62_spill] sm:$0xff] %v8524_v53  ;;  %v8539_v8 = vadd.f32 %v8369_v43, %v4650_v1  ;;  %v8542_v18 = vadd.f32 %v8369_v43, %v4651_v0  ;;  %v8545_v2 = vadd.f32 %v8369_v43, %v4652_v20  ;;  %v8548_v47 = vadd.f32 %v8369_v43, %v4653_v38 }
 0x2f4   : > { %9200 = vst [vmem:[#allocation30_spill] sm:$0xff] %v8530_v12  ;;  %9201 = vst [vmem:[#allocation66_spill] sm:$0xff] %v8533_v30  ;;  %v8551_v4 = vadd.f32 %v8369_v43, %v4654_v35  ;;  %v8554_v50 = vadd.f32 %v8369_v43, %v4655_v14  ;;  %v8557_v7 = vadd.f32 %v8369_v43, %v4656_v3  ;;  %v8569_v28 = vmul.f32 0.2, %v8431_v24 }
 0x2f5   : > { %9202 = vst [vmem:[#allocation67_spill] sm:$0xff] %v8539_v8  ;;  %9203 = vst [vmem:[#allocation68_spill] sm:$0xff] %v8542_v18  ;;  %v8560_v44 = vadd.f32 %v8369_v43, %v4657_v21  ;;  %v8563_v32 = vadd.f32 %v8369_v43, %v4658_v9  ;;  %v8572_v58 = vmul.f32 0.2, %v8434_v40  ;;  %v8575_v62 = vadd.f32 %v8369_v43, %v4659_v48 }
 0x2f6   : > { %9204 = vst [vmem:[#allocation69_spill] sm:$0xff] %v8548_v47  ;;  %9205 = vst [vmem:[#allocation70_spill] sm:$0xff] %v8551_v4  ;;  %v8578_v25 = vmul.f32 0.2, %v8437_v31  ;;  %v8581_v51 = vmul.f32 0.2, %v8440_v17 }
 0x2f7   : > { %9206 = vst [vmem:[#allocation71_spill] sm:$0xff] %v8554_v50  ;;  %9207 = vst [vmem:[#allocation72_spill] sm:$0xff] %v8557_v7  ;;  %v8584_v6 = vmul.f32 0.2, %v8443_v27  ;;  %v8587_v1 = vmul.f32 0.2, %v8446_v46 }
 0x2f8   : > { %9208 = vst [vmem:[#allocation73_spill] sm:$0xff] %v8560_v44  ;;  %9209 = vst [vmem:[#allocation74_spill] sm:$0xff] %v8563_v32  ;;  %v8590_v0 = vmul.f32 0.2, %v8449_v15  ;;  %v8593_v20 = vmul.f32 0.2, %v8452_v26 }
 0x2f9   : > { %9210 = vst [vmem:[#allocation75_spill] sm:$0xff] %v8566_v37  ;;  %9211 = vst [vmem:[#allocation76_spill] sm:$0xff] %v8569_v28  ;;  %v8598_v38 = vmul.f32 0.2, %v8455_v52  ;;  %v8601_v35 = vmul.f32 0.2, %v8458_v45 }
 0x2fa   : > { %9212 = vst [vmem:[#allocation77_spill] sm:$0xff] %v8572_v58  ;;  %9213 = vst [vmem:[#allocation78_spill] sm:$0xff] %v8575_v62  ;;  %v8604_v14 = vmul.f32 0.2, %v8461_v16  ;;  %v8609_v21 = vmul.f32 0.2, %v8464_v56 }
 0x2fb   : > { %9214 = vst [vmem:[#allocation79_spill] sm:$0xff] %v8578_v25  ;;  %9215 = vst [vmem:[#allocation80_spill] sm:$0xff] %v8581_v51  ;;  %v8612_v9 = vmul.f32 0.2, %v8467_v5  ;;  %v8615_v48 = vmul.f32 0.2, %v8470_v23 }
 0x2fc   : > { %9216 = vst [vmem:[#allocation81_spill] sm:$0xff] %v8584_v6  ;;  %9217 = vst [vmem:[#allocation82_spill] sm:$0xff] %v8587_v1  ;;  %v8620_v37 = vmul.f32 0.2, %v8473_v54  ;;  %v8623_v61 = vmul.f32 0.2, %v8476_v33  ;;  %v4766_v1 = vmax.f32 %v8452_v26, %v8593_v20  ;;  %v4768_v20 = vmax.f32 %v8458_v45, %v8601_v35 }
 0x2fd   : > { %9218 = vst [vmem:[#allocation83_spill] sm:$0xff] %v8590_v0  ;;  %v8626_v3 = vmul.f32 0.2, %v8479_v10  ;;  %v8631_v24 = vmul.f32 0.2, %v8482_v60  ;;  %v4767_v0 = vmax.f32 %v8455_v52, %v8598_v38  ;;  %v4769_v38 = vmax.f32 %v8461_v16, %v8604_v14  ;;  %v9219_v14 = vld [vmem:[#allocation4_spill] sm:$0xff] }
 0x2fe   : > { %v8634_v23 = vmul.f32 0.2, %v8485_v42  ;;  %v8637_v43 = vmul.f32 0.2, %v8488_v11  ;;  %v8642_v40 = vmul.f32 0.2, %v8491_v22  ;;  %v4770_v35 = vmax.f32 %v8464_v56, %v8609_v21 }
 0x2ff   : > { %v8645_v10 = vmul.f32 0.2, %v8494_v55  ;;  %v8648_v28 = vmul.f32 0.2, %v8497_v34  ;;  %v8653_v31 = vmul.f32 0.2, %v8500_v49  ;;  %v4771_v16 = vmax.f32 %v8467_v5, %v8612_v9 }
 0x300   : > { %v8656_v11 = vmul.f32 0.2, %v8503_v36  ;;  %v8659_v58 = vmul.f32 0.2, %v8506_v41  ;;  %v8664_v17 = vmul.f32 0.2, %v8509_v63 }
 0x301   : > { %v8667_v34 = vmul.f32 0.2, %v8512_v29  ;;  %v8670_v25 = vmul.f32 0.2, %v8515_v59  ;;  %v8675_v27 = vmul.f32 0.2, %v8518_v13 }
 0x302   : > { %v8678_v41 = vmul.f32 0.2, %v8521_v39  ;;  %v8681_v51 = vmul.f32 0.2, %v8524_v53  ;;  %v8686_v46 = vmul.f32 0.2, %v8527_v57 }
 0x303   : > { %v8689_v59 = vmul.f32 0.2, %v8530_v12  ;;  %v8692_v6 = vmul.f32 0.2, %v8533_v30  ;;  %v8697_v15 = vmul.f32 0.2, %v8536_v19 }
 0x304   : > { %v8700_v53 = vmul.f32 0.2, %v8539_v8  ;;  %v8703_v26 = vmul.f32 0.2, %v8542_v18  ;;  %v8708_v12 = vmul.f32 0.2, %v8545_v2 }
 0x305   : > { %v8711_v30 = vmul.f32 0.2, %v8548_v47  ;;  %v8714_v52 = vmul.f32 0.2, %v8551_v4  ;;  %v8719_v8 = vmul.f32 0.2, %v8554_v50  ;;  %v4772_v50 = vmax.f32 %v9219_v14, %v8615_v48 }
 0x306   : > { %v8722_v18 = vmul.f32 0.2, %v8557_v7  ;;  %v8725_v45 = vmul.f32 0.2, %v8560_v44  ;;  %v8730_v47 = vmul.f32 0.2, %v8563_v32  ;;  %v4773_v7 = vmax.f32 %v8473_v54, %v8620_v37 }
 0x307   : > { %v8733_v4 = vmul.f32 0.2, %v8575_v62  ;;  %v4774_v44 = vmax.f32 %v8476_v33, %v8623_v61  ;;  %v9220_v56 = vld [vmem:[#allocation23_spill] sm:$0xff]  ;;  %v4776_v32 = vmax.f32 %v8482_v60, %v8631_v24  ;;  %v4777_v62 = vmax.f32 %v8485_v42, %v8634_v23  ;;  %v9222_v61 = vld [vmem:[#allocation64_spill] sm:$0xff]  ;;  %v9223_v23 = vld [vmem:[#allocation65_spill] sm:$0xff] }
 0x308   : > { %v4775_v21 = vmax.f32 %v9220_v56, %v8626_v3  ;;  %v9221_v5 = vld [vmem:[#allocation27_spill] sm:$0xff]  ;;  %v4779_v48 = vmax.f32 %v8491_v22, %v8642_v40  ;;  %v4780_v54 = vmax.f32 %v8494_v55, %v8645_v10  ;;  %v4781_v33 = vmax.f32 %v9222_v61, %v8648_v28  ;;  %v9224_v10 = vld [vmem:[#allocation32_spill] sm:$0xff]  ;;  %v9235_v3 = vld [vmem:[#allocation74_spill] sm:$0xff] }
 0x309   : > { %v4778_v9 = vmax.f32 %v9221_v5, %v8637_v43  ;;  %v4782_v37 = vmax.f32 %v8500_v49, %v8653_v31  ;;  %v4783_v24 = vmax.f32 %v8503_v36, %v8656_v11  ;;  %v4784_v60 = vmax.f32 %v9223_v23, %v8659_v58  ;;  %v9225_v11 = vld [vmem:[#allocation62_spill] sm:$0xff]  ;;  %v9239_v56 = vld [vmem:[#allocation75_spill] sm:$0xff] }
 0x30a   : > { %v4785_v42 = vmax.f32 %v8509_v63, %v8664_v17  ;;  %v4786_v40 = vmax.f32 %v8512_v29, %v8667_v34  ;;  %v4787_v22 = vmax.f32 %v9224_v10, %v8670_v25  ;;  %v4788_v55 = vmax.f32 %v8518_v13, %v8675_v27  ;;  %v9226_v17 = vld [vmem:[#allocation30_spill] sm:$0xff]  ;;  %v9228_v27 = vld [vmem:[#allocation67_spill] sm:$0xff] }
 0x30b   : > { %v4789_v31 = vmax.f32 %v8521_v39, %v8678_v41  ;;  %v4790_v49 = vmax.f32 %v9225_v11, %v8681_v51  ;;  %v4791_v36 = vmax.f32 %v8527_v57, %v8686_v46  ;;  %v4792_v63 = vmax.f32 %v9226_v17, %v8689_v59  ;;  %v9227_v34 = vld [vmem:[#allocation66_spill] sm:$0xff]  ;;  %v9229_v41 = vld [vmem:[#allocation68_spill] sm:$0xff]  ;;  %v9230_v46 = vld [vmem:[#allocation69_spill] sm:$0xff] }
 0x30c   : > { %v4793_v29 = vmax.f32 %v9227_v34, %v8692_v6  ;;  %v4794_v28 = vmax.f32 %v8536_v19, %v8697_v15  ;;  %v4795_v13 = vmax.f32 %v9228_v27, %v8700_v53  ;;  %v4796_v39 = vmax.f32 %v9229_v41, %v8703_v26  ;;  %v9231_v59 = vld [vmem:[#allocation70_spill] sm:$0xff]  ;;  %v9232_v51 = vld [vmem:[#allocation71_spill] sm:$0xff]  ;;  %v9233_v15 = vld [vmem:[#allocation72_spill] sm:$0xff] }
 0x30d   : > { %v4797_v58 = vmax.f32 %v8545_v2, %v8708_v12  ;;  %v4798_v57 = vmax.f32 %v9230_v46, %v8711_v30  ;;  %v4799_v25 = vmax.f32 %v9231_v59, %v8714_v52  ;;  %v4800_v6 = vmax.f32 %v9232_v51, %v8719_v8  ;;  %v9234_v53 = vld [vmem:[#allocation73_spill] sm:$0xff]  ;;  %v9236_v12 = vld [vmem:[#allocation78_spill] sm:$0xff]  ;;  %v9241_v61 = vld [vmem:[#allocation11_spill] sm:$0xff] }
 0x30e   : > { %v4801_v19 = vmax.f32 %v9233_v15, %v8722_v18  ;;  %v4802_v43 = vmax.f32 %v9234_v53, %v8725_v45  ;;  %v4803_v26 = vmax.f32 %v9235_v3, %v8730_v47  ;;  %v4804_v2 = vmax.f32 %v9236_v12, %v8733_v4  ;;  %v9237_v14 = vld [vmem:[#allocation10_spill] sm:$0xff]  ;;  %v9238_v30 = vld [vmem:[#allocation37_spill] sm:$0xff]  ;;  %v9242_v23 = vld [vmem:[#allocation39_spill] sm:$0xff] }
 0x30f   : > { %v9240_v5 = vmax.f32 %v9238_v30, %v9239_v56  ;;  %v9243_v8 = vld [vmem:[#allocation76_spill] sm:$0xff]  ;;  %v9245_v18 = vld [vmem:[#allocation13_spill] sm:$0xff]  ;;  %v9249_v41 = vld [vmem:[#allocation7_spill] sm:$0xff] }
 0x310   : > { %v9244_v10 = vmax.f32 %v9242_v23, %v9243_v8  ;;  %v9246_v17 = vld [vmem:[#allocation53_spill] sm:$0xff]  ;;  %v9250_v47 = vld [vmem:[#allocation54_spill] sm:$0xff]  ;;  %v9251_v46 = vld [vmem:[#allocation79_spill] sm:$0xff] }
 0x311   : > { %v4805_v52 = vmul.f32 %v9240_v5, %v9237_v14  ;;  %v9247_v34 = vld [vmem:[#allocation77_spill] sm:$0xff]  ;;  %v9252_v59 = vmax.f32 %v9250_v47, %v9251_v46  ;;  %v9255_v53 = vld [vmem:[#allocation80_spill] sm:$0xff]  ;;  %v9261_v23 = vld [vmem:[#allocation14_spill] sm:$0xff] }
 0x312   : > { %v4806_v11 = vmul.f32 %v9244_v10, %v9241_v61  ;;  %v9248_v45 = vmax.f32 %v9246_v17, %v9247_v34  ;;  %v9253_v51 = vld [vmem:[#allocation5_spill] sm:$0xff]  ;;  %v9257_v14 = vld [vmem:[#allocation16_spill] sm:$0xff]  ;;  %v9262_v8 = vld [vmem:[#allocation59_spill] sm:$0xff] }
 0x313   : > { %v4808_v4 = vmul.f32 %v9252_v59, %v9249_v41  ;;  %v9254_v15 = vld [vmem:[#allocation57_spill] sm:$0xff]  ;;  %v9258_v30 = vld [vmem:[#allocation60_spill] sm:$0xff]  ;;  %v9263_v10 = vld [vmem:[#allocation82_spill] sm:$0xff] }
 0x314   : > { %v4807_v27 = vmul.f32 %v9248_v45, %v9245_v18  ;;  %v9256_v3 = vmax.f32 %v9254_v15, %v9255_v53  ;;  %v9259_v56 = vld [vmem:[#allocation81_spill] sm:$0xff]  ;;  %v9264_v17 = vmax.f32 %v9262_v8, %v9263_v10  ;;  %v9267_v46 = vld [vmem:[#allocation83_spill] sm:$0xff]  ;;  %v9270_v53 = vld [vmem:[#allocation26_spill] sm:$0xff] }
 0x315   : > { %v9260_v5 = vmax.f32 %v9258_v30, %v9259_v56  ;;  %v9265_v34 = vld [vmem:[#allocation21_spill] sm:$0xff]  ;;  %v9269_v59 = vld [vmem:[#allocation19_spill] sm:$0xff] }
 0x316   : > { %v4809_v12 = vmul.f32 %v9256_v3, %v9253_v51  ;;  %v4811_v18 = vmul.f32 %v9264_v17, %v9261_v23  ;;  %v9266_v45 = vld [vmem:[#allocation61_spill] sm:$0xff]  ;;  %v4813_v15 = vmul.f32 %v4766_v1, %v9269_v59  ;;  %v4814_v51 = vmul.f32 %v4767_v0, %v9270_v53  ;;  %v9271_v3 = vld [vmem:[#allocation24_spill] sm:$0xff]  ;;  %v9272_v56 = vld [vmem:[#allocation31_spill] sm:$0xff] }
 0x317   : > { %v4810_v61 = vmul.f32 %v9260_v5, %v9257_v14  ;;  %v9268_v47 = vmax.f32 %v9266_v45, %v9267_v46  ;;  %v4815_v30 = vmul.f32 %v4768_v20, %v9271_v3  ;;  %v4816_v5 = vmul.f32 %v4769_v38, %v9272_v56  ;;  %v9273_v14 = vld [vmem:[#allocation29_spill] sm:$0xff]  ;;  %v9274_v10 = vld [vmem:[#allocation35_spill] sm:$0xff]  ;;  %v9276_v46 = vld [vmem:[#allocation38_spill] sm:$0xff] }
 0x318   : > { %v4817_v8 = vmul.f32 %v4770_v35, %v9273_v14  ;;  %v4818_v17 = vmul.f32 %v4771_v16, %v9274_v10  ;;  %v9275_v23 = vld [vmem:[#allocation33_spill] sm:$0xff]  ;;  %v9279_v53 = vld [vmem:[#allocation40_spill] sm:$0xff]  ;;  %v9280_v20 = vld [vmem:[#allocation43_spill] sm:$0xff] }
 0x319   : > { %v4812_v41 = vmul.f32 %v9268_v47, %v9265_v34  ;;  %v4819_v45 = vmul.f32 %v4772_v50, %v9275_v23  ;;  %v4820_v34 = vmul.f32 %v4773_v7, %v9276_v46  ;;  %v9277_v47 = vld [vmem:[#allocation36_spill] sm:$0xff]  ;;  %v9278_v59 = vld [vmem:[#allocation41_spill] sm:$0xff]  ;;  %v4823_v3 = vmul.f32 %v4776_v32, %v9279_v53  ;;  %v9281_v56 = vld [vmem:[#allocation42_spill] sm:$0xff] }
 0x31a   : > { %v4821_v1 = vmul.f32 %v4774_v44, %v9277_v47  ;;  %v4822_v0 = vmul.f32 %v4775_v21, %v9278_v59  ;;  %v4824_v38 = vmul.f32 %v4777_v62, %v9280_v20  ;;  %v4825_v14 = vmul.f32 %v4778_v9, %v9281_v56  ;;  %v9282_v35 = vld [vmem:[#allocation45_spill] sm:$0xff]  ;;  %v9283_v16 = vld [vmem:[#allocation44_spill] sm:$0xff]  ;;  %v9284_v50 = vld [vmem:[#allocation47_spill] sm:$0xff] }
 0x31b   : > { %v4826_v10 = vmul.f32 %v4779_v48, %v9282_v35  ;;  %v4827_v23 = vmul.f32 %v4780_v54, %v9283_v16  ;;  %v4828_v7 = vmul.f32 %v4781_v33, %v9284_v50  ;;  %v9285_v46 = vld [vmem:[#allocation46_spill] sm:$0xff]  ;;  %v9286_v47 = vld [vmem:[#allocation49_spill] sm:$0xff]  ;;  %v9287_v59 = vld [vmem:[#allocation48_spill] sm:$0xff] }
 0x31c   : > { %v4829_v44 = vmul.f32 %v4782_v37, %v9285_v46  ;;  %v4830_v21 = vmul.f32 %v4783_v24, %v9286_v47  ;;  %v4831_v32 = vmul.f32 %v4784_v60, %v9287_v59  ;;  %v9288_v53 = vld [vmem:[#allocation51_spill] sm:$0xff]  ;;  %v9289_v62 = vld [vmem:[#allocation50_spill] sm:$0xff]  ;;  %v9291_v48 = vld [vmem:[#allocation52_spill] sm:$0xff] }
 0x31d   : > { %v4832_v20 = vmul.f32 %v4785_v42, %v9288_v53  ;;  %v4833_v9 = vmul.f32 %v4786_v40, %v9289_v62  ;;  %v9290_v56 = vld [vmem:[#allocation55_spill] sm:$0xff]  ;;  %v4835_v16 = vmul.f32 %v4788_v55, %v9291_v48  ;;  %v9292_v54 = vld [vmem:[#allocation58_spill] sm:$0xff]  ;;  %v9293_v50 = vld [vmem:[#allocation56_spill] sm:$0xff] }
 0x31e   : > { %v4834_v35 = vmul.f32 %v4787_v22, %v9290_v56  ;;  %v4836_v33 = vmul.f32 %v4789_v31, %v9292_v54  ;;  %v4837_v37 = vmul.f32 %v4790_v49, %v9293_v50  ;;  %v9294_v46 = vld [vmem:[#allocation3_spill] sm:$0xff]  ;;  %v9295_v47 = vld [vmem:[#allocation12_spill] sm:$0xff]  ;;  %v9297_v53 = vld [vmem:[#allocation6_spill] sm:$0xff] }
 0x31f   : > { %v4838_v24 = vmul.f32 %v4791_v36, %v9294_v46  ;;  %v4839_v59 = vmul.f32 %v4792_v63, %v9295_v47  ;;  %v9296_v60 = vld [vmem:[#allocation8_spill] sm:$0xff]  ;;  %v4841_v40 = vmul.f32 %v4794_v28, %v9297_v53  ;;  %v9298_v62 = vld [vmem:[#allocation15_spill] sm:$0xff]  ;;  %v9299_v56 = vld [vmem:[#allocation9_spill] sm:$0xff] }
 0x320   : > { %v4840_v42 = vmul.f32 %v4793_v29, %v9296_v60  ;;  %v4842_v22 = vmul.f32 %v4795_v13, %v9298_v62  ;;  %v4843_v48 = vmul.f32 %v4796_v39, %v9299_v56  ;;  %v9300_v55 = vld [vmem:[#allocation18_spill] sm:$0xff]  ;;  %v9301_v49 = vld [vmem:[#allocation17_spill] sm:$0xff]  ;;  %v9303_v50 = vld [vmem:[#allocation20_spill] sm:$0xff]  ;;  %v5567_v62 = vpack.c.bf16 %v4806_v11, %v4805_v52 }
 0x321   : > { %v4844_v31 = vmul.f32 %v4797_v58, %v9300_v55  ;;  %v4845_v36 = vmul.f32 %v4798_v57, %v9301_v49  ;;  %v9302_v54 = vld [vmem:[#allocation22_spill] sm:$0xff]  ;;  %v4847_v29 = vmul.f32 %v4800_v6, %v9303_v50  ;;  %v9304_v28 = vld [vmem:[#allocation28_spill] sm:$0xff]  ;;  %v9305_v46 = vld [vmem:[#allocation25_spill] sm:$0xff]  ;;  %v5572_v56 = vpack.c.bf16 %v4808_v4, %v4807_v27 }
 0x322   : > { %v4846_v63 = vmul.f32 %v4799_v25, %v9302_v54  ;;  %v4848_v13 = vmul.f32 %v4801_v19, %v9304_v28  ;;  %v4849_v39 = vmul.f32 %v4802_v43, %v9305_v46  ;;  %v9306_v58 = vld [vmem:[#allocation63_spill] sm:$0xff]  ;;  %v9307_v60 = vld [vmem:[#allocation34_spill] sm:$0xff]  ;;  %v5577_v55 = vpack.c.bf16 %v4810_v61, %v4809_v12  ;;  %5568 = vst [vmem:[%s8871_s21] sm:$0xff] %v5567_v62  }
 0x323   : > { %v4850_v47 = vmul.f32 %v4803_v26, %v9306_v58  ;;  %v4851_v53 = vmul.f32 %v4804_v2, %v9307_v60  ;;  %v5582_v57 = vpack.c.bf16 %v4812_v41, %v4811_v18  ;;  %v5587_v25 = vpack.c.bf16 %v4814_v51, %v4813_v15  ;;  %5704 = vst [vmem:[%s8871_s21 + $0x8] sm:$0xff] %v5572_v56  }
 0x324   : > { %v5592_v49 = vpack.c.bf16 %v4816_v5, %v4815_v30  ;;  %v5597_v19 = vpack.c.bf16 %v4818_v17, %v4817_v8  ;;  %v5602_v54 = vpack.c.bf16 %v4820_v34, %v4819_v45  ;;  %5705 = vst [vmem:[%s8871_s21 + $0x10] sm:$0xff] %v5577_v55   ;;  %v5607_v43 = vpack.c.bf16 %v4822_v0, %v4821_v1 }
 0x325   : > { %v5459_v6 = vpack.c.bf16 %v4851_v53, %v4851_v53  ;;  %5706 = vst [vmem:[%s8871_s21 + $0x18] sm:$0xff] %v5582_v57   ;;  %5707 = vst [vmem:[%s8871_s21 + $0x20] sm:$0xff] %v5587_v25   ;;  %v5612_v26 = vpack.c.bf16 %v4824_v38, %v4823_v3  ;;  %v5617_v2 = vpack.c.bf16 %v4826_v10, %v4825_v14 }
 0x326   : > { %v5622_v52 = vpack.c.bf16 %v4828_v7, %v4827_v23  ;;  %5708 = vst [vmem:[%s8871_s21 + $0x28] sm:$0xff] %v5592_v49   ;;  %5709 = vst [vmem:[%s8871_s21 + $0x30] sm:$0xff] %v5597_v19   ;;  %v5627_v11 = vpack.c.bf16 %v4830_v21, %v4829_v44  ;;  %v5632_v27 = vpack.c.bf16 %v4832_v20, %v4831_v32 }
 0x327   : > { %5710 = vst [vmem:[%s8871_s21 + $0x38] sm:$0xff] %v5602_v54   ;;  %v5637_v4 = vpack.c.bf16 %v4834_v35, %v4833_v9  ;;  %v5642_v12 = vpack.c.bf16 %v4836_v33, %v4835_v16  ;;  %5087 = vst [vmem:[%s8871_s21 + $0xb8] sm:$0x3] %v5459_v6  ;;  %v5647_v61 = vpack.c.bf16 %v4838_v24, %v4837_v37 }
 0x328   : > { %5711 = vst [vmem:[%s8871_s21 + $0x40] sm:$0xff] %v5607_v43   ;;  %5712 = vst [vmem:[%s8871_s21 + $0x48] sm:$0xff] %v5612_v26   ;;  %v5652_v18 = vpack.c.bf16 %v4840_v42, %v4839_v59  ;;  %v5657_v41 = vpack.c.bf16 %v4842_v22, %v4841_v40  ;;  %v5662_v15 = vpack.c.bf16 %v4844_v31, %v4843_v48 }
 0x329   : > { %5713 = vst [vmem:[%s8871_s21 + $0x50] sm:$0xff] %v5617_v2   ;;  %5714 = vst [vmem:[%s8871_s21 + $0x58] sm:$0xff] %v5622_v52   ;;  %v5667_v51 = vpack.c.bf16 %v4846_v63, %v4845_v36  ;;  %v5672_v30 = vpack.c.bf16 %v4848_v13, %v4847_v29  ;;  %v5677_v5 = vpack.c.bf16 %v4850_v47, %v4849_v39 }
 0x32a   : > { %5715 = vst [vmem:[%s8871_s21 + $0x60] sm:$0xff] %v5627_v11   ;;  %5716 = vst [vmem:[%s8871_s21 + $0x68] sm:$0xff] %v5632_v27  }
 0x32b   : > { %5717 = vst [vmem:[%s8871_s21 + $0x70] sm:$0xff] %v5637_v4   ;;  %5718 = vst [vmem:[%s8871_s21 + $0x78] sm:$0xff] %v5642_v12  }
 0x32c   : > { %5719 = vst [vmem:[%s8871_s21 + $0x80] sm:$0xff] %v5647_v61   ;;  %5720 = vst [vmem:[%s8871_s21 + $0x88] sm:$0xff] %v5652_v18  }
 0x32d   : > { %5721 = vst [vmem:[%s8871_s21 + $0x90] sm:$0xff] %v5657_v41   ;;  %5722 = vst [vmem:[%s8871_s21 + $0x98] sm:$0xff] %v5662_v15  }
 0x32e   : > { %5723 = vst [vmem:[%s8871_s21 + $0xa0] sm:$0xff] %v5667_v51   ;;  %5724 = vst [vmem:[%s8871_s21 + $0xa8] sm:$0xff] %v5672_v30  }
 0x32f   : > { %5725 = vst [vmem:[%s8871_s21 + $0xb0] sm:$0xff] %v5677_v5  }
 0x330 PF: > { %s15_s18 = sadd.s32 1, %s6706_s18  }
 0x331   : > { %p12_p4 = scmp.ge.s32.totalorder %s15_s18, 4  }
 0x333   :  { %14 = sbr.rel (!%p12_p4) target bundleno = 1 (0x1), region = 81 }

</bundles_post_ra>
